<compile_context>
chip_gen: v6e
topology: v6e:2x2x1
jax: 0.10.0
libtpu: 0.0.40
codegen_flags: <defaults>
</compile_context>

<pallas_src>
import functools

import jax
import jax.numpy as jnp
from jax.experimental import pallas as pl
from jax.experimental.pallas import tpu as pltpu

D_MODEL = 768
NUM_HEADS = 8
HEAD_DIM = D_MODEL // NUM_HEADS      # 96
HEAD_DIM_PAD = 128                   # padded to a full 128-lane vreg
HP = NUM_HEADS * HEAD_DIM_PAD        # 1024


def _mha_meanpool_kernel(x_ref, bias_ref, wpool_ref, wqkv_ref, bqkv_ref,
                         wo_ref, bo_ref, out_ref, qkv_s, *, num_heads,
                         head_dim_pad):
    # x_ref:     [bt, T, D]    concatenated speech+text representations (bf16)
    # bias_ref:  [bt, 1, T]    additive score bias (float mask; -1e9 at align-pad keys)
    # wpool_ref: [bt, T, 1]    pooling weights (mask; 0 at align-pad queries)
    # wqkv_ref:  [D, 3*HP]     head-padded in_proj_weight^T (Q pre-scaled), bf16
    # bqkv_ref:  [1, 3*HP]     head-padded in_proj_bias (Q pre-scaled), f32
    # wo_ref:    [HP, D]       head-padded out_proj.weight^T, bf16
    # bo_ref:    [1, D]        out_proj.bias, f32
    # out_ref:   [bt, 1, D]    masked-mean-pooled attention output (f32)
    # qkv_s:     [bt, T, 3*HP] VMEM scratch: staged QKV projection, bf16
    bt, T, D = x_ref.shape
    hp = num_heads * head_dim_pad

    # 1) QKV projection over all bt*T rows at once (bf16 MXU, f32 accumulation).
    x = x_ref[...].reshape(bt * T, D)                                  # bf16
    qkv = (jnp.dot(x, wqkv_ref[...], preferred_element_type=jnp.float32)
           + bqkv_ref[...])                                            # [bt*T, 3*HP] f32
    qkv_s[...] = qkv.reshape(bt, T, 3 * hp).astype(jnp.bfloat16)

    # 2) Per-head attention, batched over the bt folded batch elements.
    bias_full = jnp.broadcast_to(bias_ref[...], (bt, T, T))   # hoisted (no CSE in-loop)
    wpool = wpool_ref[...]                                     # [bt, T, 1] f32
    pooled_heads = []
    for h in range(num_heads):
        c0 = h * head_dim_pad
        qh = qkv_s[:, :, c0:c0 + head_dim_pad]                         # [bt,T,128] bf16
        kh = qkv_s[:, :, hp + c0:hp + c0 + head_dim_pad]               # [bt,T,128] bf16
        vh = qkv_s[:, :, 2 * hp + c0:2 * hp + c0 + head_dim_pad]       # [bt,T,128] bf16

        s = jnp.einsum('bqd,bkd->bqk', qh, kh,
                       preferred_element_type=jnp.float32)             # [bt,T,T] f32
        s = s + bias_full                       # float mask ADDED (torch semantics)
        s = s - jnp.max(s, axis=-1, keepdims=True)
        p = jnp.exp(s)
        p = p * pl.reciprocal(jnp.sum(p, axis=-1, keepdims=True), approx=True)
        ctx = jnp.einsum('bqk,bkd->bqd', p.astype(jnp.bfloat16), vh,
                         preferred_element_type=jnp.float32)           # [bt,T,128] f32
        # masked sum over queries (pooling before out_proj; pooling is linear)
        pooled_heads.append(jnp.sum(ctx * wpool, axis=1))              # [bt,128] f32

    # 3) Mean-pooled context -> output projection on a (bt, HP) slab only.
    pooled = jnp.concatenate(pooled_heads, axis=-1)                    # [bt, HP] f32
    count = jnp.maximum(jnp.sum(wpool, axis=1), jnp.float32(1e-9))     # [bt, 1]
    mean_ctx = (pooled / count).astype(jnp.bfloat16)
    out = (jnp.dot(mean_ctx, wo_ref[...], preferred_element_type=jnp.float32)
           + bo_ref[...])                                              # [bt, D] f32
    out_ref[...] = out.reshape(bt, 1, D)


def multi_model_forward(speech_repr, speech_mask, text_repr, text_mask, params):
    """Pallas equivalent of Multi_Model.forward given the encoder outputs."""
    concat_repr = jnp.concatenate([speech_repr, text_repr], axis=1).astype(jnp.float32)
    concat_attn = jnp.concatenate([speech_mask, text_mask], axis=-1).astype(jnp.float32)
    B, T0, D = concat_repr.shape
    H, DH, DHP = NUM_HEADS, D // NUM_HEADS, HEAD_DIM_PAD
    hp = H * DHP
    scale = 1.0 / (DH ** 0.5)

    # ---- Weight prep: fold 1/sqrt(dh) into Q, per-head zero-pad 96 -> 128, bf16. ----
    W = params["in_proj_weight"]          # [3D, D] (torch layout: rows = output dims)
    b_in = params["in_proj_bias"]         # [3D]

    def pad_w(wx, s=1.0):                 # [D_out, D_in] -> [D_in, H*DHP]
        wt = (wx * s).T.reshape(D, H, DH)
        return jnp.pad(wt, ((0, 0), (0, 0), (0, DHP - DH))).reshape(D, hp)

    def pad_b(bx, s=1.0):                 # [D_out] -> [H*DHP]
        return jnp.pad((bx * s).reshape(H, DH), ((0, 0), (0, DHP - DH))).reshape(hp)

    wqkv = jnp.concatenate(
        [pad_w(W[0:D], scale), pad_w(W[D:2 * D]), pad_w(W[2 * D:3 * D])],
        axis=1).astype(jnp.bfloat16)                                   # [D, 3*HP]
    bqkv = jnp.concatenate(
        [pad_b(b_in[0:D], scale), pad_b(b_in[D:2 * D]), pad_b(b_in[2 * D:3 * D])]
    )[None, :].astype(jnp.float32)                                     # [1, 3*HP]
    wo = jnp.pad(params["out_proj_weight"].T.reshape(H, DH, D),
                 ((0, 0), (0, DHP - DH), (0, 0))
                 ).reshape(hp, D).astype(jnp.bfloat16)                 # [HP, D]
    bo = params["out_proj_bias"][None, :].astype(jnp.float32)          # [1, D]

    # ---- Pad T to a multiple of 16 so in-kernel reshapes / bf16 scratch slices stay
    #      sublane-tile aligned. Alignment-pad keys get -1e9 score bias (excluded
    #      from softmax, unlike real padded keys which keep torch's +0 semantics);
    #      alignment-pad queries get pooling weight 0. ----
    T = pl.cdiv(T0, 16) * 16
    x = jnp.pad(concat_repr, ((0, 0), (0, T - T0), (0, 0))).astype(jnp.bfloat16)
    score_bias = jnp.pad(concat_attn, ((0, 0), (0, T - T0)), constant_values=-1e9)
    wpool = jnp.pad(concat_attn, ((0, 0), (0, T - T0)))

    # ---- Batch folding: target ~256 MXU rows for the QKV matmul (fills the v6e/v7x
    #      256x256 MXU) but keep >= 2 grid steps so v7x's 2 TensorCores both work. ----
    bt = max(1, min(B, pl.cdiv(256, T), pl.cdiv(B, 2)))
    B_pad = pl.cdiv(B, bt) * bt
    pb = B_pad - B
    if pb:
        x = jnp.pad(x, ((0, pb), (0, 0), (0, 0)))
        score_bias = jnp.pad(score_bias, ((0, pb), (0, 0)))
        wpool = jnp.pad(wpool, ((0, pb), (0, 0)))
    score_bias3 = score_bias[:, None, :]          # [B_pad, 1, T]
    wpool3 = wpool[:, :, None]                    # [B_pad, T, 1]

    kernel = functools.partial(_mha_meanpool_kernel, num_heads=H, head_dim_pad=DHP)
    pooled = pl.pallas_call(
        kernel,
        out_shape=jax.ShapeDtypeStruct((B_pad, 1, D), jnp.float32),
        grid_spec=pltpu.PrefetchScalarGridSpec(
            num_scalar_prefetch=0,
            grid=(B_pad // bt,),
            in_specs=[
                pl.BlockSpec((bt, T, D), lambda i: (i, 0, 0)),     # activations (bf16)
                pl.BlockSpec((bt, 1, T), lambda i: (i, 0, 0)),     # additive score bias
                pl.BlockSpec((bt, T, 1), lambda i: (i, 0, 0)),     # pooling weights
                # Weights / biases: grid-invariant index_map -> fetched once.
                # (pipeline_mode=pl.Buffered(1) would drop the dead second buffer,
                #  but the bf16 weights are only ~6 MiB so headroom is not needed.)
                pl.BlockSpec((D, 3 * hp), lambda i: (0, 0)),       # in_proj W^T (padded)
                pl.BlockSpec((1, 3 * hp), lambda i: (0, 0)),       # in_proj bias
                pl.BlockSpec((hp, D), lambda i: (0, 0)),           # out_proj W^T (padded)
                pl.BlockSpec((1, D), lambda i: (0, 0)),            # out_proj bias
            ],
            out_specs=pl.BlockSpec((bt, 1, D), lambda i: (i, 0, 0)),
            scratch_shapes=[
                pltpu.VMEM((bt, T, 3 * hp), jnp.bfloat16),         # staged QKV (bf16)
            ],
        ),
        compiler_params=pltpu.CompilerParams(
            dimension_semantics=("parallel",),       # batch steps are independent
            vmem_limit_bytes=32 * 1024 * 1024,       # safe on v5e/v6e/v7x (64 MiB phys)
        ),
    )(x, score_bias3, wpool3, wqkv, bqkv, wo, bo)

    # TODO(synk): for very long sequences (T >~ 512) switch the per-head attention
    #             to a key-tiled online-softmax (flash-style) inner loop.
    logits = pooled[:B, 0, :]             # [B, D] ("logits" in Multi_Model.forward)
    return logits, concat_attn


def _reference_forward(concat_repr, concat_attn, params):
    """Pure-JAX reference matching torch.nn.MultiheadAttention (eval) + mean_pool."""
    W = params["in_proj_weight"]      # [3D, D]
    b = params["in_proj_bias"]        # [3D]
    Wo = params["out_proj_weight"]    # [D, D]
    bo = params["out_proj_bias"]      # [D]
    B, T, D = concat_repr.shape
    H, dh = NUM_HEADS, D // NUM_HEADS

    qkv = jnp.einsum("btd,ed->bte", concat_repr, W, precision="highest") + b
    q, k, v = qkv[..., :D], qkv[..., D:2 * D], qkv[..., 2 * D:]
    q = q.reshape(B, T, H, dh).transpose(0, 2, 1, 3) / jnp.sqrt(jnp.float32(dh))
    k = k.reshape(B, T, H, dh).transpose(0, 2, 1, 3)
    v = v.reshape(B, T, H, dh).transpose(0, 2, 1, 3)
    s = jnp.einsum("bhqd,bhkd->bhqk", q, k, precision="highest")
    s = s + concat_attn[:, None, None, :]   # float key_padding_mask is added
    p = jax.nn.softmax(s, axis=-1)
    ctx = jnp.einsum("bhqk,bhkd->bhqd", p, v, precision="highest")
    ctx = ctx.transpose(0, 2, 1, 3).reshape(B, T, D)
    out = jnp.einsum("btd,ed->bte", ctx, Wo, precision="highest") + bo
    emb_sum = jnp.einsum("btd,bt->bd", out, concat_attn)
    count = jnp.clip(jnp.sum(concat_attn, axis=-1, keepdims=True), 1e-9, None)
    return emb_sum / count


def _init_params(key):
    k1, k2, k3 = jax.random.split(key, 3)
    return {
        "in_proj_weight": 0.05 * jax.random.normal(k1, (3 * D_MODEL, D_MODEL), jnp.float32),
        "in_proj_bias": 0.01 * jax.random.normal(k2, (3 * D_MODEL,), jnp.float32),
        "out_proj_weight": 0.05 * jax.random.normal(k3, (D_MODEL, D_MODEL), jnp.float32),
        "out_proj_bias": jnp.zeros((D_MODEL,), jnp.float32),
        # dlinear (768->7) / clinear (768->2) are only used in the loss helpers,
        # not in forward(), so they are not materialized here.
    }


if __name__ == "__main__":
    key = jax.random.PRNGKey(0)
    kp, ks, kt = jax.random.split(key, 3)

    B, Ts, Tt = 2, 8, 8
    params = _init_params(kp)

    # Synthetic encoder outputs (the speecht5/textt5 encoders are external).
    speech_repr = jax.random.normal(ks, (B, Ts, D_MODEL), jnp.float32)
    text_repr = jax.random.normal(kt, (B, Tt, D_MODEL), jnp.float32)
    speech_mask = jnp.array([[1, 1, 1, 1, 1, 1, 1, 1],
                             [1, 1, 1, 1, 1, 1, 0, 0]], jnp.float32)
    text_mask = jnp.array([[1, 1, 1, 1, 1, 0, 0, 0],
                           [1, 1, 1, 1, 1, 1, 1, 1]], jnp.float32)

    logits, concat_attn = multi_model_forward(
        speech_repr, speech_mask, text_repr, text_mask, params)
    logits = jax.block_until_ready(logits)

    # Correctness check against a pure-JAX reference (loose tol: bf16 MXU inputs).
    concat_repr = jnp.concatenate([speech_repr, text_repr], axis=1)
    ref = _reference_forward(concat_repr, concat_attn, params)
    assert logits.shape == (B, D_MODEL)
    assert jnp.allclose(logits, ref, rtol=5e-2, atol=5e-2), "kernel/reference mismatch"

    print("KERNEL_OK")
</pallas_src>

<mosaic_0001>
module attributes {stable_mosaic.version = 11 : i64} {
  func.func @_mha_meanpool_kernel(%arg0: i32, %arg1: memref<1x16x768xbf16, #tpu.memory_space<vmem>>, %arg2: memref<1x1x16xf32, #tpu.memory_space<vmem>>, %arg3: memref<1x16x1xf32, #tpu.memory_space<vmem>>, %arg4: memref<768x3072xbf16, #tpu.memory_space<vmem>>, %arg5: memref<1x3072xf32, #tpu.memory_space<vmem>>, %arg6: memref<1024x768xbf16, #tpu.memory_space<vmem>>, %arg7: memref<1x768xf32, #tpu.memory_space<vmem>>, %arg8: memref<1x1x768xf32, #tpu.memory_space<vmem>>, %arg9: memref<1x16x3072xbf16, #tpu.memory_space<vmem>>) attributes {dimension_semantics = [#tpu.dimension_semantics<parallel>], iteration_bounds = array<i64: 2>, scalar_prefetch = 0 : i64, scratch_operands = 1 : i64, tpu.core_type = #tpu.core_type<tc>, window_params = [{transform_indices = @transform_0, window_bounds = array<i64: 1, 16, 768>}, {transform_indices = @transform_1, window_bounds = array<i64: 1, 1, 16>}, {transform_indices = @transform_2, window_bounds = array<i64: 1, 16, 1>}, {pipeline_mode = #tpu.pipeline_mode<synchronous>, transform_indices = @transform_3, window_bounds = array<i64: 768, 3072>}, {pipeline_mode = #tpu.pipeline_mode<synchronous>, transform_indices = @transform_4, window_bounds = array<i64: 1, 3072>}, {pipeline_mode = #tpu.pipeline_mode<synchronous>, transform_indices = @transform_5, window_bounds = array<i64: 1024, 768>}, {pipeline_mode = #tpu.pipeline_mode<synchronous>, transform_indices = @transform_6, window_bounds = array<i64: 1, 768>}, {transform_indices = @transform_7, window_bounds = array<i64: 1, 1, 768>}]} {
    %c0 = arith.constant 0 : index
    %c0_0 = arith.constant 0 : index
    %c0_1 = arith.constant 0 : index
    %0 = vector.load %arg1[%c0, %c0_0, %c0_1] : memref<1x16x768xbf16, #tpu.memory_space<vmem>>, vector<1x16x768xbf16>
    %1 = vector.shape_cast %0 : vector<1x16x768xbf16> to vector<16x768xbf16>
    %c0_2 = arith.constant 0 : index
    %c0_3 = arith.constant 0 : index
    %2 = vector.load %arg4[%c0_2, %c0_3] : memref<768x3072xbf16, #tpu.memory_space<vmem>>, vector<768x3072xbf16>
    %cst = arith.constant dense<0.000000e+00> : vector<16x3072xf32>
    %3 = tpu.matmul %1, %2, %cst {dimension_numbers = #tpu.dot_dimension_numbers<[1], [0], [0], [1], [0, 0, 1, 1], [], []>} : vector<16x768xbf16>, vector<768x3072xbf16>, vector<16x3072xf32> -> vector<16x3072xf32>
    %c0_4 = arith.constant 0 : index
    %c0_5 = arith.constant 0 : index
    %4 = vector.load %arg5[%c0_4, %c0_5] : memref<1x3072xf32, #tpu.memory_space<vmem>>, vector<1x3072xf32>
    %5 = vector.broadcast %4 : vector<1x3072xf32> to vector<16x3072xf32>
    %6 = arith.addf %3, %5 : vector<16x3072xf32>
    %7 = vector.shape_cast %6 : vector<16x3072xf32> to vector<1x16x3072xf32>
    %8 = arith.truncf %7 : vector<1x16x3072xf32> to vector<1x16x3072xbf16>
    %c0_6 = arith.constant 0 : index
    %c0_7 = arith.constant 0 : index
    %c0_8 = arith.constant 0 : index
    %9 = vector.load %arg9[%c0_6, %c0_7, %c0_8] : memref<1x16x3072xbf16, #tpu.memory_space<vmem>>, vector<1x16x3072xbf16>
    tpu.vector_store %arg9[%c0_6, %c0_7, %c0_8], %8 {strides = array<i32>} : memref<1x16x3072xbf16, #tpu.memory_space<vmem>>, vector<1x16x3072xbf16>,
    %c0_9 = arith.constant 0 : index
    %c0_10 = arith.constant 0 : index
    %c0_11 = arith.constant 0 : index
    %10 = vector.load %arg2[%c0_9, %c0_10, %c0_11] : memref<1x1x16xf32, #tpu.memory_space<vmem>>, vector<1x1x16xf32>
    %11 = vector.shape_cast %10 : vector<1x1x16xf32> to vector<1x1x16xf32>
    %12 = vector.broadcast %11 : vector<1x1x16xf32> to vector<1x16x16xf32>
    %c0_12 = arith.constant 0 : index
    %c0_13 = arith.constant 0 : index
    %c0_14 = arith.constant 0 : index
    %13 = vector.load %arg3[%c0_12, %c0_13, %c0_14] : memref<1x16x1xf32, #tpu.memory_space<vmem>>, vector<1x16x1xf32>
    %c0_15 = arith.constant 0 : index
    %c0_16 = arith.constant 0 : index
    %c0_17 = arith.constant 0 : index
    %14 = vector.load %arg9[%c0_15, %c0_16, %c0_17] : memref<1x16x3072xbf16, #tpu.memory_space<vmem>>, vector<1x16x128xbf16>
    %c0_18 = arith.constant 0 : index
    %c0_19 = arith.constant 0 : index
    %c1024 = arith.constant 1024 : index
    %15 = vector.load %arg9[%c0_18, %c0_19, %c1024] : memref<1x16x3072xbf16, #tpu.memory_space<vmem>>, vector<1x16x128xbf16>
    %c0_20 = arith.constant 0 : index
    %c0_21 = arith.constant 0 : index
    %c2048 = arith.constant 2048 : index
    %16 = vector.load %arg9[%c0_20, %c0_21, %c2048] : memref<1x16x3072xbf16, #tpu.memory_space<vmem>>, vector<1x16x128xbf16>
    "tpu.trace_start"() <{level = 10 : i32, message = "bqd,bkd->bqk"}> : () -> ()
    %cst_22 = arith.constant dense<0.000000e+00> : vector<1x16x16xf32>
    %17 = tpu.matmul %14, %15, %cst_22 {dimension_numbers = #tpu.dot_dimension_numbers<[2], [2], [1], [1], [0, 0, 0, 1, 1, 1], [0], [0]>} : vector<1x16x128xbf16>, vector<1x16x128xbf16>, vector<1x16x16xf32> -> vector<1x16x16xf32>
    "tpu.trace_stop"() : () -> ()
    %18 = arith.addf %17, %12 : vector<1x16x16xf32>
    %cst_23 = arith.constant dense<0xFF800000> : vector<1x16xf32>
    %19 = vector.multi_reduction <maximumf>, %18, %cst_23 [2] : vector<1x16x16xf32> to vector<1x16xf32>
    %20 = vector.shape_cast %19 : vector<1x16xf32> to vector<1x16x1xf32>
    %21 = vector.broadcast %20 : vector<1x16x1xf32> to vector<1x16x16xf32>
    %22 = arith.subf %18, %21 : vector<1x16x16xf32>
    %23 = math.exp %22 : vector<1x16x16xf32>
    %cst_24 = arith.constant dense<0.000000e+00> : vector<1x16xf32>
    %24 = vector.multi_reduction <add>, %23, %cst_24 [2] : vector<1x16x16xf32> to vector<1x16xf32>
    %25 = vector.shape_cast %24 : vector<1x16xf32> to vector<1x16x1xf32>
    %26 = tpu.reciprocal %25 {approx = true} : vector<1x16x1xf32> -> vector<1x16x1xf32>
    %27 = vector.broadcast %26 : vector<1x16x1xf32> to vector<1x16x16xf32>
    %28 = arith.mulf %23, %27 : vector<1x16x16xf32>
    %29 = arith.truncf %28 : vector<1x16x16xf32> to vector<1x16x16xbf16>
    "tpu.trace_start"() <{level = 10 : i32, message = "bqk,bkd->bqd"}> : () -> ()
    %cst_25 = arith.constant dense<0.000000e+00> : vector<1x16x128xf32>
    %30 = tpu.matmul %29, %16, %cst_25 {dimension_numbers = #tpu.dot_dimension_numbers<[2], [1], [1], [2], [0, 0, 0, 1, 1, 2], [0], [0]>} : vector<1x16x16xbf16>, vector<1x16x128xbf16>, vector<1x16x128xf32> -> vector<1x16x128xf32>
    "tpu.trace_stop"() : () -> ()
    %31 = vector.broadcast %13 : vector<1x16x1xf32> to vector<1x16x128xf32>
    %32 = arith.mulf %30, %31 : vector<1x16x128xf32>
    %cst_26 = arith.constant dense<0.000000e+00> : vector<1x128xf32>
    %33 = vector.multi_reduction <add>, %32, %cst_26 [1] : vector<1x16x128xf32> to vector<1x128xf32>
    %c0_27 = arith.constant 0 : index
    %c0_28 = arith.constant 0 : index
    %c128 = arith.constant 128 : index
    %34 = vector.load %arg9[%c0_27, %c0_28, %c128] : memref<1x16x3072xbf16, #tpu.memory_space<vmem>>, vector<1x16x128xbf16>
    %c0_29 = arith.constant 0 : index
    %c0_30 = arith.constant 0 : index
    %c1152 = arith.constant 1152 : index
    %35 = vector.load %arg9[%c0_29, %c0_30, %c1152] : memref<1x16x3072xbf16, #tpu.memory_space<vmem>>, vector<1x16x128xbf16>
    %c0_31 = arith.constant 0 : index
    %c0_32 = arith.constant 0 : index
    %c2176 = arith.constant 2176 : index
    %36 = vector.load %arg9[%c0_31, %c0_32, %c2176] : memref<1x16x3072xbf16, #tpu.memory_space<vmem>>, vector<1x16x128xbf16>
    "tpu.trace_start"() <{level = 10 : i32, message = "bqd,bkd->bqk"}> : () -> ()
    %cst_33 = arith.constant dense<0.000000e+00> : vector<1x16x16xf32>
    %37 = tpu.matmul %34, %35, %cst_33 {dimension_numbers = #tpu.dot_dimension_numbers<[2], [2], [1], [1], [0, 0, 0, 1, 1, 1], [0], [0]>} : vector<1x16x128xbf16>, vector<1x16x128xbf16>, vector<1x16x16xf32> -> vector<1x16x16xf32>
    "tpu.trace_stop"() : () -> ()
    %38 = arith.addf %37, %12 : vector<1x16x16xf32>
    %cst_34 = arith.constant dense<0xFF800000> : vector<1x16xf32>
    %39 = vector.multi_reduction <maximumf>, %38, %cst_34 [2] : vector<1x16x16xf32> to vector<1x16xf32>
    %40 = vector.shape_cast %39 : vector<1x16xf32> to vector<1x16x1xf32>
    %41 = vector.broadcast %40 : vector<1x16x1xf32> to vector<1x16x16xf32>
    %42 = arith.subf %38, %41 : vector<1x16x16xf32>
    %43 = math.exp %42 : vector<1x16x16xf32>
    %cst_35 = arith.constant dense<0.000000e+00> : vector<1x16xf32>
    %44 = vector.multi_reduction <add>, %43, %cst_35 [2] : vector<1x16x16xf32> to vector<1x16xf32>
    %45 = vector.shape_cast %44 : vector<1x16xf32> to vector<1x16x1xf32>
    %46 = tpu.reciprocal %45 {approx = true} : vector<1x16x1xf32> -> vector<1x16x1xf32>
    %47 = vector.broadcast %46 : vector<1x16x1xf32> to vector<1x16x16xf32>
    %48 = arith.mulf %43, %47 : vector<1x16x16xf32>
    %49 = arith.truncf %48 : vector<1x16x16xf32> to vector<1x16x16xbf16>
    "tpu.trace_start"() <{level = 10 : i32, message = "bqk,bkd->bqd"}> : () -> ()
    %cst_36 = arith.constant dense<0.000000e+00> : vector<1x16x128xf32>
    %50 = tpu.matmul %49, %36, %cst_36 {dimension_numbers = #tpu.dot_dimension_numbers<[2], [1], [1], [2], [0, 0, 0, 1, 1, 2], [0], [0]>} : vector<1x16x16xbf16>, vector<1x16x128xbf16>, vector<1x16x128xf32> -> vector<1x16x128xf32>
    "tpu.trace_stop"() : () -> ()
    %51 = vector.broadcast %13 : vector<1x16x1xf32> to vector<1x16x128xf32>
    %52 = arith.mulf %50, %51 : vector<1x16x128xf32>
    %cst_37 = arith.constant dense<0.000000e+00> : vector<1x128xf32>
    %53 = vector.multi_reduction <add>, %52, %cst_37 [1] : vector<1x16x128xf32> to vector<1x128xf32>
    %c0_38 = arith.constant 0 : index
    %c0_39 = arith.constant 0 : index
    %c256 = arith.constant 256 : index
    %54 = vector.load %arg9[%c0_38, %c0_39, %c256] : memref<1x16x3072xbf16, #tpu.memory_space<vmem>>, vector<1x16x128xbf16>
    %c0_40 = arith.constant 0 : index
    %c0_41 = arith.constant 0 : index
    %c1280 = arith.constant 1280 : index
    %55 = vector.load %arg9[%c0_40, %c0_41, %c1280] : memref<1x16x3072xbf16, #tpu.memory_space<vmem>>, vector<1x16x128xbf16>
    %c0_42 = arith.constant 0 : index
    %c0_43 = arith.constant 0 : index
    %c2304 = arith.constant 2304 : index
    %56 = vector.load %arg9[%c0_42, %c0_43, %c2304] : memref<1x16x3072xbf16, #tpu.memory_space<vmem>>, vector<1x16x128xbf16>
    "tpu.trace_start"() <{level = 10 : i32, message = "bqd,bkd->bqk"}> : () -> ()
    %cst_44 = arith.constant dense<0.000000e+00> : vector<1x16x16xf32>
    %57 = tpu.matmul %54, %55, %cst_44 {dimension_numbers = #tpu.dot_dimension_numbers<[2], [2], [1], [1], [0, 0, 0, 1, 1, 1], [0], [0]>} : vector<1x16x128xbf16>, vector<1x16x128xbf16>, vector<1x16x16xf32> -> vector<1x16x16xf32>
    "tpu.trace_stop"() : () -> ()
    %58 = arith.addf %57, %12 : vector<1x16x16xf32>
    %cst_45 = arith.constant dense<0xFF800000> : vector<1x16xf32>
    %59 = vector.multi_reduction <maximumf>, %58, %cst_45 [2] : vector<1x16x16xf32> to vector<1x16xf32>
    %60 = vector.shape_cast %59 : vector<1x16xf32> to vector<1x16x1xf32>
    %61 = vector.broadcast %60 : vector<1x16x1xf32> to vector<1x16x16xf32>
    %62 = arith.subf %58, %61 : vector<1x16x16xf32>
    %63 = math.exp %62 : vector<1x16x16xf32>
    %cst_46 = arith.constant dense<0.000000e+00> : vector<1x16xf32>
    %64 = vector.multi_reduction <add>, %63, %cst_46 [2] : vector<1x16x16xf32> to vector<1x16xf32>
    %65 = vector.shape_cast %64 : vector<1x16xf32> to vector<1x16x1xf32>
    %66 = tpu.reciprocal %65 {approx = true} : vector<1x16x1xf32> -> vector<1x16x1xf32>
    %67 = vector.broadcast %66 : vector<1x16x1xf32> to vector<1x16x16xf32>
    %68 = arith.mulf %63, %67 : vector<1x16x16xf32>
    %69 = arith.truncf %68 : vector<1x16x16xf32> to vector<1x16x16xbf16>
    "tpu.trace_start"() <{level = 10 : i32, message = "bqk,bkd->bqd"}> : () -> ()
    %cst_47 = arith.constant dense<0.000000e+00> : vector<1x16x128xf32>
    %70 = tpu.matmul %69, %56, %cst_47 {dimension_numbers = #tpu.dot_dimension_numbers<[2], [1], [1], [2], [0, 0, 0, 1, 1, 2], [0], [0]>} : vector<1x16x16xbf16>, vector<1x16x128xbf16>, vector<1x16x128xf32> -> vector<1x16x128xf32>
    "tpu.trace_stop"() : () -> ()
    %71 = vector.broadcast %13 : vector<1x16x1xf32> to vector<1x16x128xf32>
    %72 = arith.mulf %70, %71 : vector<1x16x128xf32>
    %cst_48 = arith.constant dense<0.000000e+00> : vector<1x128xf32>
    %73 = vector.multi_reduction <add>, %72, %cst_48 [1] : vector<1x16x128xf32> to vector<1x128xf32>
    %c0_49 = arith.constant 0 : index
    %c0_50 = arith.constant 0 : index
    %c384 = arith.constant 384 : index
    %74 = vector.load %arg9[%c0_49, %c0_50, %c384] : memref<1x16x3072xbf16, #tpu.memory_space<vmem>>, vector<1x16x128xbf16>
    %c0_51 = arith.constant 0 : index
    %c0_52 = arith.constant 0 : index
    %c1408 = arith.constant 1408 : index
    %75 = vector.load %arg9[%c0_51, %c0_52, %c1408] : memref<1x16x3072xbf16, #tpu.memory_space<vmem>>, vector<1x16x128xbf16>
    %c0_53 = arith.constant 0 : index
    %c0_54 = arith.constant 0 : index
    %c2432 = arith.constant 2432 : index
    %76 = vector.load %arg9[%c0_53, %c0_54, %c2432] : memref<1x16x3072xbf16, #tpu.memory_space<vmem>>, vector<1x16x128xbf16>
    "tpu.trace_start"() <{level = 10 : i32, message = "bqd,bkd->bqk"}> : () -> ()
    %cst_55 = arith.constant dense<0.000000e+00> : vector<1x16x16xf32>
    %77 = tpu.matmul %74, %75, %cst_55 {dimension_numbers = #tpu.dot_dimension_numbers<[2], [2], [1], [1], [0, 0, 0, 1, 1, 1], [0], [0]>} : vector<1x16x128xbf16>, vector<1x16x128xbf16>, vector<1x16x16xf32> -> vector<1x16x16xf32>
    "tpu.trace_stop"() : () -> ()
    %78 = arith.addf %77, %12 : vector<1x16x16xf32>
    %cst_56 = arith.constant dense<0xFF800000> : vector<1x16xf32>
    %79 = vector.multi_reduction <maximumf>, %78, %cst_56 [2] : vector<1x16x16xf32> to vector<1x16xf32>
    %80 = vector.shape_cast %79 : vector<1x16xf32> to vector<1x16x1xf32>
    %81 = vector.broadcast %80 : vector<1x16x1xf32> to vector<1x16x16xf32>
    %82 = arith.subf %78, %81 : vector<1x16x16xf32>
    %83 = math.exp %82 : vector<1x16x16xf32>
    %cst_57 = arith.constant dense<0.000000e+00> : vector<1x16xf32>
    %84 = vector.multi_reduction <add>, %83, %cst_57 [2] : vector<1x16x16xf32> to vector<1x16xf32>
    %85 = vector.shape_cast %84 : vector<1x16xf32> to vector<1x16x1xf32>
    %86 = tpu.reciprocal %85 {approx = true} : vector<1x16x1xf32> -> vector<1x16x1xf32>
    %87 = vector.broadcast %86 : vector<1x16x1xf32> to vector<1x16x16xf32>
    %88 = arith.mulf %83, %87 : vector<1x16x16xf32>
    %89 = arith.truncf %88 : vector<1x16x16xf32> to vector<1x16x16xbf16>
    "tpu.trace_start"() <{level = 10 : i32, message = "bqk,bkd->bqd"}> : () -> ()
    %cst_58 = arith.constant dense<0.000000e+00> : vector<1x16x128xf32>
    %90 = tpu.matmul %89, %76, %cst_58 {dimension_numbers = #tpu.dot_dimension_numbers<[2], [1], [1], [2], [0, 0, 0, 1, 1, 2], [0], [0]>} : vector<1x16x16xbf16>, vector<1x16x128xbf16>, vector<1x16x128xf32> -> vector<1x16x128xf32>
    "tpu.trace_stop"() : () -> ()
    %91 = vector.broadcast %13 : vector<1x16x1xf32> to vector<1x16x128xf32>
    %92 = arith.mulf %90, %91 : vector<1x16x128xf32>
    %cst_59 = arith.constant dense<0.000000e+00> : vector<1x128xf32>
    %93 = vector.multi_reduction <add>, %92, %cst_59 [1] : vector<1x16x128xf32> to vector<1x128xf32>
    %c0_60 = arith.constant 0 : index
    %c0_61 = arith.constant 0 : index
    %c512 = arith.constant 512 : index
    %94 = vector.load %arg9[%c0_60, %c0_61, %c512] : memref<1x16x3072xbf16, #tpu.memory_space<vmem>>, vector<1x16x128xbf16>
    %c0_62 = arith.constant 0 : index
    %c0_63 = arith.constant 0 : index
    %c1536 = arith.constant 1536 : index
    %95 = vector.load %arg9[%c0_62, %c0_63, %c1536] : memref<1x16x3072xbf16, #tpu.memory_space<vmem>>, vector<1x16x128xbf16>
    %c0_64 = arith.constant 0 : index
    %c0_65 = arith.constant 0 : index
    %c2560 = arith.constant 2560 : index
    %96 = vector.load %arg9[%c0_64, %c0_65, %c2560] : memref<1x16x3072xbf16, #tpu.memory_space<vmem>>, vector<1x16x128xbf16>
    "tpu.trace_start"() <{level = 10 : i32, message = "bqd,bkd->bqk"}> : () -> ()
    %cst_66 = arith.constant dense<0.000000e+00> : vector<1x16x16xf32>
    %97 = tpu.matmul %94, %95, %cst_66 {dimension_numbers = #tpu.dot_dimension_numbers<[2], [2], [1], [1], [0, 0, 0, 1, 1, 1], [0], [0]>} : vector<1x16x128xbf16>, vector<1x16x128xbf16>, vector<1x16x16xf32> -> vector<1x16x16xf32>
    "tpu.trace_stop"() : () -> ()
    %98 = arith.addf %97, %12 : vector<1x16x16xf32>
    %cst_67 = arith.constant dense<0xFF800000> : vector<1x16xf32>
    %99 = vector.multi_reduction <maximumf>, %98, %cst_67 [2] : vector<1x16x16xf32> to vector<1x16xf32>
    %100 = vector.shape_cast %99 : vector<1x16xf32> to vector<1x16x1xf32>
    %101 = vector.broadcast %100 : vector<1x16x1xf32> to vector<1x16x16xf32>
    %102 = arith.subf %98, %101 : vector<1x16x16xf32>
    %103 = math.exp %102 : vector<1x16x16xf32>
    %cst_68 = arith.constant dense<0.000000e+00> : vector<1x16xf32>
    %104 = vector.multi_reduction <add>, %103, %cst_68 [2] : vector<1x16x16xf32> to vector<1x16xf32>
    %105 = vector.shape_cast %104 : vector<1x16xf32> to vector<1x16x1xf32>
    %106 = tpu.reciprocal %105 {approx = true} : vector<1x16x1xf32> -> vector<1x16x1xf32>
    %107 = vector.broadcast %106 : vector<1x16x1xf32> to vector<1x16x16xf32>
    %108 = arith.mulf %103, %107 : vector<1x16x16xf32>
    %109 = arith.truncf %108 : vector<1x16x16xf32> to vector<1x16x16xbf16>
    "tpu.trace_start"() <{level = 10 : i32, message = "bqk,bkd->bqd"}> : () -> ()
    %cst_69 = arith.constant dense<0.000000e+00> : vector<1x16x128xf32>
    %110 = tpu.matmul %109, %96, %cst_69 {dimension_numbers = #tpu.dot_dimension_numbers<[2], [1], [1], [2], [0, 0, 0, 1, 1, 2], [0], [0]>} : vector<1x16x16xbf16>, vector<1x16x128xbf16>, vector<1x16x128xf32> -> vector<1x16x128xf32>
    "tpu.trace_stop"() : () -> ()
    %111 = vector.broadcast %13 : vector<1x16x1xf32> to vector<1x16x128xf32>
    %112 = arith.mulf %110, %111 : vector<1x16x128xf32>
    %cst_70 = arith.constant dense<0.000000e+00> : vector<1x128xf32>
    %113 = vector.multi_reduction <add>, %112, %cst_70 [1] : vector<1x16x128xf32> to vector<1x128xf32>
    %c0_71 = arith.constant 0 : index
    %c0_72 = arith.constant 0 : index
    %c640 = arith.constant 640 : index
    %114 = vector.load %arg9[%c0_71, %c0_72, %c640] : memref<1x16x3072xbf16, #tpu.memory_space<vmem>>, vector<1x16x128xbf16>
    %c0_73 = arith.constant 0 : index
    %c0_74 = arith.constant 0 : index
    %c1664 = arith.constant 1664 : index
    %115 = vector.load %arg9[%c0_73, %c0_74, %c1664] : memref<1x16x3072xbf16, #tpu.memory_space<vmem>>, vector<1x16x128xbf16>
    %c0_75 = arith.constant 0 : index
    %c0_76 = arith.constant 0 : index
    %c2688 = arith.constant 2688 : index
    %116 = vector.load %arg9[%c0_75, %c0_76, %c2688] : memref<1x16x3072xbf16, #tpu.memory_space<vmem>>, vector<1x16x128xbf16>
    "tpu.trace_start"() <{level = 10 : i32, message = "bqd,bkd->bqk"}> : () -> ()
    %cst_77 = arith.constant dense<0.000000e+00> : vector<1x16x16xf32>
    %117 = tpu.matmul %114, %115, %cst_77 {dimension_numbers = #tpu.dot_dimension_numbers<[2], [2], [1], [1], [0, 0, 0, 1, 1, 1], [0], [0]>} : vector<1x16x128xbf16>, vector<1x16x128xbf16>, vector<1x16x16xf32> -> vector<1x16x16xf32>
    "tpu.trace_stop"() : () -> ()
    %118 = arith.addf %117, %12 : vector<1x16x16xf32>
    %cst_78 = arith.constant dense<0xFF800000> : vector<1x16xf32>
    %119 = vector.multi_reduction <maximumf>, %118, %cst_78 [2] : vector<1x16x16xf32> to vector<1x16xf32>
    %120 = vector.shape_cast %119 : vector<1x16xf32> to vector<1x16x1xf32>
    %121 = vector.broadcast %120 : vector<1x16x1xf32> to vector<1x16x16xf32>
    %122 = arith.subf %118, %121 : vector<1x16x16xf32>
    %123 = math.exp %122 : vector<1x16x16xf32>
    %cst_79 = arith.constant dense<0.000000e+00> : vector<1x16xf32>
    %124 = vector.multi_reduction <add>, %123, %cst_79 [2] : vector<1x16x16xf32> to vector<1x16xf32>
    %125 = vector.shape_cast %124 : vector<1x16xf32> to vector<1x16x1xf32>
    %126 = tpu.reciprocal %125 {approx = true} : vector<1x16x1xf32> -> vector<1x16x1xf32>
    %127 = vector.broadcast %126 : vector<1x16x1xf32> to vector<1x16x16xf32>
    %128 = arith.mulf %123, %127 : vector<1x16x16xf32>
    %129 = arith.truncf %128 : vector<1x16x16xf32> to vector<1x16x16xbf16>
    "tpu.trace_start"() <{level = 10 : i32, message = "bqk,bkd->bqd"}> : () -> ()
    %cst_80 = arith.constant dense<0.000000e+00> : vector<1x16x128xf32>
    %130 = tpu.matmul %129, %116, %cst_80 {dimension_numbers = #tpu.dot_dimension_numbers<[2], [1], [1], [2], [0, 0, 0, 1, 1, 2], [0], [0]>} : vector<1x16x16xbf16>, vector<1x16x128xbf16>, vector<1x16x128xf32> -> vector<1x16x128xf32>
    "tpu.trace_stop"() : () -> ()
    %131 = vector.broadcast %13 : vector<1x16x1xf32> to vector<1x16x128xf32>
    %132 = arith.mulf %130, %131 : vector<1x16x128xf32>
    %cst_81 = arith.constant dense<0.000000e+00> : vector<1x128xf32>
    %133 = vector.multi_reduction <add>, %132, %cst_81 [1] : vector<1x16x128xf32> to vector<1x128xf32>
    %c0_82 = arith.constant 0 : index
    %c0_83 = arith.constant 0 : index
    %c768 = arith.constant 768 : index
    %134 = vector.load %arg9[%c0_82, %c0_83, %c768] : memref<1x16x3072xbf16, #tpu.memory_space<vmem>>, vector<1x16x128xbf16>
    %c0_84 = arith.constant 0 : index
    %c0_85 = arith.constant 0 : index
    %c1792 = arith.constant 1792 : index
    %135 = vector.load %arg9[%c0_84, %c0_85, %c1792] : memref<1x16x3072xbf16, #tpu.memory_space<vmem>>, vector<1x16x128xbf16>
    %c0_86 = arith.constant 0 : index
    %c0_87 = arith.constant 0 : index
    %c2816 = arith.constant 2816 : index
    %136 = vector.load %arg9[%c0_86, %c0_87, %c2816] : memref<1x16x3072xbf16, #tpu.memory_space<vmem>>, vector<1x16x128xbf16>
    "tpu.trace_start"() <{level = 10 : i32, message = "bqd,bkd->bqk"}> : () -> ()
    %cst_88 = arith.constant dense<0.000000e+00> : vector<1x16x16xf32>
    %137 = tpu.matmul %134, %135, %cst_88 {dimension_numbers = #tpu.dot_dimension_numbers<[2], [2], [1], [1], [0, 0, 0, 1, 1, 1], [0], [0]>} : vector<1x16x128xbf16>, vector<1x16x128xbf16>, vector<1x16x16xf32> -> vector<1x16x16xf32>
    "tpu.trace_stop"() : () -> ()
    %138 = arith.addf %137, %12 : vector<1x16x16xf32>
    %cst_89 = arith.constant dense<0xFF800000> : vector<1x16xf32>
    %139 = vector.multi_reduction <maximumf>, %138, %cst_89 [2] : vector<1x16x16xf32> to vector<1x16xf32>
    %140 = vector.shape_cast %139 : vector<1x16xf32> to vector<1x16x1xf32>
    %141 = vector.broadcast %140 : vector<1x16x1xf32> to vector<1x16x16xf32>
    %142 = arith.subf %138, %141 : vector<1x16x16xf32>
    %143 = math.exp %142 : vector<1x16x16xf32>
    %cst_90 = arith.constant dense<0.000000e+00> : vector<1x16xf32>
    %144 = vector.multi_reduction <add>, %143, %cst_90 [2] : vector<1x16x16xf32> to vector<1x16xf32>
    %145 = vector.shape_cast %144 : vector<1x16xf32> to vector<1x16x1xf32>
    %146 = tpu.reciprocal %145 {approx = true} : vector<1x16x1xf32> -> vector<1x16x1xf32>
    %147 = vector.broadcast %146 : vector<1x16x1xf32> to vector<1x16x16xf32>
    %148 = arith.mulf %143, %147 : vector<1x16x16xf32>
    %149 = arith.truncf %148 : vector<1x16x16xf32> to vector<1x16x16xbf16>
    "tpu.trace_start"() <{level = 10 : i32, message = "bqk,bkd->bqd"}> : () -> ()
    %cst_91 = arith.constant dense<0.000000e+00> : vector<1x16x128xf32>
    %150 = tpu.matmul %149, %136, %cst_91 {dimension_numbers = #tpu.dot_dimension_numbers<[2], [1], [1], [2], [0, 0, 0, 1, 1, 2], [0], [0]>} : vector<1x16x16xbf16>, vector<1x16x128xbf16>, vector<1x16x128xf32> -> vector<1x16x128xf32>
    "tpu.trace_stop"() : () -> ()
    %151 = vector.broadcast %13 : vector<1x16x1xf32> to vector<1x16x128xf32>
    %152 = arith.mulf %150, %151 : vector<1x16x128xf32>
    %cst_92 = arith.constant dense<0.000000e+00> : vector<1x128xf32>
    %153 = vector.multi_reduction <add>, %152, %cst_92 [1] : vector<1x16x128xf32> to vector<1x128xf32>
    %c0_93 = arith.constant 0 : index
    %c0_94 = arith.constant 0 : index
    %c896 = arith.constant 896 : index
    %154 = vector.load %arg9[%c0_93, %c0_94, %c896] : memref<1x16x3072xbf16, #tpu.memory_space<vmem>>, vector<1x16x128xbf16>
    %c0_95 = arith.constant 0 : index
    %c0_96 = arith.constant 0 : index
    %c1920 = arith.constant 1920 : index
    %155 = vector.load %arg9[%c0_95, %c0_96, %c1920] : memref<1x16x3072xbf16, #tpu.memory_space<vmem>>, vector<1x16x128xbf16>
    %c0_97 = arith.constant 0 : index
    %c0_98 = arith.constant 0 : index
    %c2944 = arith.constant 2944 : index
    %156 = vector.load %arg9[%c0_97, %c0_98, %c2944] : memref<1x16x3072xbf16, #tpu.memory_space<vmem>>, vector<1x16x128xbf16>
    "tpu.trace_start"() <{level = 10 : i32, message = "bqd,bkd->bqk"}> : () -> ()
    %cst_99 = arith.constant dense<0.000000e+00> : vector<1x16x16xf32>
    %157 = tpu.matmul %154, %155, %cst_99 {dimension_numbers = #tpu.dot_dimension_numbers<[2], [2], [1], [1], [0, 0, 0, 1, 1, 1], [0], [0]>} : vector<1x16x128xbf16>, vector<1x16x128xbf16>, vector<1x16x16xf32> -> vector<1x16x16xf32>
    "tpu.trace_stop"() : () -> ()
    %158 = arith.addf %157, %12 : vector<1x16x16xf32>
    %cst_100 = arith.constant dense<0xFF800000> : vector<1x16xf32>
    %159 = vector.multi_reduction <maximumf>, %158, %cst_100 [2] : vector<1x16x16xf32> to vector<1x16xf32>
    %160 = vector.shape_cast %159 : vector<1x16xf32> to vector<1x16x1xf32>
    %161 = vector.broadcast %160 : vector<1x16x1xf32> to vector<1x16x16xf32>
    %162 = arith.subf %158, %161 : vector<1x16x16xf32>
    %163 = math.exp %162 : vector<1x16x16xf32>
    %cst_101 = arith.constant dense<0.000000e+00> : vector<1x16xf32>
    %164 = vector.multi_reduction <add>, %163, %cst_101 [2] : vector<1x16x16xf32> to vector<1x16xf32>
    %165 = vector.shape_cast %164 : vector<1x16xf32> to vector<1x16x1xf32>
    %166 = tpu.reciprocal %165 {approx = true} : vector<1x16x1xf32> -> vector<1x16x1xf32>
    %167 = vector.broadcast %166 : vector<1x16x1xf32> to vector<1x16x16xf32>
    %168 = arith.mulf %163, %167 : vector<1x16x16xf32>
    %169 = arith.truncf %168 : vector<1x16x16xf32> to vector<1x16x16xbf16>
    "tpu.trace_start"() <{level = 10 : i32, message = "bqk,bkd->bqd"}> : () -> ()
    %cst_102 = arith.constant dense<0.000000e+00> : vector<1x16x128xf32>
    %170 = tpu.matmul %169, %156, %cst_102 {dimension_numbers = #tpu.dot_dimension_numbers<[2], [1], [1], [2], [0, 0, 0, 1, 1, 2], [0], [0]>} : vector<1x16x16xbf16>, vector<1x16x128xbf16>, vector<1x16x128xf32> -> vector<1x16x128xf32>
    "tpu.trace_stop"() : () -> ()
    %171 = vector.broadcast %13 : vector<1x16x1xf32> to vector<1x16x128xf32>
    %172 = arith.mulf %170, %171 : vector<1x16x128xf32>
    %cst_103 = arith.constant dense<0.000000e+00> : vector<1x128xf32>
    %173 = vector.multi_reduction <add>, %172, %cst_103 [1] : vector<1x16x128xf32> to vector<1x128xf32>
    %174 = tpu.concatenate %33, %53, %73, %93, %113, %133, %153, %173 in 1 : vector<1x128xf32>, vector<1x128xf32>, vector<1x128xf32>, vector<1x128xf32>, vector<1x128xf32>, vector<1x128xf32>, vector<1x128xf32>, vector<1x128xf32> -> vector<1x1024xf32>
    %cst_104 = arith.constant dense<0.000000e+00> : vector<1x1xf32>
    %175 = vector.multi_reduction <add>, %13, %cst_104 [1] : vector<1x16x1xf32> to vector<1x1xf32>
    %cst_105 = arith.constant 9.99999971E-10 : f32
    %176 = vector.broadcast %cst_105 : f32 to vector<1x1xf32>
    %177 = arith.maximumf %175, %176 : vector<1x1xf32>
    %178 = vector.broadcast %177 : vector<1x1xf32> to vector<1x1024xf32>
    %179 = arith.divf %174, %178 : vector<1x1024xf32>
    %180 = arith.truncf %179 : vector<1x1024xf32> to vector<1x1024xbf16>
    %c0_106 = arith.constant 0 : index
    %c0_107 = arith.constant 0 : index
    %181 = vector.load %arg6[%c0_106, %c0_107] : memref<1024x768xbf16, #tpu.memory_space<vmem>>, vector<1024x768xbf16>
    %cst_108 = arith.constant dense<0.000000e+00> : vector<1x768xf32>
    %182 = tpu.matmul %180, %181, %cst_108 {dimension_numbers = #tpu.dot_dimension_numbers<[1], [0], [0], [1], [0, 0, 1, 1], [], []>} : vector<1x1024xbf16>, vector<1024x768xbf16>, vector<1x768xf32> -> vector<1x768xf32>
    %c0_109 = arith.constant 0 : index
    %c0_110 = arith.constant 0 : index
    %183 = vector.load %arg7[%c0_109, %c0_110] : memref<1x768xf32, #tpu.memory_space<vmem>>, vector<1x768xf32>
    %184 = arith.addf %182, %183 : vector<1x768xf32>
    %185 = vector.shape_cast %184 : vector<1x768xf32> to vector<1x1x768xf32>
    %c0_111 = arith.constant 0 : index
    %c0_112 = arith.constant 0 : index
    %c0_113 = arith.constant 0 : index
    %186 = vector.load %arg8[%c0_111, %c0_112, %c0_113] : memref<1x1x768xf32, #tpu.memory_space<vmem>>, vector<1x1x768xf32>
    tpu.vector_store %arg8[%c0_111, %c0_112, %c0_113], %185 {strides = array<i32>} : memref<1x1x768xf32, #tpu.memory_space<vmem>>, vector<1x1x768xf32>,
    return
  }
  func.func @transform_0(%arg0: i32) -> (i32, i32, i32) {
    %c0_i32 = arith.constant 0 : i32
    %c0_i32_0 = arith.constant 0 : i32
    %c0_i32_1 = arith.constant 0 : i32
    return %arg0, %c0_i32, %c0_i32_0 : i32, i32, i32
  }
  func.func @transform_1(%arg0: i32) -> (i32, i32, i32) {
    %c0_i32 = arith.constant 0 : i32
    %c0_i32_0 = arith.constant 0 : i32
    %c0_i32_1 = arith.constant 0 : i32
    return %arg0, %c0_i32, %c0_i32_0 : i32, i32, i32
  }
  func.func @transform_2(%arg0: i32) -> (i32, i32, i32) {
    %c0_i32 = arith.constant 0 : i32
    %c0_i32_0 = arith.constant 0 : i32
    %c0_i32_1 = arith.constant 0 : i32
    return %arg0, %c0_i32, %c0_i32_0 : i32, i32, i32
  }
  func.func @transform_3(%arg0: i32) -> (i32, i32) {
    %c0_i32 = arith.constant 0 : i32
    %c0_i32_0 = arith.constant 0 : i32
    %c0_i32_1 = arith.constant 0 : i32
    return %c0_i32, %c0_i32_0 : i32, i32
  }
  func.func @transform_4(%arg0: i32) -> (i32, i32) {
    %c0_i32 = arith.constant 0 : i32
    %c0_i32_0 = arith.constant 0 : i32
    %c0_i32_1 = arith.constant 0 : i32
    return %c0_i32, %c0_i32_0 : i32, i32
  }
  func.func @transform_5(%arg0: i32) -> (i32, i32) {
    %c0_i32 = arith.constant 0 : i32
    %c0_i32_0 = arith.constant 0 : i32
    %c0_i32_1 = arith.constant 0 : i32
    return %c0_i32, %c0_i32_0 : i32, i32
  }
  func.func @transform_6(%arg0: i32) -> (i32, i32) {
    %c0_i32 = arith.constant 0 : i32
    %c0_i32_0 = arith.constant 0 : i32
    %c0_i32_1 = arith.constant 0 : i32
    return %c0_i32, %c0_i32_0 : i32, i32
  }
  func.func @transform_7(%arg0: i32) -> (i32, i32, i32) {
    %c0_i32 = arith.constant 0 : i32
    %c0_i32_0 = arith.constant 0 : i32
    %c0_i32_1 = arith.constant 0 : i32
    return %arg0, %c0_i32, %c0_i32_0 : i32, i32, i32
  }
}

</mosaic_0001>

<bundles_post_ra>
// kernel: tpu_custom_call.1
= control target key start
LH: loop header
LB: loop body
LE: loop exit
PB: predicated region body
PF: predicated region fallthrough
CT: control target
= control target key end

     0   :  { %s17125_s0 = inlined_call_operand.hbm [shape: bf16[2,16,768], index: 0, kind: input, shape index: {}]   ;;  %s17126_s1 = inlined_call_operand.hbm [shape: f32[2,1,16], index: 1, kind: input, shape index: {}]   ;;  %s17127_s2 = inlined_call_operand.vmem [shape: f32[2,16,1], index: 2, kind: input, shape index: {}]   ;;  %s17128_s3 = inlined_call_operand.hbm [shape: bf16[768,3072], index: 3, kind: input, shape index: {}]   ;;  %s17129_s4 = inlined_call_operand.hbm [shape: f32[1,3072], index: 4, kind: input, shape index: {}]   ;;  %s17130_s5 = inlined_call_operand.hbm [shape: bf16[1024,768], index: 5, kind: input, shape index: {}]   ;;  %s17131_s6 = inlined_call_operand.hbm [shape: f32[1,768], index: 6, kind: input, shape index: {}]   ;;  %s17132_s7 = inlined_call_operand.hbm [shape: f32[2,1,768], index: 7, kind: output, shape index: {}]  }
   0x1   :  { %17139 = sst [smem:[#allocation22_spill]] %s17125_s0 }
   0x2   :  { %17140 = sst [smem:[#allocation23_spill]] %s17128_s3 }
   0x3   :  { %17141 = sst [smem:[#allocation24_spill]] %s17129_s4 }
   0x4   :  { %17142 = sst [smem:[#allocation25_spill]] %s17130_s5 }
   0x5   :  { %17143 = sst [smem:[#allocation26_spill]] %s17131_s6 }
   0x6   :  { %12 = vsyncpa [#allocation4], 0 }
   0x7   :  { %14 = vsyncpa [#allocation4 + $0x1], 0 }
   0x8   :  { %15 = vsyncpa [#allocation7], 0 }
   0x9   :  { %17 = vsyncpa [#allocation7 + $0x1], 0 }
   0xa   :  { %18 = vsyncpa [#allocation10], 0 }
   0xb   :  { %19 = vsyncpa [#allocation13], 0 }
   0xc   :  { %20 = vsyncpa [#allocation5], 0 }
   0xd   :  { %22 = vsyncpa [#allocation5 + $0x1], 0  ;;  %s16272_s24 = smov 0   ;;  %s16274_s25 = smov 0  }
   0xe   :  { %s16276_s26 = smov 0   ;;  %s16278_s27 = smov 0  }
   0xf LB: > { %s16293_s28 = sadd.s32 4294967295, %s16215_s27   ;;  %s13412_s29 = sadd.s32 4294967294, %s16215_s27   ;;  %s16215_s27 = sphi %s16278_s27, %s17175_s27   ;;  %s16211_s26 = sphi %s16276_s26, %s17174_s26   ;;  %s16207_s25 = sphi %s16274_s25, %s17173_s25   ;;  %s16203_s24 = sphi %s16272_s24, %s17172_s24  }
  0x10   : > { %p48_p0 = scmp.ne.s32.totalorder %s16207_s25, %s16203_s24  ;;  %p17133_p1 = scmp.eq.s32.totalorder %s16293_s28, 0 }
  0x11   : > { %p214_p3 = scmp.eq.s32.totalorder %s13412_s29, 1  ;;  %p13413_p5 = scmp.ge.s32.totalorder %s16215_s27, 1 }
  0x12   : > { %p16302_p4 = por %p17133_p1, %p48_p0  ;;  %p221_p7 = scmp.lt.s32.totalorder %s16215_s27, 3 }
  0x13   : > { %p16307_p6 = por %p214_p3, %p48_p0  ;;  %s16217_s10 = smov [#allocation8]  }
  0x14   : > { %s17144_s30 = scalar_select %p16302_p4, 1, 0 }
  0x15   : > { %s17145_s8 = scalar_select %p16307_p6, 1, 0 }
  0x16   : > { %p16312_p8 = pnand %p13413_p5, %p221_p7  ;;  %s233_s11 = sshll.u32 %s16217_s10, 4  ;;  %s234_s11 = int_to_ptr.vmem [resolvable:$true] %s233_s11 }
  0x17   : > { %s16218_s13 = smov [#allocation9]   ;;  %s16219_s15 = smov [#allocation11]  }
  0x18   : > { %s17146_s9 = scalar_select %p16312_p8, 1, 0 }
  0x19   : > { %p15210_p9 = pneg %p16312_p8  ;;  %s247_s14 = sshll.u32 %s16218_s13, 4  ;;  %s248_s14 = int_to_ptr.vmem [resolvable:$true] %s247_s14 }
  0x1a   : > { %s257_s16 = sshll.u32 %s16219_s15, 4  ;;  %s15986_s17 = scalar_lea.vmem %s234_s11, 147456  ;;  %s258_s16 = int_to_ptr.vmem [resolvable:$true] %s257_s16 }
  0x1b   : > { %p16321_p11 = pnand %p15210_p9, %p17133_p1  ;;  %p15987_p13 = scmp.ne.s32.totalorder %s234_s11, %s15986_s17 }
  0x1c   : > { %p15994_p5 = scmp.lt.s32.totalorder %s234_s11, %s234_s11  ;;  %p15995_p7 = scmp.lt.s32.totalorder %s15986_s17, %s15986_s17 }
  0x1d   : > { %p15977_p12 = pneg %p16321_p11 }
  0x1e   : > { %p15996_p9 = por %p15995_p7, %p15994_p5 }
  0x1f   : > { %p15989_p0 = pnand %p15987_p13, %p15977_p12 }
  0x21   : > { %p15990_p3 = pneg %p15989_p0 }
  0x23   : > { %p15997_p10 = pnand %p15996_p9, %p15990_p3 }
  0x25   : > { %16000 = shalt.err (!%p15997_p10)
}
  0x26   : > { %s16220_s18 = smov 1536   ;;  %s16221_s19 = smov 96  }
  0x27   : > { %s17148_s3 = sld [smem:[#allocation23_spill]]  ;;  %s16012_s22 = scalar_lea.vmem %s248_s14, 384 }
  0x28   : > { %p16013_p1 = scmp.ne.s32.totalorder %s248_s14, %s16012_s22  ;;  %p16020_p2 = scmp.lt.s32.totalorder %s248_s14, %s248_s14 }
  0x29   : > { %p16021_p6 = scmp.lt.s32.totalorder %s16012_s22, %s16012_s22 }
  0x2a   : > { %p16015_p13 = pnand %p16013_p1, %p15977_p12 }
  0x2b   : > { %p16022_p5 = por %p16021_p6, %p16020_p2 }
  0x2c   : > { %p16016_p0 = pneg %p16015_p13 }
  0x2d   : > { %15213 = dma.hbm_to_vmem [thread:$0]  (!%p16321_p11), %s17148_s3, 147456, %s234_s11, [#allocation7], %s16220_s18, %s16220_s18, %s16221_s19  }
  0x2e   : > { %p16023_p3 = pnand %p16022_p5, %p16016_p0 }
  0x30   : > { %16026 = shalt.err (!%p16023_p3)
}
  0x31   : > { %s17149_s4 = sld [smem:[#allocation24_spill]]  ;;  %s16038_s10 = scalar_lea.vmem %s258_s16, 49152 }
  0x32   : > { %p16039_p10 = scmp.ne.s32.totalorder %s258_s16, %s16038_s10  ;;  %p16046_p9 = scmp.lt.s32.totalorder %s258_s16, %s258_s16 }
  0x33   : > { %p16047_p13 = scmp.lt.s32.totalorder %s16038_s10, %s16038_s10 }
  0x34   : > { %p16041_p7 = pnand %p16039_p10, %p15977_p12 }
  0x35   : > { %p16048_p4 = por %p16047_p13, %p16046_p9 }
  0x36   : > { %p16042_p1 = pneg %p16041_p7 }
  0x37   : > { %15216 = dma.hbm_to_vmem [thread:$0]  (!%p16321_p11), %s17149_s4, 384, %s248_s14, [#allocation10]  }
  0x38   : > { %p16049_p2 = pnand %p16048_p4, %p16042_p1 }
  0x3a   : > { %16052 = shalt.err (!%p16049_p2)
}
  0x3b   : > { %s17135_s11 = smov 384   ;;  %s17136_s13 = smov 24  }
  0x3c   : > { %s17150_s5 = sld [smem:[#allocation25_spill]]  ;;  %s16224_s17 = smov [#allocation12]  }
  0x3d   : > { %s271_s18 = sshll.u32 %s16224_s17, 4  ;;  %s272_s18 = int_to_ptr.vmem [resolvable:$true] %s271_s18 }
  0x3e   : > { %s16064_s19 = scalar_lea.vmem %s272_s18, 96  ;;  %p16072_p5 = scmp.lt.s32.totalorder %s272_s18, %s272_s18 }
  0x3f   : > { %p16065_p6 = scmp.ne.s32.totalorder %s272_s18, %s16064_s19  ;;  %p16073_p3 = scmp.lt.s32.totalorder %s16064_s19, %s16064_s19 }
  0x41   : > { %p16067_p4 = pnand %p16065_p6, %p15977_p12  ;;  %p16074_p10 = por %p16073_p3, %p16072_p5 }
  0x42   : > { %15219 = dma.hbm_to_vmem [thread:$0]  (!%p16321_p11), %s17150_s5, 49152, %s258_s16, [#allocation10], %s17135_s11, %s17135_s11, %s17136_s13  }
  0x43   : > { %p16068_p0 = pneg %p16067_p4 }
  0x45   : > { %p16075_p7 = pnand %p16074_p10, %p16068_p0 }
  0x47   : > { %16078 = shalt.err (!%p16075_p7)
}
  0x48   : > { %s17151_s6 = sld [smem:[#allocation26_spill]]  ;;  %s16363_s16 = sadd.s32 1, %s16215_s27  }
  0x49   : > { %s35_s12 = sadd.s32 1, %s16211_s26  ;;  %s32_s22 = ssub.s32 %s16215_s27, %s16363_s16 }
  0x4a   : > { %p42_p12 = scmp.ne.s32.totalorder %s16211_s26, %s16207_s25  ;;  %p33_p1 = scmp.eq.s32.totalorder %s32_s22, 0 }
  0x4b   : > { %p43_p9 = scmp.eq.s32.totalorder %s16215_s27, 0  ;;  %p17152_p13 = scmp.eq.s32.totalorder %s16293_s28, 1 }
  0x4c   : > { %p15238_p6 = scmp.lt.s32.totalorder %s16215_s27, 2  ;;  %s16382_s10 = sand.u32 1, %s16211_s26  }
  0x4d   : > { %p16373_p2 = por %p17152_p13, %p42_p12  ;;  %p44_p4 = por %p43_p9, %p42_p12 }
  0x4e   : > { %15222 = dma.hbm_to_vmem [thread:$0]  (!%p16321_p11), %s17151_s6, 96, %s272_s18, [#allocation13]  }
  0x4f   : > { %s17153_s23 = scalar_select %p16373_p2, 1, 0 }
  0x50   : > { %s16379_s29 = scalar_select %p33_p1, %s16211_s26, %s35_s12  }
  0x51   : > { %s15183_s14 = smul.u32 48, %s16382_s10  ;;  %p16386_p11 = pnand %p15238_p6, %p44_p4 }
  0x52   : > { %17154 = sst [smem:[#allocation21_spill]] %s16379_s29  ;;  %s15184_s15 = smul.u32 768, %s16215_s27 }
  0x53   : > { %s17156_s0 = sld [smem:[#allocation22_spill]]  ;;  %s286_s12 = scalar_lea.vmem [#allocation3], %s15183_s14 }
  0x54   : > { %s293_s22 = sshll.u32 %s286_s12, 4  ;;  %s283_s11 = scalar_lea.sflag [#allocation4], %s16382_s10  ;;  %s16396_s22 = int_to_ptr.vmem [resolvable:$true] %s293_s22 }
  0x55   : > { %p16081_p5 = pneg %p16386_p11 }
  0x59   : > { %s16394_s21 = scalar_lea.hbm %s17156_s0, %s15184_s15  ;;  %s16084_s15 = scalar_lea.hbm %s17156_s0, 1536 }
  0x5a   : > { %s16079_s13 = scalar_lea.hbm %s16394_s21, 768  ;;  %p16085_p7 = scmp.lt.s32.totalorder %s16394_s21, %s17156_s0 }
  0x5b   : > { %p16080_p0 = scmp.ne.s32.totalorder %s16394_s21, %s16079_s13  ;;  %p16086_p12 = scmp.lt.s32.totalorder %s16084_s15, %s16079_s13 }
  0x5d   : > { %p16082_p3 = pnand %p16081_p5, %p16080_p0  ;;  %p16087_p1 = por %p16086_p12, %p16085_p7 }
  0x5f   : > { %p16083_p10 = pneg %p16082_p3 }
  0x61   : > { %p16088_p9 = pnand %p16087_p1, %p16083_p10 }
  0x63   : > { %16091 = shalt.err (!%p16088_p9)
}
  0x64   : > { %s16092_s14 = scalar_lea.vmem %s16396_s22, 768  ;;  %s16225_s18 = smov [#allocation3]  }
  0x65   : > { %p16093_p13 = scmp.ne.s32.totalorder %s16396_s22, %s16092_s14  ;;  %s16097_s12 = sshll.u32 %s16225_s18, 4  ;;  %s16098_s12 = int_to_ptr.vmem [resolvable:$false] %s16097_s12 }
  0x66   : > { %s16099_s19 = scalar_lea.vmem %s16098_s12, 1536  ;;  %p16100_p0 = scmp.lt.s32.totalorder %s16396_s22, %s16098_s12 }
  0x67   : > { %p16095_p6 = pnand %p16093_p13, %p16081_p5  ;;  %p16101_p3 = scmp.lt.s32.totalorder %s16099_s19, %s16092_s14 }
  0x69   : > { %p16096_p4 = pneg %p16095_p6  ;;  %p16102_p2 = por %p16101_p3, %p16100_p0 }
  0x6b   : > { %p16103_p7 = pnand %p16102_p2, %p16096_p4 }
  0x6d   : > { %16106 = shalt.err (!%p16103_p7)
}
  0x6e   : > { %s17157_s3 = smov 24   ;;  %s17158_s13 = smov 384  }
  0x6f   : > { %15226 = dma.hbm_to_vmem [thread:$0]  (!%p16386_p11), %s16394_s21, 768, %s16396_s22, %s283_s11, %s17158_s13, %s17158_s13, %s17157_s3  }
  0x70   : > { %s13420_s15 = sshll.u32 %s16215_s27, 4  ;;  %s306_s20 = scalar_lea.vmem [#allocation6], %s16382_s10 }
  0x71   : > { %s313_s14 = sshll.u32 %s306_s20, 4  ;;  %s311_s19 = scalar_lea.hbm %s17126_s1, %s13420_s15  ;;  %s314_s14 = int_to_ptr.vmem [resolvable:$true] %s313_s14 }
  0x72   : > { %s17159_s0 = sand.u32 1, %s16215_s27   ;;  %s16107_s5 = scalar_lea.hbm %s311_s19, 16 }
  0x73   : > { %s304_s4 = scalar_lea.sflag [#allocation7], %s17159_s0  ;;  %p16108_p2 = scmp.ne.s32.totalorder %s311_s19, %s16107_s5 }
  0x74   : > { %s16112_s11 = scalar_lea.hbm %s17126_s1, 32  ;;  %p16113_p1 = scmp.lt.s32.totalorder %s311_s19, %s17126_s1 }
  0x75   : > { %p16110_p10 = pnand %p16108_p2, %p16081_p5  ;;  %p16114_p9 = scmp.lt.s32.totalorder %s16112_s11, %s16107_s5 }
  0x77   : > { %p16111_p12 = pneg %p16110_p10  ;;  %p16115_p13 = por %p16114_p9, %p16113_p1 }
  0x79   : > { %p16116_p6 = pnand %p16115_p13, %p16111_p12 }
  0x7b   : > { %16119 = shalt.err (!%p16116_p6)
}
  0x7c   : > { %s16120_s22 = scalar_lea.vmem %s314_s14, 16  ;;  %s16226_s0 = smov [#allocation6]  }
  0x7d   : > { %p16121_p4 = scmp.ne.s32.totalorder %s314_s14, %s16120_s22  ;;  %s16125_s3 = sshll.u32 %s16226_s0, 4  ;;  %s16126_s3 = int_to_ptr.vmem [resolvable:$false] %s16125_s3 }
  0x7e   : > { %s16127_s6 = scalar_lea.vmem %s16126_s3, 32  ;;  %p16128_p7 = scmp.lt.s32.totalorder %s314_s14, %s16126_s3 }
  0x7f   : > { %p16123_p0 = pnand %p16121_p4, %p16081_p5  ;;  %p16129_p2 = scmp.lt.s32.totalorder %s16127_s6, %s16120_s22 }
  0x81   : > { %p16124_p3 = pneg %p16123_p0  ;;  %p16130_p10 = por %p16129_p2, %p16128_p7 }
  0x83   : > { %p16131_p8 = pnand %p16130_p10, %p16124_p3 }
  0x85   : > { %16134 = shalt.err (!%p16131_p8)
}
  0x86   : > { %15229 = dma.hbm_to_vmem [thread:$0]  (!%p16386_p11), %s311_s19, 16, %s314_s14, %s304_s4  }
  0x87   : > { %p17160_p12 = scmp.ne.s32.totalorder %s17146_s9, 0 }
  0x88   : > { %s16452_s5 = sand.u32 (!%p17160_p12), 1, %s16207_s25   ;;  %p17161_p5 = scmp.ne.s32.totalorder (!%p17160_p12), %s17144_s30, 0 }
  0x89   : > { %330 = sbr.rel (%p17160_p12) target bundleno = 2615 (0xa37), region = 48  ;;  %s333_s13 = scalar_lea.sflag (!%p17160_p12), [#allocation4], %s16452_s5 }
  0x8a   : > { %s15185_s29 = smul.u32 (!%p17160_p12), 48, %s16452_s5 }
  0x8c   : > { %s16456_s15 = scalar_lea.vmem (!%p17160_p12), [#allocation3], %s15185_s29 }
  0x8e   : > { %16178 = dma.done.wait (%p17161_p5), %s333_s13, 768  }
  0x8f   : > { %16180 = vsyncadd (%p17161_p5), %s333_s13, 4294966528  ;;  %s341_s4 = sand.u32 1, %s16293_s28   ;;  %s344_s17 = scalar_lea.vmem [#allocation6], %s16452_s5 }
  0x90   : > { %s342_s9 = scalar_lea.sflag [#allocation7], %s341_s4 }
  0x91   : > { %16182 = dma.done.wait (%p17161_p5), %s342_s9, 16  }
  0x92   : > { %16184 = vsyncadd (%p17161_p5), %s342_s9, 4294967280  ;;  %p17162_p8 = scmp.eq.s32.totalorder %s16293_s28, 0 }
  0x94   : > { %16186 = dma.done.wait (%p17162_p8), [#allocation7], 147456   ;;  %p17163_p11 = pmov %p17162_p8 }
  0x95   : > { %p17164_p1 = pmov %p17162_p8 }
  0x96   : > { %16188 = vsyncadd (%p17163_p11), [#allocation7], 4294819840 }
  0x97   : > { %16190 = dma.done.wait (%p17164_p1), [#allocation10], 49536   ;;  %p17165_p9 = pmov %p17164_p1 }
  0x98   : > { %p17166_p13 = pmov %p17164_p1 }
  0x99   : > { %16192 = vsyncadd (%p17165_p9), [#allocation10], 4294917760 }
  0x9a   : > { %16194 = dma.done.wait (%p17166_p13), [#allocation13], 96   ;;  %p17167_p6 = pmov %p17164_p1 }
  0x9b   : > { %v580_v0 = vld [vmem:[#allocation8 + $0x540] sm:$0xff]  ;;  %vm16228_vm0 = vmmov 0   ;;  %vm9264_vm1 = vcmask 130048   ;;  %p400_p4 = scmp.lt.s32.totalorder %s16293_s28, 1  ;;  %vm10344_vm2 = vcmask 7168   ;;  %s15186_s19 = smul.u32 6, %s16452_s5 }
  0x9c   : > { %16196 = vsyncadd (%p17167_p6), [#allocation13], 4294967200  ;;  %v592_v1 = vld [vmem:[#allocation8 + $0x5a0] sm:$0xff]  ;;  %s15187_s11 = smul.u32 96, %s16293_s28  ;;  %s13258_s6 = scalar_lea.sflag [#allocation5], %s16452_s5 }
  0x9d   : > { %v964_v2 = vld [vmem:[#allocation8 + $0x1140] sm:$0xff]  ;;  %v13603_v3 = vcombine.high %v580_v0, %v592_v1  ;;  %v13602_v5 = vcombine.low %v580_v0, %v592_v1  ;;  %s401_s30 = scalar_select %p400_p4, %s16293_s28, 1 }
  0x9e   : > { %v976_v4 = vld [vmem:[#allocation8 + $0x11a0] sm:$0xff]  ;;  %s399_s21 = scalar_lea.vmem [#allocation14], %s15186_s19  ;;  %s13270_s3 = scalar_lea.hbm %s17132_s7, %s15187_s11 }
  0x9f   : > { %v556_v6 = vld [vmem:[#allocation8 + $0x480] sm:$0xff]  ;;  %v13987_v8 = vcombine.high %v964_v2, %v976_v4  ;;  %v13986_v9 = vcombine.low %v964_v2, %v976_v4  ;;  %7480 = vmatprep.subr.bf16.mxu0 %v13603_v3  ;;  %s15030_s20 = sshll.u32 %s401_s30, 4  ;;  %s13272_s10 = sshll.u32 %s399_s21, 4  ;;  %s13273_s10 = int_to_ptr.vmem [resolvable:$true] %s13272_s10 }
  0xa0   : > { %v568_v7 = vld [vmem:[#allocation8 + $0x4e0] sm:$0xff]  ;;  %7481 = vmatpush1.bf16.msra.mxu0 %v13602_v5  ;;  %s404_s12 = scalar_lea.vmem %s17127_s2, %s15030_s20  ;;  %s16135_s29 = scalar_lea.vmem %s13273_s10, 96 }
  0xa1   : > { %v13579_v10 = vcombine.high %v556_v6, %v568_v7  ;;  %v940_v11 = vld [vmem:[#allocation8 + $0x1080] sm:$0xff]  ;;  %7523 = vmatprep.subr.bf16.mxu1 %v13987_v8  ;;  %v13578_v18 = vcombine.low %v556_v6, %v568_v7  ;;  %p16136_p0 = scmp.ne.s32.totalorder %s13273_s10, %s16135_s29  ;;  %p17168_p3 = scmp.ne.s32.totalorder %s17153_s23, 0 }
  0xa2   : > { %v952_v12 = vld [vmem:[#allocation8 + $0x10e0] sm:$0xff]  ;;  %7524 = vmatpush1.bf16.msra.mxu1 %v13986_v9  ;;  %s16231_s28 = smov [#allocation14]  }
  0xa3   : > { %v532_v13 = vld [vmem:[#allocation8 + $0x3c0] sm:$0xff]  ;;  %v13963_v14 = vcombine.high %v940_v11, %v952_v12  ;;  %7482 = vmatprep.subr.bf16.mxu0 %v13579_v10  ;;  %v13962_v19 = vcombine.low %v940_v11, %v952_v12  ;;  %p16137_p7 = pnand %p16136_p0, %p17168_p3  ;;  %s16139_s13 = sshll.u32 %s16231_s28, 4  ;;  %s16140_s13 = int_to_ptr.vmem [resolvable:$false] %s16139_s13 }
  0xa4   : > { %v544_v15 = vld [vmem:[#allocation8 + $0x420] sm:$0xff]  ;;  %7483 = vmatpush1.bf16.msra.mxu0 %v13578_v18  ;;  %p16142_p10 = scmp.lt.s32.totalorder %s13273_s10, %s16140_s13 }
  0xa5   : > { %v916_v16 = vld [vmem:[#allocation8 + $0xfc0] sm:$0xff]  ;;  %v13555_v20 = vcombine.high %v532_v13, %v544_v15  ;;  %7525 = vmatprep.subr.bf16.mxu1 %v13963_v14  ;;  %v13554_v26 = vcombine.low %v532_v13, %v544_v15  ;;  %p16138_p2 = pneg %p16137_p7 }
  0xa6   : > { %v928_v17 = vld [vmem:[#allocation8 + $0x1020] sm:$0xff]  ;;  %7526 = vmatpush1.bf16.msra.mxu1 %v13962_v19 }
  0xa7   : > { %v13939_v21 = vcombine.high %v916_v16, %v928_v17  ;;  %v508_v22 = vld [vmem:[#allocation8 + $0x300] sm:$0xff]  ;;  %7484 = vmatprep.subr.bf16.mxu0 %v13555_v20  ;;  %v13938_v27 = vcombine.low %v916_v16, %v928_v17 }
  0xa8   : > { %v520_v23 = vld [vmem:[#allocation8 + $0x360] sm:$0xff]  ;;  %7485 = vmatpush1.bf16.msra.mxu0 %v13554_v26 }
  0xa9   : > { %v892_v24 = vld [vmem:[#allocation8 + $0xf00] sm:$0xff]  ;;  %v13531_v28 = vcombine.high %v508_v22, %v520_v23  ;;  %7527 = vmatprep.subr.bf16.mxu1 %v13939_v21  ;;  %v13530_v34 = vcombine.low %v508_v22, %v520_v23 }
  0xaa   : > { %v904_v25 = vld [vmem:[#allocation8 + $0xf60] sm:$0xff]  ;;  %7528 = vmatpush1.bf16.msra.mxu1 %v13938_v27 }
  0xab   : > { %v13915_v29 = vcombine.high %v892_v24, %v904_v25  ;;  %v484_v30 = vld [vmem:[#allocation8 + $0x240] sm:$0xff]  ;;  %7486 = vmatprep.subr.bf16.mxu0 %v13531_v28  ;;  %v13914_v35 = vcombine.low %v892_v24, %v904_v25 }
  0xac   : > { %v496_v31 = vld [vmem:[#allocation8 + $0x2a0] sm:$0xff]  ;;  %7487 = vmatpush1.bf16.msra.mxu0 %v13530_v34 }
  0xad   : > { %v868_v32 = vld [vmem:[#allocation8 + $0xe40] sm:$0xff]  ;;  %v13507_v36 = vcombine.high %v484_v30, %v496_v31  ;;  %7529 = vmatprep.subr.bf16.mxu1 %v13915_v29  ;;  %v13506_v42 = vcombine.low %v484_v30, %v496_v31 }
  0xae   : > { %v880_v33 = vld [vmem:[#allocation8 + $0xea0] sm:$0xff]  ;;  %7530 = vmatpush1.bf16.msra.mxu1 %v13914_v35 }
  0xaf   : > { %v13891_v37 = vcombine.high %v868_v32, %v880_v33  ;;  %v460_v38 = vld [vmem:[#allocation8 + $0x180] sm:$0xff]  ;;  %7488 = vmatprep.subr.bf16.mxu0 %v13507_v36  ;;  %v13890_v43 = vcombine.low %v868_v32, %v880_v33 }
  0xb0   : > { %v472_v39 = vld [vmem:[#allocation8 + $0x1e0] sm:$0xff]  ;;  %7489 = vmatpush1.bf16.msra.mxu0 %v13506_v42 }
  0xb1   : > { %v844_v40 = vld [vmem:[#allocation8 + $0xd80] sm:$0xff]  ;;  %v13483_v44 = vcombine.high %v460_v38, %v472_v39  ;;  %7531 = vmatprep.subr.bf16.mxu1 %v13891_v37  ;;  %v13482_v50 = vcombine.low %v460_v38, %v472_v39 }
  0xb2   : > { %v856_v41 = vld [vmem:[#allocation8 + $0xde0] sm:$0xff]  ;;  %7532 = vmatpush1.bf16.msra.mxu1 %v13890_v43 }
  0xb3   : > { %v13867_v45 = vcombine.high %v844_v40, %v856_v41  ;;  %v436_v46 = vld [vmem:[#allocation8 + $0xc0] sm:$0xff]  ;;  %7490 = vmatprep.subr.bf16.mxu0 %v13483_v44  ;;  %v13866_v52 = vcombine.low %v844_v40, %v856_v41 }
  0xb4   : > { %v448_v47 = vld [vmem:[#allocation8 + $0x120] sm:$0xff]  ;;  %7491 = vmatpush1.bf16.msra.mxu0 %v13482_v50 }
  0xb5   : > { %v820_v48 = vld [vmem:[#allocation8 + $0xcc0] sm:$0xff]  ;;  %v13459_v53 = vcombine.high %v436_v46, %v448_v47  ;;  %7533 = vmatprep.subr.bf16.mxu1 %v13867_v45  ;;  %v13458_v60 = vcombine.low %v436_v46, %v448_v47 }
  0xb6   : > { %v832_v49 = vld [vmem:[#allocation8 + $0xd20] sm:$0xff]  ;;  %7534 = vmatpush1.bf16.msra.mxu1 %v13866_v52 }
  0xb7   : > { %v412_v51 = vld [vmem:[#allocation8] sm:$0xff]  ;;  %v13843_v55 = vcombine.high %v820_v48, %v832_v49  ;;  %7492 = vmatprep.subr.bf16.mxu0 %v13459_v53  ;;  %v13842_v61 = vcombine.low %v820_v48, %v832_v49 }
  0xb8   : > { %v424_v54 = vld [vmem:[#allocation8 + $0x60] sm:$0xff]  ;;  %7493 = vmatpush1.bf16.msra.mxu0 %v13458_v60 }
  0xb9   : > { %v796_v56 = vld [vmem:[#allocation8 + $0xc00] sm:$0xff]  ;;  %v13435_v62 = vcombine.high %v412_v51, %v424_v54  ;;  %7535 = vmatprep.subr.bf16.mxu1 %v13843_v55  ;;  %v13434_v4 = vcombine.low %v412_v51, %v424_v54 }
  0xba   : > { %v16481_v57 = vld [vmem:[%s16456_s15 + $0x4] ss:$24 sps:$4 sm:$0xff]   ;;  %7536 = vmatpush1.bf16.msra.mxu1 %v13842_v61 }
  0xbb   : > { %v808_v58 = vld [vmem:[#allocation8 + $0xc60] sm:$0xff]  ;;  %7512 = vmatprep.mubr.bf16.mxu0 %v16481_v57  ;;  %7494 = vmatprep.subr.bf16.mxu0 %v13435_v62 }
  0xbc   : > { %v16484_v59 = vld [vmem:[%s16456_s15 + $0xc] ss:$24 sps:$4 sm:$0xff]   ;;  %v13819_v63 = vcombine.high %v796_v56, %v808_v58  ;;  %v13818_v5 = vcombine.low %v796_v56, %v808_v58  ;;  %7495 = vmatpush1.bf16.msra.mxu0 %v13434_v4 }
  0xbd   : > { %v772_v0 = vld [vmem:[#allocation8 + $0xb40] sm:$0xff]  ;;  %7555 = vmatprep.mubr.bf16.mxu1 %v16484_v59  ;;  %v581_v4 = vld [vmem:[#allocation8 + $0x548] sm:$0xff] }
  0xbe   : > { %v784_v1 = vld [vmem:[#allocation8 + $0xba0] sm:$0xff]  ;;  %7537 = vmatprep.subr.bf16.mxu1 %v13819_v63 }
  0xbf   : > { %v1156_v2 = vld [vmem:[#allocation8 + $0x1740] sm:$0xff]  ;;  %v13795_v6 = vcombine.high %v772_v0, %v784_v1  ;;  %v13794_v12 = vcombine.low %v772_v0, %v784_v1  ;;  %7538 = vmatpush1.bf16.msra.mxu1 %v13818_v5  ;;  %v593_v5 = vld [vmem:[#allocation8 + $0x5a8] sm:$0xff] }
  0xc0   : > { %v1168_v3 = vld [vmem:[#allocation8 + $0x17a0] sm:$0xff] }
  0xc1   : > { %v14179_v7 = vcombine.high %v1156_v2, %v1168_v3  ;;  %v748_v8 = vld [vmem:[#allocation8 + $0xa80] sm:$0xff]  ;;  %7496 = vmatprep.subr.bf16.mxu0 %v13795_v6  ;;  %v14178_v13 = vcombine.low %v1156_v2, %v1168_v3 }
  0xc2   : > { %v760_v9 = vld [vmem:[#allocation8 + $0xae0] sm:$0xff]  ;;  %7497 = vmatpush2.bf16.msra.mxu0 %v13794_v12 }
  0xc3   : > { %v1132_v10 = vld [vmem:[#allocation8 + $0x1680] sm:$0xff]  ;;  %v13771_v14 = vcombine.high %v748_v8, %v760_v9  ;;  %7539 = vmatprep.subr.bf16.mxu1 %v14179_v7  ;;  %v13770_v20 = vcombine.low %v748_v8, %v760_v9  ;;  %v13605_v9 = vcombine.high %v581_v4, %v593_v5 }
  0xc4   : > { %v1144_v11 = vld [vmem:[#allocation8 + $0x16e0] sm:$0xff]  ;;  %7540 = vmatpush2.bf16.msra.mxu1 %v14178_v13  ;;  %v557_v13 = vld [vmem:[#allocation8 + $0x488] sm:$0xff] }
  0xc5   : > { %v14155_v15 = vcombine.high %v1132_v10, %v1144_v11  ;;  %v724_v16 = vld [vmem:[#allocation8 + $0x9c0] sm:$0xff]  ;;  %7498 = vmatprep.subr.bf16.mxu0 %v13771_v14  ;;  %v14154_v21 = vcombine.low %v1132_v10, %v1144_v11  ;;  %v569_v14 = vld [vmem:[#allocation8 + $0x4e8] sm:$0xff] }
  0xc6   : > { %v736_v17 = vld [vmem:[#allocation8 + $0xa20] sm:$0xff]  ;;  %7499 = vmatpush2.bf16.msra.mxu0 %v13770_v20 }
  0xc7   : > { %v1108_v18 = vld [vmem:[#allocation8 + $0x15c0] sm:$0xff]  ;;  %v13747_v22 = vcombine.high %v724_v16, %v736_v17  ;;  %7541 = vmatprep.subr.bf16.mxu1 %v14155_v15  ;;  %v13746_v28 = vcombine.low %v724_v16, %v736_v17  ;;  %v13604_v17 = vcombine.low %v581_v4, %v593_v5 }
  0xc8   : > { %v1120_v19 = vld [vmem:[#allocation8 + $0x1620] sm:$0xff]  ;;  %7542 = vmatpush2.bf16.msra.mxu1 %v14154_v21 }
  0xc9   : > { %v14131_v23 = vcombine.high %v1108_v18, %v1120_v19  ;;  %v700_v24 = vld [vmem:[#allocation8 + $0x900] sm:$0xff]  ;;  %7500 = vmatprep.subr.bf16.mxu0 %v13747_v22  ;;  %v14130_v29 = vcombine.low %v1108_v18, %v1120_v19  ;;  %v13581_v19 = vcombine.high %v557_v13, %v569_v14 }
  0xca   : > { %v712_v25 = vld [vmem:[#allocation8 + $0x960] sm:$0xff]  ;;  %7501 = vmatpush2.bf16.msra.mxu0 %v13746_v28 }
  0xcb   : > { %v1084_v26 = vld [vmem:[#allocation8 + $0x1500] sm:$0xff]  ;;  %v13723_v30 = vcombine.high %v700_v24, %v712_v25  ;;  %7543 = vmatprep.subr.bf16.mxu1 %v14131_v23  ;;  %v13722_v36 = vcombine.low %v700_v24, %v712_v25  ;;  %v533_v23 = vld [vmem:[#allocation8 + $0x3c8] sm:$0xff] }
  0xcc   : > { %v1096_v27 = vld [vmem:[#allocation8 + $0x1560] sm:$0xff]  ;;  %7544 = vmatpush2.bf16.msra.mxu1 %v14130_v29  ;;  %v545_v24 = vld [vmem:[#allocation8 + $0x428] sm:$0xff] }
  0xcd   : > { %v14107_v31 = vcombine.high %v1084_v26, %v1096_v27  ;;  %v676_v32 = vld [vmem:[#allocation8 + $0x840] sm:$0xff]  ;;  %7502 = vmatprep.subr.bf16.mxu0 %v13723_v30  ;;  %v14106_v37 = vcombine.low %v1084_v26, %v1096_v27  ;;  %v13580_v26 = vcombine.low %v557_v13, %v569_v14  ;;  %v13557_v30 = vcombine.high %v533_v23, %v545_v24 }
  0xce   : > { %v688_v33 = vld [vmem:[#allocation8 + $0x8a0] sm:$0xff]  ;;  %7503 = vmatpush2.bf16.msra.mxu0 %v13722_v36 }
  0xcf   : > { %v1060_v34 = vld [vmem:[#allocation8 + $0x1440] sm:$0xff]  ;;  %v13699_v38 = vcombine.high %v676_v32, %v688_v33  ;;  %7545 = vmatprep.subr.bf16.mxu1 %v14107_v31  ;;  %v13698_v44 = vcombine.low %v676_v32, %v688_v33  ;;  %v509_v31 = vld [vmem:[#allocation8 + $0x308] sm:$0xff] }
  0xd0   : > { %v1072_v35 = vld [vmem:[#allocation8 + $0x14a0] sm:$0xff]  ;;  %7546 = vmatpush2.bf16.msra.mxu1 %v14106_v37  ;;  %v521_v32 = vld [vmem:[#allocation8 + $0x368] sm:$0xff] }
  0xd1   : > { %v14083_v39 = vcombine.high %v1060_v34, %v1072_v35  ;;  %v652_v40 = vld [vmem:[#allocation8 + $0x780] sm:$0xff]  ;;  %7504 = vmatprep.subr.bf16.mxu0 %v13699_v38  ;;  %v14082_v45 = vcombine.low %v1060_v34, %v1072_v35  ;;  %v13556_v34 = vcombine.low %v533_v23, %v545_v24  ;;  %v485_v38 = vld [vmem:[#allocation8 + $0x248] sm:$0xff] }
  0xd2   : > { %v664_v41 = vld [vmem:[#allocation8 + $0x7e0] sm:$0xff]  ;;  %7505 = vmatpush2.bf16.msra.mxu0 %v13698_v44 }
  0xd3   : > { %v1036_v42 = vld [vmem:[#allocation8 + $0x1380] sm:$0xff]  ;;  %v13675_v46 = vcombine.high %v652_v40, %v664_v41  ;;  %7547 = vmatprep.subr.bf16.mxu1 %v14083_v39  ;;  %v13674_v52 = vcombine.low %v652_v40, %v664_v41  ;;  %v13533_v39 = vcombine.high %v509_v31, %v521_v32  ;;  %v497_v40 = vld [vmem:[#allocation8 + $0x2a8] sm:$0xff] }
  0xd4   : > { %v1048_v43 = vld [vmem:[#allocation8 + $0x13e0] sm:$0xff]  ;;  %7548 = vmatpush2.bf16.msra.mxu1 %v14082_v45  ;;  %v461_v45 = vld [vmem:[#allocation8 + $0x188] sm:$0xff] }
  0xd5   : > { %v14059_v47 = vcombine.high %v1036_v42, %v1048_v43  ;;  %v628_v48 = vld [vmem:[#allocation8 + $0x6c0] sm:$0xff]  ;;  %7506 = vmatprep.subr.bf16.mxu0 %v13675_v46  ;;  %v14058_v53 = vcombine.low %v1036_v42, %v1048_v43  ;;  %v13532_v42 = vcombine.low %v509_v31, %v521_v32  ;;  %v13509_v46 = vcombine.high %v485_v38, %v497_v40 }
  0xd6   : > { %v640_v49 = vld [vmem:[#allocation8 + $0x720] sm:$0xff]  ;;  %7507 = vmatpush2.bf16.msra.mxu0 %v13674_v52 }
  0xd7   : > { %v1012_v50 = vld [vmem:[#allocation8 + $0x12c0] sm:$0xff]  ;;  %v13651_v54 = vcombine.high %v628_v48, %v640_v49  ;;  %7549 = vmatprep.subr.bf16.mxu1 %v14059_v47  ;;  %v13650_v62 = vcombine.low %v628_v48, %v640_v49  ;;  %v473_v47 = vld [vmem:[#allocation8 + $0x1e8] sm:$0xff]  ;;  %v13508_v49 = vcombine.low %v485_v38, %v497_v40 }
  0xd8   : > { %v1024_v51 = vld [vmem:[#allocation8 + $0x1320] sm:$0xff]  ;;  %7550 = vmatpush2.bf16.msra.mxu1 %v14058_v53  ;;  %v437_v53 = vld [vmem:[#allocation8 + $0xc8] sm:$0xff] }
  0xd9   : > { %v14035_v55 = vcombine.high %v1012_v50, %v1024_v51  ;;  %v604_v56 = vld [vmem:[#allocation8 + $0x600] sm:$0xff]  ;;  %7508 = vmatprep.subr.bf16.mxu0 %v13651_v54  ;;  %v14034_v63 = vcombine.low %v1012_v50, %v1024_v51  ;;  %v13485_v54 = vcombine.high %v461_v45, %v473_v47 }
  0xda   : > { %v616_v58 = vld [vmem:[#allocation8 + $0x660] sm:$0xff]  ;;  %7509 = vmatpush2.bf16.msra.mxu0 %v13650_v62 }
  0xdb   : > { %v988_v60 = vld [vmem:[#allocation8 + $0x1200] sm:$0xff]  ;;  %v13627_v0 = vcombine.high %v604_v56, %v616_v58  ;;  %7551 = vmatprep.subr.bf16.mxu1 %v14035_v55  ;;  %v13626_v6 = vcombine.low %v604_v56, %v616_v58  ;;  %v449_v55 = vld [vmem:[#allocation8 + $0x128] sm:$0xff]  ;;  %v13484_v58 = vcombine.low %v461_v45, %v473_v47 }
  0xdc   : > { %v1000_v61 = vld [vmem:[#allocation8 + $0x1260] sm:$0xff]  ;;  %7552 = vmatpush2.bf16.msra.mxu1 %v14034_v63  ;;  %v413_v63 = vld [vmem:[#allocation8 + $0x8] sm:$0xff] }
  0xdd   : > { %v14011_v1 = vcombine.high %v988_v60, %v1000_v61  ;;  %v1348_v2 = vld [vmem:[#allocation8 + $0x1d40] sm:$0xff]  ;;  %7510 = vmatprep.subr.bf16.mxu0 %v13627_v0  ;;  %v14010_v7 = vcombine.low %v988_v60, %v1000_v61  ;;  %v13461_v0 = vcombine.high %v437_v53, %v449_v55 }
  0xde   : > { %v1360_v3 = vld [vmem:[#allocation8 + $0x1da0] sm:$0xff]  ;;  %7511 = vmatpush2.bf16.msra.mxu0 %v13626_v6 }
  0xdf   : > { %v14371_v8 = vcombine.high %v1348_v2, %v1360_v3  ;;  %7553 = vmatprep.subr.bf16.mxu1 %v14011_v1  ;;  %v1324_v10 = vld [vmem:[#allocation8 + $0x1c80] sm:$0xff]  ;;  %v14370_v15 = vcombine.low %v1348_v2, %v1360_v3  ;;  %v425_v1 = vld [vmem:[#allocation8 + $0x68] sm:$0xff]  ;;  %v13460_v3 = vcombine.low %v437_v53, %v449_v55 }
  0xe0   : > { %v1336_v11 = vld [vmem:[#allocation8 + $0x1ce0] sm:$0xff]  ;;  %7554 = vmatpush2.bf16.msra.mxu1 %v14010_v7  ;;  %v773_v7 = vld [vmem:[#allocation8 + $0xb48] sm:$0xff] }
  0xe1   : > { %v16489_v12 = vld [vmem:[%s16456_s15] ss:$24 sps:$4 sm:$0xff]   ;;  %7566 = vmatprep.subr.bf16.mxu0 %v14371_v8  ;;  %v14347_v18 = vcombine.high %v1324_v10, %v1336_v11  ;;  %7609 = vmatprep.subr.bf16.mxu1 %v13605_v9  ;;  %v16493_v22 = vld [vmem:[%s16456_s15 + $0x14] ss:$24 sps:$4 sm:$0xff]   ;;  %v14346_v25 = vcombine.low %v1324_v10, %v1336_v11  ;;  %v13437_v8 = vcombine.high %v413_v63, %v425_v1 }
  0xe2   : > { %v15295_v16 = vld [vmem:[%s16456_s15 + $0x8] ss:$24 sps:$4 sm:$0xff]   ;;  %7513 = vmatmul.mubr.bf16.vlgmr.msra.gmra.mxu0 %v16489_v12  ;;  %v13436_v11 = vcombine.low %v413_v63, %v425_v1 }
  0xe3   : > { %v1300_v20 = vld [vmem:[#allocation8 + $0x1bc0] sm:$0xff]  ;;  %7556 = vmatmul.mubr.bf16.vlgmr.msra.gmra.mxu1 %v15295_v16  ;;  %7567 = vmatpush1.bf16.msra.mxu0 %v14370_v15  ;;  %v785_v9 = vld [vmem:[#allocation8 + $0xba8] sm:$0xff] }
  0xe4   : > { %v1312_v21 = vld [vmem:[#allocation8 + $0x1c20] sm:$0xff]  ;;  %7610 = vmatpush1.bf16.msra.mxu1 %v13604_v17  ;;  %7568 = vmatprep.subr.bf16.mxu0 %v14347_v18  ;;  %v749_v16 = vld [vmem:[#allocation8 + $0xa88] sm:$0xff]  ;;  %v13797_v17 = vcombine.high %v773_v7, %v785_v9 }
  0xe5   : > { %v14323_v27 = vcombine.high %v1300_v20, %v1312_v21  ;;  %v1276_v28 = vld [vmem:[#allocation8 + $0x1b00] sm:$0xff]  ;;  %7611 = vmatprep.subr.bf16.mxu1 %v13581_v19  ;;  %7598 = vmatprep.mubr.bf16.mxu0 %v16493_v22  ;;  %v14322_v33 = vcombine.low %v1300_v20, %v1312_v21  ;;  %v761_v18 = vld [vmem:[#allocation8 + $0xae8] sm:$0xff]  ;;  %v13796_v20 = vcombine.low %v773_v7, %v785_v9 }
  0xe6   : > { %v1288_v29 = vld [vmem:[#allocation8 + $0x1b60] sm:$0xff]  ;;  %7641 = vmatprep.mubr.bf16.mxu1 %v16481_v57  ;;  %v977_v9 = vld [vmem:[#allocation8 + $0x11a8] sm:$0xff] }
  0xe7   : > { %7569 = vmatpush1.bf16.msra.mxu0 %v14346_v25  ;;  %v14299_v35 = vcombine.high %v1276_v28, %v1288_v29  ;;  %v1252_v36 = vld [vmem:[#allocation8 + $0x1a40] sm:$0xff]  ;;  %v14298_v41 = vcombine.low %v1276_v28, %v1288_v29  ;;  %v725_v25 = vld [vmem:[#allocation8 + $0x9c8] sm:$0xff]  ;;  %v13772_v29 = vcombine.low %v749_v16, %v761_v18 }
  0xe8   : > { %7612 = vmatpush1.bf16.msra.mxu1 %v13580_v26  ;;  %7570 = vmatprep.subr.bf16.mxu0 %v14323_v27  ;;  %v1264_v37 = vld [vmem:[#allocation8 + $0x1aa0] sm:$0xff]  ;;  %v13773_v26 = vcombine.high %v749_v16, %v761_v18  ;;  %v737_v27 = vld [vmem:[#allocation8 + $0xa28] sm:$0xff] }
  0xe9   : > { %7613 = vmatprep.subr.bf16.mxu1 %v13557_v30  ;;  %v14275_v43 = vcombine.high %v1252_v36, %v1264_v37  ;;  %v1228_v44 = vld [vmem:[#allocation8 + $0x1980] sm:$0xff]  ;;  %v14274_v48 = vcombine.low %v1252_v36, %v1264_v37  ;;  %v13748_v37 = vcombine.low %v725_v25, %v737_v27  ;;  %v941_v18 = vld [vmem:[#allocation8 + $0x1088] sm:$0xff] }
  0xea   : > { %v1240_v57 = vld [vmem:[#allocation8 + $0x19e0] sm:$0xff] }
  0xeb   : > { %7571 = vmatpush1.bf16.msra.mxu0 %v14322_v33  ;;  %v14251_v50 = vcombine.high %v1228_v44, %v1240_v57  ;;  %v1204_v51 = vld [vmem:[#allocation8 + $0x18c0] sm:$0xff]  ;;  %v14250_v56 = vcombine.low %v1228_v44, %v1240_v57  ;;  %v701_v33 = vld [vmem:[#allocation8 + $0x908] sm:$0xff] }
  0xec   : > { %7614 = vmatpush1.bf16.msra.mxu1 %v13556_v34  ;;  %7572 = vmatprep.subr.bf16.mxu0 %v14299_v35  ;;  %v1216_v52 = vld [vmem:[#allocation8 + $0x1920] sm:$0xff]  ;;  %v13749_v34 = vcombine.high %v725_v25, %v737_v27  ;;  %v713_v35 = vld [vmem:[#allocation8 + $0x968] sm:$0xff] }
  0xed   : > { %7615 = vmatprep.subr.bf16.mxu1 %v13533_v39  ;;  %v14227_v60 = vcombine.high %v1204_v51, %v1216_v52  ;;  %v1180_v61 = vld [vmem:[#allocation8 + $0x1800] sm:$0xff]  ;;  %v14226_v2 = vcombine.low %v1204_v51, %v1216_v52  ;;  %v13724_v57 = vcombine.low %v701_v33, %v713_v35  ;;  %v917_v27 = vld [vmem:[#allocation8 + $0xfc8] sm:$0xff] }
  0xee   : > { %v1192_v62 = vld [vmem:[#allocation8 + $0x1860] sm:$0xff] }
  0xef   : > { %7573 = vmatpush1.bf16.msra.mxu0 %v14298_v41  ;;  %v14203_v4 = vcombine.high %v1180_v61, %v1192_v62  ;;  %v1540_v5 = vld [vmem:[#allocation8 + $0x2340] sm:$0xff]  ;;  %v14202_v10 = vcombine.low %v1180_v61, %v1192_v62  ;;  %v677_v41 = vld [vmem:[#allocation8 + $0x848] sm:$0xff] }
  0xf0   : > { %7616 = vmatpush1.bf16.msra.mxu1 %v13532_v42  ;;  %7574 = vmatprep.subr.bf16.mxu0 %v14275_v43  ;;  %v1552_v6 = vld [vmem:[#allocation8 + $0x23a0] sm:$0xff]  ;;  %v13725_v42 = vcombine.high %v701_v33, %v713_v35  ;;  %v689_v43 = vld [vmem:[#allocation8 + $0x8a8] sm:$0xff] }
  0xf1   : > { %7617 = vmatprep.subr.bf16.mxu1 %v13509_v46  ;;  %v14563_v13 = vcombine.high %v1540_v5, %v1552_v6  ;;  %v1516_v14 = vld [vmem:[#allocation8 + $0x2280] sm:$0xff]  ;;  %v14562_v19 = vcombine.low %v1540_v5, %v1552_v6  ;;  %v13700_v52 = vcombine.low %v677_v41, %v689_v43  ;;  %v893_v35 = vld [vmem:[#allocation8 + $0xf08] sm:$0xff] }
  0xf2   : > { %v1528_v15 = vld [vmem:[#allocation8 + $0x22e0] sm:$0xff] }
  0xf3   : > { %7575 = vmatpush1.bf16.msra.mxu0 %v14274_v48  ;;  %v14539_v21 = vcombine.high %v1516_v14, %v1528_v15  ;;  %v1492_v23 = vld [vmem:[#allocation8 + $0x21c0] sm:$0xff]  ;;  %v14538_v28 = vcombine.low %v1516_v14, %v1528_v15  ;;  %v653_v48 = vld [vmem:[#allocation8 + $0x788] sm:$0xff] }
  0xf4   : > { %7618 = vmatpush1.bf16.msra.mxu1 %v13508_v49  ;;  %7576 = vmatprep.subr.bf16.mxu0 %v14251_v50  ;;  %v1504_v24 = vld [vmem:[#allocation8 + $0x2220] sm:$0xff]  ;;  %v13701_v49 = vcombine.high %v677_v41, %v689_v43  ;;  %v665_v50 = vld [vmem:[#allocation8 + $0x7e8] sm:$0xff] }
  0xf5   : > { %7619 = vmatprep.subr.bf16.mxu1 %v13485_v54  ;;  %v14515_v30 = vcombine.high %v1492_v23, %v1504_v24  ;;  %v1468_v31 = vld [vmem:[#allocation8 + $0x2100] sm:$0xff]  ;;  %v14514_v36 = vcombine.low %v1492_v23, %v1504_v24  ;;  %v13676_v62 = vcombine.low %v653_v48, %v665_v50  ;;  %v1337_v23 = vld [vmem:[#allocation8 + $0x1ce8] sm:$0xff] }
  0xf6   : > { %v1480_v32 = vld [vmem:[#allocation8 + $0x2160] sm:$0xff]  ;;  %v881_v43 = vld [vmem:[#allocation8 + $0xea8] sm:$0xff] }
  0xf7   : > { %7577 = vmatpush1.bf16.msra.mxu0 %v14250_v56  ;;  %v14491_v38 = vcombine.high %v1468_v31, %v1480_v32  ;;  %v1444_v39 = vld [vmem:[#allocation8 + $0x2040] sm:$0xff]  ;;  %v14490_v44 = vcombine.low %v1468_v31, %v1480_v32  ;;  %v629_v56 = vld [vmem:[#allocation8 + $0x6c8] sm:$0xff] }
  0xf8   : > { %7620 = vmatpush1.bf16.msra.mxu1 %v13484_v58  ;;  %7578 = vmatprep.subr.bf16.mxu0 %v14227_v60  ;;  %v1456_v40 = vld [vmem:[#allocation8 + $0x20a0] sm:$0xff]  ;;  %v13677_v58 = vcombine.high %v653_v48, %v665_v50  ;;  %v641_v60 = vld [vmem:[#allocation8 + $0x728] sm:$0xff] }
  0xf9   : > { %7621 = vmatprep.subr.bf16.mxu1 %v13461_v0  ;;  %v14467_v45 = vcombine.high %v1444_v39, %v1456_v40  ;;  %v1420_v46 = vld [vmem:[#allocation8 + $0x1f80] sm:$0xff]  ;;  %v14466_v51 = vcombine.low %v1444_v39, %v1456_v40  ;;  %v13652_v6 = vcombine.low %v629_v56, %v641_v60  ;;  %v1313_v31 = vld [vmem:[#allocation8 + $0x1c28] sm:$0xff] }
  0xfa   : > { %v1432_v47 = vld [vmem:[#allocation8 + $0x1fe0] sm:$0xff]  ;;  %v1289_v39 = vld [vmem:[#allocation8 + $0x1b68] sm:$0xff] }
  0xfb   : > { %7579 = vmatpush1.bf16.msra.mxu0 %v14226_v2  ;;  %v14443_v53 = vcombine.high %v1420_v46, %v1432_v47  ;;  %v1396_v54 = vld [vmem:[#allocation8 + $0x1ec0] sm:$0xff]  ;;  %v14442_v61 = vcombine.low %v1420_v46, %v1432_v47  ;;  %v605_v2 = vld [vmem:[#allocation8 + $0x608] sm:$0xff] }
  0xfc   : > { %7622 = vmatpush1.bf16.msra.mxu1 %v13460_v3  ;;  %7580 = vmatprep.subr.bf16.mxu0 %v14203_v4  ;;  %v1408_v55 = vld [vmem:[#allocation8 + $0x1f20] sm:$0xff]  ;;  %v13653_v3 = vcombine.high %v629_v56, %v641_v60  ;;  %v617_v4 = vld [vmem:[#allocation8 + $0x668] sm:$0xff] }
  0xfd   : > { %7623 = vmatprep.subr.bf16.mxu1 %v13437_v8  ;;  %v14419_v63 = vcombine.high %v1396_v54, %v1408_v55  ;;  %v1372_v0 = vld [vmem:[#allocation8 + $0x1e00] sm:$0xff]  ;;  %v14418_v5 = vcombine.low %v1396_v54, %v1408_v55  ;;  %v965_v8 = vld [vmem:[#allocation8 + $0x1148] sm:$0xff]  ;;  %v13628_v15 = vcombine.low %v605_v2, %v617_v4 }
  0xfe   : > { %v1384_v1 = vld [vmem:[#allocation8 + $0x1e60] sm:$0xff]  ;;  %v13988_v24 = vcombine.low %v965_v8, %v977_v9  ;;  %v845_v48 = vld [vmem:[#allocation8 + $0xd88] sm:$0xff] }
  0xff   : > { %7581 = vmatpush1.bf16.msra.mxu0 %v14202_v10  ;;  %v14395_v7 = vcombine.high %v1372_v0, %v1384_v1  ;;  %v1349_v10 = vld [vmem:[#allocation8 + $0x1d48] sm:$0xff]  ;;  %v14394_v14 = vcombine.low %v1372_v0, %v1384_v1 }
 0x100   : > { %7624 = vmatpush1.bf16.msra.mxu1 %v13436_v11  ;;  %7582 = vmatprep.subr.bf16.mxu0 %v14563_v13  ;;  %v13629_v11 = vcombine.high %v605_v2, %v617_v4  ;;  %v1361_v13 = vld [vmem:[#allocation8 + $0x1da8] sm:$0xff] }
 0x101   : > { %7625 = vmatprep.subr.bf16.mxu1 %v13797_v17  ;;  %v16499_v16 = vld [vmem:[%s16456_s15 + $0x10] ss:$24 sps:$4 sm:$0xff]   ;;  %v13989_v17 = vcombine.high %v965_v8, %v977_v9  ;;  %v14372_v25 = vcombine.low %v1349_v10, %v1361_v13 }
 0x102   : > { %v821_v55 = vld [vmem:[#allocation8 + $0xcc8] sm:$0xff] }
 0x103   : > { %7583 = vmatpush2.bf16.msra.mxu0 %v14562_v19  ;;  %v953_v19 = vld [vmem:[#allocation8 + $0x10e8] sm:$0xff] }
 0x104   : > { %7626 = vmatpush2.bf16.msra.mxu1 %v13796_v20  ;;  %7584 = vmatprep.subr.bf16.mxu0 %v14539_v21  ;;  %v1325_v20 = vld [vmem:[#allocation8 + $0x1c88] sm:$0xff]  ;;  %v14373_v21 = vcombine.high %v1349_v10, %v1361_v13  ;;  %v13964_v32 = vcombine.low %v941_v18, %v953_v19 }
 0x105   : > { %7627 = vmatprep.subr.bf16.mxu1 %v13773_v26  ;;  %v13965_v26 = vcombine.high %v941_v18, %v953_v19  ;;  %v14348_v33 = vcombine.low %v1325_v20, %v1337_v23  ;;  %v833_v56 = vld [vmem:[#allocation8 + $0xd28] sm:$0xff] }
 0x106   : > { %v13845_v0 = vcombine.high %v821_v55, %v833_v56  ;;  %v797_v1 = vld [vmem:[#allocation8 + $0xc08] sm:$0xff] }
 0x107   : > { %7585 = vmatpush2.bf16.msra.mxu0 %v14538_v28  ;;  %v929_v28 = vld [vmem:[#allocation8 + $0x1028] sm:$0xff] }
 0x108   : > { %7628 = vmatpush2.bf16.msra.mxu1 %v13772_v29  ;;  %7586 = vmatprep.subr.bf16.mxu0 %v14515_v30  ;;  %v14349_v29 = vcombine.high %v1325_v20, %v1337_v23  ;;  %v1301_v30 = vld [vmem:[#allocation8 + $0x1bc8] sm:$0xff]  ;;  %v13940_v40 = vcombine.low %v917_v27, %v929_v28 }
 0x109   : > { %7629 = vmatprep.subr.bf16.mxu1 %v13749_v34  ;;  %v13941_v34 = vcombine.high %v917_v27, %v929_v28  ;;  %v809_v2 = vld [vmem:[#allocation8 + $0xc68] sm:$0xff] }
 0x10a   : > { %v13821_v8 = vcombine.high %v797_v1, %v809_v2  ;;  %v1157_v9 = vld [vmem:[#allocation8 + $0x1748] sm:$0xff] }
 0x10b   : > { %7587 = vmatpush2.bf16.msra.mxu0 %v14514_v36  ;;  %v905_v36 = vld [vmem:[#allocation8 + $0xf68] sm:$0xff] }
 0x10c   : > { %7630 = vmatpush2.bf16.msra.mxu1 %v13748_v37  ;;  %7588 = vmatprep.subr.bf16.mxu0 %v14491_v38  ;;  %v1277_v37 = vld [vmem:[#allocation8 + $0x1b08] sm:$0xff]  ;;  %v14325_v38 = vcombine.high %v1301_v30, %v1313_v31  ;;  %v13917_v41 = vcombine.high %v893_v35, %v905_v36  ;;  %v13916_v46 = vcombine.low %v893_v35, %v905_v36 }
 0x10d   : > { %7631 = vmatprep.subr.bf16.mxu1 %v13725_v42  ;;  %v869_v42 = vld [vmem:[#allocation8 + $0xe48] sm:$0xff]  ;;  %v14300_v47 = vcombine.low %v1277_v37, %v1289_v39 }
 0x10e   : > { %v1169_v10 = vld [vmem:[#allocation8 + $0x17a8] sm:$0xff] }
 0x10f   : > { %7589 = vmatpush2.bf16.msra.mxu0 %v14490_v44  ;;  %v1253_v44 = vld [vmem:[#allocation8 + $0x1a48] sm:$0xff]  ;;  %v14181_v18 = vcombine.high %v1157_v9, %v1169_v10 }
 0x110   : > { %7632 = vmatpush2.bf16.msra.mxu1 %v13724_v57  ;;  %7590 = vmatprep.subr.bf16.mxu0 %v14467_v45  ;;  %v14301_v57 = vcombine.high %v1277_v37, %v1289_v39  ;;  %v1265_v45 = vld [vmem:[#allocation8 + $0x1aa8] sm:$0xff] }
 0x111   : > { %7633 = vmatprep.subr.bf16.mxu1 %v13701_v49  ;;  %v1229_v49 = vld [vmem:[#allocation8 + $0x1988] sm:$0xff]  ;;  %v14277_v50 = vcombine.high %v1253_v44, %v1265_v45 }
 0x112   : > { %v1133_v19 = vld [vmem:[#allocation8 + $0x1688] sm:$0xff] }
 0x113   : > { %7591 = vmatpush2.bf16.msra.mxu0 %v14466_v51  ;;  %v1241_v51 = vld [vmem:[#allocation8 + $0x19e8] sm:$0xff] }
 0x114   : > { %7634 = vmatpush2.bf16.msra.mxu1 %v13700_v52  ;;  %7592 = vmatprep.subr.bf16.mxu0 %v14443_v53  ;;  %v13892_v52 = vcombine.low %v869_v42, %v881_v43  ;;  %v14276_v53 = vcombine.low %v1253_v44, %v1265_v45  ;;  %v14253_v60 = vcombine.high %v1229_v49, %v1241_v51  ;;  %v1145_v20 = vld [vmem:[#allocation8 + $0x16e8] sm:$0xff] }
 0x115   : > { %7635 = vmatprep.subr.bf16.mxu1 %v13677_v58  ;;  %v1205_v58 = vld [vmem:[#allocation8 + $0x18c8] sm:$0xff]  ;;  %v14157_v27 = vcombine.high %v1133_v19, %v1145_v20 }
 0x116   : > { %v1109_v28 = vld [vmem:[#allocation8 + $0x15c8] sm:$0xff] }
 0x117   : > { %7593 = vmatpush2.bf16.msra.mxu0 %v14442_v61  ;;  %v1217_v61 = vld [vmem:[#allocation8 + $0x1928] sm:$0xff] }
 0x118   : > { %7636 = vmatpush2.bf16.msra.mxu1 %v13676_v62  ;;  %7594 = vmatprep.subr.bf16.mxu0 %v14419_v63  ;;  %v14252_v63 = vcombine.low %v1229_v49, %v1241_v51  ;;  %v14229_v4 = vcombine.high %v1205_v58, %v1217_v61  ;;  %v1085_v36 = vld [vmem:[#allocation8 + $0x1508] sm:$0xff] }
 0x119   : > { %7637 = vmatprep.subr.bf16.mxu1 %v13653_v3  ;;  %v1181_v3 = vld [vmem:[#allocation8 + $0x1808] sm:$0xff] }
 0x11a   : > { %v1097_v37 = vld [vmem:[#allocation8 + $0x1568] sm:$0xff] }
 0x11b   : > { %7595 = vmatpush2.bf16.msra.mxu0 %v14418_v5  ;;  %v1193_v5 = vld [vmem:[#allocation8 + $0x1868] sm:$0xff] }
 0x11c   : > { %7638 = vmatpush2.bf16.msra.mxu1 %v13652_v6  ;;  %7596 = vmatprep.subr.bf16.mxu0 %v14395_v7  ;;  %v13844_v6 = vcombine.low %v821_v55, %v833_v56  ;;  %v14228_v7 = vcombine.low %v1205_v58, %v1217_v61  ;;  %v14205_v13 = vcombine.high %v1181_v3, %v1193_v5  ;;  %v1073_v44 = vld [vmem:[#allocation8 + $0x14a8] sm:$0xff] }
 0x11d   : > { %7639 = vmatprep.subr.bf16.mxu1 %v13629_v11  ;;  %v1541_v11 = vld [vmem:[#allocation8 + $0x2348] sm:$0xff] }
 0x11e   : > { %v1049_v49 = vld [vmem:[#allocation8 + $0x13e8] sm:$0xff] }
 0x11f   : > { %7597 = vmatpush2.bf16.msra.mxu0 %v14394_v14  ;;  %v1553_v14 = vld [vmem:[#allocation8 + $0x23a8] sm:$0xff] }
 0x120   : > { %7640 = vmatpush2.bf16.msra.mxu1 %v13628_v15  ;;  %7652 = vmatprep.subr.bf16.mxu0 %v13989_v17  ;;  %v13820_v15 = vcombine.low %v797_v1, %v809_v2  ;;  %v14204_v17 = vcombine.low %v1181_v3, %v1193_v5  ;;  %v14565_v23 = vcombine.high %v1541_v11, %v1553_v14  ;;  %v1013_v56 = vld [vmem:[#allocation8 + $0x12c8] sm:$0xff] }
 0x121   : > { %7695 = vmatprep.subr.bf16.mxu1 %v14373_v21  ;;  %v1517_v21 = vld [vmem:[#allocation8 + $0x2288] sm:$0xff] }
 0x122   : > { %7599 = vmatmul.mubr.bf16.vlgmr.msra.gmra.mxu0 %v16499_v16  ;;  %v1025_v58 = vld [vmem:[#allocation8 + $0x1328] sm:$0xff] }
 0x123   : > { %7642 = vmatmul.mubr.bf16.vlgmr.msra.gmra.mxu1 %v16489_v12  ;;  %7653 = vmatpush1.bf16.msra.mxu0 %v13988_v24  ;;  %v14324_v12 = vcombine.low %v1301_v30, %v1313_v31  ;;  %v1529_v24 = vld [vmem:[#allocation8 + $0x22e8] sm:$0xff]  ;;  %v14037_v1 = vcombine.high %v1013_v56, %v1025_v58 }
 0x124   : > { %7696 = vmatpush1.bf16.msra.mxu1 %v14372_v25  ;;  %7654 = vmatprep.subr.bf16.mxu0 %v13965_v26  ;;  %v14180_v25 = vcombine.low %v1157_v9, %v1169_v10  ;;  %v14564_v26 = vcombine.low %v1541_v11, %v1553_v14  ;;  %v1493_v30 = vld [vmem:[#allocation8 + $0x21c8] sm:$0xff]  ;;  %v14541_v31 = vcombine.high %v1517_v21, %v1529_v24  ;;  %v582_v10 = vld [vmem:[#allocation8 + $0x550] sm:$0xff] }
 0x125   : > { %7697 = vmatprep.subr.bf16.mxu1 %v14349_v29  ;;  %7684 = vmatprep.mubr.bf16.mxu0 %v16484_v59  ;;  %v13893_v59 = vcombine.high %v869_v42, %v881_v43  ;;  %v1121_v29 = vld [vmem:[#allocation8 + $0x1628] sm:$0xff]  ;;  %v14109_v42 = vcombine.high %v1085_v36, %v1097_v37  ;;  %v594_v11 = vld [vmem:[#allocation8 + $0x5b0] sm:$0xff] }
 0x126   : > { %7727 = vmatprep.mubr.bf16.mxu1 %v16493_v22  ;;  %v857_v22 = vld [vmem:[#allocation8 + $0xde8] sm:$0xff]  ;;  %v14133_v35 = vcombine.high %v1109_v28, %v1121_v29 }
 0x127   : > { %7655 = vmatpush1.bf16.msra.mxu0 %v13964_v32  ;;  %v13869_v54 = vcombine.high %v845_v48, %v857_v22  ;;  %v13868_v62 = vcombine.low %v845_v48, %v857_v22  ;;  %v1505_v32 = vld [vmem:[#allocation8 + $0x2228] sm:$0xff] }
 0x128   : > { %7698 = vmatpush1.bf16.msra.mxu1 %v14348_v33  ;;  %7656 = vmatprep.subr.bf16.mxu0 %v13941_v34  ;;  %v14156_v33 = vcombine.low %v1133_v19, %v1145_v20  ;;  %v14540_v34 = vcombine.low %v1517_v21, %v1529_v24  ;;  %v14517_v39 = vcombine.high %v1493_v30, %v1505_v32  ;;  %v1061_v43 = vld [vmem:[#allocation8 + $0x1448] sm:$0xff]  ;;  %v558_v20 = vld [vmem:[#allocation8 + $0x490] sm:$0xff] }
 0x129   : > { %7699 = vmatprep.subr.bf16.mxu1 %v14325_v38  ;;  %v1469_v38 = vld [vmem:[#allocation8 + $0x2108] sm:$0xff]  ;;  %v14085_v48 = vcombine.high %v1061_v43, %v1073_v44  ;;  %v13607_v19 = vcombine.high %v582_v10, %v594_v11  ;;  %v570_v21 = vld [vmem:[#allocation8 + $0x4f0] sm:$0xff] }
 0x12a   : > { %v1037_v22 = vld [vmem:[#allocation8 + $0x1388] sm:$0xff] }
 0x12b   : > { %7657 = vmatpush1.bf16.msra.mxu0 %v13940_v40  ;;  %v1481_v40 = vld [vmem:[#allocation8 + $0x2168] sm:$0xff]  ;;  %v14061_v55 = vcombine.high %v1037_v22, %v1049_v49 }
 0x12c   : > { %7700 = vmatpush1.bf16.msra.mxu1 %v14324_v12  ;;  %7658 = vmatprep.subr.bf16.mxu0 %v13917_v41  ;;  %v14132_v12 = vcombine.low %v1109_v28, %v1121_v29  ;;  %v14516_v41 = vcombine.low %v1493_v30, %v1505_v32  ;;  %v14493_v45 = vcombine.high %v1469_v38, %v1481_v40  ;;  %v989_v2 = vld [vmem:[#allocation8 + $0x1208] sm:$0xff]  ;;  %v534_v29 = vld [vmem:[#allocation8 + $0x3d0] sm:$0xff] }
 0x12d   : > { %7701 = vmatprep.subr.bf16.mxu1 %v14301_v57  ;;  %v1445_v57 = vld [vmem:[#allocation8 + $0x2048] sm:$0xff]  ;;  %v13583_v28 = vcombine.high %v558_v20, %v570_v21  ;;  %v546_v30 = vld [vmem:[#allocation8 + $0x430] sm:$0xff] }
 0x12e   : > { %v1001_v3 = vld [vmem:[#allocation8 + $0x1268] sm:$0xff] }
 0x12f   : > { %7659 = vmatpush1.bf16.msra.mxu0 %v13916_v46  ;;  %v1457_v46 = vld [vmem:[#allocation8 + $0x20a8] sm:$0xff]  ;;  %v14013_v9 = vcombine.high %v989_v2, %v1001_v3 }
 0x130   : > { %7702 = vmatpush1.bf16.msra.mxu1 %v14300_v47  ;;  %7660 = vmatprep.subr.bf16.mxu0 %v13893_v59  ;;  %v14108_v47 = vcombine.low %v1085_v36, %v1097_v37  ;;  %v14492_v59 = vcombine.low %v1469_v38, %v1481_v40  ;;  %v14469_v51 = vcombine.high %v1445_v57, %v1457_v46  ;;  %v510_v38 = vld [vmem:[#allocation8 + $0x310] sm:$0xff] }
 0x131   : > { %7703 = vmatprep.subr.bf16.mxu1 %v14277_v50  ;;  %v1421_v50 = vld [vmem:[#allocation8 + $0x1f88] sm:$0xff]  ;;  %v13559_v37 = vcombine.high %v534_v29, %v546_v30  ;;  %v894_v40 = vld [vmem:[#allocation8 + $0xf10] sm:$0xff] }
 0x133   : > { %7661 = vmatpush1.bf16.msra.mxu0 %v13892_v52  ;;  %v1433_v52 = vld [vmem:[#allocation8 + $0x1fe8] sm:$0xff] }
 0x134   : > { %7704 = vmatpush1.bf16.msra.mxu1 %v14276_v53  ;;  %7662 = vmatprep.subr.bf16.mxu0 %v13869_v54  ;;  %v14084_v53 = vcombine.low %v1061_v43, %v1073_v44  ;;  %v14468_v54 = vcombine.low %v1445_v57, %v1457_v46  ;;  %v14445_v61 = vcombine.high %v1421_v50, %v1433_v52  ;;  %v15943_v43 = vld [vmem:[%s16456_s15 + $0xc] ss:$24 sps:$4 sm:$0xff]  }
 0x135   : > { %7705 = vmatprep.subr.bf16.mxu1 %v14253_v60  ;;  %v1397_v60 = vld [vmem:[#allocation8 + $0x1ec8] sm:$0xff]  ;;  %v498_v46 = vld [vmem:[#allocation8 + $0x2b0] sm:$0xff] }
 0x137   : > { %7663 = vmatpush1.bf16.msra.mxu0 %v13868_v62  ;;  %v1409_v62 = vld [vmem:[#allocation8 + $0x1f28] sm:$0xff] }
 0x138   : > { %7706 = vmatpush1.bf16.msra.mxu1 %v14252_v63  ;;  %7664 = vmatprep.subr.bf16.mxu0 %v13845_v0  ;;  %v14060_v63 = vcombine.low %v1037_v22, %v1049_v49  ;;  %v14444_v0 = vcombine.low %v1421_v50, %v1433_v52  ;;  %v14421_v5 = vcombine.high %v1397_v60, %v1409_v62  ;;  %v474_v52 = vld [vmem:[#allocation8 + $0x1f0] sm:$0xff] }
 0x139   : > { %7707 = vmatprep.subr.bf16.mxu1 %v14229_v4  ;;  %v1373_v4 = vld [vmem:[#allocation8 + $0x1e08] sm:$0xff] }
 0x13b   : > { %7665 = vmatpush1.bf16.msra.mxu0 %v13844_v6  ;;  %v1385_v6 = vld [vmem:[#allocation8 + $0x1e68] sm:$0xff] }
 0x13c   : > { %7708 = vmatpush1.bf16.msra.mxu1 %v14228_v7  ;;  %7666 = vmatprep.subr.bf16.mxu0 %v13821_v8  ;;  %v14036_v7 = vcombine.low %v1013_v56, %v1025_v58  ;;  %v14420_v8 = vcombine.low %v1397_v60, %v1409_v62  ;;  %v14397_v14 = vcombine.high %v1373_v4, %v1385_v6  ;;  %v450_v62 = vld [vmem:[#allocation8 + $0x130] sm:$0xff] }
 0x13d   : > { %7709 = vmatprep.subr.bf16.mxu1 %v14205_v13  ;;  %v966_v13 = vld [vmem:[#allocation8 + $0x1150] sm:$0xff] }
 0x13f   : > { %7667 = vmatpush1.bf16.msra.mxu0 %v13820_v15  ;;  %v978_v15 = vld [vmem:[#allocation8 + $0x11b0] sm:$0xff] }
 0x140   : > { %7710 = vmatpush1.bf16.msra.mxu1 %v14204_v17  ;;  %7668 = vmatprep.subr.bf16.mxu0 %v14181_v18  ;;  %v14012_v17 = vcombine.low %v989_v2, %v1001_v3  ;;  %v14396_v18 = vcombine.low %v1373_v4, %v1385_v6  ;;  %v13991_v24 = vcombine.high %v966_v13, %v978_v15  ;;  %v426_v6 = vld [vmem:[#allocation8 + $0x70] sm:$0xff] }
 0x141   : > { %7711 = vmatprep.subr.bf16.mxu1 %v14565_v23  ;;  %v942_v23 = vld [vmem:[#allocation8 + $0x1090] sm:$0xff] }
 0x143   : > { %7669 = vmatpush2.bf16.msra.mxu0 %v14180_v25  ;;  %v954_v25 = vld [vmem:[#allocation8 + $0x10f0] sm:$0xff] }
 0x144   : > { %7712 = vmatpush2.bf16.msra.mxu1 %v14564_v26  ;;  %7670 = vmatprep.subr.bf16.mxu0 %v14157_v27  ;;  %v13606_v26 = vcombine.low %v582_v10, %v594_v11  ;;  %v13990_v27 = vcombine.low %v966_v13, %v978_v15  ;;  %v13967_v32 = vcombine.high %v942_v23, %v954_v25  ;;  %v786_v15 = vld [vmem:[#allocation8 + $0xbb0] sm:$0xff] }
 0x145   : > { %7713 = vmatprep.subr.bf16.mxu1 %v14541_v31  ;;  %v918_v31 = vld [vmem:[#allocation8 + $0xfd0] sm:$0xff]  ;;  %v13966_v36 = vcombine.low %v942_v23, %v954_v25 }
 0x146   : > { %v762_v25 = vld [vmem:[#allocation8 + $0xaf0] sm:$0xff] }
 0x147   : > { %7671 = vmatpush2.bf16.msra.mxu0 %v14156_v33  ;;  %v930_v33 = vld [vmem:[#allocation8 + $0x1030] sm:$0xff] }
 0x148   : > { %7714 = vmatpush2.bf16.msra.mxu1 %v14540_v34  ;;  %7672 = vmatprep.subr.bf16.mxu0 %v14133_v35  ;;  %v16506_v34 = vld [vmem:[%s16456_s15 + $0x8] ss:$24 sps:$4 sm:$0xff]   ;;  %v13582_v35 = vcombine.low %v558_v20, %v570_v21  ;;  %v13942_v44 = vcombine.low %v918_v31, %v930_v33 }
 0x149   : > { %7715 = vmatprep.subr.bf16.mxu1 %v14517_v39  ;;  %v522_v39 = vld [vmem:[#allocation8 + $0x370] sm:$0xff] }
 0x14a   : > { %v13535_v57 = vcombine.high %v510_v38, %v522_v39  ;;  %v13534_v22 = vcombine.low %v510_v38, %v522_v39 }
 0x14b   : > { %7673 = vmatpush2.bf16.msra.mxu0 %v14132_v12  ;;  %v13943_v12 = vcombine.high %v918_v31, %v930_v33  ;;  %v738_v33 = vld [vmem:[#allocation8 + $0xa30] sm:$0xff] }
 0x14c   : > { %7716 = vmatpush2.bf16.msra.mxu1 %v14516_v41  ;;  %7674 = vmatprep.subr.bf16.mxu0 %v14109_v42  ;;  %v906_v41 = vld [vmem:[#allocation8 + $0xf70] sm:$0xff] }
 0x14d   : > { %7717 = vmatprep.subr.bf16.mxu1 %v14493_v45  ;;  %v16511_v42 = vld [vmem:[%s16456_s15 + $0x4] ss:$24 sps:$4 sm:$0xff]   ;;  %v13918_v49 = vcombine.low %v894_v40, %v906_v41 }
 0x14e   : > { %v486_v45 = vld [vmem:[#allocation8 + $0x250] sm:$0xff] }
 0x14f   : > { %7675 = vmatpush2.bf16.msra.mxu0 %v14108_v47  ;;  %v870_v47 = vld [vmem:[#allocation8 + $0xe50] sm:$0xff]  ;;  %v13511_v50 = vcombine.high %v486_v45, %v498_v46  ;;  %v13510_v56 = vcombine.low %v486_v45, %v498_v46 }
 0x150   : > { %7718 = vmatpush2.bf16.msra.mxu1 %v14492_v59  ;;  %7676 = vmatprep.subr.bf16.mxu0 %v14085_v48  ;;  %v13919_v59 = vcombine.high %v894_v40, %v906_v41  ;;  %v882_v48 = vld [vmem:[#allocation8 + $0xeb0] sm:$0xff] }
 0x151   : > { %7719 = vmatprep.subr.bf16.mxu1 %v14469_v51  ;;  %v462_v51 = vld [vmem:[#allocation8 + $0x190] sm:$0xff]  ;;  %v13894_v58 = vcombine.low %v870_v47, %v882_v48 }
 0x152   : > { %v13487_v60 = vcombine.high %v462_v51, %v474_v52  ;;  %v13486_v2 = vcombine.low %v462_v51, %v474_v52  ;;  %v714_v41 = vld [vmem:[#allocation8 + $0x970] sm:$0xff] }
 0x153   : > { %7677 = vmatpush2.bf16.msra.mxu0 %v14084_v53  ;;  %v846_v53 = vld [vmem:[#allocation8 + $0xd90] sm:$0xff] }
 0x154   : > { %7720 = vmatpush2.bf16.msra.mxu1 %v14468_v54  ;;  %7678 = vmatprep.subr.bf16.mxu0 %v14061_v55  ;;  %v13895_v54 = vcombine.high %v870_v47, %v882_v48  ;;  %v858_v55 = vld [vmem:[#allocation8 + $0xdf0] sm:$0xff] }
 0x155   : > { %7721 = vmatprep.subr.bf16.mxu1 %v14445_v61  ;;  %v438_v61 = vld [vmem:[#allocation8 + $0xd0] sm:$0xff]  ;;  %v13870_v3 = vcombine.low %v846_v53, %v858_v55 }
 0x156   : > { %v13463_v4 = vcombine.high %v438_v61, %v450_v62  ;;  %v13462_v10 = vcombine.low %v438_v61, %v450_v62  ;;  %v678_v47 = vld [vmem:[#allocation8 + $0x850] sm:$0xff] }
 0x157   : > { %7679 = vmatpush2.bf16.msra.mxu0 %v14060_v63  ;;  %v822_v63 = vld [vmem:[#allocation8 + $0xcd0] sm:$0xff] }
 0x158   : > { %7722 = vmatpush2.bf16.msra.mxu1 %v14444_v0  ;;  %7680 = vmatprep.subr.bf16.mxu0 %v14037_v1  ;;  %v13871_v0 = vcombine.high %v846_v53, %v858_v55  ;;  %v834_v1 = vld [vmem:[#allocation8 + $0xd30] sm:$0xff] }
 0x159   : > { %7723 = vmatprep.subr.bf16.mxu1 %v14421_v5  ;;  %v414_v5 = vld [vmem:[#allocation8 + $0x10] sm:$0xff]  ;;  %v13846_v11 = vcombine.low %v822_v63, %v834_v1 }
 0x15a   : > { %v13439_v13 = vcombine.high %v414_v5, %v426_v6  ;;  %v13438_v20 = vcombine.low %v414_v5, %v426_v6  ;;  %v1062_v48 = vld [vmem:[#allocation8 + $0x1450] sm:$0xff] }
 0x15b   : > { %7681 = vmatpush2.bf16.msra.mxu0 %v14036_v7  ;;  %v798_v7 = vld [vmem:[#allocation8 + $0xc10] sm:$0xff] }
 0x15c   : > { %7724 = vmatpush2.bf16.msra.mxu1 %v14420_v8  ;;  %7682 = vmatprep.subr.bf16.mxu0 %v14013_v9  ;;  %v13847_v8 = vcombine.high %v822_v63, %v834_v1  ;;  %v810_v9 = vld [vmem:[#allocation8 + $0xc70] sm:$0xff] }
 0x15d   : > { %7725 = vmatprep.subr.bf16.mxu1 %v14397_v14  ;;  %v774_v14 = vld [vmem:[#allocation8 + $0xb50] sm:$0xff]  ;;  %v13822_v21 = vcombine.low %v798_v7, %v810_v9 }
 0x15e   : > { %v13799_v23 = vcombine.high %v774_v14, %v786_v15  ;;  %v654_v53 = vld [vmem:[#allocation8 + $0x790] sm:$0xff] }
 0x15f   : > { %7683 = vmatpush2.bf16.msra.mxu0 %v14012_v17  ;;  %v1158_v17 = vld [vmem:[#allocation8 + $0x1750] sm:$0xff] }
 0x160   : > { %7726 = vmatpush2.bf16.msra.mxu1 %v14396_v18  ;;  %7738 = vmatprep.subr.bf16.mxu0 %v13607_v19  ;;  %v13823_v18 = vcombine.high %v798_v7, %v810_v9  ;;  %v1170_v19 = vld [vmem:[#allocation8 + $0x17b0] sm:$0xff] }
 0x161   : > { %7781 = vmatprep.subr.bf16.mxu1 %v13991_v24  ;;  %v750_v24 = vld [vmem:[#allocation8 + $0xa90] sm:$0xff] }
 0x162   : > { %7685 = vmatmul.mubr.bf16.vlgmr.msra.gmra.mxu0 %v16506_v34  ;;  %v13775_v31 = vcombine.high %v750_v24, %v762_v25  ;;  %v13774_v38 = vcombine.low %v750_v24, %v762_v25  ;;  %v1038_v55 = vld [vmem:[#allocation8 + $0x1390] sm:$0xff] }
 0x163   : > { %7728 = vmatmul.mubr.bf16.vlgmr.msra.gmra.mxu1 %v16499_v16  ;;  %7739 = vmatpush1.bf16.msra.mxu0 %v13606_v26  ;;  %v13558_v16 = vcombine.low %v534_v29, %v546_v30  ;;  %v1134_v26 = vld [vmem:[#allocation8 + $0x1690] sm:$0xff]  ;;  %v13798_v29 = vcombine.low %v774_v14, %v786_v15  ;;  %v14182_v30 = vcombine.low %v1158_v17, %v1170_v19 }
 0x164   : > { %7782 = vmatpush1.bf16.msra.mxu1 %v13990_v27  ;;  %7740 = vmatprep.subr.bf16.mxu0 %v13583_v28  ;;  %v14183_v27 = vcombine.high %v1158_v17, %v1170_v19  ;;  %v1146_v28 = vld [vmem:[#allocation8 + $0x16f0] sm:$0xff]  ;;  %v583_v19 = vld [vmem:[#allocation8 + $0x558] sm:$0xff] }
 0x165   : > { %7783 = vmatprep.subr.bf16.mxu1 %v13967_v32  ;;  %7770 = vmatprep.mubr.bf16.mxu0 %v16511_v42  ;;  %v726_v32 = vld [vmem:[#allocation8 + $0x9d0] sm:$0xff]  ;;  %v14158_v39 = vcombine.low %v1134_v26, %v1146_v28 }
 0x166   : > { %7813 = vmatprep.mubr.bf16.mxu1 %v15943_v43  ;;  %v13751_v40 = vcombine.high %v726_v32, %v738_v33  ;;  %v1086_v43 = vld [vmem:[#allocation8 + $0x1510] sm:$0xff] }
 0x167   : > { %7741 = vmatpush1.bf16.msra.mxu0 %v13582_v35  ;;  %v1110_v35 = vld [vmem:[#allocation8 + $0x15d0] sm:$0xff] }
 0x168   : > { %7784 = vmatpush1.bf16.msra.mxu1 %v13966_v36  ;;  %7742 = vmatprep.subr.bf16.mxu0 %v13559_v37  ;;  %v14159_v36 = vcombine.high %v1134_v26, %v1146_v28  ;;  %v1122_v37 = vld [vmem:[#allocation8 + $0x1630] sm:$0xff]  ;;  %v559_v28 = vld [vmem:[#allocation8 + $0x498] sm:$0xff] }
 0x169   : > { %7785 = vmatprep.subr.bf16.mxu1 %v13943_v12  ;;  %v702_v12 = vld [vmem:[#allocation8 + $0x910] sm:$0xff]  ;;  %v14134_v45 = vcombine.low %v1110_v35, %v1122_v37 }
 0x16a   : > { %v13727_v46 = vcombine.high %v702_v12, %v714_v41  ;;  %v630_v63 = vld [vmem:[#allocation8 + $0x6d0] sm:$0xff] }
 0x16b   : > { %7743 = vmatpush1.bf16.msra.mxu0 %v13558_v16  ;;  %v14135_v16 = vcombine.high %v1110_v35, %v1122_v37  ;;  %v1014_v1 = vld [vmem:[#allocation8 + $0x12d0] sm:$0xff]  ;;  %v535_v37 = vld [vmem:[#allocation8 + $0x3d8] sm:$0xff] }
 0x16c   : > { %7786 = vmatpush1.bf16.msra.mxu1 %v13942_v44  ;;  %7744 = vmatprep.subr.bf16.mxu0 %v13535_v57  ;;  %v1098_v44 = vld [vmem:[#allocation8 + $0x1570] sm:$0xff]  ;;  %v13750_v57 = vcombine.low %v726_v32, %v738_v33 }
 0x16d   : > { %7787 = vmatprep.subr.bf16.mxu1 %v13919_v59  ;;  %v690_v59 = vld [vmem:[#allocation8 + $0x8b0] sm:$0xff]  ;;  %v14110_v51 = vcombine.low %v1086_v43, %v1098_v44 }
 0x16e   : > { %v13703_v52 = vcombine.high %v678_v47, %v690_v59  ;;  %v606_v7 = vld [vmem:[#allocation8 + $0x610] sm:$0xff] }
 0x16f   : > { %7745 = vmatpush1.bf16.msra.mxu0 %v13534_v22  ;;  %v14111_v22 = vcombine.high %v1086_v43, %v1098_v44  ;;  %v990_v9 = vld [vmem:[#allocation8 + $0x1210] sm:$0xff] }
 0x170   : > { %7788 = vmatpush1.bf16.msra.mxu1 %v13918_v49  ;;  %7746 = vmatprep.subr.bf16.mxu0 %v13511_v50  ;;  %v1074_v49 = vld [vmem:[#allocation8 + $0x14b0] sm:$0xff]  ;;  %v13726_v50 = vcombine.low %v702_v12, %v714_v41 }
 0x171   : > { %7789 = vmatprep.subr.bf16.mxu1 %v13895_v54  ;;  %v666_v54 = vld [vmem:[#allocation8 + $0x7f0] sm:$0xff]  ;;  %v14086_v61 = vcombine.low %v1062_v48, %v1074_v49 }
 0x172   : > { %v13679_v62 = vcombine.high %v654_v53, %v666_v54  ;;  %v1350_v17 = vld [vmem:[#allocation8 + $0x1d50] sm:$0xff] }
 0x173   : > { %7747 = vmatpush1.bf16.msra.mxu0 %v13510_v56  ;;  %v14087_v56 = vcombine.high %v1062_v48, %v1074_v49  ;;  %v1326_v26 = vld [vmem:[#allocation8 + $0x1c90] sm:$0xff] }
 0x174   : > { %7790 = vmatpush1.bf16.msra.mxu1 %v13894_v58  ;;  %7748 = vmatprep.subr.bf16.mxu0 %v13487_v60  ;;  %v1050_v58 = vld [vmem:[#allocation8 + $0x13f0] sm:$0xff]  ;;  %v13702_v60 = vcombine.low %v678_v47, %v690_v59  ;;  %v523_v47 = vld [vmem:[#allocation8 + $0x378] sm:$0xff] }
 0x175   : > { %7791 = vmatprep.subr.bf16.mxu1 %v13871_v0  ;;  %v642_v0 = vld [vmem:[#allocation8 + $0x730] sm:$0xff]  ;;  %v14062_v5 = vcombine.low %v1038_v55, %v1050_v58 }
 0x176   : > { %v13655_v6 = vcombine.high %v630_v63, %v642_v0  ;;  %v1302_v35 = vld [vmem:[#allocation8 + $0x1bd0] sm:$0xff] }
 0x177   : > { %7749 = vmatpush1.bf16.msra.mxu0 %v13486_v2  ;;  %v14063_v2 = vcombine.high %v1038_v55, %v1050_v58  ;;  %v1254_v49 = vld [vmem:[#allocation8 + $0x1a50] sm:$0xff] }
 0x178   : > { %7792 = vmatpush1.bf16.msra.mxu1 %v13870_v3  ;;  %7750 = vmatprep.subr.bf16.mxu0 %v13463_v4  ;;  %v1026_v3 = vld [vmem:[#allocation8 + $0x1330] sm:$0xff]  ;;  %v13678_v4 = vcombine.low %v654_v53, %v666_v54 }
 0x179   : > { %7793 = vmatprep.subr.bf16.mxu1 %v13847_v8  ;;  %v618_v8 = vld [vmem:[#allocation8 + $0x670] sm:$0xff]  ;;  %v14038_v14 = vcombine.low %v1014_v1, %v1026_v3 }
 0x17a   : > { %v13631_v15 = vcombine.high %v606_v7, %v618_v8  ;;  %v1242_v58 = vld [vmem:[#allocation8 + $0x19f0] sm:$0xff] }
 0x17b   : > { %7751 = vmatpush1.bf16.msra.mxu0 %v13462_v10  ;;  %v14039_v10 = vcombine.high %v1014_v1, %v1026_v3  ;;  %v1218_v3 = vld [vmem:[#allocation8 + $0x1930] sm:$0xff] }
 0x17c   : > { %7794 = vmatpush1.bf16.msra.mxu1 %v13846_v11  ;;  %7752 = vmatprep.subr.bf16.mxu0 %v13439_v13  ;;  %v1002_v11 = vld [vmem:[#allocation8 + $0x1270] sm:$0xff]  ;;  %v13654_v13 = vcombine.low %v630_v63, %v642_v0 }
 0x17d   : > { %7795 = vmatprep.subr.bf16.mxu1 %v13823_v18  ;;  %v1362_v18 = vld [vmem:[#allocation8 + $0x1db0] sm:$0xff]  ;;  %v14014_v24 = vcombine.low %v990_v9, %v1002_v11 }
 0x17e   : > { %v14375_v25 = vcombine.high %v1350_v17, %v1362_v18 }
 0x17f   : > { %7753 = vmatpush1.bf16.msra.mxu0 %v13438_v20  ;;  %v14015_v20 = vcombine.high %v990_v9, %v1002_v11  ;;  %v1194_v11 = vld [vmem:[#allocation8 + $0x1870] sm:$0xff] }
 0x180   : > { %7796 = vmatpush1.bf16.msra.mxu1 %v13822_v21  ;;  %7754 = vmatprep.subr.bf16.mxu0 %v13799_v23  ;;  %v595_v21 = vld [vmem:[#allocation8 + $0x5b8] sm:$0xff]  ;;  %v13630_v23 = vcombine.low %v606_v7, %v618_v8 }
 0x181   : > { %7797 = vmatprep.subr.bf16.mxu1 %v14183_v27  ;;  %v1338_v27 = vld [vmem:[#allocation8 + $0x1cf0] sm:$0xff]  ;;  %v13608_v32 = vcombine.low %v583_v19, %v595_v21 }
 0x182   : > { %v14351_v33 = vcombine.high %v1326_v26, %v1338_v27  ;;  %v14350_v12 = vcombine.low %v1326_v26, %v1338_v27 }
 0x183   : > { %7755 = vmatpush2.bf16.msra.mxu0 %v13798_v29  ;;  %v13609_v29 = vcombine.high %v583_v19, %v595_v21  ;;  %v1554_v21 = vld [vmem:[#allocation8 + $0x23b0] sm:$0xff] }
 0x184   : > { %7798 = vmatpush2.bf16.msra.mxu1 %v14182_v30  ;;  %7756 = vmatprep.subr.bf16.mxu0 %v13775_v31  ;;  %v571_v30 = vld [vmem:[#allocation8 + $0x4f8] sm:$0xff]  ;;  %v14374_v31 = vcombine.low %v1350_v17, %v1362_v18 }
 0x185   : > { %7799 = vmatprep.subr.bf16.mxu1 %v14159_v36  ;;  %v1314_v36 = vld [vmem:[#allocation8 + $0x1c30] sm:$0xff]  ;;  %v13584_v41 = vcombine.low %v559_v28, %v571_v30 }
 0x186   : > { %v14327_v43 = vcombine.high %v1302_v35, %v1314_v36 }
 0x187   : > { %7757 = vmatpush2.bf16.msra.mxu0 %v13774_v38  ;;  %v13585_v38 = vcombine.high %v559_v28, %v571_v30  ;;  %v1530_v30 = vld [vmem:[#allocation8 + $0x22f0] sm:$0xff] }
 0x188   : > { %7800 = vmatpush2.bf16.msra.mxu1 %v14158_v39  ;;  %7758 = vmatprep.subr.bf16.mxu0 %v13751_v40  ;;  %v547_v39 = vld [vmem:[#allocation8 + $0x438] sm:$0xff] }
 0x189   : > { %7801 = vmatprep.subr.bf16.mxu1 %v14135_v16  ;;  %v16516_v40 = vld [vmem:[%s16456_s15] ss:$24 sps:$4 sm:$0xff]   ;;  %v13561_v44 = vcombine.high %v535_v37, %v547_v39  ;;  %v13560_v59 = vcombine.low %v535_v37, %v547_v39 }
 0x18a   : > { %v1278_v16 = vld [vmem:[#allocation8 + $0x1b10] sm:$0xff] }
 0x18b   : > { %7759 = vmatpush2.bf16.msra.mxu0 %v13750_v57  ;;  %v1290_v57 = vld [vmem:[#allocation8 + $0x1b70] sm:$0xff] }
 0x18c   : > { %7802 = vmatpush2.bf16.msra.mxu1 %v14134_v45  ;;  %7760 = vmatprep.subr.bf16.mxu0 %v13727_v46  ;;  %v16521_v45 = vld [vmem:[%s16456_s15 + $0x14] ss:$24 sps:$4 sm:$0xff]   ;;  %v14303_v48 = vcombine.high %v1278_v16, %v1290_v57  ;;  %v14302_v53 = vcombine.low %v1278_v16, %v1290_v57 }
 0x18d   : > { %7803 = vmatprep.subr.bf16.mxu1 %v14111_v22  ;;  %v511_v46 = vld [vmem:[#allocation8 + $0x318] sm:$0xff]  ;;  %v1506_v39 = vld [vmem:[#allocation8 + $0x2230] sm:$0xff] }
 0x18e   : > { %v13537_v22 = vcombine.high %v511_v46, %v523_v47  ;;  %v13536_v54 = vcombine.low %v511_v46, %v523_v47  ;;  %v1470_v46 = vld [vmem:[#allocation8 + $0x2110] sm:$0xff] }
 0x18f   : > { %7761 = vmatpush2.bf16.msra.mxu0 %v13726_v50  ;;  %v1266_v50 = vld [vmem:[#allocation8 + $0x1ab0] sm:$0xff] }
 0x190   : > { %7804 = vmatpush2.bf16.msra.mxu1 %v14110_v51  ;;  %7762 = vmatprep.subr.bf16.mxu0 %v13703_v52  ;;  %v487_v51 = vld [vmem:[#allocation8 + $0x258] sm:$0xff]  ;;  %v14279_v55 = vcombine.high %v1254_v49, %v1266_v50  ;;  %v1482_v47 = vld [vmem:[#allocation8 + $0x2170] sm:$0xff] }
 0x191   : > { %7805 = vmatprep.subr.bf16.mxu1 %v14087_v56  ;;  %v499_v52 = vld [vmem:[#allocation8 + $0x2b8] sm:$0xff]  ;;  %v1230_v56 = vld [vmem:[#allocation8 + $0x1990] sm:$0xff] }
 0x192   : > { %v13512_v63 = vcombine.low %v487_v51, %v499_v52  ;;  %v14255_v0 = vcombine.high %v1230_v56, %v1242_v58 }
 0x193   : > { %7763 = vmatpush2.bf16.msra.mxu0 %v13702_v60  ;;  %v463_v60 = vld [vmem:[#allocation8 + $0x198] sm:$0xff] }
 0x194   : > { %7806 = vmatpush2.bf16.msra.mxu1 %v14086_v61  ;;  %7764 = vmatprep.subr.bf16.mxu0 %v13679_v62  ;;  %v475_v61 = vld [vmem:[#allocation8 + $0x1f8] sm:$0xff]  ;;  %v14278_v62 = vcombine.low %v1254_v49, %v1266_v50  ;;  %v14495_v49 = vcombine.high %v1470_v46, %v1482_v47 }
 0x195   : > { %7807 = vmatprep.subr.bf16.mxu1 %v14063_v2  ;;  %v13489_v1 = vcombine.high %v463_v60, %v475_v61  ;;  %v1206_v2 = vld [vmem:[#allocation8 + $0x18d0] sm:$0xff]  ;;  %v13488_v7 = vcombine.low %v463_v60, %v475_v61 }
 0x196   : > { %v14231_v8 = vcombine.high %v1206_v2, %v1218_v3  ;;  %v1422_v60 = vld [vmem:[#allocation8 + $0x1f90] sm:$0xff] }
 0x197   : > { %7765 = vmatpush2.bf16.msra.mxu0 %v13678_v4  ;;  %v439_v4 = vld [vmem:[#allocation8 + $0xd8] sm:$0xff]  ;;  %v1434_v61 = vld [vmem:[#allocation8 + $0x1ff0] sm:$0xff] }
 0x198   : > { %7808 = vmatpush2.bf16.msra.mxu1 %v14062_v5  ;;  %7766 = vmatprep.subr.bf16.mxu0 %v13655_v6  ;;  %v451_v5 = vld [vmem:[#allocation8 + $0x138] sm:$0xff]  ;;  %v14254_v6 = vcombine.low %v1230_v56, %v1242_v58 }
 0x199   : > { %7809 = vmatprep.subr.bf16.mxu1 %v14039_v10  ;;  %v13465_v9 = vcombine.high %v439_v4, %v451_v5  ;;  %v1182_v10 = vld [vmem:[#allocation8 + $0x1810] sm:$0xff]  ;;  %v13464_v17 = vcombine.low %v439_v4, %v451_v5 }
 0x19a   : > { %v14207_v18 = vcombine.high %v1182_v10, %v1194_v11  ;;  %v1398_v5 = vld [vmem:[#allocation8 + $0x1ed0] sm:$0xff] }
 0x19b   : > { %7767 = vmatpush2.bf16.msra.mxu0 %v13654_v13  ;;  %v415_v13 = vld [vmem:[#allocation8 + $0x18] sm:$0xff] }
 0x19c   : > { %7810 = vmatpush2.bf16.msra.mxu1 %v14038_v14  ;;  %7768 = vmatprep.subr.bf16.mxu0 %v13631_v15  ;;  %v427_v14 = vld [vmem:[#allocation8 + $0x78] sm:$0xff]  ;;  %v14230_v15 = vcombine.low %v1206_v2, %v1218_v3  ;;  %v14447_v3 = vcombine.high %v1422_v60, %v1434_v61 }
 0x19d   : > { %7811 = vmatprep.subr.bf16.mxu1 %v14015_v20  ;;  %v13441_v19 = vcombine.high %v415_v13, %v427_v14  ;;  %v1542_v20 = vld [vmem:[#allocation8 + $0x2350] sm:$0xff]  ;;  %v13440_v26 = vcombine.low %v415_v13, %v427_v14 }
 0x19e   : > { %v14567_v27 = vcombine.high %v1542_v20, %v1554_v21 }
 0x19f   : > { %7769 = vmatpush2.bf16.msra.mxu0 %v13630_v23  ;;  %v775_v23 = vld [vmem:[#allocation8 + $0xb58] sm:$0xff] }
 0x1a0   : > { %7812 = vmatpush2.bf16.msra.mxu1 %v14014_v24  ;;  %7824 = vmatprep.subr.bf16.mxu0 %v14375_v25  ;;  %v787_v24 = vld [vmem:[#allocation8 + $0xbb8] sm:$0xff]  ;;  %v14206_v25 = vcombine.low %v1182_v10, %v1194_v11  ;;  %v14446_v10 = vcombine.low %v1422_v60, %v1434_v61 }
 0x1a1   : > { %7867 = vmatprep.subr.bf16.mxu1 %v13609_v29  ;;  %v13801_v28 = vcombine.high %v775_v23, %v787_v24  ;;  %v1518_v29 = vld [vmem:[#allocation8 + $0x2290] sm:$0xff]  ;;  %v1303_v60 = vld [vmem:[#allocation8 + $0x1bd8] sm:$0xff] }
 0x1a2   : > { %7771 = vmatmul.mubr.bf16.vlgmr.msra.gmra.mxu0 %v16516_v40  ;;  %v7514_v11 = vpop.f32.mrf.mxu0  ;;  %v1315_v61 = vld [vmem:[#allocation8 + $0x1c38] sm:$0xff] }
 0x1a3   : > { %7814 = vmatmul.mubr.bf16.vlgmr.msra.gmra.mxu1 %v16506_v34  ;;  %7825 = vmatpush1.bf16.msra.mxu0 %v14374_v31  ;;  %v14326_v34 = vcombine.low %v1302_v35, %v1314_v36  ;;  %v751_v31 = vld [vmem:[#allocation8 + $0xa98] sm:$0xff]  ;;  %v13800_v35 = vcombine.low %v775_v23, %v787_v24  ;;  %v14543_v36 = vcombine.high %v1518_v29, %v1530_v30  ;;  %v16531_v23 = vld [vmem:[#allocation9] sm:$0xff] }
 0x1a4   : > { %7868 = vmatpush1.bf16.msra.mxu1 %v13608_v32  ;;  %7826 = vmatprep.subr.bf16.mxu0 %v14351_v33  ;;  %v763_v32 = vld [vmem:[#allocation8 + $0xaf8] sm:$0xff]  ;;  %v14566_v33 = vcombine.low %v1542_v20, %v1554_v21 }
 0x1a5   : > { %7869 = vmatprep.subr.bf16.mxu1 %v13585_v38  ;;  %7856 = vmatprep.mubr.bf16.mxu0 %v16521_v45  ;;  %v13777_v37 = vcombine.high %v751_v31, %v763_v32  ;;  %v1494_v38 = vld [vmem:[#allocation8 + $0x21d0] sm:$0xff]  ;;  %v13776_v16 = vcombine.low %v751_v31, %v763_v32  ;;  %v607_v20 = vld [vmem:[#allocation8 + $0x618] sm:$0xff] }
 0x1a6   : > { %7899 = vmatprep.mubr.bf16.mxu1 %v16511_v42  ;;  %v13513_v42 = vcombine.high %v487_v51, %v499_v52  ;;  %v1446_v51 = vld [vmem:[#allocation8 + $0x2050] sm:$0xff]  ;;  %v619_v21 = vld [vmem:[#allocation8 + $0x678] sm:$0xff] }
 0x1a7   : > { %7827 = vmatpush1.bf16.msra.mxu0 %v14350_v12  ;;  %v727_v12 = vld [vmem:[#allocation8 + $0x9d8] sm:$0xff]  ;;  %v1458_v52 = vld [vmem:[#allocation8 + $0x20b0] sm:$0xff] }
 0x1a8   : > { %7870 = vmatpush1.bf16.msra.mxu1 %v13584_v41  ;;  %7828 = vmatprep.subr.bf16.mxu0 %v14327_v43  ;;  %v739_v41 = vld [vmem:[#allocation8 + $0xa38] sm:$0xff]  ;;  %v14542_v43 = vcombine.low %v1518_v29, %v1530_v30  ;;  %v14471_v56 = vcombine.high %v1446_v51, %v1458_v52  ;;  %v13633_v30 = vcombine.high %v607_v20, %v619_v21 }
 0x1a9   : > { %7871 = vmatprep.subr.bf16.mxu1 %v13561_v44  ;;  %v14519_v44 = vcombine.high %v1494_v38, %v1506_v39  ;;  %v13753_v57 = vcombine.high %v727_v12, %v739_v41  ;;  %v967_v31 = vld [vmem:[#allocation8 + $0x1158] sm:$0xff] }
 0x1aa   : > { %v979_v32 = vld [vmem:[#allocation8 + $0x11b8] sm:$0xff] }
 0x1ab   : > { %7829 = vmatpush1.bf16.msra.mxu0 %v14326_v34  ;;  %v703_v34 = vld [vmem:[#allocation8 + $0x918] sm:$0xff] }
 0x1ac   : > { %7872 = vmatpush1.bf16.msra.mxu1 %v13560_v59  ;;  %7830 = vmatprep.subr.bf16.mxu0 %v14303_v48  ;;  %v715_v59 = vld [vmem:[#allocation8 + $0x978] sm:$0xff]  ;;  %v14518_v48 = vcombine.low %v1494_v38, %v1506_v39 }
 0x1ad   : > { %7873 = vmatprep.subr.bf16.mxu1 %v13537_v22  ;;  %v13752_v22 = vcombine.low %v727_v12, %v739_v41  ;;  %v13729_v50 = vcombine.high %v703_v34, %v715_v59  ;;  %v13632_v41 = vcombine.low %v607_v20, %v619_v21 }
 0x1af   : > { %7831 = vmatpush1.bf16.msra.mxu0 %v14302_v53  ;;  %v679_v53 = vld [vmem:[#allocation8 + $0x858] sm:$0xff] }
 0x1b0   : > { %7874 = vmatpush1.bf16.msra.mxu1 %v13536_v54  ;;  %7832 = vmatprep.subr.bf16.mxu0 %v14279_v55  ;;  %v691_v54 = vld [vmem:[#allocation8 + $0x8b8] sm:$0xff]  ;;  %v14494_v55 = vcombine.low %v1470_v46, %v1482_v47 }
 0x1b1   : > { %7875 = vmatprep.subr.bf16.mxu1 %v13513_v42  ;;  %v13728_v42 = vcombine.low %v703_v34, %v715_v59  ;;  %v13705_v58 = vcombine.high %v679_v53, %v691_v54  ;;  %v13704_v2 = vcombine.low %v679_v53, %v691_v54  ;;  %v1327_v47 = vld [vmem:[#allocation8 + $0x1c98] sm:$0xff] }
 0x1b2   : > { %v1339_v34 = vld [vmem:[#allocation8 + $0x1cf8] sm:$0xff] }
 0x1b3   : > { %7833 = vmatpush1.bf16.msra.mxu0 %v14278_v62  ;;  %v1570_v62 = vlaneseq  ;;  %v919_v53 = vld [vmem:[#allocation8 + $0xfd8] sm:$0xff] }
 0x1b4   : > { %7876 = vmatpush1.bf16.msra.mxu1 %v13512_v63  ;;  %7834 = vmatprep.subr.bf16.mxu0 %v14255_v0  ;;  %v655_v63 = vld [vmem:[#allocation8 + $0x798] sm:$0xff] }
 0x1b5   : > { %7877 = vmatprep.subr.bf16.mxu1 %v13489_v1  ;;  %v667_v0 = vld [vmem:[#allocation8 + $0x7f8] sm:$0xff]  ;;  %v14470_v1 = vcombine.low %v1446_v51, %v1458_v52  ;;  %v14353_v52 = vcombine.high %v1327_v47, %v1339_v34  ;;  %vm13254_vm3 = vcmp.lt.s32.totalorder %v1570_v62, 768 }
 0x1b6   : > { %v13681_v4 = vcombine.high %v655_v63, %v667_v0  ;;  %v13680_v13 = vcombine.low %v655_v63, %v667_v0  ;;  %v931_v54 = vld [vmem:[#allocation8 + $0x1038] sm:$0xff] }
 0x1b7   : > { %7835 = vmatpush1.bf16.msra.mxu0 %v14254_v6  ;;  %v1410_v6 = vld [vmem:[#allocation8 + $0x1f30] sm:$0xff]  ;;  %v13944_v21 = vcombine.low %v919_v53, %v931_v54 }
 0x1b8   : > { %7878 = vmatpush1.bf16.msra.mxu1 %v13488_v7  ;;  %7836 = vmatprep.subr.bf16.mxu0 %v14231_v8  ;;  %v16526_v7 = vshrl.u32 %v1570_v62, 7  ;;  %v631_v8 = vld [vmem:[#allocation8 + $0x6d8] sm:$0xff]  ;;  %v14423_v14 = vcombine.high %v1398_v5, %v1410_v6 }
 0x1b9   : > { %7879 = vmatprep.subr.bf16.mxu1 %v13465_v9  ;;  %v643_v9 = vld [vmem:[#allocation8 + $0x738] sm:$0xff] }
 0x1ba   : > { %v16534_v24 = vsub.s32 1, %v16526_v7 }
 0x1bb   : > { %7837 = vmatpush1.bf16.msra.mxu0 %v14230_v15  ;;  %v13657_v15 = vcombine.high %v631_v8, %v643_v9 }
 0x1bc   : > { %7880 = vmatpush1.bf16.msra.mxu1 %v13464_v17  ;;  %7838 = vmatprep.subr.bf16.mxu0 %v14207_v18  ;;  %v1374_v17 = vld [vmem:[#allocation8 + $0x1e10] sm:$0xff] }
 0x1bd   : > { %7881 = vmatprep.subr.bf16.mxu1 %v13441_v19  ;;  %v1386_v18 = vld [vmem:[#allocation8 + $0x1e70] sm:$0xff]  ;;  %v16529_v19 = vsub.s32 0, %v16526_v7 }
 0x1be   : > { %v14399_v29 = vcombine.high %v1374_v17, %v1386_v18  ;;  %v14398_v38 = vcombine.low %v1374_v17, %v1386_v18 }
 0x1bf   : > { %7839 = vmatpush1.bf16.msra.mxu0 %v14206_v25  ;;  %v14422_v25 = vcombine.low %v1398_v5, %v1410_v6  ;;  %v13945_v5 = vcombine.high %v919_v53, %v931_v54  ;;  %v799_v53 = vld [vmem:[#allocation8 + $0xc18] sm:$0xff] }
 0x1c0   : > { %7882 = vmatpush1.bf16.msra.mxu1 %v13440_v26  ;;  %7840 = vmatprep.subr.bf16.mxu0 %v14567_v27  ;;  %v7516_v26 = vpop.f32.mrf.mxu0  ;;  %v7557_v27 = vpop.f32.mrf.mxu1  ;;  %v811_v54 = vld [vmem:[#allocation8 + $0xc78] sm:$0xff] }
 0x1c1   : > { %7883 = vmatprep.subr.bf16.mxu1 %v13801_v28  ;;  %v13656_v28 = vcombine.low %v631_v8, %v643_v9  ;;  %v14329_v9 = vcombine.high %v1303_v60, %v1315_v61 }
 0x1c2   : > { %v7518_v39 = vpop.f32.mrf.mxu0  ;;  %v7559_v12 = vpop.f32.mrf.mxu1 }
 0x1c3   : > { %7841 = vmatpush2.bf16.msra.mxu0 %v14566_v33  ;;  %v1573_v33 = vrot.slane %v16531_v23, %v16529_v19 }
 0x1c4   : > { %7884 = vmatpush2.bf16.msra.mxu1 %v13800_v35  ;;  %7842 = vmatprep.subr.bf16.mxu0 %v14543_v36  ;;  %v1351_v35 = vld [vmem:[#allocation8 + $0x1d58] sm:$0xff] }
 0x1c5   : > { %7885 = vmatprep.subr.bf16.mxu1 %v13777_v37  ;;  %v1363_v36 = vld [vmem:[#allocation8 + $0x1db8] sm:$0xff]  ;;  %v1577_v37 = vrot.slane %v16531_v23, %v16534_v24  ;;  %v7515_v46 = vadd.f32 %v7514_v11, %v1573_v33  ;;  %v7519_v63 = vadd.f32 %v7518_v39, %v1573_v33 }
 0x1c6   : > { %v907_v11 = vld [vmem:[#allocation8 + $0xf78] sm:$0xff] }
 0x1c7   : > { %7843 = vmatpush2.bf16.msra.mxu0 %v14542_v43  ;;  %v13993_v43 = vcombine.high %v967_v31, %v979_v32  ;;  %v7517_v59 = vadd.f32 %v7516_v26, %v1577_v37  ;;  %v14328_v26 = vcombine.low %v1303_v60, %v1315_v61  ;;  %v1255_v33 = vld [vmem:[#allocation8 + $0x1a58] sm:$0xff]  ;;  %v13825_v61 = vcombine.high %v799_v53, %v811_v54 }
 0x1c8   : > { %7886 = vmatpush2.bf16.msra.mxu1 %v13776_v16  ;;  %7844 = vmatprep.subr.bf16.mxu0 %v14519_v44  ;;  %v14377_v16 = vcombine.high %v1351_v35, %v1363_v36  ;;  %v943_v44 = vld [vmem:[#allocation8 + $0x1098] sm:$0xff] }
 0x1c9   : > { %7887 = vmatprep.subr.bf16.mxu1 %v13753_v57  ;;  %v955_v57 = vld [vmem:[#allocation8 + $0x10f8] sm:$0xff]  ;;  %v7560_v0 = vadd.f32 %v7559_v12, %v7517_v59 }
 0x1ca   : > { %v13969_v51 = vcombine.high %v943_v44, %v955_v57  ;;  %v847_v12 = vld [vmem:[#allocation8 + $0xd98] sm:$0xff] }
 0x1cb   : > { %7845 = vmatpush2.bf16.msra.mxu0 %v14518_v48  ;;  %v13992_v48 = vcombine.low %v967_v31, %v979_v32  ;;  %v871_v31 = vld [vmem:[#allocation8 + $0xe58] sm:$0xff] }
 0x1cc   : > { %7888 = vmatpush2.bf16.msra.mxu1 %v13752_v22  ;;  %7846 = vmatprep.subr.bf16.mxu0 %v14495_v49  ;;  %v7520_v22 = vpop.f32.mrf.mxu0  ;;  %v7561_v49 = vpop.f32.mrf.mxu1  ;;  %v883_v32 = vld [vmem:[#allocation8 + $0xeb8] sm:$0xff] }
 0x1cd   : > { %7889 = vmatprep.subr.bf16.mxu1 %v13729_v50  ;;  %v14376_v50 = vcombine.low %v1351_v35, %v1363_v36  ;;  %v7562_v17 = vadd.f32 %v7561_v49, %v7519_v63  ;;  %v1267_v35 = vld [vmem:[#allocation8 + $0x1ab8] sm:$0xff] }
 0x1ce   : > { %v14281_v39 = vcombine.high %v1255_v33, %v1267_v35  ;;  %v835_v59 = vld [vmem:[#allocation8 + $0xd38] sm:$0xff] }
 0x1cf   : > { %7847 = vmatpush2.bf16.msra.mxu0 %v14494_v55  ;;  %v7558_v55 = vadd.f32 %v7557_v27, %v7515_v46 }
 0x1d0   : > { %7890 = vmatpush2.bf16.msra.mxu1 %v13728_v42  ;;  %7848 = vmatprep.subr.bf16.mxu0 %v14471_v56  ;;  %v16541_v56 = vld [vmem:[%s16456_s15 + $0x10] ss:$24 sps:$4 sm:$0xff]  }
 0x1d1   : > { %7891 = vmatprep.subr.bf16.mxu1 %v13705_v58  ;;  %v13968_v58 = vcombine.low %v943_v44, %v955_v57  ;;  %v13896_v44 = vcombine.low %v871_v31, %v883_v32  ;;  %v14280_v57 = vcombine.low %v1255_v33, %v1267_v35  ;;  %v1471_v33 = vld [vmem:[#allocation8 + $0x2118] sm:$0xff] }
 0x1d2   : > { %v1483_v35 = vld [vmem:[#allocation8 + $0x2178] sm:$0xff] }
 0x1d3   : > { %7849 = vmatpush2.bf16.msra.mxu0 %v14470_v1  ;;  %v7521_v1 = vadd.f32 %v7520_v22, %v1577_v37  ;;  %v1219_v22 = vld [vmem:[#allocation8 + $0x1938] sm:$0xff] }
 0x1d4   : > { %7892 = vmatpush2.bf16.msra.mxu1 %v13704_v2  ;;  %7850 = vmatprep.subr.bf16.mxu0 %v14447_v3  ;;  %v7563_v2 = vpop.f32.mrf.mxu1 }
 0x1d5   : > { %7893 = vmatprep.subr.bf16.mxu1 %v13681_v4  ;;  %v14352_v4 = vcombine.low %v1327_v47, %v1339_v34  ;;  %v7564_v18 = vadd.f32 %v7563_v2, %v7521_v1  ;;  %v823_v34 = vld [vmem:[#allocation8 + $0xcd8] sm:$0xff] }
 0x1d6   : > { %v1171_v1 = vld [vmem:[#allocation8 + $0x17b8] sm:$0xff] }
 0x1d7   : > { %7851 = vmatpush2.bf16.msra.mxu0 %v14446_v10  ;;  %v895_v10 = vld [vmem:[#allocation8 + $0xf18] sm:$0xff] }
 0x1d8   : > { %7894 = vmatpush2.bf16.msra.mxu1 %v13680_v13  ;;  %7852 = vmatprep.subr.bf16.mxu0 %v14423_v14  ;;  %v16546_v13 = vld [vmem:[%s16456_s15 + $0xc] ss:$24 sps:$4 sm:$0xff]   ;;  %v13921_v27 = vcombine.high %v895_v10, %v907_v11  ;;  %v13920_v36 = vcombine.low %v895_v10, %v907_v11 }
 0x1d9   : > { %7895 = vmatprep.subr.bf16.mxu1 %v13657_v15  ;;  %v1279_v15 = vld [vmem:[#allocation8 + $0x1b18] sm:$0xff] }
 0x1da   : > { %v1543_v2 = vld [vmem:[#allocation8 + $0x2358] sm:$0xff] }
 0x1db   : > { %7853 = vmatpush2.bf16.msra.mxu0 %v14422_v25  ;;  %v1147_v10 = vld [vmem:[#allocation8 + $0x16f8] sm:$0xff] }
 0x1dc   : > { %7896 = vmatpush2.bf16.msra.mxu1 %v13656_v28  ;;  %7854 = vmatprep.subr.bf16.mxu0 %v14399_v29  ;;  %v1519_v11 = vld [vmem:[#allocation8 + $0x2298] sm:$0xff] }
 0x1dd   : > { %7897 = vmatprep.subr.bf16.mxu1 %v13633_v30 }
 0x1df   : > { %7855 = vmatpush2.bf16.msra.mxu0 %v14398_v38  ;;  %v13897_v38 = vcombine.high %v871_v31, %v883_v32  ;;  %v1087_v31 = vld [vmem:[#allocation8 + $0x1518] sm:$0xff] }
 0x1e0   : > { %7898 = vmatpush2.bf16.msra.mxu1 %v13632_v41  ;;  %7910 = vmatprep.subr.bf16.mxu0 %v13993_v43  ;;  %v859_v41 = vld [vmem:[#allocation8 + $0xdf8] sm:$0xff] }
 0x1e1   : > { %7953 = vmatprep.subr.bf16.mxu1 %v14377_v16  ;;  %v1231_v43 = vld [vmem:[#allocation8 + $0x1998] sm:$0xff]  ;;  %v13873_v46 = vcombine.high %v847_v12, %v859_v41  ;;  %v13872_v49 = vcombine.low %v847_v12, %v859_v41 }
 0x1e2   : > { %v7600_v42 = vpop.f32.mrf.mxu0  ;;  %7857 = vmatmul.mubr.bf16.vlgmr.msra.gmra.mxu0 %v16541_v56  ;;  %v1243_v16 = vld [vmem:[#allocation8 + $0x19f8] sm:$0xff] }
 0x1e3   : > { %7900 = vmatmul.mubr.bf16.vlgmr.msra.gmra.mxu1 %v16516_v40  ;;  %7911 = vmatpush1.bf16.msra.mxu0 %v13992_v48  ;;  %v7601_v6 = vadd.f32 %v7600_v42, %v7558_v55  ;;  %v1291_v40 = vld [vmem:[#allocation8 + $0x1b78] sm:$0xff]  ;;  %v14257_v47 = vcombine.high %v1231_v43, %v1243_v16 }
 0x1e4   : > { %7954 = vmatpush1.bf16.msra.mxu1 %v14376_v50  ;;  %v7602_v3 = vpop.f32.mrf.mxu0  ;;  %7912 = vmatprep.subr.bf16.mxu0 %v13969_v51  ;;  %v14305_v30 = vcombine.high %v1279_v15, %v1291_v40  ;;  %v14304_v37 = vcombine.low %v1279_v15, %v1291_v40  ;;  %v1207_v48 = vld [vmem:[#allocation8 + $0x18d8] sm:$0xff]  ;;  %v14256_v50 = vcombine.low %v1231_v43, %v1243_v16 }
 0x1e5   : > { %v7603_v8 = vadd.f32 %v7602_v3, %v7560_v0  ;;  %7955 = vmatprep.subr.bf16.mxu1 %v14353_v52  ;;  %7942 = vmatprep.mubr.bf16.mxu0 %v16546_v13  ;;  %v13849_v51 = vcombine.high %v823_v34, %v835_v59  ;;  %v14233_v52 = vcombine.high %v1207_v48, %v1219_v22  ;;  %v1183_v55 = vld [vmem:[#allocation8 + $0x1818] sm:$0xff] }
 0x1e6   : > { %v7604_v14 = vpop.f32.mrf.mxu0  ;;  %7985 = vmatprep.mubr.bf16.mxu1 %v16521_v45  ;;  %v1195_v42 = vld [vmem:[#allocation8 + $0x1878] sm:$0xff]  ;;  %v14232_v60 = vcombine.low %v1207_v48, %v1219_v22 }
 0x1e7   : > { %v15031_v20 = vpack.c.bf16 %v7603_v8, %v7601_v6  ;;  %7913 = vmatpush1.bf16.msra.mxu0 %v13968_v58  ;;  %v7605_v28 = vadd.f32 %v7604_v14, %v7562_v17  ;;  %v13848_v58 = vcombine.low %v823_v34, %v835_v59  ;;  %v14209_v63 = vcombine.high %v1183_v55, %v1195_v42  ;;  %v1159_v0 = vld [vmem:[#allocation8 + $0x1758] sm:$0xff] }
 0x1e8   : > { %7956 = vmatpush1.bf16.msra.mxu1 %v14352_v4  ;;  %v7606_v25 = vpop.f32.mrf.mxu0  ;;  %7914 = vmatprep.subr.bf16.mxu0 %v13945_v5  ;;  %v1555_v3 = vld [vmem:[#allocation8 + $0x23b8] sm:$0xff]  ;;  %v13824_v4 = vcombine.low %v799_v53, %v811_v54  ;;  %v14208_v5 = vcombine.low %v1183_v55, %v1195_v42  ;;  %v14185_v6 = vcombine.high %v1159_v0, %v1171_v1 }
 0x1e9   : > { %9172 = vst [vmem:[#allocation2] sm:$0xff] %v15031_v20  ;;  %v7607_v29 = vadd.f32 %v7606_v25, %v7564_v18  ;;  %7957 = vmatprep.subr.bf16.mxu1 %v14329_v9  ;;  %v14569_v8 = vcombine.high %v1543_v2, %v1555_v3  ;;  %v1135_v9 = vld [vmem:[#allocation8 + $0x1698] sm:$0xff]  ;;  %v14184_v15 = vcombine.low %v1159_v0, %v1171_v1 }
 0x1ea   : > { %v1531_v14 = vld [vmem:[#allocation8 + $0x22f8] sm:$0xff]  ;;  %v14568_v40 = vcombine.low %v1543_v2, %v1555_v3  ;;  %v14161_v17 = vcombine.high %v1135_v9, %v1147_v10 }
 0x1eb   : > { %v15043_v45 = vpack.c.bf16 %v7607_v29, %v7605_v28  ;;  %7915 = vmatpush1.bf16.msra.mxu0 %v13944_v21  ;;  %v14545_v18 = vcombine.high %v1519_v11, %v1531_v14  ;;  %v1111_v20 = vld [vmem:[#allocation8 + $0x15d8] sm:$0xff]  ;;  %v14544_v28 = vcombine.low %v1519_v11, %v1531_v14  ;;  %v584_v14 = vld [vmem:[#allocation8 + $0x560] sm:$0xff] }
 0x1ec   : > { %7958 = vmatpush1.bf16.msra.mxu1 %v14328_v26  ;;  %7916 = vmatprep.subr.bf16.mxu0 %v13921_v27  ;;  %v1123_v21 = vld [vmem:[#allocation8 + $0x1638] sm:$0xff]  ;;  %v14160_v27 = vcombine.low %v1135_v9, %v1147_v10  ;;  %v16554_v10 = vsub.s32 3, %v16526_v7 }
 0x1ed   : > { %9184 = vst [vmem:[#allocation2 + $0x60] sm:$0xff] %v15043_v45  ;;  %7959 = vmatprep.subr.bf16.mxu1 %v14305_v30  ;;  %v1495_v25 = vld [vmem:[#allocation8 + $0x21d8] sm:$0xff]  ;;  %v14137_v29 = vcombine.high %v1111_v20, %v1123_v21  ;;  %v14136_v45 = vcombine.low %v1111_v20, %v1123_v21 }
 0x1ee   : > { %v1507_v26 = vld [vmem:[#allocation8 + $0x2238] sm:$0xff] }
 0x1ef   : > { %7917 = vmatpush1.bf16.msra.mxu0 %v13920_v36  ;;  %v14521_v30 = vcombine.high %v1495_v25, %v1507_v26  ;;  %v1099_v32 = vld [vmem:[#allocation8 + $0x1578] sm:$0xff]  ;;  %v14520_v36 = vcombine.low %v1495_v25, %v1507_v26 }
 0x1f0   : > { %7960 = vmatpush1.bf16.msra.mxu1 %v14304_v37  ;;  %7918 = vmatprep.subr.bf16.mxu0 %v13897_v38  ;;  %v14113_v37 = vcombine.high %v1087_v31, %v1099_v32  ;;  %v14497_v38 = vcombine.high %v1471_v33, %v1483_v35  ;;  %v1075_v12 = vld [vmem:[#allocation8 + $0x14b8] sm:$0xff]  ;;  %v14112_v16 = vcombine.low %v1087_v31, %v1099_v32  ;;  %v944_v31 = vld [vmem:[#allocation8 + $0x10a0] sm:$0xff] }
 0x1f1   : > { %7961 = vmatprep.subr.bf16.mxu1 %v14281_v39  ;;  %v1063_v39 = vld [vmem:[#allocation8 + $0x1458] sm:$0xff]  ;;  %v956_v32 = vld [vmem:[#allocation8 + $0x1100] sm:$0xff] }
 0x1f2   : > { %v1447_v41 = vld [vmem:[#allocation8 + $0x2058] sm:$0xff]  ;;  %v14088_v22 = vcombine.low %v1063_v39, %v1075_v12 }
 0x1f3   : > { %7919 = vmatpush1.bf16.msra.mxu0 %v13896_v44  ;;  %v1459_v43 = vld [vmem:[#allocation8 + $0x20b8] sm:$0xff]  ;;  %v14496_v44 = vcombine.low %v1471_v33, %v1483_v35 }
 0x1f4   : > { %7962 = vmatpush1.bf16.msra.mxu1 %v14280_v57  ;;  %7920 = vmatprep.subr.bf16.mxu0 %v13873_v46  ;;  %v14089_v57 = vcombine.high %v1063_v39, %v1075_v12  ;;  %v14473_v46 = vcombine.high %v1447_v41, %v1459_v43  ;;  %v1051_v34 = vld [vmem:[#allocation8 + $0x13f8] sm:$0xff]  ;;  %v13971_v12 = vcombine.high %v944_v31, %v956_v32 }
 0x1f5   : > { %7963 = vmatprep.subr.bf16.mxu1 %v14257_v47  ;;  %v1039_v47 = vld [vmem:[#allocation8 + $0x1398] sm:$0xff] }
 0x1f6   : > { %v1423_v59 = vld [vmem:[#allocation8 + $0x1f98] sm:$0xff]  ;;  %v14064_v42 = vcombine.low %v1039_v47, %v1051_v34 }
 0x1f7   : > { %7921 = vmatpush1.bf16.msra.mxu0 %v13872_v49  ;;  %v1435_v48 = vld [vmem:[#allocation8 + $0x1ff8] sm:$0xff]  ;;  %v14472_v49 = vcombine.low %v1447_v41, %v1459_v43  ;;  %v920_v41 = vld [vmem:[#allocation8 + $0xfe0] sm:$0xff] }
 0x1f8   : > { %7964 = vmatpush1.bf16.msra.mxu1 %v14256_v50  ;;  %7922 = vmatprep.subr.bf16.mxu0 %v13849_v51  ;;  %v14065_v50 = vcombine.high %v1039_v47, %v1051_v34  ;;  %v14449_v51 = vcombine.high %v1423_v59, %v1435_v48  ;;  %v1027_v53 = vld [vmem:[#allocation8 + $0x1338] sm:$0xff]  ;;  %v932_v43 = vld [vmem:[#allocation8 + $0x1040] sm:$0xff] }
 0x1f9   : > { %7965 = vmatprep.subr.bf16.mxu1 %v14233_v52  ;;  %v1015_v52 = vld [vmem:[#allocation8 + $0x12d8] sm:$0xff] }
 0x1fa   : > { %v1399_v54 = vld [vmem:[#allocation8 + $0x1ed8] sm:$0xff] }
 0x1fb   : > { %7923 = vmatpush1.bf16.msra.mxu0 %v13848_v58  ;;  %v1411_v55 = vld [vmem:[#allocation8 + $0x1f38] sm:$0xff]  ;;  %v7643_v58 = vpop.f32.mrf.mxu1 }
 0x1fc   : > { %7966 = vmatpush1.bf16.msra.mxu1 %v14232_v60  ;;  %7924 = vmatprep.subr.bf16.mxu0 %v13825_v61  ;;  %v14448_v60 = vcombine.low %v1423_v59, %v1435_v48  ;;  %v14041_v61 = vcombine.high %v1015_v52, %v1027_v53  ;;  %v991_v0 = vld [vmem:[#allocation8 + $0x1218] sm:$0xff]  ;;  %v13970_v48 = vcombine.low %v944_v31, %v956_v32  ;;  %v860_v31 = vld [vmem:[#allocation8 + $0xe00] sm:$0xff] }
 0x1fd   : > { %7967 = vmatprep.subr.bf16.mxu1 %v14209_v63  ;;  %v14425_v63 = vcombine.high %v1399_v54, %v1411_v55  ;;  %v1003_v1 = vld [vmem:[#allocation8 + $0x1278] sm:$0xff] }
 0x1fe   : > { %v1375_v2 = vld [vmem:[#allocation8 + $0x1e18] sm:$0xff]  ;;  %v14017_v9 = vcombine.high %v991_v0, %v1003_v1  ;;  %v14016_v20 = vcombine.low %v991_v0, %v1003_v1 }
 0x1ff   : > { %7925 = vmatpush1.bf16.msra.mxu0 %v13824_v4  ;;  %v1387_v3 = vld [vmem:[#allocation8 + $0x1e78] sm:$0xff]  ;;  %v14040_v4 = vcombine.low %v1015_v52, %v1027_v53 }
 0x200   : > { %7968 = vmatpush1.bf16.msra.mxu1 %v14208_v5  ;;  %7926 = vmatprep.subr.bf16.mxu0 %v14185_v6  ;;  %v16551_v5 = vsub.s32 2, %v16526_v7  ;;  %v7645_v6 = vpop.f32.mrf.mxu1  ;;  %v14401_v11 = vcombine.high %v1375_v2, %v1387_v3  ;;  %v14400_v25 = vcombine.low %v1375_v2, %v1387_v3  ;;  %v13946_v3 = vcombine.low %v920_v41, %v932_v43 }
 0x201   : > { %7969 = vmatprep.subr.bf16.mxu1 %v14569_v8  ;;  %v14424_v8 = vcombine.low %v1399_v54, %v1411_v55  ;;  %v512_v54 = vld [vmem:[#allocation8 + $0x320] sm:$0xff] }
 0x202   : > { %v7647_v21 = vpop.f32.mrf.mxu1  ;;  %v524_v55 = vld [vmem:[#allocation8 + $0x380] sm:$0xff] }
 0x203   : > { %7927 = vmatpush2.bf16.msra.mxu0 %v14184_v15  ;;  %v596_v15 = vld [vmem:[#allocation8 + $0x5c0] sm:$0xff] }
 0x204   : > { %7970 = vmatpush2.bf16.msra.mxu1 %v14568_v40  ;;  %7928 = vmatprep.subr.bf16.mxu0 %v14161_v17  ;;  %v968_v40 = vld [vmem:[#allocation8 + $0x1160] sm:$0xff]  ;;  %v13611_v26 = vcombine.high %v584_v14, %v596_v15  ;;  %v7649_v35 = vpop.f32.mrf.mxu1 }
 0x205   : > { %7971 = vmatprep.subr.bf16.mxu1 %v14545_v18  ;;  %v980_v17 = vld [vmem:[#allocation8 + $0x11c0] sm:$0xff]  ;;  %v1581_v18 = vrot.slane %v16531_v23, %v16551_v5 }
 0x207   : > { %7929 = vmatpush2.bf16.msra.mxu0 %v14160_v27  ;;  %v1585_v27 = vrot.slane %v16531_v23, %v16554_v10  ;;  %v7644_v33 = vadd.f32 %v7643_v58, %v1581_v18  ;;  %v548_v23 = vld [vmem:[#allocation8 + $0x440] sm:$0xff] }
 0x208   : > { %7972 = vmatpush2.bf16.msra.mxu1 %v14544_v28  ;;  %7930 = vmatprep.subr.bf16.mxu0 %v14137_v29  ;;  %v13995_v28 = vcombine.high %v968_v40, %v980_v17  ;;  %v560_v29 = vld [vmem:[#allocation8 + $0x4a0] sm:$0xff] }
 0x209   : > { %7973 = vmatprep.subr.bf16.mxu1 %v14521_v30  ;;  %v572_v30 = vld [vmem:[#allocation8 + $0x500] sm:$0xff]  ;;  %v7646_v39 = vadd.f32 %v7645_v6, %v1585_v27 }
 0x20a   : > { %v13586_v34 = vcombine.low %v560_v29, %v572_v30  ;;  %v896_v58 = vld [vmem:[#allocation8 + $0xf20] sm:$0xff] }
 0x20b   : > { %7931 = vmatpush2.bf16.msra.mxu0 %v14136_v45  ;;  %v13610_v45 = vcombine.low %v584_v14, %v596_v15  ;;  %v488_v14 = vld [vmem:[#allocation8 + $0x260] sm:$0xff] }
 0x20c   : > { %7974 = vmatpush2.bf16.msra.mxu1 %v14520_v36  ;;  %7932 = vmatprep.subr.bf16.mxu0 %v14113_v37  ;;  %v13994_v36 = vcombine.low %v968_v40, %v980_v17  ;;  %v13587_v37 = vcombine.high %v560_v29, %v572_v30  ;;  %v500_v15 = vld [vmem:[#allocation8 + $0x2c0] sm:$0xff] }
 0x20d   : > { %7975 = vmatprep.subr.bf16.mxu1 %v14497_v38  ;;  %v536_v38 = vld [vmem:[#allocation8 + $0x3e0] sm:$0xff]  ;;  %v13514_v32 = vcombine.low %v488_v14, %v500_v15 }
 0x20e   : > { %v13562_v1 = vcombine.low %v536_v38, %v548_v23  ;;  %v872_v40 = vld [vmem:[#allocation8 + $0xe60] sm:$0xff] }
 0x20f   : > { %7933 = vmatpush2.bf16.msra.mxu0 %v14112_v16  ;;  %v884_v17 = vld [vmem:[#allocation8 + $0xec0] sm:$0xff] }
 0x210   : > { %7976 = vmatpush2.bf16.msra.mxu1 %v14496_v44  ;;  %7934 = vmatprep.subr.bf16.mxu0 %v14089_v57  ;;  %v16561_v44 = vld [vmem:[%s16456_s15 + $0x8] ss:$24 sps:$4 sm:$0xff]   ;;  %v7648_v57 = vadd.f32 %v7647_v21, %v1581_v18 }
 0x211   : > { %7977 = vmatprep.subr.bf16.mxu1 %v14473_v46  ;;  %v476_v29 = vld [vmem:[#allocation8 + $0x200] sm:$0xff] }
 0x212   : > { %v848_v30 = vld [vmem:[#allocation8 + $0xda0] sm:$0xff] }
 0x213   : > { %7935 = vmatpush2.bf16.msra.mxu0 %v14088_v22  ;;  %v13563_v22 = vcombine.high %v536_v38, %v548_v23  ;;  %v824_v38 = vld [vmem:[#allocation8 + $0xce0] sm:$0xff]  ;;  %v13874_v23 = vcombine.low %v848_v30, %v860_v31 }
 0x214   : > { %7978 = vmatpush2.bf16.msra.mxu1 %v14472_v49  ;;  %7936 = vmatprep.subr.bf16.mxu0 %v14065_v50  ;;  %v13947_v49 = vcombine.high %v920_v41, %v932_v43  ;;  %v7650_v50 = vadd.f32 %v7649_v35, %v1585_v27  ;;  %v13899_v27 = vcombine.high %v872_v40, %v884_v17 }
 0x215   : > { %7979 = vmatprep.subr.bf16.mxu1 %v14449_v51 }
 0x217   : > { %7937 = vmatpush2.bf16.msra.mxu0 %v14064_v42  ;;  %v16566_v42 = vld [vmem:[%s16456_s15 + $0x4] ss:$24 sps:$4 sm:$0xff]  }
 0x218   : > { %7980 = vmatpush2.bf16.msra.mxu1 %v14448_v60  ;;  %7938 = vmatprep.subr.bf16.mxu0 %v14041_v61  ;;  %v908_v60 = vld [vmem:[#allocation8 + $0xf80] sm:$0xff] }
 0x219   : > { %7981 = vmatprep.subr.bf16.mxu1 %v14425_v63  ;;  %v13922_v21 = vcombine.low %v896_v58, %v908_v60 }
 0x21b   : > { %7939 = vmatpush2.bf16.msra.mxu0 %v14040_v4  ;;  %v13539_v4 = vcombine.high %v512_v54, %v524_v55 }
 0x21c   : > { %7982 = vmatpush2.bf16.msra.mxu1 %v14424_v8  ;;  %7940 = vmatprep.subr.bf16.mxu0 %v14017_v9 }
 0x21d   : > { %7983 = vmatprep.subr.bf16.mxu1 %v14401_v11  ;;  %v13923_v11 = vcombine.high %v896_v58, %v908_v60  ;;  %v752_v58 = vld [vmem:[#allocation8 + $0xaa0] sm:$0xff] }
 0x21e   : > { %v764_v60 = vld [vmem:[#allocation8 + $0xb00] sm:$0xff] }
 0x21f   : > { %7941 = vmatpush2.bf16.msra.mxu0 %v14016_v20  ;;  %v13538_v20 = vcombine.low %v512_v54, %v524_v55 }
 0x220   : > { %7984 = vmatpush2.bf16.msra.mxu1 %v14400_v25  ;;  %7996 = vmatprep.subr.bf16.mxu0 %v13611_v26  ;;  %v13515_v25 = vcombine.high %v488_v14, %v500_v15 }
 0x221   : > { %8039 = vmatprep.subr.bf16.mxu1 %v13995_v28  ;;  %v464_v28 = vld [vmem:[#allocation8 + $0x1a0] sm:$0xff] }
 0x222   : > { %v7686_v16 = vpop.f32.mrf.mxu0  ;;  %7943 = vmatmul.mubr.bf16.vlgmr.msra.gmra.mxu0 %v16561_v44  ;;  %v13491_v35 = vcombine.high %v464_v28, %v476_v29 }
 0x223   : > { %v7687_v46 = vadd.f32 %v7686_v16, %v7644_v33  ;;  %7986 = vmatmul.mubr.bf16.vlgmr.msra.gmra.mxu1 %v16541_v56  ;;  %7997 = vmatpush1.bf16.msra.mxu0 %v13610_v45  ;;  %v7729_v47 = vpop.f32.mrf.mxu1  ;;  %v13898_v33 = vcombine.low %v872_v40, %v884_v17  ;;  %v13875_v45 = vcombine.high %v848_v30, %v860_v31  ;;  %v416_v16 = vld [vmem:[#allocation8 + $0x20] sm:$0xff] }
 0x224   : > { %8040 = vmatpush1.bf16.msra.mxu1 %v13994_v36  ;;  %v7688_v59 = vpop.f32.mrf.mxu0  ;;  %7998 = vmatprep.subr.bf16.mxu0 %v13587_v37  ;;  %v440_v36 = vld [vmem:[#allocation8 + $0xe0] sm:$0xff] }
 0x225   : > { %v7689_v51 = vadd.f32 %v7688_v59, %v7646_v39  ;;  %v7730_v52 = vadd.f32 %v7729_v47, %v7687_v46  ;;  %v7731_v53 = vpop.f32.mrf.mxu1  ;;  %8041 = vmatprep.subr.bf16.mxu1 %v13971_v12  ;;  %8028 = vmatprep.mubr.bf16.mxu0 %v16566_v42  ;;  %v452_v37 = vld [vmem:[#allocation8 + $0x140] sm:$0xff]  ;;  %v13490_v12 = vcombine.low %v464_v28, %v476_v29 }
 0x226   : > { %v7690_v56 = vpop.f32.mrf.mxu0  ;;  %8071 = vmatprep.mubr.bf16.mxu1 %v16546_v13  ;;  %v836_v39 = vld [vmem:[#allocation8 + $0xd40] sm:$0xff]  ;;  %v13467_v41 = vcombine.high %v440_v36, %v452_v37 }
 0x227   : > { %v7691_v61 = vadd.f32 %v7690_v56, %v7648_v57  ;;  %v7732_v63 = vadd.f32 %v7731_v53, %v7689_v51  ;;  %7999 = vmatpush1.bf16.msra.mxu0 %v13586_v34  ;;  %v7733_v0 = vpop.f32.mrf.mxu1  ;;  %v13851_v43 = vcombine.high %v824_v38, %v836_v39  ;;  %v428_v57 = vld [vmem:[#allocation8 + $0x80] sm:$0xff]  ;;  %v13466_v34 = vcombine.low %v440_v36, %v452_v37 }
 0x228   : > { %8042 = vmatpush1.bf16.msra.mxu1 %v13970_v48  ;;  %v7692_v2 = vpop.f32.mrf.mxu0  ;;  %8000 = vmatprep.subr.bf16.mxu0 %v13563_v22  ;;  %v800_v46 = vld [vmem:[#allocation8 + $0xc20] sm:$0xff]  ;;  %v13850_v59 = vcombine.low %v824_v38, %v836_v39  ;;  %v13443_v48 = vcombine.high %v416_v16, %v428_v57  ;;  %v13442_v53 = vcombine.low %v416_v16, %v428_v57 }
 0x229   : > { %v15032_v6 = vpack.c.bf16 %v7732_v63, %v7730_v52  ;;  %v7693_v8 = vadd.f32 %v7692_v2, %v7650_v50  ;;  %v7735_v9 = vpop.f32.mrf.mxu1  ;;  %8043 = vmatprep.subr.bf16.mxu1 %v13947_v49  ;;  %v7734_v13 = vadd.f32 %v7733_v0, %v7691_v61  ;;  %v812_v47 = vld [vmem:[#allocation8 + $0xc80] sm:$0xff]  ;;  %v13779_v2 = vcombine.high %v752_v58, %v764_v60 }
 0x22a   : > { %v13827_v22 = vcombine.high %v800_v46, %v812_v47  ;;  %v776_v49 = vld [vmem:[#allocation8 + $0xb60] sm:$0xff]  ;;  %v13826_v54 = vcombine.low %v800_v46, %v812_v47 }
 0x22b   : > { %9173 = vst [vmem:[#allocation2 + $0x8] sm:$0xff] %v15032_v6  ;;  %v7736_v18 = vadd.f32 %v7735_v9, %v7693_v8  ;;  %8001 = vmatpush1.bf16.msra.mxu0 %v13562_v1  ;;  %v788_v50 = vld [vmem:[#allocation8 + $0xbc0] sm:$0xff] }
 0x22c   : > { %8044 = vmatpush1.bf16.msra.mxu1 %v13946_v3  ;;  %8002 = vmatprep.subr.bf16.mxu0 %v13539_v4  ;;  %v1160_v51 = vld [vmem:[#allocation8 + $0x1760] sm:$0xff]  ;;  %v13803_v55 = vcombine.high %v776_v49, %v788_v50  ;;  %v13802_v0 = vcombine.low %v776_v49, %v788_v50 }
 0x22d   : > { %v15044_v26 = vpack.c.bf16 %v7736_v18, %v7734_v13  ;;  %8045 = vmatprep.subr.bf16.mxu1 %v13923_v11  ;;  %v1172_v52 = vld [vmem:[#allocation8 + $0x17c0] sm:$0xff]  ;;  %v13778_v11 = vcombine.low %v752_v58, %v764_v60 }
 0x22e   : > { %v14187_v56 = vcombine.high %v1160_v51, %v1172_v52  ;;  %v1136_v61 = vld [vmem:[#allocation8 + $0x16a0] sm:$0xff]  ;;  %v14186_v1 = vcombine.low %v1160_v51, %v1172_v52 }
 0x22f   : > { %9185 = vst [vmem:[#allocation2 + $0x68] sm:$0xff] %v15044_v26  ;;  %8003 = vmatpush1.bf16.msra.mxu0 %v13538_v20  ;;  %v1148_v63 = vld [vmem:[#allocation8 + $0x1700] sm:$0xff] }
 0x230   : > { %8046 = vmatpush1.bf16.msra.mxu1 %v13922_v21  ;;  %8004 = vmatprep.subr.bf16.mxu0 %v13515_v25  ;;  %v14163_v3 = vcombine.high %v1136_v61, %v1148_v63  ;;  %v728_v4 = vld [vmem:[#allocation8 + $0x9e0] sm:$0xff]  ;;  %v14162_v14 = vcombine.low %v1136_v61, %v1148_v63  ;;  %v585_v61 = vld [vmem:[#allocation8 + $0x568] sm:$0xff] }
 0x231   : > { %8047 = vmatprep.subr.bf16.mxu1 %v13899_v27  ;;  %v740_v6 = vld [vmem:[#allocation8 + $0xa40] sm:$0xff]  ;;  %v597_v63 = vld [vmem:[#allocation8 + $0x5c8] sm:$0xff] }
 0x232   : > { %v1112_v8 = vld [vmem:[#allocation8 + $0x15e0] sm:$0xff]  ;;  %v13755_v15 = vcombine.high %v728_v4, %v740_v6  ;;  %v13754_v21 = vcombine.low %v728_v4, %v740_v6 }
 0x233   : > { %8005 = vmatpush1.bf16.msra.mxu0 %v13514_v32  ;;  %v1124_v9 = vld [vmem:[#allocation8 + $0x1640] sm:$0xff] }
 0x234   : > { %8048 = vmatpush1.bf16.msra.mxu1 %v13898_v33  ;;  %8006 = vmatprep.subr.bf16.mxu0 %v13491_v35  ;;  %v14139_v40 = vcombine.high %v1112_v8, %v1124_v9  ;;  %v704_v17 = vld [vmem:[#allocation8 + $0x920] sm:$0xff]  ;;  %v14138_v25 = vcombine.low %v1112_v8, %v1124_v9  ;;  %v561_v8 = vld [vmem:[#allocation8 + $0x4a8] sm:$0xff] }
 0x235   : > { %8049 = vmatprep.subr.bf16.mxu1 %v13875_v45  ;;  %v716_v13 = vld [vmem:[#allocation8 + $0x980] sm:$0xff]  ;;  %v573_v9 = vld [vmem:[#allocation8 + $0x508] sm:$0xff] }
 0x236   : > { %v1088_v18 = vld [vmem:[#allocation8 + $0x1520] sm:$0xff]  ;;  %v13731_v26 = vcombine.high %v704_v17, %v716_v13  ;;  %v13730_v32 = vcombine.low %v704_v17, %v716_v13 }
 0x237   : > { %8007 = vmatpush1.bf16.msra.mxu0 %v13490_v12  ;;  %v1100_v20 = vld [vmem:[#allocation8 + $0x1580] sm:$0xff] }
 0x238   : > { %8050 = vmatpush1.bf16.msra.mxu1 %v13874_v23  ;;  %8008 = vmatprep.subr.bf16.mxu0 %v13467_v41  ;;  %v14115_v27 = vcombine.high %v1088_v18, %v1100_v20  ;;  %v680_v28 = vld [vmem:[#allocation8 + $0x860] sm:$0xff]  ;;  %v14114_v33 = vcombine.low %v1088_v18, %v1100_v20  ;;  %v537_v20 = vld [vmem:[#allocation8 + $0x3e8] sm:$0xff] }
 0x239   : > { %8051 = vmatprep.subr.bf16.mxu1 %v13851_v43  ;;  %v692_v29 = vld [vmem:[#allocation8 + $0x8c0] sm:$0xff] }
 0x23a   : > { %v1064_v30 = vld [vmem:[#allocation8 + $0x1460] sm:$0xff]  ;;  %v13707_v35 = vcombine.high %v680_v28, %v692_v29  ;;  %v13706_v12 = vcombine.low %v680_v28, %v692_v29 }
 0x23b   : > { %8009 = vmatpush1.bf16.msra.mxu0 %v13466_v34  ;;  %v1076_v31 = vld [vmem:[#allocation8 + $0x14c0] sm:$0xff] }
 0x23c   : > { %8052 = vmatpush1.bf16.msra.mxu1 %v13850_v59  ;;  %8010 = vmatprep.subr.bf16.mxu0 %v13443_v48  ;;  %v14091_v45 = vcombine.high %v1064_v30, %v1076_v31  ;;  %v656_v36 = vld [vmem:[#allocation8 + $0x7a0] sm:$0xff]  ;;  %v14090_v23 = vcombine.low %v1064_v30, %v1076_v31 }
 0x23d   : > { %8053 = vmatprep.subr.bf16.mxu1 %v13827_v22  ;;  %v668_v37 = vld [vmem:[#allocation8 + $0x800] sm:$0xff] }
 0x23e   : > { %v1040_v38 = vld [vmem:[#allocation8 + $0x13a0] sm:$0xff]  ;;  %v13683_v41 = vcombine.high %v656_v36, %v668_v37  ;;  %v13682_v34 = vcombine.low %v656_v36, %v668_v37 }
 0x23f   : > { %8011 = vmatpush1.bf16.msra.mxu0 %v13442_v53  ;;  %v1052_v39 = vld [vmem:[#allocation8 + $0x1400] sm:$0xff] }
 0x240   : > { %8054 = vmatpush1.bf16.msra.mxu1 %v13826_v54  ;;  %8012 = vmatprep.subr.bf16.mxu0 %v13803_v55  ;;  %v14067_v43 = vcombine.high %v1040_v38, %v1052_v39  ;;  %v632_v16 = vld [vmem:[#allocation8 + $0x6e0] sm:$0xff]  ;;  %v14066_v59 = vcombine.low %v1040_v38, %v1052_v39  ;;  %v489_v39 = vld [vmem:[#allocation8 + $0x268] sm:$0xff] }
 0x241   : > { %8055 = vmatprep.subr.bf16.mxu1 %v14187_v56  ;;  %v644_v57 = vld [vmem:[#allocation8 + $0x740] sm:$0xff] }
 0x242   : > { %v1016_v46 = vld [vmem:[#allocation8 + $0x12e0] sm:$0xff]  ;;  %v13659_v48 = vcombine.high %v632_v16, %v644_v57  ;;  %v13658_v53 = vcombine.low %v632_v16, %v644_v57 }
 0x243   : > { %8013 = vmatpush2.bf16.msra.mxu0 %v13802_v0  ;;  %v1028_v47 = vld [vmem:[#allocation8 + $0x1340] sm:$0xff] }
 0x244   : > { %8056 = vmatpush2.bf16.msra.mxu1 %v14186_v1  ;;  %8014 = vmatprep.subr.bf16.mxu0 %v13779_v2  ;;  %v14043_v22 = vcombine.high %v1016_v46, %v1028_v47  ;;  %v608_v49 = vld [vmem:[#allocation8 + $0x620] sm:$0xff]  ;;  %v14042_v54 = vcombine.low %v1016_v46, %v1028_v47  ;;  %v465_v46 = vld [vmem:[#allocation8 + $0x1a8] sm:$0xff] }
 0x245   : > { %8057 = vmatprep.subr.bf16.mxu1 %v14163_v3  ;;  %v620_v50 = vld [vmem:[#allocation8 + $0x680] sm:$0xff]  ;;  %v13613_v3 = vcombine.high %v585_v61, %v597_v63  ;;  %v477_v47 = vld [vmem:[#allocation8 + $0x208] sm:$0xff] }
 0x246   : > { %v992_v51 = vld [vmem:[#allocation8 + $0x1220] sm:$0xff]  ;;  %v13635_v55 = vcombine.high %v608_v49, %v620_v50  ;;  %v13634_v0 = vcombine.low %v608_v49, %v620_v50 }
 0x247   : > { %8015 = vmatpush2.bf16.msra.mxu0 %v13778_v11  ;;  %v1004_v52 = vld [vmem:[#allocation8 + $0x1280] sm:$0xff] }
 0x248   : > { %8058 = vmatpush2.bf16.msra.mxu1 %v14162_v14  ;;  %8016 = vmatprep.subr.bf16.mxu0 %v13755_v15  ;;  %v14019_v56 = vcombine.high %v992_v51, %v1004_v52  ;;  %v1352_v58 = vld [vmem:[#allocation8 + $0x1d60] sm:$0xff]  ;;  %v14018_v1 = vcombine.low %v992_v51, %v1004_v52  ;;  %v13612_v14 = vcombine.low %v585_v61, %v597_v63  ;;  %v441_v51 = vld [vmem:[#allocation8 + $0xe8] sm:$0xff] }
 0x249   : > { %8059 = vmatprep.subr.bf16.mxu1 %v14139_v40  ;;  %v1364_v60 = vld [vmem:[#allocation8 + $0x1dc0] sm:$0xff]  ;;  %v13589_v40 = vcombine.high %v561_v8, %v573_v9  ;;  %v453_v52 = vld [vmem:[#allocation8 + $0x148] sm:$0xff] }
 0x24a   : > { %v14379_v2 = vcombine.high %v1352_v58, %v1364_v60  ;;  %v1328_v4 = vld [vmem:[#allocation8 + $0x1ca0] sm:$0xff]  ;;  %v14378_v11 = vcombine.low %v1352_v58, %v1364_v60  ;;  %v417_v61 = vld [vmem:[#allocation8 + $0x28] sm:$0xff] }
 0x24b   : > { %8017 = vmatpush2.bf16.msra.mxu0 %v13754_v21  ;;  %v1340_v6 = vld [vmem:[#allocation8 + $0x1d00] sm:$0xff]  ;;  %v549_v21 = vld [vmem:[#allocation8 + $0x448] sm:$0xff] }
 0x24c   : > { %8060 = vmatpush2.bf16.msra.mxu1 %v14138_v25  ;;  %8018 = vmatprep.subr.bf16.mxu0 %v13731_v26  ;;  %v14355_v15 = vcombine.high %v1328_v4, %v1340_v6  ;;  %v1304_v17 = vld [vmem:[#allocation8 + $0x1be0] sm:$0xff]  ;;  %v14354_v25 = vcombine.low %v1328_v4, %v1340_v6  ;;  %v13588_v26 = vcombine.low %v561_v8, %v573_v9  ;;  %v429_v63 = vld [vmem:[#allocation8 + $0x88] sm:$0xff] }
 0x24d   : > { %8061 = vmatprep.subr.bf16.mxu1 %v14115_v27  ;;  %v1316_v13 = vld [vmem:[#allocation8 + $0x1c40] sm:$0xff]  ;;  %v13565_v28 = vcombine.high %v537_v20, %v549_v21  ;;  %v777_v8 = vld [vmem:[#allocation8 + $0xb68] sm:$0xff] }
 0x24e   : > { %v16571_v18 = vld [vmem:[%s16456_s15] ss:$24 sps:$4 sm:$0xff]   ;;  %v14331_v27 = vcombine.high %v1304_v17, %v1316_v13  ;;  %v16576_v31 = vld [vmem:[%s16456_s15 + $0x14] ss:$24 sps:$4 sm:$0xff]  }
 0x24f   : > { %8019 = vmatpush2.bf16.msra.mxu0 %v13730_v32  ;;  %v1280_v29 = vld [vmem:[#allocation8 + $0x1b20] sm:$0xff]  ;;  %v513_v32 = vld [vmem:[#allocation8 + $0x328] sm:$0xff] }
 0x250   : > { %8062 = vmatpush2.bf16.msra.mxu1 %v14114_v33  ;;  %8020 = vmatprep.subr.bf16.mxu0 %v13707_v35  ;;  %v1292_v30 = vld [vmem:[#allocation8 + $0x1b80] sm:$0xff]  ;;  %v525_v33 = vld [vmem:[#allocation8 + $0x388] sm:$0xff]  ;;  %v13564_v35 = vcombine.low %v537_v20, %v549_v21 }
 0x251   : > { %8063 = vmatprep.subr.bf16.mxu1 %v14091_v45  ;;  %v14307_v45 = vcombine.high %v1280_v29, %v1292_v30  ;;  %v13541_v36 = vcombine.high %v513_v32, %v525_v33  ;;  %v1256_v37 = vld [vmem:[#allocation8 + $0x1a60] sm:$0xff]  ;;  %v789_v9 = vld [vmem:[#allocation8 + $0xbc8] sm:$0xff] }
 0x252   : > { %v1268_v38 = vld [vmem:[#allocation8 + $0x1ac0] sm:$0xff]  ;;  %v753_v20 = vld [vmem:[#allocation8 + $0xaa8] sm:$0xff] }
 0x253   : > { %8021 = vmatpush2.bf16.msra.mxu0 %v13706_v12  ;;  %v501_v12 = vld [vmem:[#allocation8 + $0x2c8] sm:$0xff]  ;;  %v1232_v16 = vld [vmem:[#allocation8 + $0x19a0] sm:$0xff] }
 0x254   : > { %8064 = vmatpush2.bf16.msra.mxu1 %v14090_v23  ;;  %8022 = vmatprep.subr.bf16.mxu0 %v13683_v41  ;;  %v14306_v23 = vcombine.low %v1280_v29, %v1292_v30  ;;  %v13540_v41 = vcombine.low %v513_v32, %v525_v33  ;;  %v1244_v57 = vld [vmem:[#allocation8 + $0x1a00] sm:$0xff]  ;;  %v765_v21 = vld [vmem:[#allocation8 + $0xb08] sm:$0xff] }
 0x255   : > { %8065 = vmatprep.subr.bf16.mxu1 %v14067_v43  ;;  %v14283_v43 = vcombine.high %v1256_v37, %v1268_v38  ;;  %v1208_v49 = vld [vmem:[#allocation8 + $0x18e0] sm:$0xff]  ;;  %v729_v32 = vld [vmem:[#allocation8 + $0x9e8] sm:$0xff] }
 0x256   : > { %v1220_v50 = vld [vmem:[#allocation8 + $0x1940] sm:$0xff]  ;;  %v741_v33 = vld [vmem:[#allocation8 + $0xa48] sm:$0xff] }
 0x257   : > { %8023 = vmatpush2.bf16.msra.mxu0 %v13682_v34  ;;  %v14282_v34 = vcombine.low %v1256_v37, %v1268_v38  ;;  %v1184_v58 = vld [vmem:[#allocation8 + $0x1820] sm:$0xff] }
 0x258   : > { %8066 = vmatpush2.bf16.msra.mxu1 %v14066_v59  ;;  %8024 = vmatprep.subr.bf16.mxu0 %v13659_v48  ;;  %v13516_v59 = vcombine.low %v489_v39, %v501_v12  ;;  %v14259_v48 = vcombine.high %v1232_v16, %v1244_v57  ;;  %v1196_v60 = vld [vmem:[#allocation8 + $0x1880] sm:$0xff] }
 0x259   : > { %8067 = vmatprep.subr.bf16.mxu1 %v14043_v22  ;;  %v13493_v22 = vcombine.high %v465_v46, %v477_v47  ;;  %v1544_v4 = vld [vmem:[#allocation8 + $0x2360] sm:$0xff] }
 0x25a   : > { %v1556_v6 = vld [vmem:[#allocation8 + $0x23c0] sm:$0xff] }
 0x25b   : > { %8025 = vmatpush2.bf16.msra.mxu0 %v13658_v53  ;;  %v14258_v53 = vcombine.low %v1232_v16, %v1244_v57  ;;  %v1496_v29 = vld [vmem:[#allocation8 + $0x21e0] sm:$0xff] }
 0x25c   : > { %8068 = vmatpush2.bf16.msra.mxu1 %v14042_v54  ;;  %8026 = vmatprep.subr.bf16.mxu0 %v13635_v55  ;;  %v13492_v54 = vcombine.low %v465_v46, %v477_v47  ;;  %v14235_v55 = vcombine.high %v1208_v49, %v1220_v50  ;;  %v1508_v30 = vld [vmem:[#allocation8 + $0x2240] sm:$0xff]  ;;  %v681_v46 = vld [vmem:[#allocation8 + $0x868] sm:$0xff] }
 0x25d   : > { %8069 = vmatprep.subr.bf16.mxu1 %v14019_v56  ;;  %v13469_v56 = vcombine.high %v441_v51, %v453_v52  ;;  %v1472_v37 = vld [vmem:[#allocation8 + $0x2120] sm:$0xff]  ;;  %v693_v47 = vld [vmem:[#allocation8 + $0x8c8] sm:$0xff] }
 0x25e   : > { %v1484_v38 = vld [vmem:[#allocation8 + $0x2180] sm:$0xff] }
 0x25f   : > { %8027 = vmatpush2.bf16.msra.mxu0 %v13634_v0  ;;  %v14234_v0 = vcombine.low %v1208_v49, %v1220_v50  ;;  %v1448_v16 = vld [vmem:[#allocation8 + $0x2060] sm:$0xff] }
 0x260   : > { %8070 = vmatpush2.bf16.msra.mxu1 %v14018_v1  ;;  %8082 = vmatprep.subr.bf16.mxu0 %v14379_v2  ;;  %v13468_v1 = vcombine.low %v441_v51, %v453_v52  ;;  %v14211_v2 = vcombine.high %v1184_v58, %v1196_v60  ;;  %v1460_v57 = vld [vmem:[#allocation8 + $0x20c0] sm:$0xff]  ;;  %v657_v51 = vld [vmem:[#allocation8 + $0x7a8] sm:$0xff] }
 0x261   : > { %8125 = vmatprep.subr.bf16.mxu1 %v13613_v3  ;;  %v13445_v3 = vcombine.high %v417_v61, %v429_v63  ;;  %v1424_v49 = vld [vmem:[#allocation8 + $0x1fa0] sm:$0xff]  ;;  %v669_v52 = vld [vmem:[#allocation8 + $0x808] sm:$0xff] }
 0x262   : > { %8029 = vmatmul.mubr.bf16.vlgmr.msra.gmra.mxu0 %v16571_v18  ;;  %v1436_v50 = vld [vmem:[#allocation8 + $0x2000] sm:$0xff] }
 0x263   : > { %8072 = vmatmul.mubr.bf16.vlgmr.msra.gmra.mxu1 %v16561_v44  ;;  %8083 = vmatpush1.bf16.msra.mxu0 %v14378_v11  ;;  %v14330_v44 = vcombine.low %v1304_v17, %v1316_v13  ;;  %v14210_v11 = vcombine.low %v1184_v58, %v1196_v60  ;;  %v1520_v17 = vld [vmem:[#allocation8 + $0x22a0] sm:$0xff] }
 0x264   : > { %8126 = vmatpush1.bf16.msra.mxu1 %v13612_v14  ;;  %8084 = vmatprep.subr.bf16.mxu0 %v14355_v15  ;;  %v13444_v14 = vcombine.low %v417_v61, %v429_v63  ;;  %v14571_v15 = vcombine.high %v1544_v4, %v1556_v6  ;;  %v1532_v13 = vld [vmem:[#allocation8 + $0x2300] sm:$0xff]  ;;  %v633_v61 = vld [vmem:[#allocation8 + $0x6e8] sm:$0xff] }
 0x265   : > { %8127 = vmatprep.subr.bf16.mxu1 %v13589_v40  ;;  %8114 = vmatprep.mubr.bf16.mxu0 %v16576_v31  ;;  %v13805_v40 = vcombine.high %v777_v8, %v789_v9  ;;  %v1400_v58 = vld [vmem:[#allocation8 + $0x1ee0] sm:$0xff]  ;;  %v645_v63 = vld [vmem:[#allocation8 + $0x748] sm:$0xff] }
 0x266   : > { %8157 = vmatprep.mubr.bf16.mxu1 %v16566_v42  ;;  %v13517_v42 = vcombine.high %v489_v39, %v501_v12  ;;  %v705_v39 = vld [vmem:[#allocation8 + $0x928] sm:$0xff]  ;;  %v1412_v60 = vld [vmem:[#allocation8 + $0x1f40] sm:$0xff] }
 0x267   : > { %8085 = vmatpush1.bf16.msra.mxu0 %v14354_v25  ;;  %v14570_v25 = vcombine.low %v1544_v4, %v1556_v6  ;;  %v717_v12 = vld [vmem:[#allocation8 + $0x988] sm:$0xff]  ;;  %v13661_v4 = vcombine.high %v633_v61, %v645_v63  ;;  %v1376_v6 = vld [vmem:[#allocation8 + $0x1e20] sm:$0xff] }
 0x268   : > { %8128 = vmatpush1.bf16.msra.mxu1 %v13588_v26  ;;  %8086 = vmatprep.subr.bf16.mxu0 %v14331_v27  ;;  %v13804_v26 = vcombine.low %v777_v8, %v789_v9  ;;  %v14547_v27 = vcombine.high %v1520_v17, %v1532_v13  ;;  %v1388_v8 = vld [vmem:[#allocation8 + $0x1e80] sm:$0xff]  ;;  %v16581_v9 = vsub.s32 4, %v16526_v7 }
 0x269   : > { %8129 = vmatprep.subr.bf16.mxu1 %v13565_v28  ;;  %v13781_v28 = vcombine.high %v753_v20, %v765_v21 }
 0x26b   : > { %8087 = vmatpush1.bf16.msra.mxu0 %v14330_v44  ;;  %v14546_v44 = vcombine.low %v1520_v17, %v1532_v13  ;;  %v7815_v13 = vpop.f32.mrf.mxu1 }
 0x26c   : > { %8130 = vmatpush1.bf16.msra.mxu1 %v13564_v35  ;;  %8088 = vmatprep.subr.bf16.mxu0 %v14307_v45  ;;  %v13780_v35 = vcombine.low %v753_v20, %v765_v21  ;;  %v14523_v45 = vcombine.high %v1496_v29, %v1508_v30  ;;  %v13660_v20 = vcombine.low %v633_v61, %v645_v63 }
 0x26d   : > { %8131 = vmatprep.subr.bf16.mxu1 %v13541_v36  ;;  %v13757_v36 = vcombine.high %v729_v32, %v741_v33  ;;  %v14403_v21 = vcombine.high %v1376_v6, %v1388_v8 }
 0x26f   : > { %8089 = vmatpush1.bf16.msra.mxu0 %v14306_v23  ;;  %v14522_v23 = vcombine.low %v1496_v29, %v1508_v30  ;;  %v1353_v30 = vld [vmem:[#allocation8 + $0x1d68] sm:$0xff] }
 0x270   : > { %8132 = vmatpush1.bf16.msra.mxu1 %v13540_v41  ;;  %8090 = vmatprep.subr.bf16.mxu0 %v14283_v43  ;;  %v13756_v41 = vcombine.low %v729_v32, %v741_v33  ;;  %v14499_v43 = vcombine.high %v1472_v37, %v1484_v38  ;;  %v1365_v32 = vld [vmem:[#allocation8 + $0x1dc8] sm:$0xff] }
 0x271   : > { %8133 = vmatprep.subr.bf16.mxu1 %v13517_v42  ;;  %v13733_v42 = vcombine.high %v705_v39, %v717_v12 }
 0x273   : > { %8091 = vmatpush1.bf16.msra.mxu0 %v14282_v34  ;;  %v14498_v34 = vcombine.low %v1472_v37, %v1484_v38  ;;  %v14381_v38 = vcombine.high %v1353_v30, %v1365_v32 }
 0x274   : > { %8134 = vmatpush1.bf16.msra.mxu1 %v13516_v59  ;;  %8092 = vmatprep.subr.bf16.mxu0 %v14259_v48  ;;  %v13732_v59 = vcombine.low %v705_v39, %v717_v12  ;;  %v14475_v48 = vcombine.high %v1448_v16, %v1460_v57  ;;  %v945_v39 = vld [vmem:[#allocation8 + $0x10a8] sm:$0xff] }
 0x275   : > { %8135 = vmatprep.subr.bf16.mxu1 %v13493_v22  ;;  %v13709_v22 = vcombine.high %v681_v46, %v693_v47  ;;  %v957_v12 = vld [vmem:[#allocation8 + $0x1108] sm:$0xff] }
 0x277   : > { %8093 = vmatpush1.bf16.msra.mxu0 %v14258_v53  ;;  %v14474_v53 = vcombine.low %v1448_v16, %v1460_v57 }
 0x278   : > { %8136 = vmatpush1.bf16.msra.mxu1 %v13492_v54  ;;  %8094 = vmatprep.subr.bf16.mxu0 %v14235_v55  ;;  %v13708_v54 = vcombine.low %v681_v46, %v693_v47  ;;  %v14451_v55 = vcombine.high %v1424_v49, %v1436_v50  ;;  %v14380_v47 = vcombine.low %v1353_v30, %v1365_v32  ;;  %v873_v32 = vld [vmem:[#allocation8 + $0xe68] sm:$0xff] }
 0x279   : > { %8137 = vmatprep.subr.bf16.mxu1 %v13469_v56  ;;  %v13685_v56 = vcombine.high %v657_v51, %v669_v52 }
 0x27b   : > { %8095 = vmatpush1.bf16.msra.mxu0 %v14234_v0  ;;  %v14450_v0 = vcombine.low %v1424_v49, %v1436_v50 }
 0x27c   : > { %8138 = vmatpush1.bf16.msra.mxu1 %v13468_v1  ;;  %8096 = vmatprep.subr.bf16.mxu0 %v14211_v2  ;;  %v7772_v1 = vpop.f32.mrf.mxu0  ;;  %v13684_v2 = vcombine.low %v657_v51, %v669_v52  ;;  %v16593_v51 = vld [vmem:[%s16456_s15 + $0x10] ss:$24 sps:$4 sm:$0xff]   ;;  %v13972_v52 = vcombine.low %v945_v39, %v957_v12 }
 0x27d   : > { %8139 = vmatprep.subr.bf16.mxu1 %v13445_v3  ;;  %v14427_v3 = vcombine.high %v1400_v58, %v1412_v60 }
 0x27e   : > { %v7774_v17 = vpop.f32.mrf.mxu0 }
 0x27f   : > { %8097 = vmatpush1.bf16.msra.mxu0 %v14210_v11  ;;  %v609_v11 = vld [vmem:[#allocation8 + $0x628] sm:$0xff] }
 0x280   : > { %8140 = vmatpush1.bf16.msra.mxu1 %v13444_v14  ;;  %8098 = vmatprep.subr.bf16.mxu0 %v14571_v15  ;;  %v621_v14 = vld [vmem:[#allocation8 + $0x688] sm:$0xff]  ;;  %v16584_v15 = vsub.s32 5, %v16526_v7 }
 0x281   : > { %8141 = vmatprep.subr.bf16.mxu1 %v13805_v40  ;;  %v14426_v40 = vcombine.low %v1400_v58, %v1412_v60 }
 0x283   : > { %8099 = vmatpush2.bf16.msra.mxu0 %v14570_v25  ;;  %v13637_v25 = vcombine.high %v609_v11, %v621_v14 }
 0x284   : > { %8142 = vmatpush2.bf16.msra.mxu1 %v13804_v26  ;;  %8100 = vmatprep.subr.bf16.mxu0 %v14547_v27  ;;  %v969_v26 = vld [vmem:[#allocation8 + $0x1168] sm:$0xff] }
 0x285   : > { %8143 = vmatprep.subr.bf16.mxu1 %v13781_v28  ;;  %v981_v27 = vld [vmem:[#allocation8 + $0x11c8] sm:$0xff]  ;;  %v16586_v28 = vld [vmem:[#allocation9] sm:$0xff] }
 0x286   : > { %v1589_v29 = vrot.slane %v16586_v28, %v16581_v9  ;;  %v1593_v33 = vrot.slane %v16586_v28, %v16584_v15  ;;  %v13997_v37 = vcombine.high %v969_v26, %v981_v27  ;;  %v13996_v16 = vcombine.low %v969_v26, %v981_v27 }
 0x287   : > { %8101 = vmatpush2.bf16.msra.mxu0 %v14546_v44  ;;  %v14402_v44 = vcombine.low %v1376_v6, %v1388_v8  ;;  %v909_v6 = vld [vmem:[#allocation8 + $0xf88] sm:$0xff] }
 0x288   : > { %8144 = vmatpush2.bf16.msra.mxu1 %v13780_v35  ;;  %8102 = vmatprep.subr.bf16.mxu0 %v14523_v45  ;;  %v7776_v35 = vpop.f32.mrf.mxu0  ;;  %v7817_v45 = vpop.f32.mrf.mxu1  ;;  %v16598_v8 = vld [vmem:[%s16456_s15 + $0xc] ss:$24 sps:$4 sm:$0xff]  }
 0x289   : > { %8145 = vmatprep.subr.bf16.mxu1 %v13757_v36  ;;  %v13636_v36 = vcombine.low %v609_v11, %v621_v14  ;;  %v1281_v14 = vld [vmem:[#allocation8 + $0x1b28] sm:$0xff] }
 0x28a   : > { %v7778_v57 = vpop.f32.mrf.mxu0  ;;  %v7819_v46 = vpop.f32.mrf.mxu1 }
 0x28b   : > { %8103 = vmatpush2.bf16.msra.mxu0 %v14522_v23  ;;  %v7773_v23 = vadd.f32 %v7772_v1, %v1589_v29  ;;  %v7779_v58 = vadd.f32 %v7778_v57, %v1593_v33 }
 0x28c   : > { %8146 = vmatpush2.bf16.msra.mxu1 %v13756_v41  ;;  %8104 = vmatprep.subr.bf16.mxu0 %v14499_v43  ;;  %v1329_v41 = vld [vmem:[#allocation8 + $0x1ca8] sm:$0xff]  ;;  %v7821_v60 = vpop.f32.mrf.mxu1 }
 0x28d   : > { %8147 = vmatprep.subr.bf16.mxu1 %v13733_v42  ;;  %v1341_v43 = vld [vmem:[#allocation8 + $0x1d08] sm:$0xff]  ;;  %v7775_v42 = vadd.f32 %v7774_v17, %v1593_v33  ;;  %v7816_v49 = vadd.f32 %v7815_v13, %v7773_v23  ;;  %v7822_v17 = vadd.f32 %v7821_v60, %v7779_v58 }
 0x28e   : > { %v14356_v63 = vcombine.low %v1329_v41, %v1341_v43  ;;  %v885_v33 = vld [vmem:[#allocation8 + $0xec8] sm:$0xff] }
 0x28f   : > { %8105 = vmatpush2.bf16.msra.mxu0 %v14498_v34  ;;  %v13973_v34 = vcombine.high %v945_v39, %v957_v12  ;;  %v849_v39 = vld [vmem:[#allocation8 + $0xda8] sm:$0xff] }
 0x290   : > { %8148 = vmatpush2.bf16.msra.mxu1 %v13732_v59  ;;  %8106 = vmatprep.subr.bf16.mxu0 %v14475_v48  ;;  %v14357_v59 = vcombine.high %v1329_v41, %v1341_v43  ;;  %v921_v48 = vld [vmem:[#allocation8 + $0xfe8] sm:$0xff]  ;;  %v13900_v43 = vcombine.low %v873_v32, %v885_v33 }
 0x291   : > { %8149 = vmatprep.subr.bf16.mxu1 %v13709_v22  ;;  %v933_v22 = vld [vmem:[#allocation8 + $0x1048] sm:$0xff] }
 0x292   : > { %v861_v12 = vld [vmem:[#allocation8 + $0xe08] sm:$0xff] }
 0x293   : > { %8107 = vmatpush2.bf16.msra.mxu0 %v14474_v53  ;;  %v1305_v53 = vld [vmem:[#allocation8 + $0x1be8] sm:$0xff] }
 0x294   : > { %8150 = vmatpush2.bf16.msra.mxu1 %v13708_v54  ;;  %8108 = vmatprep.subr.bf16.mxu0 %v14451_v55  ;;  %v1317_v54 = vld [vmem:[#allocation8 + $0x1c48] sm:$0xff]  ;;  %v7777_v55 = vadd.f32 %v7776_v35, %v1589_v29 }
 0x295   : > { %8151 = vmatprep.subr.bf16.mxu1 %v13685_v56  ;;  %v7818_v56 = vadd.f32 %v7817_v45, %v7775_v42  ;;  %v1269_v35 = vld [vmem:[#allocation8 + $0x1ac8] sm:$0xff] }
 0x296   : > { %v1233_v23 = vld [vmem:[#allocation8 + $0x19a8] sm:$0xff] }
 0x297   : > { %8109 = vmatpush2.bf16.msra.mxu0 %v14450_v0  ;;  %v13949_v0 = vcombine.high %v921_v48, %v933_v22  ;;  %v1245_v41 = vld [vmem:[#allocation8 + $0x1a08] sm:$0xff] }
 0x298   : > { %8152 = vmatpush2.bf16.msra.mxu1 %v13684_v2  ;;  %8110 = vmatprep.subr.bf16.mxu0 %v14427_v3  ;;  %v14333_v3 = vcombine.high %v1305_v53, %v1317_v54  ;;  %v14261_v57 = vcombine.high %v1233_v23, %v1245_v41 }
 0x299   : > { %8153 = vmatprep.subr.bf16.mxu1 %v13661_v4  ;;  %v897_v4 = vld [vmem:[#allocation8 + $0xf28] sm:$0xff] }
 0x29a   : > { %v13925_v26 = vcombine.high %v897_v4, %v909_v6  ;;  %v13924_v45 = vcombine.low %v897_v4, %v909_v6 }
 0x29b   : > { %8111 = vmatpush2.bf16.msra.mxu0 %v14426_v40  ;;  %v7820_v40 = vadd.f32 %v7819_v46, %v7777_v55  ;;  %v825_v46 = vld [vmem:[#allocation8 + $0xce8] sm:$0xff] }
 0x29c   : > { %8154 = vmatpush2.bf16.msra.mxu1 %v13660_v20  ;;  %8112 = vmatprep.subr.bf16.mxu0 %v14403_v21  ;;  %v13948_v20 = vcombine.low %v921_v48, %v933_v22  ;;  %v13876_v48 = vcombine.low %v849_v39, %v861_v12  ;;  %v14260_v22 = vcombine.low %v1233_v23, %v1245_v41  ;;  %v1197_v55 = vld [vmem:[#allocation8 + $0x1888] sm:$0xff] }
 0x29d   : > { %8155 = vmatprep.subr.bf16.mxu1 %v13637_v25  ;;  %v14332_v25 = vcombine.low %v1305_v53, %v1317_v54  ;;  %v813_v53 = vld [vmem:[#allocation8 + $0xc88] sm:$0xff] }
 0x29e   : > { %v1185_v54 = vld [vmem:[#allocation8 + $0x1828] sm:$0xff] }
 0x29f   : > { %8113 = vmatpush2.bf16.msra.mxu0 %v14402_v44  ;;  %v1257_v44 = vld [vmem:[#allocation8 + $0x1a68] sm:$0xff]  ;;  %v14212_v4 = vcombine.low %v1185_v54, %v1197_v55 }
 0x2a0   : > { %8156 = vmatpush2.bf16.msra.mxu1 %v13636_v36  ;;  %8168 = vmatprep.subr.bf16.mxu0 %v13997_v37  ;;  %v13901_v37 = vcombine.high %v873_v32, %v885_v33  ;;  %v14284_v42 = vcombine.low %v1257_v44, %v1269_v35  ;;  %v1065_v41 = vld [vmem:[#allocation8 + $0x1468] sm:$0xff] }
 0x2a1   : > { %8211 = vmatprep.subr.bf16.mxu1 %v14381_v38  ;;  %v14285_v38 = vcombine.high %v1257_v44, %v1269_v35 }
 0x2a2   : > { %v7858_v50 = vpop.f32.mrf.mxu0  ;;  %8115 = vmatmul.mubr.bf16.vlgmr.msra.gmra.mxu0 %v16593_v51 }
 0x2a3   : > { %8158 = vmatmul.mubr.bf16.vlgmr.msra.gmra.mxu1 %v16571_v18  ;;  %8169 = vmatpush1.bf16.msra.mxu0 %v13996_v16  ;;  %v7859_v1 = vadd.f32 %v7858_v50, %v7816_v49  ;;  %v1293_v18 = vld [vmem:[#allocation8 + $0x1b88] sm:$0xff]  ;;  %v13877_v16 = vcombine.high %v849_v39, %v861_v12 }
 0x2a4   : > { %8212 = vmatpush1.bf16.msra.mxu1 %v14380_v47  ;;  %v7860_v61 = vpop.f32.mrf.mxu0  ;;  %8170 = vmatprep.subr.bf16.mxu0 %v13973_v34  ;;  %v14309_v30 = vcombine.high %v1281_v14, %v1293_v18  ;;  %v14308_v36 = vcombine.low %v1281_v14, %v1293_v18  ;;  %v837_v47 = vld [vmem:[#allocation8 + $0xd48] sm:$0xff] }
 0x2a5   : > { %v7861_v2 = vadd.f32 %v7860_v61, %v7818_v56  ;;  %8213 = vmatprep.subr.bf16.mxu1 %v14357_v59  ;;  %8200 = vmatprep.mubr.bf16.mxu0 %v16598_v8  ;;  %v1209_v34 = vld [vmem:[#allocation8 + $0x18e8] sm:$0xff]  ;;  %v13853_v49 = vcombine.high %v825_v46, %v837_v47  ;;  %v13852_v56 = vcombine.low %v825_v46, %v837_v47 }
 0x2a6   : > { %v7862_v11 = vpop.f32.mrf.mxu0  ;;  %8243 = vmatprep.mubr.bf16.mxu1 %v16576_v31  ;;  %v1221_v59 = vld [vmem:[#allocation8 + $0x1948] sm:$0xff]  ;;  %v14213_v61 = vcombine.high %v1185_v54, %v1197_v55 }
 0x2a7   : > { %v15033_v13 = vpack.c.bf16 %v7861_v2, %v7859_v1  ;;  %8171 = vmatpush1.bf16.msra.mxu0 %v13972_v52  ;;  %v7863_v27 = vadd.f32 %v7862_v11, %v7820_v40  ;;  %v14237_v50 = vcombine.high %v1209_v34, %v1221_v59  ;;  %v801_v52 = vld [vmem:[#allocation8 + $0xc28] sm:$0xff]  ;;  %v14236_v58 = vcombine.low %v1209_v34, %v1221_v59 }
 0x2a8   : > { %8214 = vmatpush1.bf16.msra.mxu1 %v14356_v63  ;;  %v7864_v21 = vpop.f32.mrf.mxu0  ;;  %8172 = vmatprep.subr.bf16.mxu0 %v13949_v0  ;;  %v13829_v60 = vcombine.high %v801_v52, %v813_v53  ;;  %v1161_v63 = vld [vmem:[#allocation8 + $0x1768] sm:$0xff] }
 0x2a9   : > { %9174 = vst [vmem:[#allocation2 + $0x10] sm:$0xff] %v15033_v13  ;;  %v7865_v29 = vadd.f32 %v7864_v21, %v7822_v17  ;;  %8215 = vmatprep.subr.bf16.mxu1 %v14333_v3  ;;  %v1173_v0 = vld [vmem:[#allocation8 + $0x17c8] sm:$0xff]  ;;  %v13828_v3 = vcombine.low %v801_v52, %v813_v53 }
 0x2aa   : > { %v1545_v1 = vld [vmem:[#allocation8 + $0x2368] sm:$0xff]  ;;  %v14189_v6 = vcombine.high %v1161_v63, %v1173_v0  ;;  %v14188_v13 = vcombine.low %v1161_v63, %v1173_v0  ;;  %v7901_v63 = vpop.f32.mrf.mxu1 }
 0x2ab   : > { %v15045_v31 = vpack.c.bf16 %v7865_v29, %v7863_v27  ;;  %8173 = vmatpush1.bf16.msra.mxu0 %v13948_v20  ;;  %v1557_v2 = vld [vmem:[#allocation8 + $0x23c8] sm:$0xff] }
 0x2ac   : > { %8216 = vmatpush1.bf16.msra.mxu1 %v14332_v25  ;;  %8174 = vmatprep.subr.bf16.mxu0 %v13925_v26  ;;  %v14573_v11 = vcombine.high %v1545_v1, %v1557_v2  ;;  %v1137_v14 = vld [vmem:[#allocation8 + $0x16a8] sm:$0xff]  ;;  %v14572_v20 = vcombine.low %v1545_v1, %v1557_v2 }
 0x2ad   : > { %9186 = vst [vmem:[#allocation2 + $0x70] sm:$0xff] %v15045_v31  ;;  %8217 = vmatprep.subr.bf16.mxu1 %v14309_v30  ;;  %v1149_v18 = vld [vmem:[#allocation8 + $0x1708] sm:$0xff] }
 0x2ae   : > { %v1521_v40 = vld [vmem:[#allocation8 + $0x22a8] sm:$0xff]  ;;  %v14165_v21 = vcombine.high %v1137_v14, %v1149_v18  ;;  %v14164_v32 = vcombine.low %v1137_v14, %v1149_v18  ;;  %v16603_v18 = vsub.s32 6, %v16526_v7 }
 0x2af   : > { %8175 = vmatpush1.bf16.msra.mxu0 %v13924_v45  ;;  %v1533_v17 = vld [vmem:[#allocation8 + $0x2308] sm:$0xff] }
 0x2b0   : > { %8218 = vmatpush1.bf16.msra.mxu1 %v14308_v36  ;;  %8176 = vmatprep.subr.bf16.mxu0 %v13901_v37  ;;  %v14549_v25 = vcombine.high %v1521_v40, %v1533_v17  ;;  %v1113_v26 = vld [vmem:[#allocation8 + $0x15e8] sm:$0xff]  ;;  %v14548_v33 = vcombine.low %v1521_v40, %v1533_v17  ;;  %v7903_v40 = vpop.f32.mrf.mxu1 }
 0x2b1   : > { %8219 = vmatprep.subr.bf16.mxu1 %v14285_v38  ;;  %v1125_v27 = vld [vmem:[#allocation8 + $0x1648] sm:$0xff] }
 0x2b2   : > { %v1497_v29 = vld [vmem:[#allocation8 + $0x21e8] sm:$0xff]  ;;  %v14141_v44 = vcombine.high %v1113_v26, %v1125_v27  ;;  %v14140_v38 = vcombine.low %v1113_v26, %v1125_v27  ;;  %v598_v26 = vld [vmem:[#allocation8 + $0x5d0] sm:$0xff] }
 0x2b3   : > { %8177 = vmatpush1.bf16.msra.mxu0 %v13900_v43  ;;  %v1509_v30 = vld [vmem:[#allocation8 + $0x2248] sm:$0xff]  ;;  %v970_v27 = vld [vmem:[#allocation8 + $0x1170] sm:$0xff] }
 0x2b4   : > { %8220 = vmatpush1.bf16.msra.mxu1 %v14284_v42  ;;  %8178 = vmatprep.subr.bf16.mxu0 %v13877_v16  ;;  %v14525_v35 = vcombine.high %v1497_v29, %v1509_v30  ;;  %v1089_v31 = vld [vmem:[#allocation8 + $0x1528] sm:$0xff]  ;;  %v14524_v39 = vcombine.low %v1497_v29, %v1509_v30  ;;  %v982_v29 = vld [vmem:[#allocation8 + $0x11d0] sm:$0xff]  ;;  %v1597_v30 = vrot.slane %v16586_v28, %v16603_v18 }
 0x2b5   : > { %8221 = vmatprep.subr.bf16.mxu1 %v14261_v57  ;;  %v1101_v45 = vld [vmem:[#allocation8 + $0x1588] sm:$0xff] }
 0x2b6   : > { %v1473_v36 = vld [vmem:[#allocation8 + $0x2128] sm:$0xff]  ;;  %v14117_v12 = vcombine.high %v1089_v31, %v1101_v45  ;;  %v14116_v57 = vcombine.low %v1089_v31, %v1101_v45  ;;  %v13999_v45 = vcombine.high %v970_v27, %v982_v29 }
 0x2b7   : > { %8179 = vmatpush1.bf16.msra.mxu0 %v13876_v48  ;;  %v1485_v37 = vld [vmem:[#allocation8 + $0x2188] sm:$0xff] }
 0x2b8   : > { %8222 = vmatpush1.bf16.msra.mxu1 %v14260_v22  ;;  %8180 = vmatprep.subr.bf16.mxu0 %v13853_v49  ;;  %v14501_v23 = vcombine.high %v1473_v36, %v1485_v37  ;;  %v1077_v43 = vld [vmem:[#allocation8 + $0x14c8] sm:$0xff]  ;;  %v14500_v46 = vcombine.low %v1473_v36, %v1485_v37  ;;  %v562_v36 = vld [vmem:[#allocation8 + $0x4b0] sm:$0xff] }
 0x2b9   : > { %8223 = vmatprep.subr.bf16.mxu1 %v14237_v50  ;;  %v1449_v42 = vld [vmem:[#allocation8 + $0x2068] sm:$0xff]  ;;  %v14093_v47 = vcombine.high %v1065_v41, %v1077_v43  ;;  %v14092_v50 = vcombine.low %v1065_v41, %v1077_v43  ;;  %v574_v37 = vld [vmem:[#allocation8 + $0x510] sm:$0xff]  ;;  %v13998_v43 = vcombine.low %v970_v27, %v982_v29 }
 0x2ba   : > { %v1461_v16 = vld [vmem:[#allocation8 + $0x20c8] sm:$0xff] }
 0x2bb   : > { %8181 = vmatpush1.bf16.msra.mxu0 %v13852_v56  ;;  %v14477_v34 = vcombine.high %v1449_v42, %v1461_v16  ;;  %v1041_v59 = vld [vmem:[#allocation8 + $0x13a8] sm:$0xff]  ;;  %v14476_v52 = vcombine.low %v1449_v42, %v1461_v16  ;;  %v13591_v42 = vcombine.high %v562_v36, %v574_v37  ;;  %v538_v16 = vld [vmem:[#allocation8 + $0x3f0] sm:$0xff] }
 0x2bc   : > { %8224 = vmatpush1.bf16.msra.mxu1 %v14236_v58  ;;  %8182 = vmatprep.subr.bf16.mxu0 %v13829_v60  ;;  %v1053_v48 = vld [vmem:[#allocation8 + $0x1408] sm:$0xff] }
 0x2bd   : > { %8225 = vmatprep.subr.bf16.mxu1 %v14213_v61  ;;  %v1425_v22 = vld [vmem:[#allocation8 + $0x1fa8] sm:$0xff]  ;;  %v14069_v53 = vcombine.high %v1041_v59, %v1053_v48  ;;  %v14068_v61 = vcombine.low %v1041_v59, %v1053_v48 }
 0x2be   : > { %v1437_v49 = vld [vmem:[#allocation8 + $0x2008] sm:$0xff] }
 0x2bf   : > { %8183 = vmatpush1.bf16.msra.mxu0 %v13828_v3  ;;  %v14453_v54 = vcombine.high %v1425_v22, %v1437_v49  ;;  %v1017_v55 = vld [vmem:[#allocation8 + $0x12e8] sm:$0xff]  ;;  %v14452_v0 = vcombine.low %v1425_v22, %v1437_v49 }
 0x2c0   : > { %8226 = vmatpush1.bf16.msra.mxu1 %v14212_v4  ;;  %8184 = vmatprep.subr.bf16.mxu0 %v14189_v6  ;;  %v1029_v56 = vld [vmem:[#allocation8 + $0x1348] sm:$0xff] }
 0x2c1   : > { %8227 = vmatprep.subr.bf16.mxu1 %v14573_v11  ;;  %v1401_v58 = vld [vmem:[#allocation8 + $0x1ee8] sm:$0xff]  ;;  %v14045_v1 = vcombine.high %v1017_v55, %v1029_v56  ;;  %v14044_v14 = vcombine.low %v1017_v55, %v1029_v56 }
 0x2c2   : > { %v1413_v60 = vld [vmem:[#allocation8 + $0x1f48] sm:$0xff] }
 0x2c3   : > { %8185 = vmatpush2.bf16.msra.mxu0 %v14188_v13  ;;  %v14429_v2 = vcombine.high %v1401_v58, %v1413_v60  ;;  %v993_v3 = vld [vmem:[#allocation8 + $0x1228] sm:$0xff]  ;;  %v14428_v17 = vcombine.low %v1401_v58, %v1413_v60 }
 0x2c4   : > { %8228 = vmatpush2.bf16.msra.mxu1 %v14572_v20  ;;  %8186 = vmatprep.subr.bf16.mxu0 %v14165_v21  ;;  %v1005_v4 = vld [vmem:[#allocation8 + $0x1288] sm:$0xff]  ;;  %v16606_v20 = vsub.s32 7, %v16526_v7 }
 0x2c5   : > { %8229 = vmatprep.subr.bf16.mxu1 %v14549_v25  ;;  %v1377_v6 = vld [vmem:[#allocation8 + $0x1e28] sm:$0xff]  ;;  %v14021_v13 = vcombine.high %v993_v3, %v1005_v4  ;;  %v586_v25 = vld [vmem:[#allocation8 + $0x570] sm:$0xff] }
 0x2c6   : > { %v1389_v11 = vld [vmem:[#allocation8 + $0x1e88] sm:$0xff]  ;;  %v1601_v31 = vrot.slane %v16586_v28, %v16606_v20  ;;  %v13614_v41 = vcombine.low %v586_v25, %v598_v26  ;;  %v550_v28 = vld [vmem:[#allocation8 + $0x450] sm:$0xff] }
 0x2c7   : > { %8187 = vmatpush2.bf16.msra.mxu0 %v14164_v32  ;;  %v14405_v21 = vcombine.high %v1377_v6, %v1389_v11  ;;  %v14020_v32 = vcombine.low %v993_v3, %v1005_v4  ;;  %v16613_v48 = vld [vmem:[%s16456_s15 + $0x8] ss:$24 sps:$4 sm:$0xff]   ;;  %v13567_v55 = vcombine.high %v538_v16, %v550_v28 }
 0x2c8   : > { %8230 = vmatpush2.bf16.msra.mxu1 %v14548_v33  ;;  %8188 = vmatprep.subr.bf16.mxu0 %v14141_v44  ;;  %v7905_v33 = vpop.f32.mrf.mxu1  ;;  %v14404_v44 = vcombine.low %v1377_v6, %v1389_v11  ;;  %v898_v3 = vld [vmem:[#allocation8 + $0xf30] sm:$0xff] }
 0x2c9   : > { %8231 = vmatprep.subr.bf16.mxu1 %v14525_v35  ;;  %v13615_v35 = vcombine.high %v586_v25, %v598_v26  ;;  %v7906_v22 = vadd.f32 %v7905_v33, %v1597_v30  ;;  %v910_v4 = vld [vmem:[#allocation8 + $0xf90] sm:$0xff] }
 0x2ca   : > { %v13927_v29 = vcombine.high %v898_v3, %v910_v4  ;;  %v874_v33 = vld [vmem:[#allocation8 + $0xe70] sm:$0xff] }
 0x2cb   : > { %8189 = vmatpush2.bf16.msra.mxu0 %v14140_v38  ;;  %v946_v38 = vld [vmem:[#allocation8 + $0x10b0] sm:$0xff] }
 0x2cc   : > { %8232 = vmatpush2.bf16.msra.mxu1 %v14524_v39  ;;  %8190 = vmatprep.subr.bf16.mxu0 %v14117_v12  ;;  %v958_v39 = vld [vmem:[#allocation8 + $0x1110] sm:$0xff]  ;;  %v7902_v12 = vadd.f32 %v7901_v63, %v1597_v30 }
 0x2cd   : > { %8233 = vmatprep.subr.bf16.mxu1 %v14501_v23  ;;  %v7907_v23 = vpop.f32.mrf.mxu1  ;;  %v490_v30 = vld [vmem:[#allocation8 + $0x270] sm:$0xff] }
 0x2ce   : > { %v7908_v58 = vadd.f32 %v7907_v23, %v1601_v31  ;;  %v850_v23 = vld [vmem:[#allocation8 + $0xdb0] sm:$0xff] }
 0x2cf   : > { %8191 = vmatpush2.bf16.msra.mxu0 %v14116_v57  ;;  %v7904_v57 = vadd.f32 %v7903_v40, %v1601_v31  ;;  %v13566_v40 = vcombine.low %v538_v16, %v550_v28  ;;  %v454_v28 = vld [vmem:[#allocation8 + $0x150] sm:$0xff] }
 0x2d0   : > { %8234 = vmatpush2.bf16.msra.mxu1 %v14500_v46  ;;  %8192 = vmatprep.subr.bf16.mxu0 %v14093_v47  ;;  %v13975_v46 = vcombine.high %v946_v38, %v958_v39  ;;  %v922_v47 = vld [vmem:[#allocation8 + $0xff0] sm:$0xff] }
 0x2d1   : > { %8235 = vmatprep.subr.bf16.mxu1 %v14477_v34  ;;  %v934_v34 = vld [vmem:[#allocation8 + $0x1050] sm:$0xff] }
 0x2d2   : > { %v13951_v56 = vcombine.high %v922_v47, %v934_v34 }
 0x2d3   : > { %8193 = vmatpush2.bf16.msra.mxu0 %v14092_v50 }
 0x2d4   : > { %8236 = vmatpush2.bf16.msra.mxu1 %v14476_v52  ;;  %8194 = vmatprep.subr.bf16.mxu0 %v14069_v53  ;;  %v13590_v52 = vcombine.low %v562_v36, %v574_v37 }
 0x2d5   : > { %8237 = vmatprep.subr.bf16.mxu1 %v14453_v54  ;;  %v13974_v54 = vcombine.low %v946_v38, %v958_v39  ;;  %v466_v39 = vld [vmem:[#allocation8 + $0x1b0] sm:$0xff] }
 0x2d7   : > { %8195 = vmatpush2.bf16.msra.mxu0 %v14068_v61 }
 0x2d8   : > { %8238 = vmatpush2.bf16.msra.mxu1 %v14452_v0  ;;  %8196 = vmatprep.subr.bf16.mxu0 %v14045_v1  ;;  %v514_v0 = vld [vmem:[#allocation8 + $0x330] sm:$0xff] }
 0x2d9   : > { %8239 = vmatprep.subr.bf16.mxu1 %v14429_v2  ;;  %v526_v1 = vld [vmem:[#allocation8 + $0x390] sm:$0xff] }
 0x2da   : > { %v16618_v2 = vld [vmem:[%s16456_s15 + $0x4] ss:$24 sps:$4 sm:$0xff]   ;;  %v13542_v31 = vcombine.low %v514_v0, %v526_v1 }
 0x2db   : > { %8197 = vmatpush2.bf16.msra.mxu0 %v14044_v14 }
 0x2dc   : > { %8240 = vmatpush2.bf16.msra.mxu1 %v14428_v17  ;;  %8198 = vmatprep.subr.bf16.mxu0 %v14021_v13  ;;  %v13950_v13 = vcombine.low %v922_v47, %v934_v34  ;;  %v826_v47 = vld [vmem:[#allocation8 + $0xcf0] sm:$0xff] }
 0x2dd   : > { %8241 = vmatprep.subr.bf16.mxu1 %v14405_v21  ;;  %v13543_v21 = vcombine.high %v514_v0, %v526_v1  ;;  %v838_v34 = vld [vmem:[#allocation8 + $0xd50] sm:$0xff] }
 0x2de   : > { %v790_v0 = vld [vmem:[#allocation8 + $0xbd0] sm:$0xff] }
 0x2df   : > { %8199 = vmatpush2.bf16.msra.mxu0 %v14020_v32  ;;  %v502_v32 = vld [vmem:[#allocation8 + $0x2d0] sm:$0xff] }
 0x2e0   : > { %8242 = vmatpush2.bf16.msra.mxu1 %v14404_v44  ;;  %8254 = vmatprep.subr.bf16.mxu0 %v13615_v35  ;;  %v886_v44 = vld [vmem:[#allocation8 + $0xed0] sm:$0xff]  ;;  %v13519_v36 = vcombine.high %v490_v30, %v502_v32 }
 0x2e1   : > { %8297 = vmatprep.subr.bf16.mxu1 %v13999_v45  ;;  %v13926_v45 = vcombine.low %v898_v3, %v910_v4  ;;  %v13903_v38 = vcombine.high %v874_v33, %v886_v44  ;;  %v1162_v1 = vld [vmem:[#allocation8 + $0x1770] sm:$0xff] }
 0x2e2   : > { %v7944_v59 = vpop.f32.mrf.mxu0  ;;  %8201 = vmatmul.mubr.bf16.vlgmr.msra.gmra.mxu0 %v16613_v48 }
 0x2e3   : > { %v7945_v49 = vadd.f32 %v7944_v59, %v7902_v12  ;;  %8244 = vmatmul.mubr.bf16.vlgmr.msra.gmra.mxu1 %v16593_v51  ;;  %8255 = vmatpush1.bf16.msra.mxu0 %v13614_v41  ;;  %v7987_v50 = vpop.f32.mrf.mxu1  ;;  %v478_v12 = vld [vmem:[#allocation8 + $0x210] sm:$0xff] }
 0x2e4   : > { %8298 = vmatpush1.bf16.msra.mxu1 %v13998_v43  ;;  %v7946_v53 = vpop.f32.mrf.mxu0  ;;  %8256 = vmatprep.subr.bf16.mxu0 %v13591_v42  ;;  %v862_v41 = vld [vmem:[#allocation8 + $0xe10] sm:$0xff]  ;;  %v13518_v43 = vcombine.low %v490_v30, %v502_v32  ;;  %v13902_v42 = vcombine.low %v874_v33, %v886_v44  ;;  %v13495_v16 = vcombine.high %v466_v39, %v478_v12 }
 0x2e5   : > { %v7947_v60 = vadd.f32 %v7946_v53, %v7904_v57  ;;  %v7988_v61 = vadd.f32 %v7987_v50, %v7945_v49  ;;  %v7989_v63 = vpop.f32.mrf.mxu1  ;;  %8299 = vmatprep.subr.bf16.mxu1 %v13975_v46  ;;  %8286 = vmatprep.mubr.bf16.mxu0 %v16618_v2  ;;  %v13879_v57 = vcombine.high %v850_v23, %v862_v41  ;;  %v442_v46 = vld [vmem:[#allocation8 + $0xf0] sm:$0xff] }
 0x2e6   : > { %v7948_v51 = vpop.f32.mrf.mxu0  ;;  %8329 = vmatprep.mubr.bf16.mxu1 %v16598_v8  ;;  %v13494_v59 = vcombine.low %v466_v39, %v478_v12  ;;  %v13471_v49 = vcombine.high %v442_v46, %v454_v28  ;;  %v13855_v50 = vcombine.high %v826_v47, %v838_v34  ;;  %v430_v53 = vld [vmem:[#allocation8 + $0x90] sm:$0xff] }
 0x2e7   : > { %v7949_v6 = vadd.f32 %v7948_v51, %v7906_v22  ;;  %v7990_v11 = vadd.f32 %v7989_v63, %v7947_v60  ;;  %8257 = vmatpush1.bf16.msra.mxu0 %v13590_v52  ;;  %v7991_v14 = vpop.f32.mrf.mxu1  ;;  %v13878_v22 = vcombine.low %v850_v23, %v862_v41  ;;  %v418_v52 = vld [vmem:[#allocation8 + $0x30] sm:$0xff] }
 0x2e8   : > { %8300 = vmatpush1.bf16.msra.mxu1 %v13974_v54  ;;  %v7950_v17 = vpop.f32.mrf.mxu0  ;;  %8258 = vmatprep.subr.bf16.mxu0 %v13567_v55  ;;  %v802_v54 = vld [vmem:[#allocation8 + $0xc30] sm:$0xff]  ;;  %v13447_v60 = vcombine.high %v418_v52, %v430_v53  ;;  %v13446_v3 = vcombine.low %v418_v52, %v430_v53 }
 0x2e9   : > { %v15034_v25 = vpack.c.bf16 %v7990_v11, %v7988_v61  ;;  %v7951_v26 = vadd.f32 %v7950_v17, %v7908_v58  ;;  %v7993_v27 = vpop.f32.mrf.mxu1  ;;  %8301 = vmatprep.subr.bf16.mxu1 %v13951_v56  ;;  %v7992_v8 = vadd.f32 %v7991_v14, %v7949_v6  ;;  %v814_v55 = vld [vmem:[#allocation8 + $0xc90] sm:$0xff]  ;;  %v13470_v56 = vcombine.low %v442_v46, %v454_v28 }
 0x2ea   : > { %v13854_v58 = vcombine.low %v826_v47, %v838_v34  ;;  %v13831_v61 = vcombine.high %v802_v54, %v814_v55  ;;  %v778_v63 = vld [vmem:[#allocation8 + $0xb70] sm:$0xff]  ;;  %v13830_v4 = vcombine.low %v802_v54, %v814_v55 }
 0x2eb   : > { %9175 = vst [vmem:[#allocation2 + $0x18] sm:$0xff] %v15034_v25  ;;  %v7994_v35 = vadd.f32 %v7993_v27, %v7951_v26  ;;  %8259 = vmatpush1.bf16.msra.mxu0 %v13566_v40  ;;  %v1174_v51 = vld [vmem:[#allocation8 + $0x17d0] sm:$0xff]  ;;  %v13807_v6 = vcombine.high %v778_v63, %v790_v0 }
 0x2ec   : > { %8302 = vmatpush1.bf16.msra.mxu1 %v13950_v13  ;;  %8260 = vmatprep.subr.bf16.mxu0 %v13543_v21  ;;  %v14191_v11 = vcombine.high %v1162_v1, %v1174_v51  ;;  %v754_v14 = vld [vmem:[#allocation8 + $0xab0] sm:$0xff]  ;;  %v13806_v21 = vcombine.low %v778_v63, %v790_v0  ;;  %v14190_v25 = vcombine.low %v1162_v1, %v1174_v51 }
 0x2ed   : > { %v15046_v37 = vpack.c.bf16 %v7994_v35, %v7992_v8  ;;  %8303 = vmatprep.subr.bf16.mxu1 %v13927_v29  ;;  %v766_v40 = vld [vmem:[#allocation8 + $0xb10] sm:$0xff] }
 0x2ee   : > { %v1138_v17 = vld [vmem:[#allocation8 + $0x16b0] sm:$0xff]  ;;  %v13783_v26 = vcombine.high %v754_v14, %v766_v40  ;;  %v13782_v44 = vcombine.low %v754_v14, %v766_v40 }
 0x2ef   : > { %9187 = vst [vmem:[#allocation2 + $0x78] sm:$0xff] %v15046_v37  ;;  %8261 = vmatpush1.bf16.msra.mxu0 %v13542_v31  ;;  %v1150_v13 = vld [vmem:[#allocation8 + $0x1710] sm:$0xff] }
 0x2f0   : > { %8304 = vmatpush1.bf16.msra.mxu1 %v13926_v45  ;;  %8262 = vmatprep.subr.bf16.mxu0 %v13519_v36  ;;  %v14167_v27 = vcombine.high %v1138_v17, %v1150_v13  ;;  %v730_v29 = vld [vmem:[#allocation8 + $0x9f0] sm:$0xff]  ;;  %v14166_v8 = vcombine.low %v1138_v17, %v1150_v13 }
 0x2f1   : > { %8305 = vmatprep.subr.bf16.mxu1 %v13903_v38  ;;  %v742_v30 = vld [vmem:[#allocation8 + $0xa50] sm:$0xff] }
 0x2f2   : > { %v1114_v32 = vld [vmem:[#allocation8 + $0x15f0] sm:$0xff]  ;;  %v13759_v35 = vcombine.high %v730_v29, %v742_v30  ;;  %v13758_v39 = vcombine.low %v730_v29, %v742_v30 }
 0x2f3   : > { %8263 = vmatpush1.bf16.msra.mxu0 %v13518_v43  ;;  %v1126_v33 = vld [vmem:[#allocation8 + $0x1650] sm:$0xff] }
 0x2f4   : > { %8306 = vmatpush1.bf16.msra.mxu1 %v13902_v42  ;;  %8264 = vmatprep.subr.bf16.mxu0 %v13495_v16  ;;  %v14143_v31 = vcombine.high %v1114_v32, %v1126_v33  ;;  %v706_v45 = vld [vmem:[#allocation8 + $0x930] sm:$0xff]  ;;  %v14142_v12 = vcombine.low %v1114_v32, %v1126_v33 }
 0x2f5   : > { %8307 = vmatprep.subr.bf16.mxu1 %v13879_v57  ;;  %v718_v36 = vld [vmem:[#allocation8 + $0x990] sm:$0xff] }
 0x2f6   : > { %v1090_v37 = vld [vmem:[#allocation8 + $0x1530] sm:$0xff]  ;;  %v13735_v23 = vcombine.high %v706_v45, %v718_v36  ;;  %v13734_v46 = vcombine.low %v706_v45, %v718_v36 }
 0x2f7   : > { %8265 = vmatpush1.bf16.msra.mxu0 %v13494_v59  ;;  %v1102_v38 = vld [vmem:[#allocation8 + $0x1590] sm:$0xff] }
 0x2f8   : > { %8308 = vmatpush1.bf16.msra.mxu1 %v13878_v22  ;;  %8266 = vmatprep.subr.bf16.mxu0 %v13471_v49  ;;  %v14119_v41 = vcombine.high %v1090_v37, %v1102_v38  ;;  %v682_v43 = vld [vmem:[#allocation8 + $0x870] sm:$0xff]  ;;  %v14118_v28 = vcombine.low %v1090_v37, %v1102_v38 }
 0x2f9   : > { %8309 = vmatprep.subr.bf16.mxu1 %v13855_v50  ;;  %v694_v42 = vld [vmem:[#allocation8 + $0x8d0] sm:$0xff] }
 0x2fa   : > { %v1066_v16 = vld [vmem:[#allocation8 + $0x1470] sm:$0xff]  ;;  %v13711_v47 = vcombine.high %v682_v43, %v694_v42  ;;  %v13710_v52 = vcombine.low %v682_v43, %v694_v42  ;;  %v551_v43 = vld [vmem:[#allocation8 + $0x458] sm:$0xff] }
 0x2fb   : > { %8267 = vmatpush1.bf16.msra.mxu0 %v13470_v56  ;;  %v1078_v57 = vld [vmem:[#allocation8 + $0x14d0] sm:$0xff] }
 0x2fc   : > { %8310 = vmatpush1.bf16.msra.mxu1 %v13854_v58  ;;  %8268 = vmatprep.subr.bf16.mxu0 %v13447_v60  ;;  %v14095_v34 = vcombine.high %v1066_v16, %v1078_v57  ;;  %v658_v59 = vld [vmem:[#allocation8 + $0x7b0] sm:$0xff]  ;;  %v14094_v53 = vcombine.low %v1066_v16, %v1078_v57 }
 0x2fd   : > { %8311 = vmatprep.subr.bf16.mxu1 %v13831_v61  ;;  %v670_v22 = vld [vmem:[#allocation8 + $0x810] sm:$0xff] }
 0x2fe   : > { %v1042_v49 = vld [vmem:[#allocation8 + $0x13b0] sm:$0xff]  ;;  %v13687_v54 = vcombine.high %v658_v59, %v670_v22  ;;  %v13686_v63 = vcombine.low %v658_v59, %v670_v22  ;;  %v515_v59 = vld [vmem:[#allocation8 + $0x338] sm:$0xff] }
 0x2ff   : > { %8269 = vmatpush1.bf16.msra.mxu0 %v13446_v3  ;;  %v1054_v50 = vld [vmem:[#allocation8 + $0x1410] sm:$0xff]  ;;  %v527_v22 = vld [vmem:[#allocation8 + $0x398] sm:$0xff] }
 0x300   : > { %8312 = vmatpush1.bf16.msra.mxu1 %v13830_v4  ;;  %8270 = vmatprep.subr.bf16.mxu0 %v13807_v6  ;;  %v14071_v55 = vcombine.high %v1042_v49, %v1054_v50  ;;  %v634_v56 = vld [vmem:[#allocation8 + $0x6f0] sm:$0xff]  ;;  %v14070_v0 = vcombine.low %v1042_v49, %v1054_v50 }
 0x301   : > { %8313 = vmatprep.subr.bf16.mxu1 %v14191_v11  ;;  %v646_v58 = vld [vmem:[#allocation8 + $0x750] sm:$0xff] }
 0x302   : > { %v1018_v60 = vld [vmem:[#allocation8 + $0x12f0] sm:$0xff]  ;;  %v13663_v1 = vcombine.high %v634_v56, %v646_v58  ;;  %v13662_v14 = vcombine.low %v634_v56, %v646_v58  ;;  %v503_v56 = vld [vmem:[#allocation8 + $0x2d8] sm:$0xff] }
 0x303   : > { %8271 = vmatpush2.bf16.msra.mxu0 %v13806_v21  ;;  %v1030_v61 = vld [vmem:[#allocation8 + $0x1350] sm:$0xff] }
 0x304   : > { %8314 = vmatpush2.bf16.msra.mxu1 %v14190_v25  ;;  %8272 = vmatprep.subr.bf16.mxu0 %v13783_v26  ;;  %v14047_v51 = vcombine.high %v1018_v60, %v1030_v61  ;;  %v610_v3 = vld [vmem:[#allocation8 + $0x630] sm:$0xff]  ;;  %v14046_v40 = vcombine.low %v1018_v60, %v1030_v61  ;;  %v587_v26 = vld [vmem:[#allocation8 + $0x578] sm:$0xff]  ;;  %v13544_v60 = vcombine.low %v515_v59, %v527_v22 }
 0x305   : > { %8315 = vmatprep.subr.bf16.mxu1 %v14167_v27  ;;  %v622_v4 = vld [vmem:[#allocation8 + $0x690] sm:$0xff]  ;;  %v599_v27 = vld [vmem:[#allocation8 + $0x5d8] sm:$0xff] }
 0x306   : > { %v994_v6 = vld [vmem:[#allocation8 + $0x1230] sm:$0xff]  ;;  %v13639_v17 = vcombine.high %v610_v3, %v622_v4  ;;  %v13638_v29 = vcombine.low %v610_v3, %v622_v4  ;;  %v13617_v33 = vcombine.high %v587_v26, %v599_v27  ;;  %v13616_v36 = vcombine.low %v587_v26, %v599_v27 }
 0x307   : > { %8273 = vmatpush2.bf16.msra.mxu0 %v13782_v44  ;;  %v1006_v11 = vld [vmem:[#allocation8 + $0x1290] sm:$0xff] }
 0x308   : > { %8316 = vmatpush2.bf16.msra.mxu1 %v14166_v8  ;;  %8274 = vmatprep.subr.bf16.mxu0 %v13759_v35  ;;  %v14023_v13 = vcombine.high %v994_v6, %v1006_v11  ;;  %v1354_v21 = vld [vmem:[#allocation8 + $0x1d70] sm:$0xff]  ;;  %v14022_v30 = vcombine.low %v994_v6, %v1006_v11  ;;  %v563_v35 = vld [vmem:[#allocation8 + $0x4b8] sm:$0xff] }
 0x309   : > { %8317 = vmatprep.subr.bf16.mxu1 %v14143_v31  ;;  %v1366_v25 = vld [vmem:[#allocation8 + $0x1dd0] sm:$0xff]  ;;  %v575_v31 = vld [vmem:[#allocation8 + $0x518] sm:$0xff] }
 0x30a   : > { %v14383_v32 = vcombine.high %v1354_v21, %v1366_v25  ;;  %v1330_v44 = vld [vmem:[#allocation8 + $0x1cb0] sm:$0xff]  ;;  %v14382_v45 = vcombine.low %v1354_v21, %v1366_v25  ;;  %v13593_v38 = vcombine.high %v563_v35, %v575_v31  ;;  %v13592_v16 = vcombine.low %v563_v35, %v575_v31 }
 0x30b   : > { %8275 = vmatpush2.bf16.msra.mxu0 %v13758_v39  ;;  %v1342_v8 = vld [vmem:[#allocation8 + $0x1d10] sm:$0xff] }
 0x30c   : > { %8318 = vmatpush2.bf16.msra.mxu1 %v14142_v12  ;;  %8276 = vmatprep.subr.bf16.mxu0 %v13735_v23  ;;  %v14359_v37 = vcombine.high %v1330_v44, %v1342_v8  ;;  %v1306_v39 = vld [vmem:[#allocation8 + $0x1bf0] sm:$0xff]  ;;  %v14358_v42 = vcombine.low %v1330_v44, %v1342_v8 }
 0x30d   : > { %8319 = vmatprep.subr.bf16.mxu1 %v14119_v41  ;;  %v1318_v12 = vld [vmem:[#allocation8 + $0x1c50] sm:$0xff]  ;;  %v539_v41 = vld [vmem:[#allocation8 + $0x3f8] sm:$0xff] }
 0x30e   : > { %v16623_v23 = vld [vmem:[%s16456_s15] ss:$24 sps:$4 sm:$0xff]   ;;  %v14335_v57 = vcombine.high %v1306_v39, %v1318_v12  ;;  %v13568_v49 = vcombine.low %v539_v41, %v551_v43 }
 0x30f   : > { %8277 = vmatpush2.bf16.msra.mxu0 %v13734_v46  ;;  %v13569_v46 = vcombine.high %v539_v41, %v551_v43 }
 0x310   : > { %8320 = vmatpush2.bf16.msra.mxu1 %v14118_v28  ;;  %8278 = vmatprep.subr.bf16.mxu0 %v13711_v47  ;;  %v1282_v28 = vld [vmem:[#allocation8 + $0x1b30] sm:$0xff] }
 0x311   : > { %8321 = vmatprep.subr.bf16.mxu1 %v14095_v34  ;;  %v1294_v47 = vld [vmem:[#allocation8 + $0x1b90] sm:$0xff] }
 0x312   : > { %v16628_v34 = vld [vmem:[%s16456_s15 + $0x14] ss:$24 sps:$4 sm:$0xff]   ;;  %v14311_v50 = vcombine.high %v1282_v28, %v1294_v47  ;;  %v14310_v58 = vcombine.low %v1282_v28, %v1294_v47 }
 0x313   : > { %8279 = vmatpush2.bf16.msra.mxu0 %v13710_v52  ;;  %v13545_v52 = vcombine.high %v515_v59, %v527_v22 }
 0x314   : > { %8322 = vmatpush2.bf16.msra.mxu1 %v14094_v53  ;;  %8280 = vmatprep.subr.bf16.mxu0 %v13687_v54  ;;  %v1258_v53 = vld [vmem:[#allocation8 + $0x1a70] sm:$0xff] }
 0x315   : > { %8323 = vmatprep.subr.bf16.mxu1 %v14071_v55  ;;  %v1270_v54 = vld [vmem:[#allocation8 + $0x1ad0] sm:$0xff]  ;;  %v491_v55 = vld [vmem:[#allocation8 + $0x278] sm:$0xff] }
 0x316   : > { %v14287_v61 = vcombine.high %v1258_v53, %v1270_v54  ;;  %v14286_v3 = vcombine.low %v1258_v53, %v1270_v54  ;;  %v13520_v4 = vcombine.low %v491_v55, %v503_v56 }
 0x317   : > { %8281 = vmatpush2.bf16.msra.mxu0 %v13686_v63  ;;  %v1234_v63 = vld [vmem:[#allocation8 + $0x19b0] sm:$0xff] }
 0x318   : > { %8324 = vmatpush2.bf16.msra.mxu1 %v14070_v0  ;;  %8282 = vmatprep.subr.bf16.mxu0 %v13663_v1  ;;  %v1246_v0 = vld [vmem:[#allocation8 + $0x1a10] sm:$0xff]  ;;  %v467_v1 = vld [vmem:[#allocation8 + $0x1b8] sm:$0xff] }
 0x319   : > { %8325 = vmatprep.subr.bf16.mxu1 %v14047_v51  ;;  %v479_v51 = vld [vmem:[#allocation8 + $0x218] sm:$0xff]  ;;  %v14263_v6 = vcombine.high %v1234_v63, %v1246_v0  ;;  %v14262_v21 = vcombine.low %v1234_v63, %v1246_v0 }
 0x31a   : > { %v13497_v11 = vcombine.high %v467_v1, %v479_v51  ;;  %v13496_v25 = vcombine.low %v467_v1, %v479_v51 }
 0x31b   : > { %8283 = vmatpush2.bf16.msra.mxu0 %v13662_v14  ;;  %v1210_v14 = vld [vmem:[#allocation8 + $0x18f0] sm:$0xff] }
 0x31c   : > { %8326 = vmatpush2.bf16.msra.mxu1 %v14046_v40  ;;  %8284 = vmatprep.subr.bf16.mxu0 %v13639_v17  ;;  %v1222_v40 = vld [vmem:[#allocation8 + $0x1950] sm:$0xff]  ;;  %v443_v17 = vld [vmem:[#allocation8 + $0xf8] sm:$0xff] }
 0x31d   : > { %8327 = vmatprep.subr.bf16.mxu1 %v14023_v13  ;;  %v455_v13 = vld [vmem:[#allocation8 + $0x158] sm:$0xff]  ;;  %v14239_v26 = vcombine.high %v1210_v14, %v1222_v40  ;;  %v14238_v44 = vcombine.low %v1210_v14, %v1222_v40 }
 0x31e   : > { %v13473_v27 = vcombine.high %v443_v17, %v455_v13  ;;  %v13472_v8 = vcombine.low %v443_v17, %v455_v13 }
 0x31f   : > { %8285 = vmatpush2.bf16.msra.mxu0 %v13638_v29  ;;  %v1186_v29 = vld [vmem:[#allocation8 + $0x1830] sm:$0xff] }
 0x320   : > { %8328 = vmatpush2.bf16.msra.mxu1 %v14022_v30  ;;  %8340 = vmatprep.subr.bf16.mxu0 %v14383_v32  ;;  %v1198_v30 = vld [vmem:[#allocation8 + $0x1890] sm:$0xff]  ;;  %v419_v32 = vld [vmem:[#allocation8 + $0x38] sm:$0xff] }
 0x321   : > { %8383 = vmatprep.subr.bf16.mxu1 %v13617_v33  ;;  %v431_v33 = vld [vmem:[#allocation8 + $0x98] sm:$0xff]  ;;  %v14215_v35 = vcombine.high %v1186_v29, %v1198_v30 }
 0x322   : > { %8287 = vmatmul.mubr.bf16.vlgmr.msra.gmra.mxu0 %v16623_v23  ;;  %v13449_v31 = vcombine.high %v419_v32, %v431_v33 }
 0x323   : > { %8330 = vmatmul.mubr.bf16.vlgmr.msra.gmra.mxu1 %v16613_v48  ;;  %8341 = vmatpush1.bf16.msra.mxu0 %v14382_v45  ;;  %v14334_v48 = vcombine.low %v1306_v39, %v1318_v12  ;;  %v1546_v45 = vld [vmem:[#allocation8 + $0x2370] sm:$0xff]  ;;  %v14214_v39 = vcombine.low %v1186_v29, %v1198_v30  ;;  %v13448_v12 = vcombine.low %v419_v32, %v431_v33 }
 0x324   : > { %8384 = vmatpush1.bf16.msra.mxu1 %v13616_v36  ;;  %8342 = vmatprep.subr.bf16.mxu0 %v14359_v37  ;;  %v1558_v36 = vld [vmem:[#allocation8 + $0x23d0] sm:$0xff]  ;;  %v779_v37 = vld [vmem:[#allocation8 + $0xb78] sm:$0xff] }
 0x325   : > { %8385 = vmatprep.subr.bf16.mxu1 %v13593_v38  ;;  %8372 = vmatprep.mubr.bf16.mxu0 %v16628_v34  ;;  %v791_v38 = vld [vmem:[#allocation8 + $0xbd8] sm:$0xff]  ;;  %v14575_v41 = vcombine.high %v1546_v45, %v1558_v36  ;;  %v14574_v28 = vcombine.low %v1546_v45, %v1558_v36  ;;  %v8030_v36 = vpop.f32.mrf.mxu0 }
 0x326   : > { %8415 = vmatprep.mubr.bf16.mxu1 %v16618_v2  ;;  %v13521_v2 = vcombine.high %v491_v55, %v503_v56  ;;  %v13809_v43 = vcombine.high %v779_v37, %v791_v38  ;;  %v13808_v47 = vcombine.low %v779_v37, %v791_v38 }
 0x327   : > { %8343 = vmatpush1.bf16.msra.mxu0 %v14358_v42  ;;  %v1522_v42 = vld [vmem:[#allocation8 + $0x22b0] sm:$0xff] }
 0x328   : > { %8386 = vmatpush1.bf16.msra.mxu1 %v13592_v16  ;;  %8344 = vmatprep.subr.bf16.mxu0 %v14335_v57  ;;  %v1534_v16 = vld [vmem:[#allocation8 + $0x2310] sm:$0xff]  ;;  %v755_v57 = vld [vmem:[#allocation8 + $0xab8] sm:$0xff] }
 0x329   : > { %8387 = vmatprep.subr.bf16.mxu1 %v13569_v46  ;;  %v767_v46 = vld [vmem:[#allocation8 + $0xb18] sm:$0xff]  ;;  %v14551_v59 = vcombine.high %v1522_v42, %v1534_v16  ;;  %v14550_v53 = vcombine.low %v1522_v42, %v1534_v16  ;;  %v16632_v16 = vld [vmem:[#allocation9 + $0x8] sm:$0xff] }
 0x32a   : > { %v13785_v22 = vcombine.high %v755_v57, %v767_v46  ;;  %v13784_v54 = vcombine.low %v755_v57, %v767_v46  ;;  %v623_v42 = vld [vmem:[#allocation8 + $0x698] sm:$0xff]  ;;  %v8032_v46 = vpop.f32.mrf.mxu0 }
 0x32b   : > { %8345 = vmatpush1.bf16.msra.mxu0 %v14334_v48  ;;  %v1498_v48 = vld [vmem:[#allocation8 + $0x21f0] sm:$0xff] }
 0x32c   : > { %8388 = vmatpush1.bf16.msra.mxu1 %v13568_v49  ;;  %8346 = vmatprep.subr.bf16.mxu0 %v14311_v50  ;;  %v1510_v49 = vld [vmem:[#allocation8 + $0x2250] sm:$0xff]  ;;  %v731_v50 = vld [vmem:[#allocation8 + $0x9f8] sm:$0xff] }
 0x32d   : > { %8389 = vmatprep.subr.bf16.mxu1 %v13545_v52  ;;  %v743_v52 = vld [vmem:[#allocation8 + $0xa58] sm:$0xff]  ;;  %v14527_v55 = vcombine.high %v1498_v48, %v1510_v49  ;;  %v14526_v63 = vcombine.low %v1498_v48, %v1510_v49 }
 0x32e   : > { %v13761_v56 = vcombine.high %v731_v50, %v743_v52  ;;  %v13760_v0 = vcombine.low %v731_v50, %v743_v52  ;;  %v971_v48 = vld [vmem:[#allocation8 + $0x1178] sm:$0xff]  ;;  %v1605_v50 = vrot.slane %v16632_v16, %v16529_v19 }
 0x32f   : > { %8347 = vmatpush1.bf16.msra.mxu0 %v14310_v58  ;;  %v1474_v58 = vld [vmem:[#allocation8 + $0x2130] sm:$0xff]  ;;  %v983_v49 = vld [vmem:[#allocation8 + $0x11d8] sm:$0xff] }
 0x330   : > { %8390 = vmatpush1.bf16.msra.mxu1 %v13544_v60  ;;  %8348 = vmatprep.subr.bf16.mxu0 %v14287_v61  ;;  %v1486_v60 = vld [vmem:[#allocation8 + $0x2190] sm:$0xff]  ;;  %v707_v61 = vld [vmem:[#allocation8 + $0x938] sm:$0xff] }
 0x331   : > { %8391 = vmatprep.subr.bf16.mxu1 %v13521_v2  ;;  %v719_v2 = vld [vmem:[#allocation8 + $0x998] sm:$0xff]  ;;  %v14503_v1 = vcombine.high %v1474_v58, %v1486_v60  ;;  %v14502_v14 = vcombine.low %v1474_v58, %v1486_v60 }
 0x332   : > { %v13737_v51 = vcombine.high %v707_v61, %v719_v2  ;;  %v13736_v40 = vcombine.low %v707_v61, %v719_v2  ;;  %v1355_v52 = vld [vmem:[#allocation8 + $0x1d78] sm:$0xff]  ;;  %v14001_v61 = vcombine.high %v971_v48, %v983_v49 }
 0x333   : > { %8349 = vmatpush1.bf16.msra.mxu0 %v14286_v3  ;;  %v1450_v3 = vld [vmem:[#allocation8 + $0x2070] sm:$0xff] }
 0x334   : > { %8392 = vmatpush1.bf16.msra.mxu1 %v13520_v4  ;;  %8350 = vmatprep.subr.bf16.mxu0 %v14263_v6  ;;  %v1462_v4 = vld [vmem:[#allocation8 + $0x20d0] sm:$0xff]  ;;  %v683_v6 = vld [vmem:[#allocation8 + $0x878] sm:$0xff] }
 0x335   : > { %8393 = vmatprep.subr.bf16.mxu1 %v13497_v11  ;;  %v695_v11 = vld [vmem:[#allocation8 + $0x8d8] sm:$0xff]  ;;  %v14479_v17 = vcombine.high %v1450_v3, %v1462_v4  ;;  %v14478_v29 = vcombine.low %v1450_v3, %v1462_v4 }
 0x336   : > { %v13713_v13 = vcombine.high %v683_v6, %v695_v11  ;;  %v13712_v30 = vcombine.low %v683_v6, %v695_v11  ;;  %v1343_v3 = vld [vmem:[#allocation8 + $0x1d18] sm:$0xff]  ;;  %v14000_v6 = vcombine.low %v971_v48, %v983_v49 }
 0x337   : > { %8351 = vmatpush1.bf16.msra.mxu0 %v14262_v21  ;;  %v1426_v21 = vld [vmem:[#allocation8 + $0x1fb0] sm:$0xff] }
 0x338   : > { %8394 = vmatpush1.bf16.msra.mxu1 %v13496_v25  ;;  %8352 = vmatprep.subr.bf16.mxu0 %v14239_v26  ;;  %v1438_v25 = vld [vmem:[#allocation8 + $0x2010] sm:$0xff]  ;;  %v659_v26 = vld [vmem:[#allocation8 + $0x7b8] sm:$0xff] }
 0x339   : > { %8395 = vmatprep.subr.bf16.mxu1 %v13473_v27  ;;  %v671_v27 = vld [vmem:[#allocation8 + $0x818] sm:$0xff]  ;;  %v14455_v32 = vcombine.high %v1426_v21, %v1438_v25  ;;  %v14454_v45 = vcombine.low %v1426_v21, %v1438_v25 }
 0x33a   : > { %v13689_v33 = vcombine.high %v659_v26, %v671_v27  ;;  %v13688_v37 = vcombine.low %v659_v26, %v671_v27  ;;  %v923_v21 = vld [vmem:[#allocation8 + $0xff8] sm:$0xff] }
 0x33b   : > { %8353 = vmatpush1.bf16.msra.mxu0 %v14238_v44  ;;  %v1402_v44 = vld [vmem:[#allocation8 + $0x1ef0] sm:$0xff]  ;;  %v935_v25 = vld [vmem:[#allocation8 + $0x1058] sm:$0xff] }
 0x33c   : > { %8396 = vmatpush1.bf16.msra.mxu1 %v13472_v8  ;;  %8354 = vmatprep.subr.bf16.mxu0 %v14215_v35  ;;  %v1414_v8 = vld [vmem:[#allocation8 + $0x1f50] sm:$0xff]  ;;  %v635_v35 = vld [vmem:[#allocation8 + $0x6f8] sm:$0xff] }
 0x33d   : > { %8397 = vmatprep.subr.bf16.mxu1 %v13449_v31  ;;  %v647_v31 = vld [vmem:[#allocation8 + $0x758] sm:$0xff]  ;;  %v14431_v38 = vcombine.high %v1402_v44, %v1414_v8  ;;  %v14430_v57 = vcombine.low %v1402_v44, %v1414_v8 }
 0x33f   : > { %8355 = vmatpush1.bf16.msra.mxu0 %v14214_v39  ;;  %v13665_v39 = vcombine.high %v635_v35, %v647_v31 }
 0x340   : > { %8398 = vmatpush1.bf16.msra.mxu1 %v13448_v12  ;;  %8356 = vmatprep.subr.bf16.mxu0 %v14575_v41  ;;  %v1378_v12 = vld [vmem:[#allocation8 + $0x1e30] sm:$0xff] }
 0x341   : > { %8399 = vmatprep.subr.bf16.mxu1 %v13809_v43  ;;  %v1390_v41 = vld [vmem:[#allocation8 + $0x1e90] sm:$0xff]  ;;  %v611_v43 = vld [vmem:[#allocation8 + $0x638] sm:$0xff] }
 0x342   : > { %v13640_v60 = vcombine.low %v611_v43, %v623_v42 }
 0x343   : > { %8357 = vmatpush2.bf16.msra.mxu0 %v14574_v28  ;;  %v8073_v28 = vpop.f32.mrf.mxu1 }
 0x344   : > { %8400 = vmatpush2.bf16.msra.mxu1 %v13808_v47  ;;  %8358 = vmatprep.subr.bf16.mxu0 %v14551_v59  ;;  %v13664_v47 = vcombine.low %v635_v35, %v647_v31  ;;  %v14407_v59 = vcombine.high %v1378_v12, %v1390_v41 }
 0x345   : > { %8401 = vmatprep.subr.bf16.mxu1 %v13785_v22  ;;  %v13641_v22 = vcombine.high %v611_v43, %v623_v42  ;;  %v8075_v58 = vpop.f32.mrf.mxu1  ;;  %v911_v43 = vld [vmem:[#allocation8 + $0xf98] sm:$0xff] }
 0x346   : > { %v16644_v42 = vld [vmem:[%s16456_s15 + $0xc] ss:$24 sps:$4 sm:$0xff]  }
 0x347   : > { %8359 = vmatpush2.bf16.msra.mxu0 %v14550_v53  ;;  %v1367_v53 = vld [vmem:[#allocation8 + $0x1dd8] sm:$0xff] }
 0x348   : > { %8402 = vmatpush2.bf16.msra.mxu1 %v13784_v54  ;;  %8360 = vmatprep.subr.bf16.mxu0 %v14527_v55  ;;  %v1609_v54 = vrot.slane %v16632_v16, %v16534_v24  ;;  %v14406_v55 = vcombine.low %v1378_v12, %v1390_v41  ;;  %v14385_v2 = vcombine.high %v1355_v52, %v1367_v53  ;;  %v899_v41 = vld [vmem:[#allocation8 + $0xf38] sm:$0xff] }
 0x349   : > { %8403 = vmatprep.subr.bf16.mxu1 %v13761_v56  ;;  %v8034_v56 = vpop.f32.mrf.mxu0 }
 0x34a   : > { %v8033_v4 = vadd.f32 %v8032_v46, %v1609_v54  ;;  %v8035_v44 = vadd.f32 %v8034_v56, %v1605_v50  ;;  %v1283_v46 = vld [vmem:[#allocation8 + $0x1b38] sm:$0xff] }
 0x34b   : > { %8361 = vmatpush2.bf16.msra.mxu0 %v14526_v63  ;;  %v947_v63 = vld [vmem:[#allocation8 + $0x10b8] sm:$0xff]  ;;  %v8036_v11 = vpop.f32.mrf.mxu0 }
 0x34c   : > { %8404 = vmatpush2.bf16.msra.mxu1 %v13760_v0  ;;  %8362 = vmatprep.subr.bf16.mxu0 %v14503_v1  ;;  %v959_v0 = vld [vmem:[#allocation8 + $0x1118] sm:$0xff]  ;;  %v8031_v1 = vadd.f32 %v8030_v36, %v1605_v50  ;;  %v8076_v8 = vadd.f32 %v8075_v58, %v8033_v4  ;;  %v8037_v35 = vadd.f32 %v8036_v11, %v1609_v54 }
 0x34d   : > { %8405 = vmatprep.subr.bf16.mxu1 %v13737_v51  ;;  %v1331_v51 = vld [vmem:[#allocation8 + $0x1cb8] sm:$0xff]  ;;  %v13929_v50 = vcombine.high %v899_v41, %v911_v43 }
 0x34e   : > { %v8074_v26 = vadd.f32 %v8073_v28, %v8031_v1  ;;  %v14360_v36 = vcombine.low %v1331_v51, %v1343_v3  ;;  %v887_v56 = vld [vmem:[#allocation8 + $0xed8] sm:$0xff] }
 0x34f   : > { %8363 = vmatpush2.bf16.msra.mxu0 %v14502_v14  ;;  %v8077_v14 = vpop.f32.mrf.mxu1  ;;  %v1259_v58 = vld [vmem:[#allocation8 + $0x1a78] sm:$0xff] }
 0x350   : > { %8406 = vmatpush2.bf16.msra.mxu1 %v13736_v40  ;;  %8364 = vmatprep.subr.bf16.mxu0 %v14479_v17  ;;  %v14384_v40 = vcombine.low %v1355_v52, %v1367_v53  ;;  %v13977_v17 = vcombine.high %v947_v63, %v959_v0  ;;  %v8078_v28 = vadd.f32 %v8077_v14, %v8035_v44  ;;  %v851_v1 = vld [vmem:[#allocation8 + $0xdb8] sm:$0xff] }
 0x351   : > { %8407 = vmatprep.subr.bf16.mxu1 %v13713_v13  ;;  %v14361_v13 = vcombine.high %v1331_v51, %v1343_v3  ;;  %v8079_v31 = vpop.f32.mrf.mxu1  ;;  %v863_v51 = vld [vmem:[#allocation8 + $0xe18] sm:$0xff] }
 0x352   : > { %v1235_v3 = vld [vmem:[#allocation8 + $0x19b8] sm:$0xff]  ;;  %v13881_v14 = vcombine.high %v851_v1, %v863_v51 }
 0x353   : > { %8365 = vmatpush2.bf16.msra.mxu0 %v14478_v29  ;;  %v16639_v29 = vld [vmem:[%s16456_s15 + $0x10] ss:$24 sps:$4 sm:$0xff]  }
 0x354   : > { %8408 = vmatpush2.bf16.msra.mxu1 %v13712_v30  ;;  %8366 = vmatprep.subr.bf16.mxu0 %v14455_v32  ;;  %v13976_v30 = vcombine.low %v947_v63, %v959_v0  ;;  %v1307_v32 = vld [vmem:[#allocation8 + $0x1bf8] sm:$0xff] }
 0x355   : > { %8409 = vmatprep.subr.bf16.mxu1 %v13689_v33  ;;  %v1319_v33 = vld [vmem:[#allocation8 + $0x1c58] sm:$0xff] }
 0x356   : > { %v14337_v12 = vcombine.high %v1307_v32, %v1319_v33  ;;  %v14336_v49 = vcombine.low %v1307_v32, %v1319_v33  ;;  %v1247_v4 = vld [vmem:[#allocation8 + $0x1a18] sm:$0xff] }
 0x357   : > { %8367 = vmatpush2.bf16.msra.mxu0 %v14454_v45  ;;  %v803_v33 = vld [vmem:[#allocation8 + $0xc38] sm:$0xff] }
 0x358   : > { %8410 = vmatpush2.bf16.msra.mxu1 %v13688_v37  ;;  %8368 = vmatprep.subr.bf16.mxu0 %v14431_v38  ;;  %v13953_v37 = vcombine.high %v923_v21, %v935_v25  ;;  %v815_v44 = vld [vmem:[#allocation8 + $0xc98] sm:$0xff] }
 0x359   : > { %8411 = vmatprep.subr.bf16.mxu1 %v13665_v39 }
 0x35b   : > { %8369 = vmatpush2.bf16.msra.mxu0 %v14430_v57 }
 0x35c   : > { %8412 = vmatpush2.bf16.msra.mxu1 %v13664_v47  ;;  %8370 = vmatprep.subr.bf16.mxu0 %v14407_v59  ;;  %v8080_v47 = vadd.f32 %v8079_v31, %v8037_v35  ;;  %v1199_v35 = vld [vmem:[#allocation8 + $0x1898] sm:$0xff] }
 0x35d   : > { %8413 = vmatprep.subr.bf16.mxu1 %v13641_v22  ;;  %v13952_v22 = vcombine.low %v923_v21, %v935_v25  ;;  %v1211_v21 = vld [vmem:[#allocation8 + $0x18f8] sm:$0xff] }
 0x35e   : > { %v1223_v25 = vld [vmem:[#allocation8 + $0x1958] sm:$0xff] }
 0x35f   : > { %8371 = vmatpush2.bf16.msra.mxu0 %v14406_v55  ;;  %v875_v55 = vld [vmem:[#allocation8 + $0xe78] sm:$0xff]  ;;  %v14241_v32 = vcombine.high %v1211_v21, %v1223_v25 }
 0x360   : > { %8414 = vmatpush2.bf16.msra.mxu1 %v13640_v60  ;;  %8426 = vmatprep.subr.bf16.mxu0 %v14001_v61  ;;  %v1271_v60 = vld [vmem:[#allocation8 + $0x1ad8] sm:$0xff]  ;;  %v13928_v61 = vcombine.low %v899_v41, %v911_v43  ;;  %v13905_v63 = vcombine.high %v875_v55, %v887_v56  ;;  %v13832_v43 = vcombine.low %v803_v33, %v815_v44 }
 0x361   : > { %8469 = vmatprep.subr.bf16.mxu1 %v14385_v2  ;;  %v14289_v0 = vcombine.high %v1259_v58, %v1271_v60  ;;  %v14288_v11 = vcombine.low %v1259_v58, %v1271_v60  ;;  %v1559_v41 = vld [vmem:[#allocation8 + $0x23d8] sm:$0xff] }
 0x362   : > { %v8116_v27 = vpop.f32.mrf.mxu0  ;;  %8373 = vmatmul.mubr.bf16.vlgmr.msra.gmra.mxu0 %v16639_v29 }
 0x363   : > { %8416 = vmatmul.mubr.bf16.vlgmr.msra.gmra.mxu1 %v16623_v23  ;;  %8427 = vmatpush1.bf16.msra.mxu0 %v14000_v6  ;;  %v8117_v38 = vadd.f32 %v8116_v27, %v8074_v26  ;;  %v1295_v23 = vld [vmem:[#allocation8 + $0x1b98] sm:$0xff]  ;;  %v13904_v6 = vcombine.low %v875_v55, %v887_v56  ;;  %v13880_v26 = vcombine.low %v851_v1, %v863_v51 }
 0x364   : > { %8470 = vmatpush1.bf16.msra.mxu1 %v14384_v40  ;;  %v8118_v45 = vpop.f32.mrf.mxu0  ;;  %8428 = vmatprep.subr.bf16.mxu0 %v13977_v17  ;;  %v14313_v54 = vcombine.high %v1283_v46, %v1295_v23  ;;  %v14312_v2 = vcombine.low %v1283_v46, %v1295_v23  ;;  %v14265_v40 = vcombine.high %v1235_v3, %v1247_v4  ;;  %v827_v17 = vld [vmem:[#allocation8 + $0xcf8] sm:$0xff] }
 0x365   : > { %v8119_v39 = vadd.f32 %v8118_v45, %v8076_v8  ;;  %8471 = vmatprep.subr.bf16.mxu1 %v14361_v13  ;;  %8458 = vmatprep.mubr.bf16.mxu0 %v16644_v42  ;;  %v839_v13 = vld [vmem:[#allocation8 + $0xd58] sm:$0xff]  ;;  %v14264_v27 = vcombine.low %v1235_v3, %v1247_v4  ;;  %v14240_v45 = vcombine.low %v1211_v21, %v1223_v25 }
 0x366   : > { %v8120_v57 = vpop.f32.mrf.mxu0  ;;  %8501 = vmatprep.mubr.bf16.mxu1 %v16628_v34  ;;  %v1187_v8 = vld [vmem:[#allocation8 + $0x1838] sm:$0xff]  ;;  %v13856_v31 = vcombine.low %v827_v17, %v839_v13 }
 0x367   : > { %v15035_v59 = vpack.c.bf16 %v8119_v39, %v8117_v38  ;;  %8429 = vmatpush1.bf16.msra.mxu0 %v13976_v30  ;;  %v8121_v52 = vadd.f32 %v8120_v57, %v8078_v28  ;;  %v13857_v30 = vcombine.high %v827_v17, %v839_v13  ;;  %v1163_v38 = vld [vmem:[#allocation8 + $0x1778] sm:$0xff]  ;;  %v14216_v57 = vcombine.low %v1187_v8, %v1199_v35 }
 0x368   : > { %8472 = vmatpush1.bf16.msra.mxu1 %v14360_v36  ;;  %v8122_v48 = vpop.f32.mrf.mxu0  ;;  %8430 = vmatprep.subr.bf16.mxu0 %v13953_v37  ;;  %v13833_v36 = vcombine.high %v803_v33, %v815_v44  ;;  %v14217_v37 = vcombine.high %v1187_v8, %v1199_v35  ;;  %v1175_v39 = vld [vmem:[#allocation8 + $0x17d8] sm:$0xff] }
 0x369   : > { %9176 = vst [vmem:[#allocation2 + $0x20] sm:$0xff] %v15035_v59  ;;  %v8123_v53 = vadd.f32 %v8122_v48, %v8080_v47  ;;  %8473 = vmatprep.subr.bf16.mxu1 %v14337_v12  ;;  %v1547_v12 = vld [vmem:[#allocation8 + $0x2378] sm:$0xff]  ;;  %v14193_v46 = vcombine.high %v1163_v38, %v1175_v39  ;;  %v14192_v48 = vcombine.low %v1163_v38, %v1175_v39 }
 0x36a   : > { %v14577_v23 = vcombine.high %v1547_v12, %v1559_v41  ;;  %v1139_v28 = vld [vmem:[#allocation8 + $0x16b8] sm:$0xff] }
 0x36b   : > { %v15047_v34 = vpack.c.bf16 %v8123_v53, %v8121_v52  ;;  %8431 = vmatpush1.bf16.msra.mxu0 %v13952_v22  ;;  %v1151_v47 = vld [vmem:[#allocation8 + $0x1718] sm:$0xff] }
 0x36c   : > { %8474 = vmatpush1.bf16.msra.mxu1 %v14336_v49  ;;  %8432 = vmatprep.subr.bf16.mxu0 %v13929_v50  ;;  %v1523_v59 = vld [vmem:[#allocation8 + $0x22b8] sm:$0xff]  ;;  %v14576_v49 = vcombine.low %v1547_v12, %v1559_v41  ;;  %v14169_v50 = vcombine.high %v1139_v28, %v1151_v47  ;;  %v14168_v58 = vcombine.low %v1139_v28, %v1151_v47  ;;  %v8159_v12 = vpop.f32.mrf.mxu1 }
 0x36d   : > { %9188 = vst [vmem:[#allocation2 + $0x80] sm:$0xff] %v15047_v34  ;;  %8475 = vmatprep.subr.bf16.mxu1 %v14313_v54  ;;  %v1535_v22 = vld [vmem:[#allocation8 + $0x2318] sm:$0xff] }
 0x36e   : > { %v14553_v52 = vcombine.high %v1523_v59, %v1535_v22  ;;  %v1115_v53 = vld [vmem:[#allocation8 + $0x15f8] sm:$0xff]  ;;  %v14552_v60 = vcombine.low %v1523_v59, %v1535_v22  ;;  %v8161_v22 = vpop.f32.mrf.mxu1 }
 0x36f   : > { %8433 = vmatpush1.bf16.msra.mxu0 %v13928_v61  ;;  %v1127_v54 = vld [vmem:[#allocation8 + $0x1658] sm:$0xff] }
 0x370   : > { %8476 = vmatpush1.bf16.msra.mxu1 %v14312_v2  ;;  %8434 = vmatprep.subr.bf16.mxu0 %v13905_v63  ;;  %v1499_v55 = vld [vmem:[#allocation8 + $0x21f8] sm:$0xff]  ;;  %v14145_v34 = vcombine.high %v1115_v53, %v1127_v54  ;;  %v14144_v51 = vcombine.low %v1115_v53, %v1127_v54  ;;  %v600_v53 = vld [vmem:[#allocation8 + $0x5e0] sm:$0xff] }
 0x371   : > { %8477 = vmatprep.subr.bf16.mxu1 %v14289_v0  ;;  %v1511_v56 = vld [vmem:[#allocation8 + $0x2258] sm:$0xff]  ;;  %v972_v54 = vld [vmem:[#allocation8 + $0x1180] sm:$0xff] }
 0x372   : > { %v14529_v61 = vcombine.high %v1499_v55, %v1511_v56  ;;  %v1091_v2 = vld [vmem:[#allocation8 + $0x1538] sm:$0xff]  ;;  %v14528_v3 = vcombine.low %v1499_v55, %v1511_v56  ;;  %v984_v55 = vld [vmem:[#allocation8 + $0x11e0] sm:$0xff]  ;;  %v1613_v56 = vrot.slane %v16632_v16, %v16551_v5 }
 0x373   : > { %8435 = vmatpush1.bf16.msra.mxu0 %v13904_v6  ;;  %v1103_v63 = vld [vmem:[#allocation8 + $0x1598] sm:$0xff] }
 0x374   : > { %8478 = vmatpush1.bf16.msra.mxu1 %v14288_v11  ;;  %8436 = vmatprep.subr.bf16.mxu0 %v13881_v14  ;;  %v1475_v0 = vld [vmem:[#allocation8 + $0x2138] sm:$0xff]  ;;  %v14121_v4 = vcombine.high %v1091_v2, %v1103_v63  ;;  %v14120_v13 = vcombine.low %v1091_v2, %v1103_v63  ;;  %v1617_v2 = vrot.slane %v16632_v16, %v16554_v10  ;;  %v552_v16 = vld [vmem:[#allocation8 + $0x460] sm:$0xff] }
 0x375   : > { %8479 = vmatprep.subr.bf16.mxu1 %v14265_v40  ;;  %v1487_v1 = vld [vmem:[#allocation8 + $0x2198] sm:$0xff]  ;;  %v14003_v63 = vcombine.high %v972_v54, %v984_v55 }
 0x376   : > { %v14505_v6 = vcombine.high %v1475_v0, %v1487_v1  ;;  %v1067_v11 = vld [vmem:[#allocation8 + $0x1478] sm:$0xff]  ;;  %v14504_v21 = vcombine.low %v1475_v0, %v1487_v1  ;;  %v564_v0 = vld [vmem:[#allocation8 + $0x4c0] sm:$0xff] }
 0x377   : > { %8437 = vmatpush1.bf16.msra.mxu0 %v13880_v26  ;;  %v1079_v14 = vld [vmem:[#allocation8 + $0x14d8] sm:$0xff]  ;;  %v576_v1 = vld [vmem:[#allocation8 + $0x520] sm:$0xff] }
 0x378   : > { %8480 = vmatpush1.bf16.msra.mxu1 %v14264_v27  ;;  %8438 = vmatprep.subr.bf16.mxu0 %v13857_v30  ;;  %v1451_v40 = vld [vmem:[#allocation8 + $0x2078] sm:$0xff]  ;;  %v14097_v25 = vcombine.high %v1067_v11, %v1079_v14  ;;  %v14096_v44 = vcombine.low %v1067_v11, %v1079_v14  ;;  %v14002_v14 = vcombine.low %v972_v54, %v984_v55 }
 0x379   : > { %8481 = vmatprep.subr.bf16.mxu1 %v14241_v32  ;;  %v1463_v17 = vld [vmem:[#allocation8 + $0x20d8] sm:$0xff] }
 0x37a   : > { %v14481_v26 = vcombine.high %v1451_v40, %v1463_v17  ;;  %v1043_v27 = vld [vmem:[#allocation8 + $0x13b8] sm:$0xff]  ;;  %v14480_v8 = vcombine.low %v1451_v40, %v1463_v17  ;;  %v13595_v40 = vcombine.high %v564_v0, %v576_v1  ;;  %v540_v17 = vld [vmem:[#allocation8 + $0x400] sm:$0xff] }
 0x37b   : > { %8439 = vmatpush1.bf16.msra.mxu0 %v13856_v31  ;;  %v1055_v30 = vld [vmem:[#allocation8 + $0x1418] sm:$0xff] }
 0x37c   : > { %8482 = vmatpush1.bf16.msra.mxu1 %v14240_v45  ;;  %8440 = vmatprep.subr.bf16.mxu0 %v13833_v36  ;;  %v1427_v32 = vld [vmem:[#allocation8 + $0x1fb8] sm:$0xff]  ;;  %v14073_v35 = vcombine.high %v1043_v27, %v1055_v30  ;;  %v14072_v39 = vcombine.low %v1043_v27, %v1055_v30 }
 0x37d   : > { %8483 = vmatprep.subr.bf16.mxu1 %v14217_v37  ;;  %v1439_v33 = vld [vmem:[#allocation8 + $0x2018] sm:$0xff] }
 0x37e   : > { %v14457_v31 = vcombine.high %v1427_v32, %v1439_v33  ;;  %v1019_v45 = vld [vmem:[#allocation8 + $0x12f8] sm:$0xff]  ;;  %v14456_v41 = vcombine.low %v1427_v32, %v1439_v33 }
 0x37f   : > { %8441 = vmatpush1.bf16.msra.mxu0 %v13832_v43  ;;  %v1031_v36 = vld [vmem:[#allocation8 + $0x1358] sm:$0xff] }
 0x380   : > { %8484 = vmatpush1.bf16.msra.mxu1 %v14216_v57  ;;  %8442 = vmatprep.subr.bf16.mxu0 %v14193_v46  ;;  %v1403_v37 = vld [vmem:[#allocation8 + $0x1ef8] sm:$0xff]  ;;  %v14049_v43 = vcombine.high %v1019_v45, %v1031_v36  ;;  %v14048_v59 = vcombine.low %v1019_v45, %v1031_v36  ;;  %v13571_v45 = vcombine.high %v540_v17, %v552_v16 }
 0x381   : > { %8485 = vmatprep.subr.bf16.mxu1 %v14577_v23  ;;  %v1415_v38 = vld [vmem:[#allocation8 + $0x1f58] sm:$0xff] }
 0x382   : > { %v14433_v57 = vcombine.high %v1403_v37, %v1415_v38  ;;  %v995_v46 = vld [vmem:[#allocation8 + $0x1238] sm:$0xff] }
 0x383   : > { %8443 = vmatpush2.bf16.msra.mxu0 %v14192_v48  ;;  %v1007_v23 = vld [vmem:[#allocation8 + $0x1298] sm:$0xff]  ;;  %v14432_v48 = vcombine.low %v1403_v37, %v1415_v38 }
 0x384   : > { %8486 = vmatpush2.bf16.msra.mxu1 %v14576_v49  ;;  %8444 = vmatprep.subr.bf16.mxu0 %v14169_v50  ;;  %v1379_v28 = vld [vmem:[#allocation8 + $0x1e38] sm:$0xff]  ;;  %v14025_v49 = vcombine.high %v995_v46, %v1007_v23 }
 0x385   : > { %8487 = vmatprep.subr.bf16.mxu1 %v14553_v52  ;;  %v1391_v47 = vld [vmem:[#allocation8 + $0x1e98] sm:$0xff]  ;;  %v588_v52 = vld [vmem:[#allocation8 + $0x580] sm:$0xff] }
 0x386   : > { %v14409_v50 = vcombine.high %v1379_v28, %v1391_v47  ;;  %v13618_v11 = vcombine.low %v588_v52, %v600_v53  ;;  %v16653_v30 = vld [vmem:[%s16456_s15 + $0x8] ss:$24 sps:$4 sm:$0xff]  }
 0x387   : > { %8445 = vmatpush2.bf16.msra.mxu0 %v14168_v58  ;;  %v14024_v58 = vcombine.low %v995_v46, %v1007_v23  ;;  %v900_v46 = vld [vmem:[#allocation8 + $0xf40] sm:$0xff] }
 0x388   : > { %8488 = vmatpush2.bf16.msra.mxu1 %v14552_v60  ;;  %8446 = vmatprep.subr.bf16.mxu0 %v14145_v34  ;;  %v8163_v60 = vpop.f32.mrf.mxu1  ;;  %v14408_v34 = vcombine.low %v1379_v28, %v1391_v47  ;;  %v912_v23 = vld [vmem:[#allocation8 + $0xfa0] sm:$0xff] }
 0x389   : > { %8489 = vmatprep.subr.bf16.mxu1 %v14529_v61  ;;  %v13619_v61 = vcombine.high %v588_v52, %v600_v53  ;;  %v8164_v32 = vadd.f32 %v8163_v60, %v1613_v56  ;;  %v13931_v55 = vcombine.high %v900_v46, %v912_v23  ;;  %v876_v60 = vld [vmem:[#allocation8 + $0xe80] sm:$0xff] }
 0x38b   : > { %8447 = vmatpush2.bf16.msra.mxu0 %v14144_v51  ;;  %v948_v51 = vld [vmem:[#allocation8 + $0x10c0] sm:$0xff] }
 0x38c   : > { %8490 = vmatpush2.bf16.msra.mxu1 %v14528_v3  ;;  %8448 = vmatprep.subr.bf16.mxu0 %v14121_v4  ;;  %v960_v3 = vld [vmem:[#allocation8 + $0x1120] sm:$0xff]  ;;  %v8160_v4 = vadd.f32 %v8159_v12, %v1613_v56 }
 0x38d   : > { %8491 = vmatprep.subr.bf16.mxu1 %v14505_v6  ;;  %v8165_v6 = vpop.f32.mrf.mxu1  ;;  %v492_v56 = vld [vmem:[#allocation8 + $0x280] sm:$0xff] }
 0x38e   : > { %v8166_v37 = vadd.f32 %v8165_v6, %v1617_v2  ;;  %v852_v6 = vld [vmem:[#allocation8 + $0xdc0] sm:$0xff] }
 0x38f   : > { %8449 = vmatpush2.bf16.msra.mxu0 %v14120_v13  ;;  %v8162_v13 = vadd.f32 %v8161_v22, %v1617_v2  ;;  %v13570_v22 = vcombine.low %v540_v17, %v552_v16  ;;  %v456_v16 = vld [vmem:[#allocation8 + $0x160] sm:$0xff] }
 0x390   : > { %8492 = vmatpush2.bf16.msra.mxu1 %v14504_v21  ;;  %8450 = vmatprep.subr.bf16.mxu0 %v14097_v25  ;;  %v13979_v21 = vcombine.high %v948_v51, %v960_v3  ;;  %v924_v25 = vld [vmem:[#allocation8 + $0x1000] sm:$0xff] }
 0x391   : > { %8493 = vmatprep.subr.bf16.mxu1 %v14481_v26  ;;  %v936_v26 = vld [vmem:[#allocation8 + $0x1060] sm:$0xff] }
 0x392   : > { %v13955_v36 = vcombine.high %v924_v25, %v936_v26 }
 0x393   : > { %8451 = vmatpush2.bf16.msra.mxu0 %v14096_v44 }
 0x394   : > { %8494 = vmatpush2.bf16.msra.mxu1 %v14480_v8  ;;  %8452 = vmatprep.subr.bf16.mxu0 %v14073_v35  ;;  %v13594_v8 = vcombine.low %v564_v0, %v576_v1 }
 0x395   : > { %8495 = vmatprep.subr.bf16.mxu1 %v14457_v31  ;;  %v13978_v31 = vcombine.low %v948_v51, %v960_v3  ;;  %v468_v3 = vld [vmem:[#allocation8 + $0x1c0] sm:$0xff] }
 0x397   : > { %8453 = vmatpush2.bf16.msra.mxu0 %v14072_v39 }
 0x398   : > { %8496 = vmatpush2.bf16.msra.mxu1 %v14456_v41  ;;  %8454 = vmatprep.subr.bf16.mxu0 %v14049_v43  ;;  %v516_v41 = vld [vmem:[#allocation8 + $0x340] sm:$0xff] }
 0x399   : > { %8497 = vmatprep.subr.bf16.mxu1 %v14433_v57  ;;  %v528_v43 = vld [vmem:[#allocation8 + $0x3a0] sm:$0xff] }
 0x39a   : > { %v16658_v57 = vld [vmem:[%s16456_s15 + $0x4] ss:$24 sps:$4 sm:$0xff]   ;;  %v13546_v2 = vcombine.low %v516_v41, %v528_v43 }
 0x39b   : > { %8455 = vmatpush2.bf16.msra.mxu0 %v14048_v59 }
 0x39c   : > { %8498 = vmatpush2.bf16.msra.mxu1 %v14432_v48  ;;  %8456 = vmatprep.subr.bf16.mxu0 %v14025_v49  ;;  %v13954_v49 = vcombine.low %v924_v25, %v936_v26  ;;  %v828_v25 = vld [vmem:[#allocation8 + $0xd00] sm:$0xff] }
 0x39d   : > { %8499 = vmatprep.subr.bf16.mxu1 %v14409_v50  ;;  %v13547_v50 = vcombine.high %v516_v41, %v528_v43  ;;  %v840_v26 = vld [vmem:[#allocation8 + $0xd60] sm:$0xff] }
 0x39e   : > { %v792_v41 = vld [vmem:[#allocation8 + $0xbe0] sm:$0xff] }
 0x39f   : > { %8457 = vmatpush2.bf16.msra.mxu0 %v14024_v58  ;;  %v504_v58 = vld [vmem:[#allocation8 + $0x2e0] sm:$0xff] }
 0x3a0   : > { %8500 = vmatpush2.bf16.msra.mxu1 %v14408_v34  ;;  %8512 = vmatprep.subr.bf16.mxu0 %v13619_v61  ;;  %v888_v34 = vld [vmem:[#allocation8 + $0xee0] sm:$0xff]  ;;  %v13523_v0 = vcombine.high %v492_v56, %v504_v58 }
 0x3a1   : > { %8555 = vmatprep.subr.bf16.mxu1 %v14003_v63  ;;  %v13930_v63 = vcombine.low %v900_v46, %v912_v23  ;;  %v13907_v51 = vcombine.high %v876_v60, %v888_v34  ;;  %v1164_v43 = vld [vmem:[#allocation8 + $0x1780] sm:$0xff] }
 0x3a2   : > { %v8202_v27 = vpop.f32.mrf.mxu0  ;;  %8459 = vmatmul.mubr.bf16.vlgmr.msra.gmra.mxu0 %v16653_v30 }
 0x3a3   : > { %v8203_v33 = vadd.f32 %v8202_v27, %v8160_v4  ;;  %8502 = vmatmul.mubr.bf16.vlgmr.msra.gmra.mxu1 %v16639_v29  ;;  %8513 = vmatpush1.bf16.msra.mxu0 %v13618_v11  ;;  %v8245_v44 = vpop.f32.mrf.mxu1  ;;  %v480_v4 = vld [vmem:[#allocation8 + $0x220] sm:$0xff] }
 0x3a4   : > { %8556 = vmatpush1.bf16.msra.mxu1 %v14002_v14  ;;  %v8204_v35 = vpop.f32.mrf.mxu0  ;;  %8514 = vmatprep.subr.bf16.mxu0 %v13595_v40  ;;  %v864_v11 = vld [vmem:[#allocation8 + $0xe20] sm:$0xff]  ;;  %v13522_v14 = vcombine.low %v492_v56, %v504_v58  ;;  %v13906_v40 = vcombine.low %v876_v60, %v888_v34  ;;  %v13499_v17 = vcombine.high %v468_v3, %v480_v4 }
 0x3a5   : > { %v8205_v38 = vadd.f32 %v8204_v35, %v8162_v13  ;;  %v8246_v39 = vadd.f32 %v8245_v44, %v8203_v33  ;;  %v8247_v12 = vpop.f32.mrf.mxu1  ;;  %8557 = vmatprep.subr.bf16.mxu1 %v13979_v21  ;;  %8544 = vmatprep.mubr.bf16.mxu0 %v16658_v57  ;;  %v13883_v13 = vcombine.high %v852_v6, %v864_v11  ;;  %v444_v21 = vld [vmem:[#allocation8 + $0x100] sm:$0xff] }
 0x3a6   : > { %v8206_v29 = vpop.f32.mrf.mxu0  ;;  %8587 = vmatprep.mubr.bf16.mxu1 %v16644_v42  ;;  %v13498_v27 = vcombine.low %v468_v3, %v480_v4  ;;  %v13475_v33 = vcombine.high %v444_v21, %v456_v16  ;;  %v13859_v44 = vcombine.high %v828_v25, %v840_v26  ;;  %v432_v35 = vld [vmem:[#allocation8 + $0xa0] sm:$0xff] }
 0x3a7   : > { %v8207_v28 = vadd.f32 %v8206_v29, %v8164_v32  ;;  %v8248_v47 = vadd.f32 %v8247_v12, %v8205_v38  ;;  %8515 = vmatpush1.bf16.msra.mxu0 %v13594_v8  ;;  %v8249_v59 = vpop.f32.mrf.mxu1  ;;  %v13882_v32 = vcombine.low %v852_v6, %v864_v11  ;;  %v420_v8 = vld [vmem:[#allocation8 + $0x40] sm:$0xff] }
 0x3a8   : > { %8558 = vmatpush1.bf16.msra.mxu1 %v13978_v31  ;;  %v8208_v48 = vpop.f32.mrf.mxu0  ;;  %8516 = vmatprep.subr.bf16.mxu0 %v13571_v45  ;;  %v804_v31 = vld [vmem:[#allocation8 + $0xc40] sm:$0xff]  ;;  %v13451_v38 = vcombine.high %v420_v8, %v432_v35  ;;  %v13450_v46 = vcombine.low %v420_v8, %v432_v35 }
 0x3a9   : > { %v15036_v52 = vpack.c.bf16 %v8248_v47, %v8246_v39  ;;  %v8209_v53 = vadd.f32 %v8208_v48, %v8166_v37  ;;  %v8251_v54 = vpop.f32.mrf.mxu1  ;;  %8559 = vmatprep.subr.bf16.mxu1 %v13955_v36  ;;  %v8250_v42 = vadd.f32 %v8249_v59, %v8207_v28  ;;  %v816_v45 = vld [vmem:[#allocation8 + $0xca0] sm:$0xff]  ;;  %v13474_v36 = vcombine.low %v444_v21, %v456_v16 }
 0x3aa   : > { %v13858_v37 = vcombine.low %v828_v25, %v840_v26  ;;  %v13835_v39 = vcombine.high %v804_v31, %v816_v45  ;;  %v780_v12 = vld [vmem:[#allocation8 + $0xb80] sm:$0xff]  ;;  %v13834_v23 = vcombine.low %v804_v31, %v816_v45 }
 0x3ab   : > { %9177 = vst [vmem:[#allocation2 + $0x28] sm:$0xff] %v15036_v52  ;;  %v8252_v61 = vadd.f32 %v8251_v54, %v8209_v53  ;;  %8517 = vmatpush1.bf16.msra.mxu0 %v13570_v22  ;;  %v1176_v29 = vld [vmem:[#allocation8 + $0x17e0] sm:$0xff]  ;;  %v13811_v28 = vcombine.high %v780_v12, %v792_v41 }
 0x3ac   : > { %8560 = vmatpush1.bf16.msra.mxu1 %v13954_v49  ;;  %8518 = vmatprep.subr.bf16.mxu0 %v13547_v50  ;;  %v14195_v47 = vcombine.high %v1164_v43, %v1176_v29  ;;  %v756_v59 = vld [vmem:[#allocation8 + $0xac0] sm:$0xff]  ;;  %v13810_v50 = vcombine.low %v780_v12, %v792_v41  ;;  %v14194_v52 = vcombine.low %v1164_v43, %v1176_v29 }
 0x3ad   : > { %v15048_v1 = vpack.c.bf16 %v8252_v61, %v8250_v42  ;;  %8561 = vmatprep.subr.bf16.mxu1 %v13931_v55  ;;  %v768_v22 = vld [vmem:[#allocation8 + $0xb20] sm:$0xff] }
 0x3ae   : > { %v1140_v48 = vld [vmem:[#allocation8 + $0x16c0] sm:$0xff]  ;;  %v13787_v53 = vcombine.high %v756_v59, %v768_v22  ;;  %v13786_v34 = vcombine.low %v756_v59, %v768_v22 }
 0x3af   : > { %9189 = vst [vmem:[#allocation2 + $0x88] sm:$0xff] %v15048_v1  ;;  %8519 = vmatpush1.bf16.msra.mxu0 %v13546_v2  ;;  %v1152_v49 = vld [vmem:[#allocation8 + $0x1720] sm:$0xff] }
 0x3b0   : > { %8562 = vmatpush1.bf16.msra.mxu1 %v13930_v63  ;;  %8520 = vmatprep.subr.bf16.mxu0 %v13523_v0  ;;  %v14171_v54 = vcombine.high %v1140_v48, %v1152_v49  ;;  %v732_v55 = vld [vmem:[#allocation8 + $0xa00] sm:$0xff]  ;;  %v14170_v42 = vcombine.low %v1140_v48, %v1152_v49 }
 0x3b1   : > { %8563 = vmatprep.subr.bf16.mxu1 %v13907_v51  ;;  %v744_v56 = vld [vmem:[#allocation8 + $0xa60] sm:$0xff] }
 0x3b2   : > { %v1116_v58 = vld [vmem:[#allocation8 + $0x1600] sm:$0xff]  ;;  %v13763_v61 = vcombine.high %v732_v55, %v744_v56  ;;  %v13762_v3 = vcombine.low %v732_v55, %v744_v56 }
 0x3b3   : > { %8521 = vmatpush1.bf16.msra.mxu0 %v13522_v14  ;;  %v1128_v60 = vld [vmem:[#allocation8 + $0x1660] sm:$0xff] }
 0x3b4   : > { %8564 = vmatpush1.bf16.msra.mxu1 %v13906_v40  ;;  %8522 = vmatprep.subr.bf16.mxu0 %v13499_v17  ;;  %v14147_v2 = vcombine.high %v1116_v58, %v1128_v60  ;;  %v708_v63 = vld [vmem:[#allocation8 + $0x940] sm:$0xff]  ;;  %v14146_v4 = vcombine.low %v1116_v58, %v1128_v60 }
 0x3b5   : > { %8565 = vmatprep.subr.bf16.mxu1 %v13883_v13  ;;  %v720_v0 = vld [vmem:[#allocation8 + $0x9a0] sm:$0xff] }
 0x3b6   : > { %v1092_v1 = vld [vmem:[#allocation8 + $0x1540] sm:$0xff]  ;;  %v13739_v6 = vcombine.high %v708_v63, %v720_v0  ;;  %v13738_v21 = vcombine.low %v708_v63, %v720_v0 }
 0x3b7   : > { %8523 = vmatpush1.bf16.msra.mxu0 %v13498_v27  ;;  %v1104_v51 = vld [vmem:[#allocation8 + $0x15a0] sm:$0xff] }
 0x3b8   : > { %8566 = vmatpush1.bf16.msra.mxu1 %v13882_v32  ;;  %8524 = vmatprep.subr.bf16.mxu0 %v13475_v33  ;;  %v14123_v11 = vcombine.high %v1092_v1, %v1104_v51  ;;  %v684_v14 = vld [vmem:[#allocation8 + $0x880] sm:$0xff]  ;;  %v14122_v16 = vcombine.low %v1092_v1, %v1104_v51 }
 0x3b9   : > { %8567 = vmatprep.subr.bf16.mxu1 %v13859_v44  ;;  %v696_v40 = vld [vmem:[#allocation8 + $0x8e0] sm:$0xff] }
 0x3ba   : > { %v1068_v17 = vld [vmem:[#allocation8 + $0x1480] sm:$0xff]  ;;  %v13715_v25 = vcombine.high %v684_v14, %v696_v40  ;;  %v13714_v8 = vcombine.low %v684_v14, %v696_v40  ;;  %v553_v14 = vld [vmem:[#allocation8 + $0x468] sm:$0xff] }
 0x3bb   : > { %8525 = vmatpush1.bf16.msra.mxu0 %v13474_v36  ;;  %v1080_v13 = vld [vmem:[#allocation8 + $0x14e0] sm:$0xff] }
 0x3bc   : > { %8568 = vmatpush1.bf16.msra.mxu1 %v13858_v37  ;;  %8526 = vmatprep.subr.bf16.mxu0 %v13451_v38  ;;  %v14099_v26 = vcombine.high %v1068_v17, %v1080_v13  ;;  %v660_v27 = vld [vmem:[#allocation8 + $0x7c0] sm:$0xff]  ;;  %v14098_v35 = vcombine.low %v1068_v17, %v1080_v13 }
 0x3bd   : > { %8569 = vmatprep.subr.bf16.mxu1 %v13835_v39  ;;  %v672_v32 = vld [vmem:[#allocation8 + $0x820] sm:$0xff] }
 0x3be   : > { %v1044_v33 = vld [vmem:[#allocation8 + $0x13c0] sm:$0xff]  ;;  %v13691_v31 = vcombine.high %v660_v27, %v672_v32  ;;  %v13690_v12 = vcombine.low %v660_v27, %v672_v32  ;;  %v517_v27 = vld [vmem:[#allocation8 + $0x348] sm:$0xff] }
 0x3bf   : > { %8527 = vmatpush1.bf16.msra.mxu0 %v13450_v46  ;;  %v1056_v44 = vld [vmem:[#allocation8 + $0x1420] sm:$0xff]  ;;  %v529_v32 = vld [vmem:[#allocation8 + $0x3a8] sm:$0xff] }
 0x3c0   : > { %8570 = vmatpush1.bf16.msra.mxu1 %v13834_v23  ;;  %8528 = vmatprep.subr.bf16.mxu0 %v13811_v28  ;;  %v14075_v45 = vcombine.high %v1044_v33, %v1056_v44  ;;  %v636_v36 = vld [vmem:[#allocation8 + $0x700] sm:$0xff]  ;;  %v14074_v41 = vcombine.low %v1044_v33, %v1056_v44 }
 0x3c1   : > { %8571 = vmatprep.subr.bf16.mxu1 %v14195_v47  ;;  %v648_v37 = vld [vmem:[#allocation8 + $0x760] sm:$0xff] }
 0x3c2   : > { %v1020_v38 = vld [vmem:[#allocation8 + $0x1300] sm:$0xff]  ;;  %v13667_v43 = vcombine.high %v636_v36, %v648_v37  ;;  %v13666_v59 = vcombine.low %v636_v36, %v648_v37  ;;  %v505_v36 = vld [vmem:[#allocation8 + $0x2e8] sm:$0xff] }
 0x3c3   : > { %8529 = vmatpush2.bf16.msra.mxu0 %v13810_v50  ;;  %v1032_v39 = vld [vmem:[#allocation8 + $0x1360] sm:$0xff] }
 0x3c4   : > { %8572 = vmatpush2.bf16.msra.mxu1 %v14194_v52  ;;  %8530 = vmatprep.subr.bf16.mxu0 %v13787_v53  ;;  %v14051_v29 = vcombine.high %v1020_v38, %v1032_v39  ;;  %v612_v46 = vld [vmem:[#allocation8 + $0x640] sm:$0xff]  ;;  %v14050_v22 = vcombine.low %v1020_v38, %v1032_v39  ;;  %v589_v53 = vld [vmem:[#allocation8 + $0x588] sm:$0xff]  ;;  %v13548_v38 = vcombine.low %v517_v27, %v529_v32 }
 0x3c5   : > { %8573 = vmatprep.subr.bf16.mxu1 %v14171_v54  ;;  %v624_v23 = vld [vmem:[#allocation8 + $0x6a0] sm:$0xff]  ;;  %v601_v54 = vld [vmem:[#allocation8 + $0x5e8] sm:$0xff] }
 0x3c6   : > { %v996_v28 = vld [vmem:[#allocation8 + $0x1240] sm:$0xff]  ;;  %v13643_v48 = vcombine.high %v612_v46, %v624_v23  ;;  %v13642_v55 = vcombine.low %v612_v46, %v624_v23  ;;  %v13621_v60 = vcombine.high %v589_v53, %v601_v54  ;;  %v13620_v0 = vcombine.low %v589_v53, %v601_v54 }
 0x3c7   : > { %8531 = vmatpush2.bf16.msra.mxu0 %v13786_v34  ;;  %v1008_v47 = vld [vmem:[#allocation8 + $0x12a0] sm:$0xff] }
 0x3c8   : > { %8574 = vmatpush2.bf16.msra.mxu1 %v14170_v42  ;;  %8532 = vmatprep.subr.bf16.mxu0 %v13763_v61  ;;  %v14027_v49 = vcombine.high %v996_v28, %v1008_v47  ;;  %v1356_v50 = vld [vmem:[#allocation8 + $0x1d80] sm:$0xff]  ;;  %v14026_v56 = vcombine.low %v996_v28, %v1008_v47  ;;  %v565_v61 = vld [vmem:[#allocation8 + $0x4c8] sm:$0xff] }
 0x3c9   : > { %8575 = vmatprep.subr.bf16.mxu1 %v14147_v2  ;;  %v1368_v52 = vld [vmem:[#allocation8 + $0x1de0] sm:$0xff]  ;;  %v577_v2 = vld [vmem:[#allocation8 + $0x528] sm:$0xff] }
 0x3ca   : > { %v14387_v58 = vcombine.high %v1356_v50, %v1368_v52  ;;  %v1332_v34 = vld [vmem:[#allocation8 + $0x1cc0] sm:$0xff]  ;;  %v14386_v63 = vcombine.low %v1356_v50, %v1368_v52  ;;  %v13597_v51 = vcombine.high %v565_v61, %v577_v2  ;;  %v13596_v17 = vcombine.low %v565_v61, %v577_v2 }
 0x3cb   : > { %8533 = vmatpush2.bf16.msra.mxu0 %v13762_v3  ;;  %v1344_v42 = vld [vmem:[#allocation8 + $0x1d20] sm:$0xff] }
 0x3cc   : > { %8576 = vmatpush2.bf16.msra.mxu1 %v14146_v4  ;;  %8534 = vmatprep.subr.bf16.mxu0 %v13739_v6  ;;  %v14363_v1 = vcombine.high %v1332_v34, %v1344_v42  ;;  %v1308_v3 = vld [vmem:[#allocation8 + $0x1c00] sm:$0xff]  ;;  %v14362_v40 = vcombine.low %v1332_v34, %v1344_v42 }
 0x3cd   : > { %8577 = vmatprep.subr.bf16.mxu1 %v14123_v11  ;;  %v1320_v4 = vld [vmem:[#allocation8 + $0x1c60] sm:$0xff]  ;;  %v541_v11 = vld [vmem:[#allocation8 + $0x408] sm:$0xff] }
 0x3ce   : > { %v16663_v6 = vld [vmem:[%s16456_s15] ss:$24 sps:$4 sm:$0xff]   ;;  %v14339_v13 = vcombine.high %v1308_v3, %v1320_v4  ;;  %v13572_v33 = vcombine.low %v541_v11, %v553_v14 }
 0x3cf   : > { %8535 = vmatpush2.bf16.msra.mxu0 %v13738_v21  ;;  %v13573_v21 = vcombine.high %v541_v11, %v553_v14 }
 0x3d0   : > { %8578 = vmatpush2.bf16.msra.mxu1 %v14122_v16  ;;  %8536 = vmatprep.subr.bf16.mxu0 %v13715_v25  ;;  %v1284_v16 = vld [vmem:[#allocation8 + $0x1b40] sm:$0xff] }
 0x3d1   : > { %8579 = vmatprep.subr.bf16.mxu1 %v14099_v26  ;;  %v1296_v25 = vld [vmem:[#allocation8 + $0x1ba0] sm:$0xff] }
 0x3d2   : > { %v16668_v26 = vld [vmem:[%s16456_s15 + $0x14] ss:$24 sps:$4 sm:$0xff]   ;;  %v14315_v44 = vcombine.high %v1284_v16, %v1296_v25  ;;  %v14314_v37 = vcombine.low %v1284_v16, %v1296_v25 }
 0x3d3   : > { %8537 = vmatpush2.bf16.msra.mxu0 %v13714_v8  ;;  %v13549_v8 = vcombine.high %v517_v27, %v529_v32 }
 0x3d4   : > { %8580 = vmatpush2.bf16.msra.mxu1 %v14098_v35  ;;  %8538 = vmatprep.subr.bf16.mxu0 %v13691_v31  ;;  %v1260_v35 = vld [vmem:[#allocation8 + $0x1a80] sm:$0xff] }
 0x3d5   : > { %8581 = vmatprep.subr.bf16.mxu1 %v14075_v45  ;;  %v1272_v31 = vld [vmem:[#allocation8 + $0x1ae0] sm:$0xff]  ;;  %v493_v45 = vld [vmem:[#allocation8 + $0x288] sm:$0xff] }
 0x3d6   : > { %v14291_v39 = vcombine.high %v1260_v35, %v1272_v31  ;;  %v14290_v46 = vcombine.low %v1260_v35, %v1272_v31  ;;  %v13524_v23 = vcombine.low %v493_v45, %v505_v36 }
 0x3d7   : > { %8539 = vmatpush2.bf16.msra.mxu0 %v13690_v12  ;;  %v1236_v12 = vld [vmem:[#allocation8 + $0x19c0] sm:$0xff] }
 0x3d8   : > { %8582 = vmatpush2.bf16.msra.mxu1 %v14074_v41  ;;  %8540 = vmatprep.subr.bf16.mxu0 %v13667_v43  ;;  %v1248_v41 = vld [vmem:[#allocation8 + $0x1a20] sm:$0xff]  ;;  %v469_v43 = vld [vmem:[#allocation8 + $0x1c8] sm:$0xff] }
 0x3d9   : > { %8583 = vmatprep.subr.bf16.mxu1 %v14051_v29  ;;  %v481_v29 = vld [vmem:[#allocation8 + $0x228] sm:$0xff]  ;;  %v14267_v28 = vcombine.high %v1236_v12, %v1248_v41  ;;  %v14266_v50 = vcombine.low %v1236_v12, %v1248_v41 }
 0x3da   : > { %v13501_v47 = vcombine.high %v469_v43, %v481_v29  ;;  %v13500_v52 = vcombine.low %v469_v43, %v481_v29 }
 0x3db   : > { %8541 = vmatpush2.bf16.msra.mxu0 %v13666_v59  ;;  %v1212_v59 = vld [vmem:[#allocation8 + $0x1900] sm:$0xff] }
 0x3dc   : > { %8584 = vmatpush2.bf16.msra.mxu1 %v14050_v22  ;;  %8542 = vmatprep.subr.bf16.mxu0 %v13643_v48  ;;  %v1224_v22 = vld [vmem:[#allocation8 + $0x1960] sm:$0xff]  ;;  %v445_v48 = vld [vmem:[#allocation8 + $0x108] sm:$0xff] }
 0x3dd   : > { %8585 = vmatprep.subr.bf16.mxu1 %v14027_v49  ;;  %v457_v49 = vld [vmem:[#allocation8 + $0x168] sm:$0xff]  ;;  %v14243_v53 = vcombine.high %v1212_v59, %v1224_v22  ;;  %v14242_v34 = vcombine.low %v1212_v59, %v1224_v22 }
 0x3de   : > { %v13477_v54 = vcombine.high %v445_v48, %v457_v49  ;;  %v13476_v42 = vcombine.low %v445_v48, %v457_v49 }
 0x3df   : > { %8543 = vmatpush2.bf16.msra.mxu0 %v13642_v55  ;;  %v1188_v55 = vld [vmem:[#allocation8 + $0x1840] sm:$0xff] }
 0x3e0   : > { %8586 = vmatpush2.bf16.msra.mxu1 %v14026_v56  ;;  %8598 = vmatprep.subr.bf16.mxu0 %v14387_v58  ;;  %v1200_v56 = vld [vmem:[#allocation8 + $0x18a0] sm:$0xff]  ;;  %v421_v58 = vld [vmem:[#allocation8 + $0x48] sm:$0xff] }
 0x3e1   : > { %8641 = vmatprep.subr.bf16.mxu1 %v13621_v60  ;;  %v433_v60 = vld [vmem:[#allocation8 + $0xa8] sm:$0xff]  ;;  %v14219_v61 = vcombine.high %v1188_v55, %v1200_v56 }
 0x3e2   : > { %8545 = vmatmul.mubr.bf16.vlgmr.msra.gmra.mxu0 %v16663_v6  ;;  %v13453_v2 = vcombine.high %v421_v58, %v433_v60 }
 0x3e3   : > { %8588 = vmatmul.mubr.bf16.vlgmr.msra.gmra.mxu1 %v16653_v30  ;;  %8599 = vmatpush1.bf16.msra.mxu0 %v14386_v63  ;;  %v14338_v30 = vcombine.low %v1308_v3, %v1320_v4  ;;  %v1548_v63 = vld [vmem:[#allocation8 + $0x2380] sm:$0xff]  ;;  %v14218_v3 = vcombine.low %v1188_v55, %v1200_v56  ;;  %v13452_v4 = vcombine.low %v421_v58, %v433_v60 }
 0x3e4   : > { %8642 = vmatpush1.bf16.msra.mxu1 %v13620_v0  ;;  %8600 = vmatprep.subr.bf16.mxu0 %v14363_v1  ;;  %v1560_v0 = vld [vmem:[#allocation8 + $0x23e0] sm:$0xff]  ;;  %v781_v1 = vld [vmem:[#allocation8 + $0xb88] sm:$0xff] }
 0x3e5   : > { %8643 = vmatprep.subr.bf16.mxu1 %v13597_v51  ;;  %8630 = vmatprep.mubr.bf16.mxu0 %v16668_v26  ;;  %v793_v51 = vld [vmem:[#allocation8 + $0xbe8] sm:$0xff]  ;;  %v14579_v11 = vcombine.high %v1548_v63, %v1560_v0  ;;  %v14578_v16 = vcombine.low %v1548_v63, %v1560_v0  ;;  %v8288_v0 = vpop.f32.mrf.mxu0 }
 0x3e6   : > { %8673 = vmatprep.mubr.bf16.mxu1 %v16658_v57  ;;  %v13525_v57 = vcombine.high %v493_v45, %v505_v36  ;;  %v13813_v14 = vcombine.high %v781_v1, %v793_v51  ;;  %v13812_v25 = vcombine.low %v781_v1, %v793_v51 }
 0x3e7   : > { %8601 = vmatpush1.bf16.msra.mxu0 %v14362_v40  ;;  %v1524_v40 = vld [vmem:[#allocation8 + $0x22c0] sm:$0xff] }
 0x3e8   : > { %8644 = vmatpush1.bf16.msra.mxu1 %v13596_v17  ;;  %8602 = vmatprep.subr.bf16.mxu0 %v14339_v13  ;;  %v1536_v17 = vld [vmem:[#allocation8 + $0x2320] sm:$0xff]  ;;  %v757_v13 = vld [vmem:[#allocation8 + $0xac8] sm:$0xff] }
 0x3e9   : > { %8645 = vmatprep.subr.bf16.mxu1 %v13573_v21  ;;  %v769_v21 = vld [vmem:[#allocation8 + $0xb28] sm:$0xff]  ;;  %v14555_v27 = vcombine.high %v1524_v40, %v1536_v17  ;;  %v14554_v35 = vcombine.low %v1524_v40, %v1536_v17 }
 0x3ea   : > { %v13789_v32 = vcombine.high %v757_v13, %v769_v21  ;;  %v13788_v31 = vcombine.low %v757_v13, %v769_v21  ;;  %v625_v40 = vld [vmem:[#allocation8 + $0x6a8] sm:$0xff]  ;;  %v8290_v13 = vpop.f32.mrf.mxu0  ;;  %v8331_v21 = vpop.f32.mrf.mxu1 }
 0x3eb   : > { %8603 = vmatpush1.bf16.msra.mxu0 %v14338_v30  ;;  %v1500_v30 = vld [vmem:[#allocation8 + $0x2200] sm:$0xff] }
 0x3ec   : > { %8646 = vmatpush1.bf16.msra.mxu1 %v13572_v33  ;;  %8604 = vmatprep.subr.bf16.mxu0 %v14315_v44  ;;  %v1512_v33 = vld [vmem:[#allocation8 + $0x2260] sm:$0xff]  ;;  %v733_v44 = vld [vmem:[#allocation8 + $0xa08] sm:$0xff] }
 0x3ed   : > { %8647 = vmatprep.subr.bf16.mxu1 %v13549_v8  ;;  %v745_v8 = vld [vmem:[#allocation8 + $0xa68] sm:$0xff]  ;;  %v14531_v45 = vcombine.high %v1500_v30, %v1512_v33  ;;  %v14530_v12 = vcombine.low %v1500_v30, %v1512_v33 }
 0x3ee   : > { %v13765_v36 = vcombine.high %v733_v44, %v745_v8  ;;  %v13764_v41 = vcombine.low %v733_v44, %v745_v8  ;;  %v985_v30 = vld [vmem:[#allocation8 + $0x11e8] sm:$0xff] }
 0x3ef   : > { %8605 = vmatpush1.bf16.msra.mxu0 %v14314_v37  ;;  %v1476_v37 = vld [vmem:[#allocation8 + $0x2140] sm:$0xff]  ;;  %v16672_v33 = vld [vmem:[#allocation9 + $0x8] sm:$0xff] }
 0x3f0   : > { %8648 = vmatpush1.bf16.msra.mxu1 %v13548_v38  ;;  %8606 = vmatprep.subr.bf16.mxu0 %v14291_v39  ;;  %v1488_v38 = vld [vmem:[#allocation8 + $0x21a0] sm:$0xff]  ;;  %v709_v39 = vld [vmem:[#allocation8 + $0x948] sm:$0xff]  ;;  %v1621_v44 = vrot.slane %v16672_v33, %v16581_v9 }
 0x3f1   : > { %8649 = vmatprep.subr.bf16.mxu1 %v13525_v57  ;;  %v721_v57 = vld [vmem:[#allocation8 + $0x9a8] sm:$0xff]  ;;  %v14507_v43 = vcombine.high %v1476_v37, %v1488_v38  ;;  %v14506_v59 = vcombine.low %v1476_v37, %v1488_v38  ;;  %v8333_v37 = vpop.f32.mrf.mxu1 }
 0x3f2   : > { %v13741_v29 = vcombine.high %v709_v39, %v721_v57  ;;  %v13740_v22 = vcombine.low %v709_v39, %v721_v57  ;;  %v1357_v8 = vld [vmem:[#allocation8 + $0x1d88] sm:$0xff] }
 0x3f3   : > { %8607 = vmatpush1.bf16.msra.mxu0 %v14290_v46  ;;  %v1452_v46 = vld [vmem:[#allocation8 + $0x2080] sm:$0xff] }
 0x3f4   : > { %8650 = vmatpush1.bf16.msra.mxu1 %v13524_v23  ;;  %8608 = vmatprep.subr.bf16.mxu0 %v14267_v28  ;;  %v1464_v23 = vld [vmem:[#allocation8 + $0x20e0] sm:$0xff]  ;;  %v685_v28 = vld [vmem:[#allocation8 + $0x888] sm:$0xff] }
 0x3f5   : > { %8651 = vmatprep.subr.bf16.mxu1 %v13501_v47  ;;  %v697_v47 = vld [vmem:[#allocation8 + $0x8e8] sm:$0xff]  ;;  %v14483_v48 = vcombine.high %v1452_v46, %v1464_v23  ;;  %v14482_v55 = vcombine.low %v1452_v46, %v1464_v23 }
 0x3f6   : > { %v13717_v49 = vcombine.high %v685_v28, %v697_v47  ;;  %v13716_v56 = vcombine.low %v685_v28, %v697_v47  ;;  %v1345_v46 = vld [vmem:[#allocation8 + $0x1d28] sm:$0xff] }
 0x3f7   : > { %8609 = vmatpush1.bf16.msra.mxu0 %v14266_v50  ;;  %v1428_v50 = vld [vmem:[#allocation8 + $0x1fc0] sm:$0xff] }
 0x3f8   : > { %8652 = vmatpush1.bf16.msra.mxu1 %v13500_v52  ;;  %8610 = vmatprep.subr.bf16.mxu0 %v14243_v53  ;;  %v1440_v52 = vld [vmem:[#allocation8 + $0x2020] sm:$0xff]  ;;  %v661_v53 = vld [vmem:[#allocation8 + $0x7c8] sm:$0xff] }
 0x3f9   : > { %8653 = vmatprep.subr.bf16.mxu1 %v13477_v54  ;;  %v673_v54 = vld [vmem:[#allocation8 + $0x828] sm:$0xff]  ;;  %v14459_v58 = vcombine.high %v1428_v50, %v1440_v52  ;;  %v14458_v63 = vcombine.low %v1428_v50, %v1440_v52 }
 0x3fa   : > { %v13693_v60 = vcombine.high %v661_v53, %v673_v54  ;;  %v13692_v1 = vcombine.low %v661_v53, %v673_v54  ;;  %v925_v50 = vld [vmem:[#allocation8 + $0x1008] sm:$0xff] }
 0x3fb   : > { %8611 = vmatpush1.bf16.msra.mxu0 %v14242_v34  ;;  %v1404_v34 = vld [vmem:[#allocation8 + $0x1f00] sm:$0xff]  ;;  %v937_v52 = vld [vmem:[#allocation8 + $0x1068] sm:$0xff] }
 0x3fc   : > { %8654 = vmatpush1.bf16.msra.mxu1 %v13476_v42  ;;  %8612 = vmatprep.subr.bf16.mxu0 %v14219_v61  ;;  %v1416_v42 = vld [vmem:[#allocation8 + $0x1f60] sm:$0xff]  ;;  %v637_v61 = vld [vmem:[#allocation8 + $0x708] sm:$0xff] }
 0x3fd   : > { %8655 = vmatprep.subr.bf16.mxu1 %v13453_v2  ;;  %v649_v2 = vld [vmem:[#allocation8 + $0x768] sm:$0xff]  ;;  %v14435_v51 = vcombine.high %v1404_v34, %v1416_v42  ;;  %v14434_v17 = vcombine.low %v1404_v34, %v1416_v42 }
 0x3ff   : > { %8613 = vmatpush1.bf16.msra.mxu0 %v14218_v3  ;;  %v13669_v3 = vcombine.high %v637_v61, %v649_v2 }
 0x400   : > { %8656 = vmatpush1.bf16.msra.mxu1 %v13452_v4  ;;  %8614 = vmatprep.subr.bf16.mxu0 %v14579_v11  ;;  %v1380_v4 = vld [vmem:[#allocation8 + $0x1e40] sm:$0xff] }
 0x401   : > { %8657 = vmatprep.subr.bf16.mxu1 %v13813_v14  ;;  %v1392_v11 = vld [vmem:[#allocation8 + $0x1ea0] sm:$0xff]  ;;  %v613_v14 = vld [vmem:[#allocation8 + $0x648] sm:$0xff] }
 0x402   : > { %v13644_v38 = vcombine.low %v613_v14, %v625_v40 }
 0x403   : > { %8615 = vmatpush2.bf16.msra.mxu0 %v14578_v16  ;;  %v13668_v16 = vcombine.low %v637_v61, %v649_v2 }
 0x404   : > { %8658 = vmatpush2.bf16.msra.mxu1 %v13812_v25  ;;  %8616 = vmatprep.subr.bf16.mxu0 %v14555_v27  ;;  %v14411_v25 = vcombine.high %v1380_v4, %v1392_v11  ;;  %v13645_v27 = vcombine.high %v613_v14, %v625_v40  ;;  %v913_v14 = vld [vmem:[#allocation8 + $0xfa8] sm:$0xff] }
 0x405   : > { %8659 = vmatprep.subr.bf16.mxu1 %v13789_v32  ;;  %v973_v32 = vld [vmem:[#allocation8 + $0x1188] sm:$0xff] }
 0x406   : > { %v14005_v39 = vcombine.high %v973_v32, %v985_v30  ;;  %v14004_v28 = vcombine.low %v973_v32, %v985_v30  ;;  %v16684_v40 = vld [vmem:[%s16456_s15 + $0xc] ss:$24 sps:$4 sm:$0xff]  }
 0x407   : > { %8617 = vmatpush2.bf16.msra.mxu0 %v14554_v35  ;;  %v1369_v35 = vld [vmem:[#allocation8 + $0x1de8] sm:$0xff] }
 0x408   : > { %8660 = vmatpush2.bf16.msra.mxu1 %v13788_v31  ;;  %8618 = vmatprep.subr.bf16.mxu0 %v14531_v45  ;;  %v1625_v31 = vrot.slane %v16672_v33, %v16584_v15  ;;  %v14410_v45 = vcombine.low %v1380_v4, %v1392_v11  ;;  %v14389_v57 = vcombine.high %v1357_v8, %v1369_v35  ;;  %v901_v11 = vld [vmem:[#allocation8 + $0xf48] sm:$0xff] }
 0x409   : > { %8661 = vmatprep.subr.bf16.mxu1 %v13765_v36  ;;  %v8292_v36 = vpop.f32.mrf.mxu0 }
 0x40a   : > { %v8291_v23 = vadd.f32 %v8290_v13, %v1625_v31  ;;  %v8293_v34 = vadd.f32 %v8292_v36, %v1621_v44  ;;  %v1285_v13 = vld [vmem:[#allocation8 + $0x1b48] sm:$0xff] }
 0x40b   : > { %8619 = vmatpush2.bf16.msra.mxu0 %v14530_v12  ;;  %v949_v12 = vld [vmem:[#allocation8 + $0x10c8] sm:$0xff]  ;;  %v8294_v47 = vpop.f32.mrf.mxu0 }
 0x40c   : > { %8662 = vmatpush2.bf16.msra.mxu1 %v13764_v41  ;;  %8620 = vmatprep.subr.bf16.mxu0 %v14507_v43  ;;  %v961_v41 = vld [vmem:[#allocation8 + $0x1128] sm:$0xff]  ;;  %v8289_v43 = vadd.f32 %v8288_v0, %v1621_v44  ;;  %v8334_v42 = vadd.f32 %v8333_v37, %v8291_v23  ;;  %v8295_v61 = vadd.f32 %v8294_v47, %v1625_v31 }
 0x40d   : > { %8663 = vmatprep.subr.bf16.mxu1 %v13741_v29  ;;  %v1333_v29 = vld [vmem:[#allocation8 + $0x1cc8] sm:$0xff]  ;;  %v13933_v44 = vcombine.high %v901_v11, %v913_v14 }
 0x40e   : > { %v8332_v53 = vadd.f32 %v8331_v21, %v8289_v43  ;;  %v14364_v0 = vcombine.low %v1333_v29, %v1345_v46  ;;  %v889_v36 = vld [vmem:[#allocation8 + $0xee8] sm:$0xff] }
 0x40f   : > { %8621 = vmatpush2.bf16.msra.mxu0 %v14506_v59  ;;  %v8335_v59 = vpop.f32.mrf.mxu1  ;;  %v1261_v37 = vld [vmem:[#allocation8 + $0x1a88] sm:$0xff] }
 0x410   : > { %8664 = vmatpush2.bf16.msra.mxu1 %v13740_v22  ;;  %8622 = vmatprep.subr.bf16.mxu0 %v14483_v48  ;;  %v14388_v22 = vcombine.low %v1357_v8, %v1369_v35  ;;  %v13981_v48 = vcombine.high %v949_v12, %v961_v41  ;;  %v8336_v21 = vadd.f32 %v8335_v59, %v8293_v34  ;;  %v853_v43 = vld [vmem:[#allocation8 + $0xdc8] sm:$0xff] }
 0x411   : > { %8665 = vmatprep.subr.bf16.mxu1 %v13717_v49  ;;  %v14365_v49 = vcombine.high %v1333_v29, %v1345_v46  ;;  %v8337_v2 = vpop.f32.mrf.mxu1  ;;  %v865_v29 = vld [vmem:[#allocation8 + $0xe28] sm:$0xff] }
 0x412   : > { %v1237_v46 = vld [vmem:[#allocation8 + $0x19c8] sm:$0xff]  ;;  %v13885_v59 = vcombine.high %v853_v43, %v865_v29 }
 0x413   : > { %8623 = vmatpush2.bf16.msra.mxu0 %v14482_v55  ;;  %v16679_v55 = vld [vmem:[%s16456_s15 + $0x10] ss:$24 sps:$4 sm:$0xff]  }
 0x414   : > { %8666 = vmatpush2.bf16.msra.mxu1 %v13716_v56  ;;  %8624 = vmatprep.subr.bf16.mxu0 %v14459_v58  ;;  %v13980_v56 = vcombine.low %v949_v12, %v961_v41  ;;  %v1309_v58 = vld [vmem:[#allocation8 + $0x1c08] sm:$0xff] }
 0x415   : > { %8667 = vmatprep.subr.bf16.mxu1 %v13693_v60  ;;  %v1321_v60 = vld [vmem:[#allocation8 + $0x1c68] sm:$0xff] }
 0x416   : > { %v14341_v4 = vcombine.high %v1309_v58, %v1321_v60  ;;  %v14340_v30 = vcombine.low %v1309_v58, %v1321_v60  ;;  %v1249_v23 = vld [vmem:[#allocation8 + $0x1a28] sm:$0xff] }
 0x417   : > { %8625 = vmatpush2.bf16.msra.mxu0 %v14458_v63  ;;  %v805_v60 = vld [vmem:[#allocation8 + $0xc48] sm:$0xff] }
 0x418   : > { %8668 = vmatpush2.bf16.msra.mxu1 %v13692_v1  ;;  %8626 = vmatprep.subr.bf16.mxu0 %v14435_v51  ;;  %v13957_v1 = vcombine.high %v925_v50, %v937_v52  ;;  %v817_v34 = vld [vmem:[#allocation8 + $0xca8] sm:$0xff] }
 0x419   : > { %8669 = vmatprep.subr.bf16.mxu1 %v13669_v3 }
 0x41b   : > { %8627 = vmatpush2.bf16.msra.mxu0 %v14434_v17 }
 0x41c   : > { %8670 = vmatpush2.bf16.msra.mxu1 %v13668_v16  ;;  %8628 = vmatprep.subr.bf16.mxu0 %v14411_v25  ;;  %v8338_v16 = vadd.f32 %v8337_v2, %v8295_v61  ;;  %v1201_v61 = vld [vmem:[#allocation8 + $0x18a8] sm:$0xff] }
 0x41d   : > { %8671 = vmatprep.subr.bf16.mxu1 %v13645_v27  ;;  %v13956_v27 = vcombine.low %v925_v50, %v937_v52  ;;  %v1213_v50 = vld [vmem:[#allocation8 + $0x1908] sm:$0xff] }
 0x41e   : > { %v1225_v52 = vld [vmem:[#allocation8 + $0x1968] sm:$0xff] }
 0x41f   : > { %8629 = vmatpush2.bf16.msra.mxu0 %v14410_v45  ;;  %v877_v45 = vld [vmem:[#allocation8 + $0xe88] sm:$0xff]  ;;  %v14245_v58 = vcombine.high %v1213_v50, %v1225_v52 }
 0x420   : > { %8672 = vmatpush2.bf16.msra.mxu1 %v13644_v38  ;;  %8684 = vmatprep.subr.bf16.mxu0 %v14005_v39  ;;  %v1273_v38 = vld [vmem:[#allocation8 + $0x1ae8] sm:$0xff]  ;;  %v13932_v39 = vcombine.low %v901_v11, %v913_v14  ;;  %v13909_v12 = vcombine.high %v877_v45, %v889_v36  ;;  %v13836_v14 = vcombine.low %v805_v60, %v817_v34 }
 0x421   : > { %8727 = vmatprep.subr.bf16.mxu1 %v14389_v57  ;;  %v14293_v41 = vcombine.high %v1261_v37, %v1273_v38  ;;  %v14292_v47 = vcombine.low %v1261_v37, %v1273_v38  ;;  %v1561_v11 = vld [vmem:[#allocation8 + $0x23e8] sm:$0xff] }
 0x422   : > { %v8374_v54 = vpop.f32.mrf.mxu0  ;;  %8631 = vmatmul.mubr.bf16.vlgmr.msra.gmra.mxu0 %v16679_v55 }
 0x423   : > { %8674 = vmatmul.mubr.bf16.vlgmr.msra.gmra.mxu1 %v16663_v6  ;;  %8685 = vmatpush1.bf16.msra.mxu0 %v14004_v28  ;;  %v8375_v51 = vadd.f32 %v8374_v54, %v8332_v53  ;;  %v1297_v6 = vld [vmem:[#allocation8 + $0x1ba8] sm:$0xff]  ;;  %v13908_v28 = vcombine.low %v877_v45, %v889_v36  ;;  %v13884_v53 = vcombine.low %v853_v43, %v865_v29 }
 0x424   : > { %8728 = vmatpush1.bf16.msra.mxu1 %v14388_v22  ;;  %v8376_v63 = vpop.f32.mrf.mxu0  ;;  %8686 = vmatprep.subr.bf16.mxu0 %v13981_v48  ;;  %v14317_v31 = vcombine.high %v1285_v13, %v1297_v6  ;;  %v14316_v57 = vcombine.low %v1285_v13, %v1297_v6  ;;  %v14269_v22 = vcombine.high %v1237_v46, %v1249_v23  ;;  %v829_v48 = vld [vmem:[#allocation8 + $0xd08] sm:$0xff] }
 0x425   : > { %v8377_v3 = vadd.f32 %v8376_v63, %v8334_v42  ;;  %8729 = vmatprep.subr.bf16.mxu1 %v14365_v49  ;;  %8716 = vmatprep.mubr.bf16.mxu0 %v16684_v40  ;;  %v841_v49 = vld [vmem:[#allocation8 + $0xd68] sm:$0xff]  ;;  %v14268_v54 = vcombine.low %v1237_v46, %v1249_v23  ;;  %v14244_v63 = vcombine.low %v1213_v50, %v1225_v52 }
 0x426   : > { %v8378_v17 = vpop.f32.mrf.mxu0  ;;  %8759 = vmatprep.mubr.bf16.mxu1 %v16668_v26  ;;  %v1189_v42 = vld [vmem:[#allocation8 + $0x1848] sm:$0xff]  ;;  %v13860_v2 = vcombine.low %v829_v48, %v841_v49 }
 0x427   : > { %v15037_v25 = vpack.c.bf16 %v8377_v3, %v8375_v51  ;;  %8687 = vmatpush1.bf16.msra.mxu0 %v13980_v56  ;;  %v8379_v8 = vadd.f32 %v8378_v17, %v8336_v21  ;;  %v13861_v56 = vcombine.high %v829_v48, %v841_v49  ;;  %v1165_v51 = vld [vmem:[#allocation8 + $0x1788] sm:$0xff]  ;;  %v14220_v17 = vcombine.low %v1189_v42, %v1201_v61 }
 0x428   : > { %8730 = vmatpush1.bf16.msra.mxu1 %v14364_v0  ;;  %v8380_v32 = vpop.f32.mrf.mxu0  ;;  %8688 = vmatprep.subr.bf16.mxu0 %v13957_v1  ;;  %v13837_v0 = vcombine.high %v805_v60, %v817_v34  ;;  %v14221_v1 = vcombine.high %v1189_v42, %v1201_v61  ;;  %v1177_v3 = vld [vmem:[#allocation8 + $0x17e8] sm:$0xff] }
 0x429   : > { %9178 = vst [vmem:[#allocation2 + $0x30] sm:$0xff] %v15037_v25  ;;  %v8381_v35 = vadd.f32 %v8380_v32, %v8338_v16  ;;  %8731 = vmatprep.subr.bf16.mxu1 %v14341_v4  ;;  %v1549_v4 = vld [vmem:[#allocation8 + $0x2388] sm:$0xff]  ;;  %v14197_v13 = vcombine.high %v1165_v51, %v1177_v3  ;;  %v14196_v32 = vcombine.low %v1165_v51, %v1177_v3 }
 0x42a   : > { %v14581_v6 = vcombine.high %v1549_v4, %v1561_v11  ;;  %v1141_v21 = vld [vmem:[#allocation8 + $0x16c8] sm:$0xff] }
 0x42b   : > { %v15049_v26 = vpack.c.bf16 %v8381_v35, %v8379_v8  ;;  %8689 = vmatpush1.bf16.msra.mxu0 %v13956_v27  ;;  %v1153_v16 = vld [vmem:[#allocation8 + $0x1728] sm:$0xff] }
 0x42c   : > { %8732 = vmatpush1.bf16.msra.mxu1 %v14340_v30  ;;  %8690 = vmatprep.subr.bf16.mxu0 %v13933_v44  ;;  %v1525_v25 = vld [vmem:[#allocation8 + $0x22c8] sm:$0xff]  ;;  %v14580_v30 = vcombine.low %v1549_v4, %v1561_v11  ;;  %v14173_v44 = vcombine.high %v1141_v21, %v1153_v16  ;;  %v14172_v37 = vcombine.low %v1141_v21, %v1153_v16  ;;  %v8417_v4 = vpop.f32.mrf.mxu1 }
 0x42d   : > { %9190 = vst [vmem:[#allocation2 + $0x90] sm:$0xff] %v15049_v26  ;;  %8733 = vmatprep.subr.bf16.mxu1 %v14317_v31  ;;  %v1537_v27 = vld [vmem:[#allocation8 + $0x2328] sm:$0xff] }
 0x42e   : > { %v14557_v8 = vcombine.high %v1525_v25, %v1537_v27  ;;  %v1117_v35 = vld [vmem:[#allocation8 + $0x1608] sm:$0xff]  ;;  %v14556_v38 = vcombine.low %v1525_v25, %v1537_v27  ;;  %v8419_v27 = vpop.f32.mrf.mxu1 }
 0x42f   : > { %8691 = vmatpush1.bf16.msra.mxu0 %v13932_v39  ;;  %v1129_v31 = vld [vmem:[#allocation8 + $0x1668] sm:$0xff] }
 0x430   : > { %8734 = vmatpush1.bf16.msra.mxu1 %v14316_v57  ;;  %8692 = vmatprep.subr.bf16.mxu0 %v13909_v12  ;;  %v1501_v45 = vld [vmem:[#allocation8 + $0x2208] sm:$0xff]  ;;  %v14149_v26 = vcombine.high %v1117_v35, %v1129_v31  ;;  %v14148_v29 = vcombine.low %v1117_v35, %v1129_v31  ;;  %v602_v35 = vld [vmem:[#allocation8 + $0x5f0] sm:$0xff] }
 0x431   : > { %8735 = vmatprep.subr.bf16.mxu1 %v14293_v41  ;;  %v1513_v36 = vld [vmem:[#allocation8 + $0x2268] sm:$0xff]  ;;  %v974_v31 = vld [vmem:[#allocation8 + $0x1190] sm:$0xff] }
 0x432   : > { %v14533_v39 = vcombine.high %v1501_v45, %v1513_v36  ;;  %v1093_v57 = vld [vmem:[#allocation8 + $0x1548] sm:$0xff]  ;;  %v14532_v46 = vcombine.low %v1501_v45, %v1513_v36  ;;  %v986_v45 = vld [vmem:[#allocation8 + $0x11f0] sm:$0xff]  ;;  %v1629_v36 = vrot.slane %v16672_v33, %v16603_v18 }
 0x433   : > { %8693 = vmatpush1.bf16.msra.mxu0 %v13908_v28  ;;  %v1105_v12 = vld [vmem:[#allocation8 + $0x15a8] sm:$0xff] }
 0x434   : > { %8736 = vmatpush1.bf16.msra.mxu1 %v14292_v47  ;;  %8694 = vmatprep.subr.bf16.mxu0 %v13885_v59  ;;  %v1477_v41 = vld [vmem:[#allocation8 + $0x2148] sm:$0xff]  ;;  %v14125_v23 = vcombine.high %v1093_v57, %v1105_v12  ;;  %v14124_v49 = vcombine.low %v1093_v57, %v1105_v12  ;;  %v1633_v57 = vrot.slane %v16672_v33, %v16606_v20  ;;  %v554_v33 = vld [vmem:[#allocation8 + $0x470] sm:$0xff] }
 0x435   : > { %8737 = vmatprep.subr.bf16.mxu1 %v14269_v22  ;;  %v1489_v43 = vld [vmem:[#allocation8 + $0x21a8] sm:$0xff]  ;;  %v14007_v12 = vcombine.high %v974_v31, %v986_v45 }
 0x436   : > { %v14509_v28 = vcombine.high %v1477_v41, %v1489_v43  ;;  %v1069_v47 = vld [vmem:[#allocation8 + $0x1488] sm:$0xff]  ;;  %v14508_v50 = vcombine.low %v1477_v41, %v1489_v43  ;;  %v566_v41 = vld [vmem:[#allocation8 + $0x4d0] sm:$0xff] }
 0x437   : > { %8695 = vmatpush1.bf16.msra.mxu0 %v13884_v53  ;;  %v1081_v59 = vld [vmem:[#allocation8 + $0x14e8] sm:$0xff]  ;;  %v578_v43 = vld [vmem:[#allocation8 + $0x530] sm:$0xff] }
 0x438   : > { %8738 = vmatpush1.bf16.msra.mxu1 %v14268_v54  ;;  %8696 = vmatprep.subr.bf16.mxu0 %v13861_v56  ;;  %v1453_v22 = vld [vmem:[#allocation8 + $0x2088] sm:$0xff]  ;;  %v14101_v52 = vcombine.high %v1069_v47, %v1081_v59  ;;  %v14100_v34 = vcombine.low %v1069_v47, %v1081_v59  ;;  %v14006_v59 = vcombine.low %v974_v31, %v986_v45 }
 0x439   : > { %8739 = vmatprep.subr.bf16.mxu1 %v14245_v58  ;;  %v1465_v48 = vld [vmem:[#allocation8 + $0x20e8] sm:$0xff] }
 0x43a   : > { %v14485_v53 = vcombine.high %v1453_v22, %v1465_v48  ;;  %v1045_v54 = vld [vmem:[#allocation8 + $0x13c8] sm:$0xff]  ;;  %v14484_v42 = vcombine.low %v1453_v22, %v1465_v48  ;;  %v13599_v22 = vcombine.high %v566_v41, %v578_v43  ;;  %v542_v48 = vld [vmem:[#allocation8 + $0x410] sm:$0xff] }
 0x43b   : > { %8697 = vmatpush1.bf16.msra.mxu0 %v13860_v2  ;;  %v1057_v56 = vld [vmem:[#allocation8 + $0x1428] sm:$0xff] }
 0x43c   : > { %8740 = vmatpush1.bf16.msra.mxu1 %v14244_v63  ;;  %8698 = vmatprep.subr.bf16.mxu0 %v13837_v0  ;;  %v1429_v58 = vld [vmem:[#allocation8 + $0x1fc8] sm:$0xff]  ;;  %v14077_v61 = vcombine.high %v1045_v54, %v1057_v56  ;;  %v14076_v3 = vcombine.low %v1045_v54, %v1057_v56 }
 0x43d   : > { %8741 = vmatprep.subr.bf16.mxu1 %v14221_v1  ;;  %v1441_v60 = vld [vmem:[#allocation8 + $0x2028] sm:$0xff] }
 0x43e   : > { %v14461_v2 = vcombine.high %v1429_v58, %v1441_v60  ;;  %v1021_v63 = vld [vmem:[#allocation8 + $0x1308] sm:$0xff]  ;;  %v14460_v11 = vcombine.low %v1429_v58, %v1441_v60 }
 0x43f   : > { %8699 = vmatpush1.bf16.msra.mxu0 %v13836_v14  ;;  %v1033_v0 = vld [vmem:[#allocation8 + $0x1368] sm:$0xff] }
 0x440   : > { %8742 = vmatpush1.bf16.msra.mxu1 %v14220_v17  ;;  %8700 = vmatprep.subr.bf16.mxu0 %v14197_v13  ;;  %v1405_v1 = vld [vmem:[#allocation8 + $0x1f08] sm:$0xff]  ;;  %v14053_v14 = vcombine.high %v1021_v63, %v1033_v0  ;;  %v14052_v25 = vcombine.low %v1021_v63, %v1033_v0  ;;  %v13575_v63 = vcombine.high %v542_v48, %v554_v33 }
 0x441   : > { %8743 = vmatprep.subr.bf16.mxu1 %v14581_v6  ;;  %v1417_v51 = vld [vmem:[#allocation8 + $0x1f68] sm:$0xff] }
 0x442   : > { %v14437_v17 = vcombine.high %v1405_v1, %v1417_v51  ;;  %v997_v13 = vld [vmem:[#allocation8 + $0x1248] sm:$0xff] }
 0x443   : > { %8701 = vmatpush2.bf16.msra.mxu0 %v14196_v32  ;;  %v1009_v6 = vld [vmem:[#allocation8 + $0x12a8] sm:$0xff]  ;;  %v14436_v32 = vcombine.low %v1405_v1, %v1417_v51 }
 0x444   : > { %8744 = vmatpush2.bf16.msra.mxu1 %v14580_v30  ;;  %8702 = vmatprep.subr.bf16.mxu0 %v14173_v44  ;;  %v1381_v21 = vld [vmem:[#allocation8 + $0x1e48] sm:$0xff]  ;;  %v14029_v30 = vcombine.high %v997_v13, %v1009_v6 }
 0x445   : > { %8745 = vmatprep.subr.bf16.mxu1 %v14557_v8  ;;  %v1393_v16 = vld [vmem:[#allocation8 + $0x1ea8] sm:$0xff]  ;;  %v590_v8 = vld [vmem:[#allocation8 + $0x590] sm:$0xff] }
 0x446   : > { %v14413_v44 = vcombine.high %v1381_v21, %v1393_v16  ;;  %v13622_v47 = vcombine.low %v590_v8, %v602_v35  ;;  %v16693_v56 = vld [vmem:[%s16456_s15 + $0x8] ss:$24 sps:$4 sm:$0xff]  }
 0x447   : > { %8703 = vmatpush2.bf16.msra.mxu0 %v14172_v37  ;;  %v14028_v37 = vcombine.low %v997_v13, %v1009_v6  ;;  %v902_v13 = vld [vmem:[#allocation8 + $0xf50] sm:$0xff] }
 0x448   : > { %8746 = vmatpush2.bf16.msra.mxu1 %v14556_v38  ;;  %8704 = vmatprep.subr.bf16.mxu0 %v14149_v26  ;;  %v8421_v38 = vpop.f32.mrf.mxu1  ;;  %v14412_v26 = vcombine.low %v1381_v21, %v1393_v16  ;;  %v914_v6 = vld [vmem:[#allocation8 + $0xfb0] sm:$0xff] }
 0x449   : > { %8747 = vmatprep.subr.bf16.mxu1 %v14533_v39  ;;  %v13623_v39 = vcombine.high %v590_v8, %v602_v35  ;;  %v8422_v58 = vadd.f32 %v8421_v38, %v1629_v36  ;;  %v13935_v45 = vcombine.high %v902_v13, %v914_v6  ;;  %v878_v38 = vld [vmem:[#allocation8 + $0xe90] sm:$0xff] }
 0x44b   : > { %8705 = vmatpush2.bf16.msra.mxu0 %v14148_v29  ;;  %v950_v29 = vld [vmem:[#allocation8 + $0x10d0] sm:$0xff] }
 0x44c   : > { %8748 = vmatpush2.bf16.msra.mxu1 %v14532_v46  ;;  %8706 = vmatprep.subr.bf16.mxu0 %v14125_v23  ;;  %v962_v46 = vld [vmem:[#allocation8 + $0x1130] sm:$0xff]  ;;  %v8418_v23 = vadd.f32 %v8417_v4, %v1629_v36 }
 0x44d   : > { %8749 = vmatprep.subr.bf16.mxu1 %v14509_v28  ;;  %v8423_v28 = vpop.f32.mrf.mxu1  ;;  %v494_v36 = vld [vmem:[#allocation8 + $0x290] sm:$0xff] }
 0x44e   : > { %v8424_v1 = vadd.f32 %v8423_v28, %v1633_v57  ;;  %v854_v28 = vld [vmem:[#allocation8 + $0xdd0] sm:$0xff] }
 0x44f   : > { %8707 = vmatpush2.bf16.msra.mxu0 %v14124_v49  ;;  %v8420_v49 = vadd.f32 %v8419_v27, %v1633_v57  ;;  %v13574_v27 = vcombine.low %v542_v48, %v554_v33  ;;  %v458_v33 = vld [vmem:[#allocation8 + $0x170] sm:$0xff] }
 0x450   : > { %8750 = vmatpush2.bf16.msra.mxu1 %v14508_v50  ;;  %8708 = vmatprep.subr.bf16.mxu0 %v14101_v52  ;;  %v13983_v50 = vcombine.high %v950_v29, %v962_v46  ;;  %v926_v52 = vld [vmem:[#allocation8 + $0x1010] sm:$0xff] }
 0x451   : > { %8751 = vmatprep.subr.bf16.mxu1 %v14485_v53  ;;  %v938_v53 = vld [vmem:[#allocation8 + $0x1070] sm:$0xff] }
 0x452   : > { %v13959_v0 = vcombine.high %v926_v52, %v938_v53 }
 0x453   : > { %8709 = vmatpush2.bf16.msra.mxu0 %v14100_v34 }
 0x454   : > { %8752 = vmatpush2.bf16.msra.mxu1 %v14484_v42  ;;  %8710 = vmatprep.subr.bf16.mxu0 %v14077_v61  ;;  %v13598_v42 = vcombine.low %v566_v41, %v578_v43 }
 0x455   : > { %8753 = vmatprep.subr.bf16.mxu1 %v14461_v2  ;;  %v13982_v2 = vcombine.low %v950_v29, %v962_v46  ;;  %v470_v46 = vld [vmem:[#allocation8 + $0x1d0] sm:$0xff] }
 0x457   : > { %8711 = vmatpush2.bf16.msra.mxu0 %v14076_v3 }
 0x458   : > { %8754 = vmatpush2.bf16.msra.mxu1 %v14460_v11  ;;  %8712 = vmatprep.subr.bf16.mxu0 %v14053_v14  ;;  %v518_v11 = vld [vmem:[#allocation8 + $0x350] sm:$0xff] }
 0x459   : > { %8755 = vmatprep.subr.bf16.mxu1 %v14437_v17  ;;  %v530_v14 = vld [vmem:[#allocation8 + $0x3b0] sm:$0xff] }
 0x45a   : > { %v16698_v17 = vld [vmem:[%s16456_s15 + $0x4] ss:$24 sps:$4 sm:$0xff]   ;;  %v13550_v57 = vcombine.low %v518_v11, %v530_v14 }
 0x45b   : > { %8713 = vmatpush2.bf16.msra.mxu0 %v14052_v25 }
 0x45c   : > { %8756 = vmatpush2.bf16.msra.mxu1 %v14436_v32  ;;  %8714 = vmatprep.subr.bf16.mxu0 %v14029_v30  ;;  %v13958_v30 = vcombine.low %v926_v52, %v938_v53  ;;  %v830_v52 = vld [vmem:[#allocation8 + $0xd10] sm:$0xff] }
 0x45d   : > { %8757 = vmatprep.subr.bf16.mxu1 %v14413_v44  ;;  %v13551_v44 = vcombine.high %v518_v11, %v530_v14  ;;  %v842_v53 = vld [vmem:[#allocation8 + $0xd70] sm:$0xff] }
 0x45e   : > { %v794_v11 = vld [vmem:[#allocation8 + $0xbf0] sm:$0xff] }
 0x45f   : > { %8715 = vmatpush2.bf16.msra.mxu0 %v14028_v37  ;;  %v506_v37 = vld [vmem:[#allocation8 + $0x2f0] sm:$0xff] }
 0x460   : > { %8758 = vmatpush2.bf16.msra.mxu1 %v14412_v26  ;;  %8770 = vmatprep.subr.bf16.mxu0 %v13623_v39  ;;  %v890_v26 = vld [vmem:[#allocation8 + $0xef0] sm:$0xff]  ;;  %v13527_v41 = vcombine.high %v494_v36, %v506_v37 }
 0x461   : > { %8813 = vmatprep.subr.bf16.mxu1 %v14007_v12  ;;  %v13934_v12 = vcombine.low %v902_v13, %v914_v6  ;;  %v13911_v29 = vcombine.high %v878_v38, %v890_v26  ;;  %v1166_v14 = vld [vmem:[#allocation8 + $0x1790] sm:$0xff] }
 0x462   : > { %v8460_v54 = vpop.f32.mrf.mxu0  ;;  %8717 = vmatmul.mubr.bf16.vlgmr.msra.gmra.mxu0 %v16693_v56 }
 0x463   : > { %v8461_v60 = vadd.f32 %v8460_v54, %v8418_v23  ;;  %8760 = vmatmul.mubr.bf16.vlgmr.msra.gmra.mxu1 %v16679_v55  ;;  %8771 = vmatpush1.bf16.msra.mxu0 %v13622_v47  ;;  %v8503_v34 = vpop.f32.mrf.mxu1  ;;  %v482_v23 = vld [vmem:[#allocation8 + $0x230] sm:$0xff] }
 0x464   : > { %8814 = vmatpush1.bf16.msra.mxu1 %v14006_v59  ;;  %v8462_v61 = vpop.f32.mrf.mxu0  ;;  %8772 = vmatprep.subr.bf16.mxu0 %v13599_v22  ;;  %v866_v47 = vld [vmem:[#allocation8 + $0xe30] sm:$0xff]  ;;  %v13526_v59 = vcombine.low %v494_v36, %v506_v37  ;;  %v13910_v22 = vcombine.low %v878_v38, %v890_v26  ;;  %v13503_v48 = vcombine.high %v470_v46, %v482_v23 }
 0x465   : > { %v8463_v51 = vadd.f32 %v8462_v61, %v8420_v49  ;;  %v8504_v3 = vadd.f32 %v8503_v34, %v8461_v60  ;;  %v8505_v4 = vpop.f32.mrf.mxu1  ;;  %8815 = vmatprep.subr.bf16.mxu1 %v13983_v50  ;;  %8802 = vmatprep.mubr.bf16.mxu0 %v16698_v17  ;;  %v13887_v49 = vcombine.high %v854_v28, %v866_v47  ;;  %v446_v50 = vld [vmem:[#allocation8 + $0x110] sm:$0xff] }
 0x466   : > { %v8464_v55 = vpop.f32.mrf.mxu0  ;;  %8845 = vmatprep.mubr.bf16.mxu1 %v16684_v40  ;;  %v13502_v54 = vcombine.low %v470_v46, %v482_v23  ;;  %v13479_v60 = vcombine.high %v446_v50, %v458_v33  ;;  %v13863_v34 = vcombine.high %v830_v52, %v842_v53  ;;  %v434_v61 = vld [vmem:[#allocation8 + $0xb0] sm:$0xff] }
 0x467   : > { %v8465_v21 = vadd.f32 %v8464_v55, %v8422_v58  ;;  %v8506_v16 = vadd.f32 %v8505_v4, %v8463_v51  ;;  %8773 = vmatpush1.bf16.msra.mxu0 %v13598_v42  ;;  %v8507_v25 = vpop.f32.mrf.mxu1  ;;  %v13886_v58 = vcombine.low %v854_v28, %v866_v47  ;;  %v422_v42 = vld [vmem:[#allocation8 + $0x50] sm:$0xff] }
 0x468   : > { %8816 = vmatpush1.bf16.msra.mxu1 %v13982_v2  ;;  %v8466_v32 = vpop.f32.mrf.mxu0  ;;  %8774 = vmatprep.subr.bf16.mxu0 %v13575_v63  ;;  %v806_v2 = vld [vmem:[#allocation8 + $0xc50] sm:$0xff]  ;;  %v13455_v51 = vcombine.high %v422_v42, %v434_v61  ;;  %v13454_v13 = vcombine.low %v422_v42, %v434_v61 }
 0x469   : > { %v15038_v8 = vpack.c.bf16 %v8506_v16, %v8504_v3  ;;  %v8467_v35 = vadd.f32 %v8466_v32, %v8424_v1  ;;  %v8509_v31 = vpop.f32.mrf.mxu1  ;;  %8817 = vmatprep.subr.bf16.mxu1 %v13959_v0  ;;  %v8508_v40 = vadd.f32 %v8507_v25, %v8465_v21  ;;  %v818_v63 = vld [vmem:[#allocation8 + $0xcb0] sm:$0xff]  ;;  %v13478_v0 = vcombine.low %v446_v50, %v458_v33 }
 0x46a   : > { %v13862_v1 = vcombine.low %v830_v52, %v842_v53  ;;  %v13839_v3 = vcombine.high %v806_v2, %v818_v63  ;;  %v782_v4 = vld [vmem:[#allocation8 + $0xb90] sm:$0xff]  ;;  %v13838_v6 = vcombine.low %v806_v2, %v818_v63 }
 0x46b   : > { %9179 = vst [vmem:[#allocation2 + $0x38] sm:$0xff] %v15038_v8  ;;  %v8510_v39 = vadd.f32 %v8509_v31, %v8467_v35  ;;  %8775 = vmatpush1.bf16.msra.mxu0 %v13574_v27  ;;  %v1178_v55 = vld [vmem:[#allocation8 + $0x17f0] sm:$0xff]  ;;  %v13815_v21 = vcombine.high %v782_v4, %v794_v11 }
 0x46c   : > { %8818 = vmatpush1.bf16.msra.mxu1 %v13958_v30  ;;  %8776 = vmatprep.subr.bf16.mxu0 %v13551_v44  ;;  %v14199_v16 = vcombine.high %v1166_v14, %v1178_v55  ;;  %v758_v25 = vld [vmem:[#allocation8 + $0xad0] sm:$0xff]  ;;  %v13814_v44 = vcombine.low %v782_v4, %v794_v11  ;;  %v14198_v8 = vcombine.low %v1166_v14, %v1178_v55 }
 0x46d   : > { %v15050_v43 = vpack.c.bf16 %v8510_v39, %v8508_v40  ;;  %8819 = vmatprep.subr.bf16.mxu1 %v13935_v45  ;;  %v770_v27 = vld [vmem:[#allocation8 + $0xb30] sm:$0xff] }
 0x46e   : > { %v1142_v32 = vld [vmem:[#allocation8 + $0x16d0] sm:$0xff]  ;;  %v13791_v35 = vcombine.high %v758_v25, %v770_v27  ;;  %v13790_v26 = vcombine.low %v758_v25, %v770_v27 }
 0x46f   : > { %9191 = vst [vmem:[#allocation2 + $0x98] sm:$0xff] %v15050_v43  ;;  %8777 = vmatpush1.bf16.msra.mxu0 %v13550_v57  ;;  %v1154_v30 = vld [vmem:[#allocation8 + $0x1730] sm:$0xff] }
 0x470   : > { %8820 = vmatpush1.bf16.msra.mxu1 %v13934_v12  ;;  %8778 = vmatprep.subr.bf16.mxu0 %v13527_v41  ;;  %v14175_v31 = vcombine.high %v1142_v32, %v1154_v30  ;;  %v734_v45 = vld [vmem:[#allocation8 + $0xa10] sm:$0xff]  ;;  %v14174_v40 = vcombine.low %v1142_v32, %v1154_v30 }
 0x471   : > { %8821 = vmatprep.subr.bf16.mxu1 %v13911_v29  ;;  %v746_v36 = vld [vmem:[#allocation8 + $0xa70] sm:$0xff] }
 0x472   : > { %v1118_v37 = vld [vmem:[#allocation8 + $0x1610] sm:$0xff]  ;;  %v13767_v39 = vcombine.high %v734_v45, %v746_v36  ;;  %v13766_v46 = vcombine.low %v734_v45, %v746_v36 }
 0x473   : > { %8779 = vmatpush1.bf16.msra.mxu0 %v13526_v59  ;;  %v1130_v38 = vld [vmem:[#allocation8 + $0x1670] sm:$0xff] }
 0x474   : > { %8822 = vmatpush1.bf16.msra.mxu1 %v13910_v22  ;;  %8780 = vmatprep.subr.bf16.mxu0 %v13503_v48  ;;  %v14151_v57 = vcombine.high %v1118_v37, %v1130_v38  ;;  %v710_v12 = vld [vmem:[#allocation8 + $0x950] sm:$0xff]  ;;  %v14150_v23 = vcombine.low %v1118_v37, %v1130_v38 }
 0x475   : > { %8823 = vmatprep.subr.bf16.mxu1 %v13887_v49  ;;  %v722_v41 = vld [vmem:[#allocation8 + $0x9b0] sm:$0xff] }
 0x476   : > { %v1094_v43 = vld [vmem:[#allocation8 + $0x1550] sm:$0xff]  ;;  %v13743_v28 = vcombine.high %v710_v12, %v722_v41  ;;  %v13742_v50 = vcombine.low %v710_v12, %v722_v41 }
 0x477   : > { %8781 = vmatpush1.bf16.msra.mxu0 %v13502_v54  ;;  %v1106_v29 = vld [vmem:[#allocation8 + $0x15b0] sm:$0xff] }
 0x478   : > { %8824 = vmatpush1.bf16.msra.mxu1 %v13886_v58  ;;  %8782 = vmatprep.subr.bf16.mxu0 %v13479_v60  ;;  %v14127_v47 = vcombine.high %v1094_v43, %v1106_v29  ;;  %v686_v59 = vld [vmem:[#allocation8 + $0x890] sm:$0xff]  ;;  %v14126_v33 = vcombine.low %v1094_v43, %v1106_v29 }
 0x479   : > { %8825 = vmatprep.subr.bf16.mxu1 %v13863_v34  ;;  %v698_v22 = vld [vmem:[#allocation8 + $0x8f0] sm:$0xff] }
 0x47a   : > { %v1070_v48 = vld [vmem:[#allocation8 + $0x1490] sm:$0xff]  ;;  %v13719_v52 = vcombine.high %v686_v59, %v698_v22  ;;  %v13718_v42 = vcombine.low %v686_v59, %v698_v22  ;;  %v555_v59 = vld [vmem:[#allocation8 + $0x478] sm:$0xff] }
 0x47b   : > { %8783 = vmatpush1.bf16.msra.mxu0 %v13478_v0  ;;  %v1082_v49 = vld [vmem:[#allocation8 + $0x14f0] sm:$0xff] }
 0x47c   : > { %8826 = vmatpush1.bf16.msra.mxu1 %v13862_v1  ;;  %8784 = vmatprep.subr.bf16.mxu0 %v13455_v51  ;;  %v14103_v53 = vcombine.high %v1070_v48, %v1082_v49  ;;  %v662_v54 = vld [vmem:[#allocation8 + $0x7d0] sm:$0xff]  ;;  %v14102_v61 = vcombine.low %v1070_v48, %v1082_v49 }
 0x47d   : > { %8827 = vmatprep.subr.bf16.mxu1 %v13839_v3  ;;  %v674_v58 = vld [vmem:[#allocation8 + $0x830] sm:$0xff] }
 0x47e   : > { %v1046_v60 = vld [vmem:[#allocation8 + $0x13d0] sm:$0xff]  ;;  %v13695_v2 = vcombine.high %v662_v54, %v674_v58  ;;  %v13694_v4 = vcombine.low %v662_v54, %v674_v58  ;;  %v519_v54 = vld [vmem:[#allocation8 + $0x358] sm:$0xff] }
 0x47f   : > { %8785 = vmatpush1.bf16.msra.mxu0 %v13454_v13  ;;  %v1058_v34 = vld [vmem:[#allocation8 + $0x1430] sm:$0xff]  ;;  %v531_v58 = vld [vmem:[#allocation8 + $0x3b8] sm:$0xff] }
 0x480   : > { %8828 = vmatpush1.bf16.msra.mxu1 %v13838_v6  ;;  %8786 = vmatprep.subr.bf16.mxu0 %v13815_v21  ;;  %v14079_v63 = vcombine.high %v1046_v60, %v1058_v34  ;;  %v638_v0 = vld [vmem:[#allocation8 + $0x710] sm:$0xff]  ;;  %v14078_v11 = vcombine.low %v1046_v60, %v1058_v34 }
 0x481   : > { %8829 = vmatprep.subr.bf16.mxu1 %v14199_v16  ;;  %v650_v1 = vld [vmem:[#allocation8 + $0x770] sm:$0xff] }
 0x482   : > { %v1022_v51 = vld [vmem:[#allocation8 + $0x1310] sm:$0xff]  ;;  %v13671_v14 = vcombine.high %v638_v0, %v650_v1  ;;  %v13670_v25 = vcombine.low %v638_v0, %v650_v1  ;;  %v507_v0 = vld [vmem:[#allocation8 + $0x2f8] sm:$0xff] }
 0x483   : > { %8787 = vmatpush2.bf16.msra.mxu0 %v13814_v44  ;;  %v1034_v3 = vld [vmem:[#allocation8 + $0x1370] sm:$0xff] }
 0x484   : > { %8830 = vmatpush2.bf16.msra.mxu1 %v14198_v8  ;;  %8788 = vmatprep.subr.bf16.mxu0 %v13791_v35  ;;  %v14055_v55 = vcombine.high %v1022_v51, %v1034_v3  ;;  %v614_v13 = vld [vmem:[#allocation8 + $0x650] sm:$0xff]  ;;  %v14054_v27 = vcombine.low %v1022_v51, %v1034_v3  ;;  %v591_v35 = vld [vmem:[#allocation8 + $0x598] sm:$0xff]  ;;  %v13552_v51 = vcombine.low %v519_v54, %v531_v58 }
 0x485   : > { %8831 = vmatprep.subr.bf16.mxu1 %v14175_v31  ;;  %v626_v6 = vld [vmem:[#allocation8 + $0x6b0] sm:$0xff]  ;;  %v603_v31 = vld [vmem:[#allocation8 + $0x5f8] sm:$0xff] }
 0x486   : > { %v998_v21 = vld [vmem:[#allocation8 + $0x1250] sm:$0xff]  ;;  %v13647_v32 = vcombine.high %v614_v13, %v626_v6  ;;  %v13646_v45 = vcombine.low %v614_v13, %v626_v6  ;;  %v13625_v38 = vcombine.high %v591_v35, %v603_v31  ;;  %v13624_v41 = vcombine.low %v591_v35, %v603_v31 }
 0x487   : > { %8789 = vmatpush2.bf16.msra.mxu0 %v13790_v26  ;;  %v1010_v16 = vld [vmem:[#allocation8 + $0x12b0] sm:$0xff] }
 0x488   : > { %8832 = vmatpush2.bf16.msra.mxu1 %v14174_v40  ;;  %8790 = vmatprep.subr.bf16.mxu0 %v13767_v39  ;;  %v14031_v30 = vcombine.high %v998_v21, %v1010_v16  ;;  %v1358_v44 = vld [vmem:[#allocation8 + $0x1d90] sm:$0xff]  ;;  %v14030_v36 = vcombine.low %v998_v21, %v1010_v16  ;;  %v567_v39 = vld [vmem:[#allocation8 + $0x4d8] sm:$0xff] }
 0x489   : > { %8833 = vmatprep.subr.bf16.mxu1 %v14151_v57  ;;  %v1370_v8 = vld [vmem:[#allocation8 + $0x1df0] sm:$0xff]  ;;  %v579_v57 = vld [vmem:[#allocation8 + $0x538] sm:$0xff] }
 0x48a   : > { %v14391_v37 = vcombine.high %v1358_v44, %v1370_v8  ;;  %v1334_v26 = vld [vmem:[#allocation8 + $0x1cd0] sm:$0xff]  ;;  %v14390_v12 = vcombine.low %v1358_v44, %v1370_v8  ;;  %v13601_v29 = vcombine.high %v567_v39, %v579_v57  ;;  %v13600_v48 = vcombine.low %v567_v39, %v579_v57 }
 0x48b   : > { %8791 = vmatpush2.bf16.msra.mxu0 %v13766_v46  ;;  %v1346_v40 = vld [vmem:[#allocation8 + $0x1d30] sm:$0xff] }
 0x48c   : > { %8834 = vmatpush2.bf16.msra.mxu1 %v14150_v23  ;;  %8792 = vmatprep.subr.bf16.mxu0 %v13743_v28  ;;  %v14367_v43 = vcombine.high %v1334_v26, %v1346_v40  ;;  %v1310_v46 = vld [vmem:[#allocation8 + $0x1c10] sm:$0xff]  ;;  %v14366_v22 = vcombine.low %v1334_v26, %v1346_v40 }
 0x48d   : > { %8835 = vmatprep.subr.bf16.mxu1 %v14127_v47  ;;  %v1322_v23 = vld [vmem:[#allocation8 + $0x1c70] sm:$0xff]  ;;  %v543_v47 = vld [vmem:[#allocation8 + $0x418] sm:$0xff] }
 0x48e   : > { %v16703_v28 = vld [vmem:[%s16456_s15] ss:$24 sps:$4 sm:$0xff]   ;;  %v14343_v49 = vcombine.high %v1310_v46, %v1322_v23  ;;  %v13576_v60 = vcombine.low %v543_v47, %v555_v59 }
 0x48f   : > { %8793 = vmatpush2.bf16.msra.mxu0 %v13742_v50  ;;  %v13577_v50 = vcombine.high %v543_v47, %v555_v59 }
 0x490   : > { %8836 = vmatpush2.bf16.msra.mxu1 %v14126_v33  ;;  %8794 = vmatprep.subr.bf16.mxu0 %v13719_v52  ;;  %v1286_v33 = vld [vmem:[#allocation8 + $0x1b50] sm:$0xff] }
 0x491   : > { %8837 = vmatprep.subr.bf16.mxu1 %v14103_v53  ;;  %v1298_v52 = vld [vmem:[#allocation8 + $0x1bb0] sm:$0xff] }
 0x492   : > { %v16708_v53 = vld [vmem:[%s16456_s15 + $0x14] ss:$24 sps:$4 sm:$0xff]   ;;  %v14319_v34 = vcombine.high %v1286_v33, %v1298_v52  ;;  %v14318_v1 = vcombine.low %v1286_v33, %v1298_v52 }
 0x493   : > { %8795 = vmatpush2.bf16.msra.mxu0 %v13718_v42  ;;  %v13553_v42 = vcombine.high %v519_v54, %v531_v58 }
 0x494   : > { %8838 = vmatpush2.bf16.msra.mxu1 %v14102_v61  ;;  %8796 = vmatprep.subr.bf16.mxu0 %v13695_v2  ;;  %v1262_v61 = vld [vmem:[#allocation8 + $0x1a90] sm:$0xff] }
 0x495   : > { %8839 = vmatprep.subr.bf16.mxu1 %v14079_v63  ;;  %v1274_v2 = vld [vmem:[#allocation8 + $0x1af0] sm:$0xff]  ;;  %v495_v63 = vld [vmem:[#allocation8 + $0x298] sm:$0xff] }
 0x496   : > { %v14295_v3 = vcombine.high %v1262_v61, %v1274_v2  ;;  %v14294_v13 = vcombine.low %v1262_v61, %v1274_v2  ;;  %v13528_v6 = vcombine.low %v495_v63, %v507_v0 }
 0x497   : > { %8797 = vmatpush2.bf16.msra.mxu0 %v13694_v4  ;;  %v1238_v4 = vld [vmem:[#allocation8 + $0x19d0] sm:$0xff] }
 0x498   : > { %8840 = vmatpush2.bf16.msra.mxu1 %v14078_v11  ;;  %8798 = vmatprep.subr.bf16.mxu0 %v13671_v14  ;;  %v1250_v11 = vld [vmem:[#allocation8 + $0x1a30] sm:$0xff]  ;;  %v471_v14 = vld [vmem:[#allocation8 + $0x1d8] sm:$0xff] }
 0x499   : > { %8841 = vmatprep.subr.bf16.mxu1 %v14055_v55  ;;  %v483_v55 = vld [vmem:[#allocation8 + $0x238] sm:$0xff]  ;;  %v14271_v21 = vcombine.high %v1238_v4, %v1250_v11  ;;  %v14270_v44 = vcombine.low %v1238_v4, %v1250_v11 }
 0x49a   : > { %v13505_v16 = vcombine.high %v471_v14, %v483_v55  ;;  %v13504_v8 = vcombine.low %v471_v14, %v483_v55 }
 0x49b   : > { %8799 = vmatpush2.bf16.msra.mxu0 %v13670_v25  ;;  %v1214_v25 = vld [vmem:[#allocation8 + $0x1910] sm:$0xff] }
 0x49c   : > { %8842 = vmatpush2.bf16.msra.mxu1 %v14054_v27  ;;  %8800 = vmatprep.subr.bf16.mxu0 %v13647_v32  ;;  %v1226_v27 = vld [vmem:[#allocation8 + $0x1970] sm:$0xff]  ;;  %v447_v32 = vld [vmem:[#allocation8 + $0x118] sm:$0xff] }
 0x49d   : > { %8843 = vmatprep.subr.bf16.mxu1 %v14031_v30  ;;  %v459_v30 = vld [vmem:[#allocation8 + $0x178] sm:$0xff]  ;;  %v14247_v35 = vcombine.high %v1214_v25, %v1226_v27  ;;  %v14246_v26 = vcombine.low %v1214_v25, %v1226_v27 }
 0x49e   : > { %v13481_v31 = vcombine.high %v447_v32, %v459_v30  ;;  %v13480_v40 = vcombine.low %v447_v32, %v459_v30 }
 0x49f   : > { %8801 = vmatpush2.bf16.msra.mxu0 %v13646_v45  ;;  %v1190_v45 = vld [vmem:[#allocation8 + $0x1850] sm:$0xff] }
 0x4a0   : > { %8844 = vmatpush2.bf16.msra.mxu1 %v14030_v36  ;;  %8856 = vmatprep.subr.bf16.mxu0 %v14391_v37  ;;  %v1202_v36 = vld [vmem:[#allocation8 + $0x18b0] sm:$0xff]  ;;  %v423_v37 = vld [vmem:[#allocation8 + $0x58] sm:$0xff] }
 0x4a1   : > { %8899 = vmatprep.subr.bf16.mxu1 %v13625_v38  ;;  %v435_v38 = vld [vmem:[#allocation8 + $0xb8] sm:$0xff]  ;;  %v14223_v39 = vcombine.high %v1190_v45, %v1202_v36 }
 0x4a2   : > { %8803 = vmatmul.mubr.bf16.vlgmr.msra.gmra.mxu0 %v16703_v28  ;;  %v13457_v57 = vcombine.high %v423_v37, %v435_v38 }
 0x4a3   : > { %8846 = vmatmul.mubr.bf16.vlgmr.msra.gmra.mxu1 %v16693_v56  ;;  %8857 = vmatpush1.bf16.msra.mxu0 %v14390_v12  ;;  %v14342_v56 = vcombine.low %v1310_v46, %v1322_v23  ;;  %v1550_v12 = vld [vmem:[#allocation8 + $0x2390] sm:$0xff]  ;;  %v14222_v46 = vcombine.low %v1190_v45, %v1202_v36  ;;  %v13456_v23 = vcombine.low %v423_v37, %v435_v38 }
 0x4a4   : > { %8900 = vmatpush1.bf16.msra.mxu1 %v13624_v41  ;;  %8858 = vmatprep.subr.bf16.mxu0 %v14367_v43  ;;  %v1562_v41 = vld [vmem:[#allocation8 + $0x23f0] sm:$0xff]  ;;  %v783_v43 = vld [vmem:[#allocation8 + $0xb98] sm:$0xff] }
 0x4a5   : > { %8901 = vmatprep.subr.bf16.mxu1 %v13601_v29  ;;  %8888 = vmatprep.mubr.bf16.mxu0 %v16708_v53  ;;  %v795_v29 = vld [vmem:[#allocation8 + $0xbf8] sm:$0xff]  ;;  %v14583_v47 = vcombine.high %v1550_v12, %v1562_v41  ;;  %v14582_v33 = vcombine.low %v1550_v12, %v1562_v41  ;;  %v8546_v41 = vpop.f32.mrf.mxu0 }
 0x4a6   : > { %8931 = vmatprep.mubr.bf16.mxu1 %v16698_v17  ;;  %v13529_v17 = vcombine.high %v495_v63, %v507_v0  ;;  %v13817_v59 = vcombine.high %v783_v43, %v795_v29  ;;  %v13816_v52 = vcombine.low %v783_v43, %v795_v29 }
 0x4a7   : > { %8859 = vmatpush1.bf16.msra.mxu0 %v14366_v22  ;;  %v1526_v22 = vld [vmem:[#allocation8 + $0x22d0] sm:$0xff] }
 0x4a8   : > { %8902 = vmatpush1.bf16.msra.mxu1 %v13600_v48  ;;  %8860 = vmatprep.subr.bf16.mxu0 %v14343_v49  ;;  %v1538_v48 = vld [vmem:[#allocation8 + $0x2330] sm:$0xff]  ;;  %v759_v49 = vld [vmem:[#allocation8 + $0xad8] sm:$0xff] }
 0x4a9   : > { %8903 = vmatprep.subr.bf16.mxu1 %v13577_v50  ;;  %v771_v50 = vld [vmem:[#allocation8 + $0xb38] sm:$0xff]  ;;  %v14559_v54 = vcombine.high %v1526_v22, %v1538_v48  ;;  %v14558_v61 = vcombine.low %v1526_v22, %v1538_v48  ;;  %v16712_v48 = vld [vmem:[#allocation9 + $0x10] sm:$0xff] }
 0x4aa   : > { %v13793_v58 = vcombine.high %v759_v49, %v771_v50  ;;  %v13792_v2 = vcombine.low %v759_v49, %v771_v50  ;;  %v627_v22 = vld [vmem:[#allocation8 + $0x6b8] sm:$0xff]  ;;  %v8548_v50 = vpop.f32.mrf.mxu0 }
 0x4ab   : > { %8861 = vmatpush1.bf16.msra.mxu0 %v14342_v56  ;;  %v1502_v56 = vld [vmem:[#allocation8 + $0x2210] sm:$0xff] }
 0x4ac   : > { %8904 = vmatpush1.bf16.msra.mxu1 %v13576_v60  ;;  %8862 = vmatprep.subr.bf16.mxu0 %v14319_v34  ;;  %v1514_v60 = vld [vmem:[#allocation8 + $0x2270] sm:$0xff]  ;;  %v735_v34 = vld [vmem:[#allocation8 + $0xa18] sm:$0xff] }
 0x4ad   : > { %8905 = vmatprep.subr.bf16.mxu1 %v13553_v42  ;;  %v747_v42 = vld [vmem:[#allocation8 + $0xa78] sm:$0xff]  ;;  %v14535_v63 = vcombine.high %v1502_v56, %v1514_v60  ;;  %v14534_v4 = vcombine.low %v1502_v56, %v1514_v60 }
 0x4ae   : > { %v13769_v0 = vcombine.high %v735_v34, %v747_v42  ;;  %v13768_v11 = vcombine.low %v735_v34, %v747_v42  ;;  %v975_v56 = vld [vmem:[#allocation8 + $0x1198] sm:$0xff]  ;;  %v1637_v34 = vrot.slane %v16712_v48, %v16529_v19 }
 0x4af   : > { %8863 = vmatpush1.bf16.msra.mxu0 %v14318_v1  ;;  %v1478_v1 = vld [vmem:[#allocation8 + $0x2150] sm:$0xff]  ;;  %v987_v60 = vld [vmem:[#allocation8 + $0x11f8] sm:$0xff] }
 0x4b0   : > { %8906 = vmatpush1.bf16.msra.mxu1 %v13552_v51  ;;  %8864 = vmatprep.subr.bf16.mxu0 %v14295_v3  ;;  %v1490_v51 = vld [vmem:[#allocation8 + $0x21b0] sm:$0xff]  ;;  %v711_v3 = vld [vmem:[#allocation8 + $0x958] sm:$0xff] }
 0x4b1   : > { %8907 = vmatprep.subr.bf16.mxu1 %v13529_v17  ;;  %v723_v17 = vld [vmem:[#allocation8 + $0x9b8] sm:$0xff]  ;;  %v14511_v14 = vcombine.high %v1478_v1, %v1490_v51  ;;  %v14510_v25 = vcombine.low %v1478_v1, %v1490_v51 }
 0x4b2   : > { %v13745_v55 = vcombine.high %v711_v3, %v723_v17  ;;  %v13744_v27 = vcombine.low %v711_v3, %v723_v17  ;;  %v1359_v42 = vld [vmem:[#allocation8 + $0x1d98] sm:$0xff]  ;;  %v14009_v3 = vcombine.high %v975_v56, %v987_v60 }
 0x4b3   : > { %8865 = vmatpush1.bf16.msra.mxu0 %v14294_v13  ;;  %v1454_v13 = vld [vmem:[#allocation8 + $0x2090] sm:$0xff] }
 0x4b4   : > { %8908 = vmatpush1.bf16.msra.mxu1 %v13528_v6  ;;  %8866 = vmatprep.subr.bf16.mxu0 %v14271_v21  ;;  %v1466_v6 = vld [vmem:[#allocation8 + $0x20f0] sm:$0xff]  ;;  %v687_v21 = vld [vmem:[#allocation8 + $0x898] sm:$0xff] }
 0x4b5   : > { %8909 = vmatprep.subr.bf16.mxu1 %v13505_v16  ;;  %v699_v16 = vld [vmem:[#allocation8 + $0x8f8] sm:$0xff]  ;;  %v14487_v32 = vcombine.high %v1454_v13, %v1466_v6  ;;  %v14486_v45 = vcombine.low %v1454_v13, %v1466_v6 }
 0x4b6   : > { %v13721_v30 = vcombine.high %v687_v21, %v699_v16  ;;  %v13720_v36 = vcombine.low %v687_v21, %v699_v16  ;;  %v1347_v13 = vld [vmem:[#allocation8 + $0x1d38] sm:$0xff]  ;;  %v14008_v21 = vcombine.low %v975_v56, %v987_v60 }
 0x4b7   : > { %8867 = vmatpush1.bf16.msra.mxu0 %v14270_v44  ;;  %v1430_v44 = vld [vmem:[#allocation8 + $0x1fd0] sm:$0xff] }
 0x4b8   : > { %8910 = vmatpush1.bf16.msra.mxu1 %v13504_v8  ;;  %8868 = vmatprep.subr.bf16.mxu0 %v14247_v35  ;;  %v1442_v8 = vld [vmem:[#allocation8 + $0x2030] sm:$0xff]  ;;  %v663_v35 = vld [vmem:[#allocation8 + $0x7d8] sm:$0xff] }
 0x4b9   : > { %8911 = vmatprep.subr.bf16.mxu1 %v13481_v31  ;;  %v675_v31 = vld [vmem:[#allocation8 + $0x838] sm:$0xff]  ;;  %v14463_v37 = vcombine.high %v1430_v44, %v1442_v8  ;;  %v14462_v12 = vcombine.low %v1430_v44, %v1442_v8 }
 0x4ba   : > { %v13697_v38 = vcombine.high %v663_v35, %v675_v31  ;;  %v13696_v43 = vcombine.low %v663_v35, %v675_v31  ;;  %v927_v44 = vld [vmem:[#allocation8 + $0x1018] sm:$0xff] }
 0x4bb   : > { %8869 = vmatpush1.bf16.msra.mxu0 %v14246_v26  ;;  %v1406_v26 = vld [vmem:[#allocation8 + $0x1f10] sm:$0xff]  ;;  %v939_v8 = vld [vmem:[#allocation8 + $0x1078] sm:$0xff] }
 0x4bc   : > { %8912 = vmatpush1.bf16.msra.mxu1 %v13480_v40  ;;  %8870 = vmatprep.subr.bf16.mxu0 %v14223_v39  ;;  %v1418_v40 = vld [vmem:[#allocation8 + $0x1f70] sm:$0xff]  ;;  %v639_v39 = vld [vmem:[#allocation8 + $0x718] sm:$0xff] }
 0x4bd   : > { %8913 = vmatprep.subr.bf16.mxu1 %v13457_v57  ;;  %v651_v57 = vld [vmem:[#allocation8 + $0x778] sm:$0xff]  ;;  %v14439_v29 = vcombine.high %v1406_v26, %v1418_v40  ;;  %v14438_v49 = vcombine.low %v1406_v26, %v1418_v40 }
 0x4bf   : > { %8871 = vmatpush1.bf16.msra.mxu0 %v14222_v46  ;;  %v13673_v46 = vcombine.high %v639_v39, %v651_v57 }
 0x4c0   : > { %8914 = vmatpush1.bf16.msra.mxu1 %v13456_v23  ;;  %8872 = vmatprep.subr.bf16.mxu0 %v14583_v47  ;;  %v1382_v23 = vld [vmem:[#allocation8 + $0x1e50] sm:$0xff] }
 0x4c1   : > { %8915 = vmatprep.subr.bf16.mxu1 %v13817_v59  ;;  %v1394_v47 = vld [vmem:[#allocation8 + $0x1eb0] sm:$0xff]  ;;  %v615_v59 = vld [vmem:[#allocation8 + $0x658] sm:$0xff] }
 0x4c2   : > { %v13648_v51 = vcombine.low %v615_v59, %v627_v22 }
 0x4c3   : > { %8873 = vmatpush2.bf16.msra.mxu0 %v14582_v33  ;;  %v8589_v33 = vpop.f32.mrf.mxu1 }
 0x4c4   : > { %8916 = vmatpush2.bf16.msra.mxu1 %v13816_v52  ;;  %8874 = vmatprep.subr.bf16.mxu0 %v14559_v54  ;;  %v13672_v52 = vcombine.low %v639_v39, %v651_v57  ;;  %v14415_v54 = vcombine.high %v1382_v23, %v1394_v47 }
 0x4c5   : > { %8917 = vmatprep.subr.bf16.mxu1 %v13793_v58  ;;  %v13649_v58 = vcombine.high %v615_v59, %v627_v22  ;;  %v8591_v1 = vpop.f32.mrf.mxu1  ;;  %v915_v59 = vld [vmem:[#allocation8 + $0xfb8] sm:$0xff] }
 0x4c6   : > { %v15973_v22 = vld [vmem:[%s16456_s15 + $0xc] ss:$24 sps:$4 sm:$0xff]  }
 0x4c7   : > { %8875 = vmatpush2.bf16.msra.mxu0 %v14558_v61  ;;  %v1371_v61 = vld [vmem:[#allocation8 + $0x1df8] sm:$0xff] }
 0x4c8   : > { %8918 = vmatpush2.bf16.msra.mxu1 %v13792_v2  ;;  %8876 = vmatprep.subr.bf16.mxu0 %v14535_v63  ;;  %v1641_v2 = vrot.slane %v16712_v48, %v16534_v24  ;;  %v14414_v63 = vcombine.low %v1382_v23, %v1394_v47  ;;  %v14393_v17 = vcombine.high %v1359_v42, %v1371_v61  ;;  %v903_v47 = vld [vmem:[#allocation8 + $0xf58] sm:$0xff] }
 0x4c9   : > { %8919 = vmatprep.subr.bf16.mxu1 %v13769_v0  ;;  %v8550_v0 = vpop.f32.mrf.mxu0 }
 0x4ca   : > { %v8549_v6 = vadd.f32 %v8548_v50, %v1641_v2  ;;  %v8551_v26 = vadd.f32 %v8550_v0, %v1637_v34  ;;  %v1287_v50 = vld [vmem:[#allocation8 + $0x1b58] sm:$0xff] }
 0x4cb   : > { %8877 = vmatpush2.bf16.msra.mxu0 %v14534_v4  ;;  %v951_v4 = vld [vmem:[#allocation8 + $0x10d8] sm:$0xff]  ;;  %v8552_v16 = vpop.f32.mrf.mxu0 }
 0x4cc   : > { %8920 = vmatpush2.bf16.msra.mxu1 %v13768_v11  ;;  %8878 = vmatprep.subr.bf16.mxu0 %v14511_v14  ;;  %v963_v11 = vld [vmem:[#allocation8 + $0x1138] sm:$0xff]  ;;  %v8547_v14 = vadd.f32 %v8546_v41, %v1637_v34  ;;  %v8592_v40 = vadd.f32 %v8591_v1, %v8549_v6  ;;  %v8553_v39 = vadd.f32 %v8552_v16, %v1641_v2 }
 0x4cd   : > { %8921 = vmatprep.subr.bf16.mxu1 %v13745_v55  ;;  %v1335_v55 = vld [vmem:[#allocation8 + $0x1cd8] sm:$0xff]  ;;  %v13937_v34 = vcombine.high %v903_v47, %v915_v59 }
 0x4ce   : > { %v8590_v35 = vadd.f32 %v8589_v33, %v8547_v14  ;;  %v14368_v41 = vcombine.low %v1335_v55, %v1347_v13  ;;  %v1299_v33 = vld [vmem:[#allocation8 + $0x1bb8] sm:$0xff] }
 0x4cf   : > { %8879 = vmatpush2.bf16.msra.mxu0 %v14510_v25  ;;  %v8593_v25 = vpop.f32.mrf.mxu1  ;;  %v14321_v2 = vcombine.high %v1287_v50, %v1299_v33  ;;  %v891_v0 = vld [vmem:[#allocation8 + $0xef8] sm:$0xff] }
 0x4d0   : > { %8922 = vmatpush2.bf16.msra.mxu1 %v13744_v27  ;;  %8880 = vmatprep.subr.bf16.mxu0 %v14487_v32  ;;  %v14392_v27 = vcombine.low %v1359_v42, %v1371_v61  ;;  %v13985_v32 = vcombine.high %v951_v4, %v963_v11  ;;  %v1263_v1 = vld [vmem:[#allocation8 + $0x1a98] sm:$0xff] }
 0x4d1   : > { %8923 = vmatprep.subr.bf16.mxu1 %v13721_v30  ;;  %v14369_v30 = vcombine.high %v1335_v55, %v1347_v13  ;;  %v8595_v57 = vpop.f32.mrf.mxu1  ;;  %v855_v14 = vld [vmem:[#allocation8 + $0xdd8] sm:$0xff] }
 0x4d2   : > { %v867_v55 = vld [vmem:[#allocation8 + $0xe38] sm:$0xff] }
 0x4d3   : > { %8881 = vmatpush2.bf16.msra.mxu0 %v14486_v45  ;;  %v16719_v45 = vld [vmem:[%s16456_s15 + $0x10] ss:$24 sps:$4 sm:$0xff]  }
 0x4d4   : > { %8924 = vmatpush2.bf16.msra.mxu1 %v13720_v36  ;;  %8882 = vmatprep.subr.bf16.mxu0 %v14463_v37  ;;  %v13984_v36 = vcombine.low %v951_v4, %v963_v11  ;;  %v1311_v37 = vld [vmem:[#allocation8 + $0x1c18] sm:$0xff] }
 0x4d5   : > { %8925 = vmatprep.subr.bf16.mxu1 %v13697_v38  ;;  %v1323_v38 = vld [vmem:[#allocation8 + $0x1c78] sm:$0xff] }
 0x4d6   : > { %v14345_v23 = vcombine.high %v1311_v37, %v1323_v38  ;;  %v14344_v60 = vcombine.low %v1311_v37, %v1323_v38  ;;  %v1239_v13 = vld [vmem:[#allocation8 + $0x19d8] sm:$0xff] }
 0x4d7   : > { %8883 = vmatpush2.bf16.msra.mxu0 %v14462_v12  ;;  %v1251_v6 = vld [vmem:[#allocation8 + $0x1a38] sm:$0xff] }
 0x4d8   : > { %8926 = vmatpush2.bf16.msra.mxu1 %v13696_v43  ;;  %8884 = vmatprep.subr.bf16.mxu0 %v14439_v29  ;;  %v13961_v43 = vcombine.high %v927_v44, %v939_v8  ;;  %v807_v38 = vld [vmem:[#allocation8 + $0xc58] sm:$0xff] }
 0x4d9   : > { %8927 = vmatprep.subr.bf16.mxu1 %v13673_v46 }
 0x4db   : > { %8885 = vmatpush2.bf16.msra.mxu0 %v14438_v49 }
 0x4dc   : > { %8928 = vmatpush2.bf16.msra.mxu1 %v13672_v52  ;;  %8886 = vmatprep.subr.bf16.mxu0 %v14415_v54  ;;  %v8596_v52 = vadd.f32 %v8595_v57, %v8553_v39  ;;  %v1203_v39 = vld [vmem:[#allocation8 + $0x18b8] sm:$0xff] }
 0x4dd   : > { %8929 = vmatprep.subr.bf16.mxu1 %v13649_v58  ;;  %v13960_v58 = vcombine.low %v927_v44, %v939_v8  ;;  %v1215_v44 = vld [vmem:[#allocation8 + $0x1918] sm:$0xff] }
 0x4de   : > { %v1227_v8 = vld [vmem:[#allocation8 + $0x1978] sm:$0xff] }
 0x4df   : > { %8887 = vmatpush2.bf16.msra.mxu0 %v14414_v63  ;;  %v879_v63 = vld [vmem:[#allocation8 + $0xe98] sm:$0xff]  ;;  %v14249_v37 = vcombine.high %v1215_v44, %v1227_v8 }
 0x4e0   : > { %8930 = vmatpush2.bf16.msra.mxu1 %v13648_v51  ;;  %8942 = vmatprep.subr.bf16.mxu0 %v14009_v3  ;;  %v1275_v51 = vld [vmem:[#allocation8 + $0x1af8] sm:$0xff]  ;;  %v13936_v3 = vcombine.low %v903_v47, %v915_v59  ;;  %v13913_v4 = vcombine.high %v879_v63, %v891_v0 }
 0x4e1   : > { %8985 = vmatprep.subr.bf16.mxu1 %v14393_v17  ;;  %v14320_v17 = vcombine.low %v1287_v50, %v1299_v33  ;;  %v14297_v11 = vcombine.high %v1263_v1, %v1275_v51  ;;  %v14296_v16 = vcombine.low %v1263_v1, %v1275_v51  ;;  %v1563_v47 = vld [vmem:[#allocation8 + $0x23f8] sm:$0xff] }
 0x4e2   : > { %v8632_v31 = vpop.f32.mrf.mxu0  ;;  %8889 = vmatmul.mubr.bf16.vlgmr.msra.gmra.mxu0 %v16719_v45  ;;  %v1143_v33 = vld [vmem:[#allocation8 + $0x16d8] sm:$0xff] }
 0x4e3   : > { %8932 = vmatmul.mubr.bf16.vlgmr.msra.gmra.mxu1 %v16703_v28  ;;  %8943 = vmatpush1.bf16.msra.mxu0 %v14008_v21  ;;  %v8633_v29 = vadd.f32 %v8632_v31, %v8590_v35  ;;  %v8594_v28 = vadd.f32 %v8593_v25, %v8551_v26  ;;  %v13912_v21 = vcombine.low %v879_v63, %v891_v0  ;;  %v819_v26 = vld [vmem:[#allocation8 + $0xcb8] sm:$0xff] }
 0x4e4   : > { %8986 = vmatpush1.bf16.msra.mxu1 %v14392_v27  ;;  %v8634_v12 = vpop.f32.mrf.mxu0  ;;  %8944 = vmatprep.subr.bf16.mxu0 %v13985_v32  ;;  %v13889_v25 = vcombine.high %v855_v14, %v867_v55  ;;  %v14273_v27 = vcombine.high %v1239_v13, %v1251_v6  ;;  %v831_v32 = vld [vmem:[#allocation8 + $0xd18] sm:$0xff]  ;;  %v13888_v35 = vcombine.low %v855_v14, %v867_v55 }
 0x4e5   : > { %v8635_v46 = vadd.f32 %v8634_v12, %v8592_v40  ;;  %8987 = vmatprep.subr.bf16.mxu1 %v14369_v30  ;;  %8974 = vmatprep.mubr.bf16.mxu0 %v15973_v22  ;;  %v843_v30 = vld [vmem:[#allocation8 + $0xd78] sm:$0xff]  ;;  %v14272_v31 = vcombine.low %v1239_v13, %v1251_v6  ;;  %v14248_v12 = vcombine.low %v1215_v44, %v1227_v8 }
 0x4e6   : > { %v8636_v49 = vpop.f32.mrf.mxu0  ;;  %9017 = vmatprep.mubr.bf16.mxu1 %v16708_v53  ;;  %v1191_v40 = vld [vmem:[#allocation8 + $0x1858] sm:$0xff]  ;;  %v13864_v57 = vcombine.low %v831_v32, %v843_v30  ;;  %v13840_v59 = vcombine.low %v807_v38, %v819_v26 }
 0x4e7   : > { %v15039_v54 = vpack.c.bf16 %v8635_v46, %v8633_v29  ;;  %8945 = vmatpush1.bf16.msra.mxu0 %v13984_v36  ;;  %v8637_v42 = vadd.f32 %v8636_v49, %v8594_v28  ;;  %v13865_v36 = vcombine.high %v831_v32, %v843_v30  ;;  %v1167_v29 = vld [vmem:[#allocation8 + $0x1798] sm:$0xff]  ;;  %v14224_v22 = vcombine.low %v1191_v40, %v1203_v39 }
 0x4e8   : > { %8988 = vmatpush1.bf16.msra.mxu1 %v14368_v41  ;;  %v8638_v56 = vpop.f32.mrf.mxu0  ;;  %8946 = vmatprep.subr.bf16.mxu0 %v13961_v43  ;;  %v13841_v41 = vcombine.high %v807_v38, %v819_v26  ;;  %v14225_v43 = vcombine.high %v1191_v40, %v1203_v39  ;;  %v1179_v46 = vld [vmem:[#allocation8 + $0x17f8] sm:$0xff] }
 0x4e9   : > { %9180 = vst [vmem:[#allocation2 + $0x40] sm:$0xff] %v15039_v54  ;;  %v8639_v61 = vadd.f32 %v8638_v56, %v8596_v52  ;;  %8989 = vmatprep.subr.bf16.mxu1 %v14345_v23  ;;  %v1551_v23 = vld [vmem:[#allocation8 + $0x2398] sm:$0xff]  ;;  %v14201_v49 = vcombine.high %v1167_v29, %v1179_v46 }
 0x4ea   : > { %v14585_v50 = vcombine.high %v1551_v23, %v1563_v47  ;;  %v1155_v28 = vld [vmem:[#allocation8 + $0x1738] sm:$0xff]  ;;  %v14584_v56 = vcombine.low %v1551_v23, %v1563_v47 }
 0x4eb   : > { %v15051_v53 = vpack.c.bf16 %v8639_v61, %v8637_v42  ;;  %8947 = vmatpush1.bf16.msra.mxu0 %v13960_v58  ;;  %v1527_v52 = vld [vmem:[#allocation8 + $0x22d8] sm:$0xff]  ;;  %v14200_v58 = vcombine.low %v1167_v29, %v1179_v46  ;;  %v14176_v0 = vcombine.low %v1143_v33, %v1155_v28  ;;  %v8675_v46 = vpop.f32.mrf.mxu1 }
 0x4ec   : > { %8990 = vmatpush1.bf16.msra.mxu1 %v14344_v60  ;;  %8948 = vmatprep.subr.bf16.mxu0 %v13937_v34  ;;  %v1539_v54 = vld [vmem:[#allocation8 + $0x2338] sm:$0xff]  ;;  %v14177_v60 = vcombine.high %v1143_v33, %v1155_v28 }
 0x4ed   : > { %9192 = vst [vmem:[#allocation2 + $0xa0] sm:$0xff] %v15051_v53  ;;  %8991 = vmatprep.subr.bf16.mxu1 %v14321_v2  ;;  %v14561_v34 = vcombine.high %v1527_v52, %v1539_v54  ;;  %v1119_v42 = vld [vmem:[#allocation8 + $0x1618] sm:$0xff]  ;;  %v14560_v1 = vcombine.low %v1527_v52, %v1539_v54  ;;  %v8677_v52 = vpop.f32.mrf.mxu1 }
 0x4ee   : > { %v1131_v61 = vld [vmem:[#allocation8 + $0x1678] sm:$0xff] }
 0x4ef   : > { %8949 = vmatpush1.bf16.msra.mxu0 %v13936_v3  ;;  %v1503_v2 = vld [vmem:[#allocation8 + $0x2218] sm:$0xff]  ;;  %v14153_v51 = vcombine.high %v1119_v42, %v1131_v61  ;;  %v14152_v14 = vcombine.low %v1119_v42, %v1131_v61  ;;  %v8679_v42 = vpop.f32.mrf.mxu1 }
 0x4f0   : > { %8992 = vmatpush1.bf16.msra.mxu1 %v14320_v17  ;;  %8950 = vmatprep.subr.bf16.mxu0 %v13913_v4  ;;  %v1515_v63 = vld [vmem:[#allocation8 + $0x2278] sm:$0xff] }
 0x4f1   : > { %8993 = vmatprep.subr.bf16.mxu1 %v14297_v11  ;;  %v14537_v53 = vcombine.high %v1503_v2, %v1515_v63  ;;  %v1095_v3 = vld [vmem:[#allocation8 + $0x1558] sm:$0xff]  ;;  %v14536_v55 = vcombine.low %v1503_v2, %v1515_v63  ;;  %v1649_v2 = vrot.slane %v16712_v48, %v16554_v10 }
 0x4f2   : > { %v1107_v17 = vld [vmem:[#allocation8 + $0x15b8] sm:$0xff] }
 0x4f3   : > { %8951 = vmatpush1.bf16.msra.mxu0 %v13912_v21  ;;  %v1479_v4 = vld [vmem:[#allocation8 + $0x2158] sm:$0xff]  ;;  %v14129_v13 = vcombine.high %v1095_v3, %v1107_v17  ;;  %v14128_v32 = vcombine.low %v1095_v3, %v1107_v17  ;;  %v8678_v17 = vadd.f32 %v8677_v52, %v1649_v2  ;;  %v9642_v52 = vld [vmem:[#allocation2 + $0x8c] sm:$0xf] }
 0x4f4   : > { %8994 = vmatpush1.bf16.msra.mxu1 %v14296_v16  ;;  %8952 = vmatprep.subr.bf16.mxu0 %v13889_v25  ;;  %v1491_v11 = vld [vmem:[#allocation8 + $0x21b8] sm:$0xff] }
 0x4f5   : > { %8995 = vmatprep.subr.bf16.mxu1 %v14273_v27  ;;  %v14513_v6 = vcombine.high %v1479_v4, %v1491_v11  ;;  %v1071_v21 = vld [vmem:[#allocation8 + $0x1498] sm:$0xff]  ;;  %v14512_v30 = vcombine.low %v1479_v4, %v1491_v11 }
 0x4f6   : > { %v1083_v16 = vld [vmem:[#allocation8 + $0x14f8] sm:$0xff] }
 0x4f7   : > { %8953 = vmatpush1.bf16.msra.mxu0 %v13888_v35  ;;  %v1455_v25 = vld [vmem:[#allocation8 + $0x2098] sm:$0xff]  ;;  %v14105_v44 = vcombine.high %v1071_v21, %v1083_v16  ;;  %v14104_v38 = vcombine.low %v1071_v21, %v1083_v16 }
 0x4f8   : > { %8996 = vmatpush1.bf16.msra.mxu1 %v14272_v31  ;;  %8954 = vmatprep.subr.bf16.mxu0 %v13865_v36  ;;  %v1467_v27 = vld [vmem:[#allocation8 + $0x20f8] sm:$0xff] }
 0x4f9   : > { %8997 = vmatprep.subr.bf16.mxu1 %v14249_v37  ;;  %v14489_v8 = vcombine.high %v1455_v25, %v1467_v27  ;;  %v1047_v35 = vld [vmem:[#allocation8 + $0x13d8] sm:$0xff]  ;;  %v14488_v26 = vcombine.low %v1455_v25, %v1467_v27 }
 0x4fa   : > { %v1059_v31 = vld [vmem:[#allocation8 + $0x1438] sm:$0xff] }
 0x4fb   : > { %8955 = vmatpush1.bf16.msra.mxu0 %v13864_v57  ;;  %v1431_v36 = vld [vmem:[#allocation8 + $0x1fd8] sm:$0xff]  ;;  %v14081_v40 = vcombine.high %v1047_v35, %v1059_v31  ;;  %v14080_v29 = vcombine.low %v1047_v35, %v1059_v31 }
 0x4fc   : > { %8998 = vmatpush1.bf16.msra.mxu1 %v14248_v12  ;;  %8956 = vmatprep.subr.bf16.mxu0 %v13841_v41  ;;  %v1443_v37 = vld [vmem:[#allocation8 + $0x2038] sm:$0xff] }
 0x4fd   : > { %8999 = vmatprep.subr.bf16.mxu1 %v14225_v43  ;;  %v14465_v39 = vcombine.high %v1431_v36, %v1443_v37  ;;  %v1023_v57 = vld [vmem:[#allocation8 + $0x1318] sm:$0xff]  ;;  %v14464_v23 = vcombine.low %v1431_v36, %v1443_v37 }
 0x4fe   : > { %v1035_v12 = vld [vmem:[#allocation8 + $0x1378] sm:$0xff] }
 0x4ff   : > { %8957 = vmatpush1.bf16.msra.mxu0 %v13840_v59  ;;  %v1407_v41 = vld [vmem:[#allocation8 + $0x1f18] sm:$0xff]  ;;  %v14057_v47 = vcombine.high %v1023_v57, %v1035_v12  ;;  %v14056_v28 = vcombine.low %v1023_v57, %v1035_v12 }
 0x500   : > { %9000 = vmatpush1.bf16.msra.mxu1 %v14224_v22  ;;  %8958 = vmatprep.subr.bf16.mxu0 %v14201_v49  ;;  %v1419_v43 = vld [vmem:[#allocation8 + $0x1f78] sm:$0xff] }
 0x501   : > { %9001 = vmatprep.subr.bf16.mxu1 %v14585_v50  ;;  %v14441_v59 = vcombine.high %v1407_v41, %v1419_v43  ;;  %v999_v22 = vld [vmem:[#allocation8 + $0x1258] sm:$0xff]  ;;  %v14440_v54 = vcombine.low %v1407_v41, %v1419_v43 }
 0x502   : > { %v1011_v49 = vld [vmem:[#allocation8 + $0x12b8] sm:$0xff] }
 0x503   : > { %8959 = vmatpush2.bf16.msra.mxu0 %v14200_v58  ;;  %v1383_v50 = vld [vmem:[#allocation8 + $0x1e58] sm:$0xff]  ;;  %v14033_v58 = vcombine.high %v999_v22, %v1011_v49 }
 0x504   : > { %9002 = vmatpush2.bf16.msra.mxu1 %v14584_v56  ;;  %8960 = vmatprep.subr.bf16.mxu0 %v14177_v60  ;;  %v1395_v33 = vld [vmem:[#allocation8 + $0x1eb8] sm:$0xff]  ;;  %v1645_v60 = vrot.slane %v16712_v48, %v16551_v5 }
 0x505   : > { %9003 = vmatprep.subr.bf16.mxu1 %v14561_v34  ;;  %v14417_v56 = vcombine.high %v1383_v50, %v1395_v33  ;;  %v14032_v34 = vcombine.low %v999_v22, %v1011_v49  ;;  %v14416_v61 = vcombine.low %v1383_v50, %v1395_v33  ;;  %v9208_v63 = vld [vmem:[#allocation2 + $0x80] sm:$0xf]  ;;  %v9357_v22 = vld [vmem:[#allocation2 + $0x4] sm:$0xf]  ;;  %v9500_v50 = vld [vmem:[#allocation2 + $0x28] sm:$0xf] }
 0x506   : > { %v9207_v3 = vld [vmem:[#allocation2 + $0x20] sm:$0xf] }
 0x507   : > { %8961 = vmatpush2.bf16.msra.mxu0 %v14176_v0  ;;  %v8676_v0 = vadd.f32 %v8675_v46, %v1645_v60  ;;  %v14612_v4 = vcombine.low %v9207_v3, %v9208_v63  ;;  %v9209_v11 = vld [vmem:[#allocation2 + $0x40] sm:$0xf]  ;;  %v9782_v63 = vld [vmem:[#allocation2 + $0x30] sm:$0xf] }
 0x508   : > { %9004 = vmatpush2.bf16.msra.mxu1 %v14560_v1  ;;  %8962 = vmatprep.subr.bf16.mxu0 %v14153_v51  ;;  %v8681_v1 = vpop.f32.mrf.mxu1  ;;  %v9210_v51 = vld [vmem:[#allocation2 + $0xa0] sm:$0xf]  ;;  %v9780_v3 = vld [vmem:[#allocation2 + $0x10] sm:$0xf] }
 0x509   : > { %9005 = vmatprep.subr.bf16.mxu1 %v14537_v53  ;;  %v16227_v53 = vmov 0.0   ;;  %v8682_v27 = vadd.f32 %v8681_v1, %v1649_v2  ;;  %v9781_v1 = vld [vmem:[#allocation2 + $0x70] sm:$0xf] }
 0x50b   : > { %8963 = vmatpush2.bf16.msra.mxu0 %v14152_v14 }
 0x50c   : > { %9006 = vmatpush2.bf16.msra.mxu1 %v14536_v55  ;;  %8964 = vmatprep.subr.bf16.mxu0 %v14129_v13  ;;  %v15974_v55 = vld [vmem:[%s16456_s15 + $0x8] ss:$24 sps:$4 sm:$0xff]   ;;  %v14613_v13 = vcombine.low %v9209_v11, %v9210_v51  ;;  %v9924_v51 = vld [vmem:[#allocation2 + $0x94] sm:$0xf]  ;;  %s16141_s15 = scalar_lea.vmem %s16140_s13, 192 }
 0x50d   : > { %9007 = vmatprep.subr.bf16.mxu1 %v14513_v6  ;;  %v8680_v6 = vadd.f32 %v8679_v42, %v1645_v60  ;;  %v9783_v42 = vld [vmem:[#allocation2 + $0x90] sm:$0xf]  ;;  %p16143_p12 = scmp.lt.s32.totalorder %s16141_s15, %s16135_s29 }
 0x50f   : > { %8965 = vmatpush2.bf16.msra.mxu0 %v14128_v32  ;;  %p16144_p5 = por %p16143_p12, %p16142_p10 }
 0x510   : > { %9008 = vmatpush2.bf16.msra.mxu1 %v14512_v30  ;;  %8966 = vmatprep.subr.bf16.mxu0 %v14105_v44 }
 0x511   : > { %9009 = vmatprep.subr.bf16.mxu1 %v14489_v8  ;;  %v9206_v8 = vld [vmem:[#allocation2 + $0x60] sm:$0xf]  ;;  %p16145_p8 = pnand %p16144_p5, %p16138_p2 }
 0x513   : > { %8967 = vmatpush2.bf16.msra.mxu0 %v14104_v38  ;;  %v9205_v38 = vld [vmem:[#allocation2] sm:$0xf] }
 0x514   : > { %9010 = vmatpush2.bf16.msra.mxu1 %v14488_v26  ;;  %8968 = vmatprep.subr.bf16.mxu0 %v14081_v40  ;;  %v14611_v40 = vcombine.low %v9205_v38, %v9206_v8 }
 0x515   : > { %9011 = vmatprep.subr.bf16.mxu1 %v14465_v39  ;;  %v9359_v39 = vld [vmem:[#allocation2 + $0x24] sm:$0xf] }
 0x517   : > { %8969 = vmatpush2.bf16.msra.mxu0 %v14080_v29 }
 0x518   : > { %9012 = vmatpush2.bf16.msra.mxu1 %v14464_v23  ;;  %8970 = vmatprep.subr.bf16.mxu0 %v14057_v47  ;;  %v9358_v47 = vld [vmem:[#allocation2 + $0x64] sm:$0xf] }
 0x519   : > { %9013 = vmatprep.subr.bf16.mxu1 %v14441_v59  ;;  %v9501_v59 = vld [vmem:[#allocation2 + $0x88] sm:$0xf]  ;;  %v14615_v49 = vcombine.low %v9357_v22, %v9358_v47 }
 0x51a   : > { %v14620_v33 = vcombine.low %v9500_v50, %v9501_v59 }
 0x51b   : > { %8971 = vmatpush2.bf16.msra.mxu0 %v14056_v28  ;;  %v9499_v28 = vld [vmem:[#allocation2 + $0x68] sm:$0xf] }
 0x51c   : > { %9014 = vmatpush2.bf16.msra.mxu1 %v14440_v54  ;;  %8972 = vmatprep.subr.bf16.mxu0 %v14033_v58  ;;  %v9498_v54 = vld [vmem:[#allocation2 + $0x8] sm:$0xf] }
 0x51d   : > { %9015 = vmatprep.subr.bf16.mxu1 %v14417_v56  ;;  %v14619_v58 = vcombine.low %v9498_v54, %v9499_v28  ;;  %v9641_v56 = vld [vmem:[#allocation2 + $0x2c] sm:$0xf] }
 0x51e   : > { %v14624_v60 = vcombine.low %v9641_v56, %v9642_v52 }
 0x51f   : > { %8973 = vmatpush2.bf16.msra.mxu0 %v14032_v34  ;;  %v9640_v34 = vld [vmem:[#allocation2 + $0x6c] sm:$0xf] }
 0x520   : > { %9016 = vmatpush2.bf16.msra.mxu1 %v14416_v61  ;;  %15087 = vmatprep.subr.bf16.mxu0 %v16227_v53  ;;  %v9639_v61 = vld [vmem:[#allocation2 + $0xc] sm:$0xf] }
 0x521   : > { %15093 = vmatprep.subr.bf16.mxu1 %v16227_v53  ;;  %v14623_v2 = vcombine.low %v9639_v61, %v9640_v34 }
 0x522   : > { %v8718_v14 = vpop.f32.mrf.mxu0  ;;  %8975 = vmatmul.mubr.bf16.vlgmr.msra.gmra.mxu0 %v15974_v55  ;;  %v10065_v55 = vld [vmem:[#allocation2 + $0x98] sm:$0xf] }
 0x523   : > { %v8719_v21 = vadd.f32 %v8718_v14, %v8676_v0  ;;  %9018 = vmatmul.mubr.bf16.vlgmr.msra.gmra.mxu1 %v16719_v45  ;;  %15088 = vmatpush3.bf16.xpose.msra.mxu0 %v14612_v4  ;;  %v8761_v16 = vpop.f32.mrf.mxu1  ;;  %v9360_v45 = vld [vmem:[#allocation2 + $0x84] sm:$0xf]  ;;  %v14628_v0 = vcombine.low %v9782_v63, %v9783_v42  ;;  %v9923_v4 = vld [vmem:[#allocation2 + $0x34] sm:$0xf] }
 0x524   : > { %15094 = vmatpush3.bf16.msra.mxu1 %v14613_v13  ;;  %v8720_v25 = vpop.f32.mrf.mxu0  ;;  %15089 = vmatprep.mubr.msk.bf16.mxu0 %vm16228_vm0, %v16227_v53  ;;  %v14616_v43 = vcombine.low %v9359_v39, %v9360_v45  ;;  %v14632_v11 = vcombine.low %v9923_v4, %v9924_v51  ;;  %v9922_v14 = vld [vmem:[#allocation2 + $0x74] sm:$0xf]  ;;  %v10203_v45 = vld [vmem:[#allocation2 + $0x1c] sm:$0xf]  ;;  %v1665_v51 = vrot.slane %v16712_v48, %v16606_v20  ;;  %v16769_v20 = vld [vmem:[%s344_s17] ss:$0 sm:$0xff] }
 0x525   : > { %v8721_v32 = vadd.f32 %v8720_v25, %v8678_v17  ;;  %v8762_v30 = vadd.f32 %v8761_v16, %v8719_v21  ;;  %v8763_v44 = vpop.f32.mrf.mxu1  ;;  %15099 = vmatprep.subr.bf16.mxu0 %v16227_v53  ;;  %15095 = vmatprep.mubr.msk.bf16.mxu1 %vm16228_vm0, %v16227_v53  ;;  %v14627_v17 = vcombine.low %v9780_v3, %v9781_v1  ;;  %v9921_v13 = vld [vmem:[#allocation2 + $0x14] sm:$0xf]  ;;  %v10064_v21 = vld [vmem:[#allocation2 + $0x38] sm:$0xf] }
 0x526   : > { %v8722_v35 = vpop.f32.mrf.mxu0  ;;  %15105 = vmatprep.subr.bf16.mxu1 %v16227_v53  ;;  %v14636_v16 = vcombine.low %v10064_v21, %v10065_v55  ;;  %v10063_v25 = vld [vmem:[#allocation2 + $0x78] sm:$0xf] }
 0x527   : > { %v8723_v31 = vadd.f32 %v8722_v35, %v8680_v6  ;;  %v8764_v36 = vadd.f32 %v8763_v44, %v8721_v32  ;;  %v8765_v37 = vpop.f32.mrf.mxu1  ;;  %v14631_v6 = vcombine.low %v9921_v13, %v9922_v14  ;;  %v10062_v32 = vld [vmem:[#allocation2 + $0x18] sm:$0xf]  ;;  %v10205_v44 = vld [vmem:[#allocation2 + $0x3c] sm:$0xf] }
 0x528   : > { %v8724_v26 = vpop.f32.mrf.mxu0  ;;  %v10204_v35 = vld [vmem:[#allocation2 + $0x7c] sm:$0xf] }
 0x529   : > { %v15040_v57 = vpack.c.bf16 %v8764_v36, %v8762_v30  ;;  %v8725_v12 = vadd.f32 %v8724_v26, %v8682_v27  ;;  %v8767_v41 = vpop.f32.mrf.mxu1  ;;  %v8766_v29 = vadd.f32 %v8765_v37, %v8723_v31  ;;  %v10206_v27 = vld [vmem:[#allocation2 + $0x9c] sm:$0xf]  ;;  %v14635_v30 = vcombine.low %v10062_v32, %v10063_v25 }
 0x52a   : > { %15090 = vmatmul.mubr.bf16.vlgmr.msra.gmra.mxu0 %v14611_v40  ;;  %v14640_v8 = vcombine.low %v10205_v44, %v10206_v27  ;;  %v14639_v31 = vcombine.low %v10203_v45, %v10204_v35  ;;  %v1653_v26 = vrot.slane %v16712_v48, %v16581_v9  ;;  %v1657_v40 = vrot.slane %v16712_v48, %v16584_v15 }
 0x52b   : > { %9181 = vst [vmem:[#allocation2 + $0x48] sm:$0xff] %v15040_v57  ;;  %v8768_v46 = vadd.f32 %v8767_v41, %v8725_v12  ;;  %15100 = vmatpush3.bf16.xpose.msra.mxu0 %v14616_v43  ;;  %15101 = vmatprep.mubr.msk.bf16.mxu0 %vm16228_vm0, %v16227_v53 }
 0x52c   : > { %15111 = vmatprep.subr.bf16.mxu0 %v16227_v53 }
 0x52d   : > { %v15052_v23 = vpack.c.bf16 %v8768_v46, %v8766_v29 }
 0x52f   : > { %9193 = vst [vmem:[#allocation2 + $0xa8] sm:$0xff] %v15052_v23 }
 0x532   : > { %15102 = vmatmul.mubr.bf16.vlgmr.msra.gmra.mxu0 %v14615_v49 }
 0x533   : > { %15112 = vmatpush3.bf16.xpose.msra.mxu0 %v14620_v33  ;;  %15113 = vmatprep.mubr.msk.bf16.mxu0 %vm16228_vm0, %v16227_v53 }
 0x534   : > { %15123 = vmatprep.subr.bf16.mxu0 %v16227_v53 }
 0x53a   : > { %15114 = vmatmul.mubr.bf16.vlgmr.msra.gmra.mxu0 %v14619_v58 }
 0x53b   : > { %15124 = vmatpush3.bf16.xpose.msra.mxu0 %v14624_v60  ;;  %15125 = vmatprep.mubr.msk.bf16.mxu0 %vm16228_vm0, %v16227_v53 }
 0x53c   : > { %15135 = vmatprep.subr.bf16.mxu0 %v16227_v53 }
 0x542   : > { %15126 = vmatmul.mubr.bf16.vlgmr.msra.gmra.mxu0 %v14623_v2 }
 0x543   : > { %15136 = vmatpush3.bf16.xpose.msra.mxu0 %v14628_v0  ;;  %15137 = vmatprep.mubr.msk.bf16.mxu0 %vm16228_vm0, %v16227_v53  ;;  %v1661_v0 = vrot.slane %v16712_v48, %v16603_v18 }
 0x544   : > { %15147 = vmatprep.subr.bf16.mxu0 %v16227_v53 }
 0x54a   : > { %15138 = vmatmul.mubr.bf16.vlgmr.msra.gmra.mxu0 %v14627_v17 }
 0x54b   : > { %15148 = vmatpush3.bf16.xpose.msra.mxu0 %v14632_v11  ;;  %15149 = vmatprep.mubr.msk.bf16.mxu0 %vm16228_vm0, %v16227_v53 }
 0x54c   : > { %15159 = vmatprep.subr.bf16.mxu0 %v16227_v53 }
 0x552   : > { %15150 = vmatmul.mubr.bf16.vlgmr.msra.gmra.mxu0 %v14631_v6 }
 0x553   : > { %15160 = vmatpush3.bf16.xpose.msra.mxu0 %v14636_v16  ;;  %15161 = vmatprep.mubr.msk.bf16.mxu0 %vm16228_vm0, %v16227_v53 }
 0x554   : > { %15171 = vmatprep.subr.bf16.mxu0 %v16227_v53 }
 0x55a   : > { %15162 = vmatmul.mubr.bf16.vlgmr.msra.gmra.mxu0 %v14635_v30 }
 0x55b   : > { %15172 = vmatpush3.bf16.xpose.msra.mxu0 %v14640_v8  ;;  %15173 = vmatprep.mubr.msk.bf16.mxu0 %vm16228_vm0, %v16227_v53 }
 0x562   : > { %15174 = vmatmul.mubr.bf16.vlgmr.msra.gmra.mxu0 %v14639_v31  ;;  %v8804_v36 = vpop.f32.mrf.mxu0 }
 0x563   : > { %v8847_v38 = vpop.f32.mrf.mxu1  ;;  %v8805_v12 = vadd.f32 %v8804_v36, %v1653_v26 }
 0x564   : > { %v8806_v37 = vpop.f32.mrf.mxu0 }
 0x565   : > { %v8849_v57 = vpop.f32.mrf.mxu1  ;;  %v8807_v41 = vadd.f32 %v8806_v37, %v1657_v40  ;;  %v8848_v23 = vadd.f32 %v8847_v38, %v8805_v12 }
 0x566   : > { %v8808_v39 = vpop.f32.mrf.mxu0 }
 0x567   : > { %v8851_v29 = vpop.f32.mrf.mxu1  ;;  %v8809_v47 = vadd.f32 %v8808_v39, %v1653_v26  ;;  %v8850_v59 = vadd.f32 %v8849_v57, %v8807_v41 }
 0x568   : > { %v8810_v43 = vpop.f32.mrf.mxu0 }
 0x569   : > { %v8811_v22 = vadd.f32 %v8810_v43, %v1657_v40  ;;  %v8853_v49 = vpop.f32.mrf.mxu1  ;;  %v8852_v54 = vadd.f32 %v8851_v29, %v8809_v47 }
 0x56b   : > { %v8854_v58 = vadd.f32 %v8853_v49, %v8811_v22 }
 0x5a2   : > { %v8890_v46 = vpop.f32.mrf.mxu0 }
 0x5a3   : > { %v8891_v33 = vadd.f32 %v8890_v46, %v8848_v23  ;;  %v8933_v2 = vpop.f32.mrf.mxu1 }
 0x5a4   : > { %v8892_v50 = vpop.f32.mrf.mxu0  ;;  %v8934_v3 = vadd.f32 %v8933_v2, %v1661_v0 }
 0x5a5   : > { %v8893_v28 = vadd.f32 %v8892_v50, %v8850_v59  ;;  %v8935_v63 = vpop.f32.mrf.mxu1 }
 0x5a6   : > { %v8894_v52 = vpop.f32.mrf.mxu0  ;;  %v8936_v4 = vadd.f32 %v8935_v63, %v1665_v51 }
 0x5a7   : > { %v15041_v56 = vpack.c.bf16 %v8893_v28, %v8891_v33  ;;  %v8895_v34 = vadd.f32 %v8894_v52, %v8852_v54  ;;  %v8937_v1 = vpop.f32.mrf.mxu1 }
 0x5a8   : > { %v8896_v60 = vpop.f32.mrf.mxu0  ;;  %v8938_v14 = vadd.f32 %v8937_v1, %v1661_v0 }
 0x5a9   : > { %9182 = vst [vmem:[#allocation2 + $0x50] sm:$0xff] %v15041_v56  ;;  %v8897_v42 = vadd.f32 %v8896_v60, %v8854_v58  ;;  %v8939_v17 = vpop.f32.mrf.mxu1 }
 0x5aa   : > { %v8940_v21 = vadd.f32 %v8939_v17, %v1665_v51 }
 0x5ab   : > { %v15053_v61 = vpack.c.bf16 %v8897_v42, %v8895_v34 }
 0x5ad   : > { %9194 = vst [vmem:[#allocation2 + $0xb0] sm:$0xff] %v15053_v61 }
 0x5e2   : > { %v8976_v11 = vpop.f32.mrf.mxu0 }
 0x5e3   : > { %v8977_v55 = vadd.f32 %v8976_v11, %v8934_v3  ;;  %v9019_v13 = vpop.f32.mrf.mxu1 }
 0x5e4   : > { %v8978_v6 = vpop.f32.mrf.mxu0 }
 0x5e5   : > { %v8979_v16 = vadd.f32 %v8978_v6, %v8936_v4  ;;  %v9021_v25 = vpop.f32.mrf.mxu1  ;;  %v9020_v32 = vadd.f32 %v9019_v13, %v8977_v55 }
 0x5e6   : > { %v8980_v27 = vpop.f32.mrf.mxu0 }
 0x5e7   : > { %v8981_v30 = vadd.f32 %v8980_v27, %v8938_v14  ;;  %v9022_v18 = vadd.f32 %v9021_v25, %v8979_v16  ;;  %v9023_v44 = vpop.f32.mrf.mxu1 }
 0x5e8   : > { %v8982_v8 = vpop.f32.mrf.mxu0 }
 0x5e9   : > { %v15042_v48 = vpack.c.bf16 %v9022_v18, %v9020_v32  ;;  %v8983_v35 = vadd.f32 %v8982_v8, %v8940_v21  ;;  %v9025_v45 = vpop.f32.mrf.mxu1  ;;  %v9024_v36 = vadd.f32 %v9023_v44, %v8981_v30 }
 0x5ea   : > { %v9257_v31 = vpop.f32.mrf.mxu0 }
 0x5eb   : > { %9183 = vst [vmem:[#allocation2 + $0x58] sm:$0xff] %v15042_v48  ;;  %v9026_v37 = vadd.f32 %v9025_v45, %v8983_v35  ;;  %v16772_v38 = vadd.f32 %v16769_v20, %v9257_v31 }
 0x5ec   : > { %v15091_v26 = vpop.f32.mrf.mxu0 }
 0x5ed   : > { %v15054_v40 = vpack.c.bf16 %v9026_v37, %v9024_v36  ;;  %v9265_v39 = vsel %vm9264_vm1, %v16772_v38, -inf }
 0x5ee   : > { %9266 = vmax.xlane.f32.xlu0 %v9265_v39  ;;  %v9260_v57 = vpop.f32.mrf.mxu0 }
 0x5ef   : > { %9195 = vst [vmem:[#allocation2 + $0xb8] sm:$0xff] %v15054_v40  ;;  %v16777_v12 = vadd.f32 %v16769_v20, %v9260_v57 }
 0x5f0   : > { %v15092_v41 = vpop.f32.mrf.mxu0 }
 0x5f1   : > { %v9268_v43 = vsel %vm9264_vm1, %v16777_v12, -inf }
 0x5f2   : > { %9269 = vmax.xlane.f32.xlu0 %v9268_v43  ;;  %v9409_v29 = vpop.f32.mrf.mxu0 }
 0x5f3   : > { %v16782_v46 = vadd.f32 %v16769_v20, %v9409_v29 }
 0x5f4   : > { %v15103_v23 = vpop.f32.mrf.mxu0 }
 0x5f5   : > { %v9416_v47 = vsel %vm9264_vm1, %v16782_v46, -inf }
 0x5f6   : > { %9417 = vmax.xlane.f32.xlu1 %v9416_v47  ;;  %v9412_v59 = vpop.f32.mrf.mxu0 }
 0x5f7   : > { %v16787_v22 = vadd.f32 %v16769_v20, %v9412_v59 }
 0x5f8   : > { %v15104_v49 = vpop.f32.mrf.mxu0 }
 0x5f9   : > { %v9419_v50 = vsel %vm9264_vm1, %v16787_v22, -inf }
 0x5fa   : > { %9420 = vmax.xlane.f32.xlu1 %v9419_v50  ;;  %v9550_v33 = vpop.f32.mrf.mxu0 }
 0x5fb   : > { %v16792_v28 = vadd.f32 %v16769_v20, %v9550_v33 }
 0x5fc   : > { %v15115_v52 = vpop.f32.mrf.mxu0 }
 0x5fd   : > { %v9557_v54 = vsel %vm9264_vm1, %v16792_v28, -inf }
 0x5fe   : > { %9558 = vmax.xlane.f32.xlu0 %v9557_v54  ;;  %v9553_v58 = vpop.f32.mrf.mxu0 }
 0x5ff   : > { %v16797_v56 = vadd.f32 %v16769_v20, %v9553_v58 }
 0x600   : > { %v15116_v60 = vpop.f32.mrf.mxu0 }
 0x601   : > { %v9560_v34 = vsel %vm9264_vm1, %v16797_v56, -inf }
 0x602   : > { %9561 = vmax.xlane.f32.xlu1 %v9560_v34  ;;  %v9691_v42 = vpop.f32.mrf.mxu0 }
 0x603   : > { %v16802_v61 = vadd.f32 %v16769_v20, %v9691_v42 }
 0x604   : > { %v15127_v2 = vpop.f32.mrf.mxu0 }
 0x605   : > { %v9698_v63 = vsel %vm9264_vm1, %v16802_v61, -inf }
 0x606   : > { %9699 = vmax.xlane.f32.xlu0 %v9698_v63  ;;  %v9694_v0 = vpop.f32.mrf.mxu0 }
 0x607   : > { %v16807_v1 = vadd.f32 %v16769_v20, %v9694_v0 }
 0x608   : > { %v15128_v51 = vpop.f32.mrf.mxu0 }
 0x609   : > { %v9701_v3 = vsel %vm9264_vm1, %v16807_v1, -inf }
 0x60a   : > { %9702 = vmax.xlane.f32.xlu1 %v9701_v3  ;;  %v9832_v17 = vpop.f32.mrf.mxu0 }
 0x60b   : > { %v16812_v4 = vadd.f32 %v16769_v20, %v9832_v17 }
 0x60c   : > { %v15139_v11 = vpop.f32.mrf.mxu0 }
 0x60d   : > { %v9839_v14 = vsel %vm9264_vm1, %v16812_v4, -inf }
 0x60e   : > { %9840 = vmax.xlane.f32.xlu0 %v9839_v14  ;;  %v9835_v55 = vpop.f32.mrf.mxu0 }
 0x60f   : > { %v16817_v13 = vadd.f32 %v16769_v20, %v9835_v55 }
 0x610   : > { %v15140_v6 = vpop.f32.mrf.mxu0 }
 0x611   : > { %v9842_v21 = vsel %vm9264_vm1, %v16817_v13, -inf }
 0x612   : > { %9843 = vmax.xlane.f32.xlu1 %v9842_v21  ;;  %v9973_v16 = vpop.f32.mrf.mxu0 }
 0x613   : > { %v16822_v25 = vadd.f32 %v16769_v20, %v9973_v16 }
 0x614   : > { %v15151_v27 = vpop.f32.mrf.mxu0 }
 0x615   : > { %v9980_v32 = vsel %vm9264_vm1, %v16822_v25, -inf }
 0x616   : > { %9981 = vmax.xlane.f32.xlu0 %v9980_v32  ;;  %v9976_v30 = vpop.f32.mrf.mxu0 }
 0x617   : > { %v16827_v18 = vadd.f32 %v16769_v20, %v9976_v30 }
 0x618   : > { %v15152_v44 = vpop.f32.mrf.mxu0 }
 0x619   : > { %v9983_v8 = vsel %vm9264_vm1, %v16827_v18, -inf }
 0x61a   : > { %9984 = vmax.xlane.f32.xlu1 %v9983_v8  ;;  %v10114_v48 = vpop.f32.mrf.mxu0 }
 0x61b   : > { %v16832_v35 = vadd.f32 %v16769_v20, %v10114_v48 }
 0x61c   : > { %v15163_v45 = vpop.f32.mrf.mxu0 }
 0x61d   : > { %v10121_v31 = vsel %vm9264_vm1, %v16832_v35, -inf }
 0x61e   : > { %10122 = vmax.xlane.f32.xlu0 %v10121_v31  ;;  %v10117_v36 = vpop.f32.mrf.mxu0 }
 0x61f   : > { %v16837_v37 = vadd.f32 %v16769_v20, %v10117_v36 }
 0x620   : > { %v15164_v26 = vpop.f32.mrf.mxu0 }
 0x621   : > { %v10124_v40 = vsel %vm9264_vm1, %v16837_v37, -inf }
 0x622   : > { %10125 = vmax.xlane.f32.xlu1 %v10124_v40  ;;  %v10255_v39 = vpop.f32.mrf.mxu0 }
 0x623   : > { %v16842_v57 = vadd.f32 %v16769_v20, %v10255_v39 }
 0x624   : > { %v15175_v41 = vpop.f32.mrf.mxu0 }
 0x625   : > { %v10262_v43 = vsel %vm9264_vm1, %v16842_v57, -inf }
 0x626   : > { %10263 = vmax.xlane.f32.xlu0 %v10262_v43  ;;  %v10258_v29 = vpop.f32.mrf.mxu0 }
 0x627   : > { %v16847_v23 = vadd.f32 %v16769_v20, %v10258_v29 }
 0x628   : > { %v15176_v47 = vpop.f32.mrf.mxu0 }
 0x629   : > { %v10265_v59 = vsel %vm9264_vm1, %v16847_v23, -inf }
 0x62a   : > { %10266 = vmax.xlane.f32.xlu1 %v10265_v59 }
 0x677   : > { %v9267_v49 = vpop.xlane.xlu0 %9266 }
 0x678   : > { %v9271_v50 = vsub.f32 %v16772_v38, %v9267_v49 }
 0x67a   : > { %v9273_v33 = vmul.f32 1.442695, %v9271_v50 }
 0x67b   : > { %v9270_v52 = vpop.xlane.xlu0 %9269 }
 0x67c   : > { %15875 = vpow2.f32 %v9273_v33  ;;  %v9272_v54 = vsub.f32 %v16777_v12, %v9270_v52 }
 0x67e   : > { %v9275_v58 = vmul.f32 1.442695, %v9272_v54 }
 0x67f   : > { %v9418_v60 = vpop.xlane.xlu1 %9417 }
 0x680   : > { %15877 = vpow2.f32 %v9275_v58  ;;  %v9422_v34 = vsub.f32 %v16782_v46, %v9418_v60 }
 0x682   : > { %v9424_v20 = vmul.f32 1.442695, %v9422_v34 }
 0x683   : > { %v9421_v42 = vpop.xlane.xlu1 %9420 }
 0x684   : > { %15879 = vpow2.f32 %v9424_v20  ;;  %v9423_v2 = vsub.f32 %v16787_v22, %v9421_v42 }
 0x686   : > { %v9426_v63 = vmul.f32 1.442695, %v9423_v2 }
 0x687   : > { %v9559_v0 = vpop.xlane.xlu0 %9558 }
 0x688   : > { %15881 = vpow2.f32 %v9426_v63  ;;  %v9563_v38 = vsub.f32 %v16792_v28, %v9559_v0 }
 0x689   : > { %v16856_v51 = vpop.eup %15875 }
 0x68a   : > { %v9565_v3 = vmul.f32 1.442695, %v9563_v38  ;;  %v9277_v12 = vsel %vm9264_vm1, %v16856_v51, 0.0 }
 0x68b   : > { %v9562_v17 = vpop.xlane.xlu1 %9561  ;;  %9278 = vadd.xlane.f32.xlu0 %v9277_v12 }
 0x68c   : > { %15883 = vpow2.f32 %v9565_v3  ;;  %v9564_v46 = vsub.f32 %v16797_v56, %v9562_v17 }
 0x68d   : > { %v16861_v11 = vpop.eup %15877 }
 0x68e   : > { %v9567_v14 = vmul.f32 1.442695, %v9564_v46  ;;  %v9280_v22 = vsel %vm9264_vm1, %v16861_v11, 0.0 }
 0x68f   : > { %v9700_v55 = vpop.xlane.xlu0 %9699  ;;  %9281 = vadd.xlane.f32.xlu1 %v9280_v22 }
 0x690   : > { %15885 = vpow2.f32 %v9567_v14  ;;  %v9704_v28 = vsub.f32 %v16802_v61, %v9700_v55 }
 0x691   : > { %v16866_v6 = vpop.eup %15879 }
 0x692   : > { %v9706_v21 = vmul.f32 1.442695, %v9704_v28  ;;  %v9428_v16 = vsel %vm9264_vm1, %v16866_v6, 0.0 }
 0x693   : > { %v9703_v27 = vpop.xlane.xlu1 %9702  ;;  %9429 = vadd.xlane.f32.xlu0 %v9428_v16 }
 0x694   : > { %15887 = vpow2.f32 %v9706_v21  ;;  %v9705_v56 = vsub.f32 %v16807_v1, %v9703_v27 }
 0x695   : > { %v16871_v32 = vpop.eup %15881 }
 0x696   : > { %v9708_v30 = vmul.f32 1.442695, %v9705_v56  ;;  %v9431_v44 = vsel %vm9264_vm1, %v16871_v32, 0.0  ;;  %v16229_v56 = vmov 0  }
 0x697   : > { %v9841_v8 = vpop.xlane.xlu0 %9840  ;;  %9432 = vadd.xlane.f32.xlu1 %v9431_v44  ;;  %15288 = vset.pattern.permute.xlu0 %v16229_v56  ;;  %v15301_v44 = vld [vmem:[#allocation11 + $0x154] ss:$24 sps:$4 sm:$0xff]  }
 0x698   : > { %15889 = vpow2.f32 %v9708_v30  ;;  %v9845_v61 = vsub.f32 %v16812_v4, %v9841_v8  ;;  %15289 = vset.pattern.permute.xlu1 %v16229_v56  ;;  %v15299_v30 = vld [vmem:[#allocation11 + $0x150] ss:$24 sps:$4 sm:$0xff]   ;;  %12713 = vmatprep.subr.bf16.mxu0 %v15301_v44 }
 0x699   : > { %v16876_v48 = vpop.eup %15883  ;;  %v9203_v8 = vld [vmem:[%s404_s12] sm:$0xff]  ;;  %12714 = vmatpush1.bf16.msra.mxu0 %v15299_v30 }
 0x69a   : > { %v9847_v45 = vmul.f32 1.442695, %v9845_v61  ;;  %v9569_v31 = vsel %vm9264_vm1, %v16876_v48, 0.0  ;;  %v9204_v61 = vld [vmem:[%s404_s12 + $0x8] sm:$0xff]  ;;  %v9361_v44 = vld [vmem:[#allocation2 + $0x44] sm:$0xf] }
 0x69b   : > { %v9844_v36 = vpop.xlane.xlu1 %9843  ;;  %9570 = vadd.xlane.f32.xlu0 %v9569_v31  ;;  %v10345_v31 = vsel %vm10344_vm2, %v9203_v8, 0.0 }
 0x69c   : > { %15891 = vpow2.f32 %v9847_v45  ;;  %v9846_v1 = vsub.f32 %v16817_v13, %v9844_v36  ;;  %v15304_v45 = vld [vmem:[#allocation11 + $0x124] ss:$24 sps:$4 sm:$0xff]   ;;  %v10346_v36 = vsel %vm10344_vm2, %v9204_v61, 0.0 }
 0x69d   : > { %v16881_v26 = vpop.eup %15885  ;;  %12715 = vmatprep.subr.bf16.mxu0 %v15304_v45 }
 0x69e   : > { %v9849_v40 = vmul.f32 1.442695, %v9846_v1  ;;  %v9572_v39 = vsel %vm9264_vm1, %v16881_v26, 0.0  ;;  %v10347_v1 = vadd.f32 %v10346_v36, %v10345_v31  ;;  %v9503_v36 = vld [vmem:[#allocation2 + $0xa8] sm:$0xf] }
 0x69f   : > { %v9982_v41 = vpop.xlane.xlu0 %9981  ;;  %9573 = vadd.xlane.f32.xlu1 %v9572_v39 }
 0x6a0   : > { %15893 = vpow2.f32 %v9849_v40  ;;  %v9986_v4 = vsub.f32 %v16822_v25, %v9982_v41  ;;  %v15302_v40 = vld [vmem:[#allocation11 + $0x120] ss:$24 sps:$4 sm:$0xff]   ;;  %v10348_v39 = vrot.slane %v10347_v1, 4  ;;  %v15307_v41 = vld [vmem:[#allocation11 + $0xf4] ss:$24 sps:$4 sm:$0xff]  }
 0x6a1   : > { %v16886_v43 = vpop.eup %15887  ;;  %12716 = vmatpush1.bf16.msra.mxu0 %v15302_v40 }
 0x6a2   : > { %v9988_v29 = vmul.f32 1.442695, %v9986_v4  ;;  %v9710_v47 = vsel %vm9264_vm1, %v16886_v43, 0.0  ;;  %v10349_v4 = vadd.f32 %v10348_v39, %v10347_v1  ;;  %12717 = vmatprep.subr.bf16.mxu0 %v15307_v41  ;;  %v9502_v39 = vld [vmem:[#allocation2 + $0x48] sm:$0xf] }
 0x6a3   : > { %v9985_v59 = vpop.xlane.xlu1 %9984  ;;  %9711 = vadd.xlane.f32.xlu0 %v9710_v47  ;;  %v14621_v41 = vcombine.low %v9502_v39, %v9503_v36  ;;  %v10207_v36 = vld [vmem:[#allocation2 + $0x5c] sm:$0xf] }
 0x6a4   : > { %15895 = vpow2.f32 %v9988_v29  ;;  %v9987_v13 = vsub.f32 %v16827_v18, %v9985_v59  ;;  %v15305_v29 = vld [vmem:[#allocation11 + $0xf0] ss:$24 sps:$4 sm:$0xff]   ;;  %v10350_v47 = vrot.slane %v10349_v4, 2  ;;  %v15310_v59 = vld [vmem:[#allocation11 + $0xc4] ss:$24 sps:$4 sm:$0xff]  }
 0x6a5   : > { %v16891_v49 = vpop.eup %15889  ;;  %12718 = vmatpush1.bf16.msra.mxu0 %v15305_v29 }
 0x6a6   : > { %v9990_v50 = vmul.f32 1.442695, %v9987_v13  ;;  %v9713_v33 = vsel %vm9264_vm1, %v16891_v49, 0.0  ;;  %v10351_v13 = vadd.f32 %v10350_v47, %v10349_v4  ;;  %12719 = vmatprep.subr.bf16.mxu0 %v15310_v59  ;;  %v9644_v59 = vld [vmem:[#allocation2 + $0xac] sm:$0xf] }
 0x6a7   : > { %v10123_v52 = vpop.xlane.xlu0 %10122  ;;  %9714 = vadd.xlane.f32.xlu1 %v9713_v33 }
 0x6a8   : > { %15897 = vpow2.f32 %v9990_v50  ;;  %v10127_v25 = vsub.f32 %v16832_v35, %v10123_v52  ;;  %v15308_v50 = vld [vmem:[#allocation11 + $0xc0] ss:$24 sps:$4 sm:$0xff]   ;;  %v10352_v33 = vrot.slane %v10351_v13, 1  ;;  %v15313_v52 = vld [vmem:[#allocation11 + $0x94] ss:$24 sps:$4 sm:$0xff]  }
 0x6a9   : > { %v16896_v54 = vpop.eup %15891  ;;  %12720 = vmatpush1.bf16.msra.mxu0 %v15308_v50 }
 0x6aa   : > { %v10129_v58 = vmul.f32 1.442695, %v10127_v25  ;;  %v9851_v60 = vsel %vm9264_vm1, %v16896_v54, 0.0  ;;  %v10353_v25 = vadd.f32 %v10352_v33, %v10351_v13  ;;  %12721 = vmatprep.subr.bf16.mxu0 %v15313_v52  ;;  %v9643_v33 = vld [vmem:[#allocation2 + $0x4c] sm:$0xf] }
 0x6ab   : > { %v10126_v34 = vpop.xlane.xlu1 %10125  ;;  %9852 = vadd.xlane.f32.xlu0 %v9851_v60  ;;  %v14625_v52 = vcombine.low %v9643_v33, %v9644_v59  ;;  %v15326_v59 = vld [vmem:[#allocation11 + $0x3f0] ss:$24 sps:$4 sm:$0xff]  }
 0x6ac   : > { %15899 = vpow2.f32 %v10129_v58  ;;  %v10128_v18 = vsub.f32 %v16837_v37, %v10126_v34  ;;  %v15311_v58 = vld [vmem:[#allocation11 + $0x90] ss:$24 sps:$4 sm:$0xff]   ;;  %v10354_v60 = vmax.f32 %v10353_v25, 1e-09  ;;  %v15319_v34 = vld [vmem:[#allocation11 + $0x64] ss:$24 sps:$4 sm:$0xff]  }
 0x6ad   : > { %v16901_v20 = vpop.eup %15893  ;;  %12722 = vmatpush1.bf16.msra.mxu0 %v15311_v58  ;;  %v15335_v33 = vld [vmem:[#allocation11 + $0x2d0] ss:$24 sps:$4 sm:$0xff]  }
 0x6ae   : > { %v10131_v42 = vmul.f32 1.442695, %v10128_v18  ;;  %v9854_v2 = vsel %vm9264_vm1, %v16901_v20, 0.0  ;;  %v15317_v18 = vld [vmem:[#allocation11 + $0x60] ss:$24 sps:$4 sm:$0xff]   ;;  %12723 = vmatprep.subr.bf16.mxu0 %v15319_v34 }
 0x6af   : > { %v10264_v63 = vpop.xlane.xlu0 %10263  ;;  %9855 = vadd.xlane.f32.xlu1 %v9854_v2  ;;  %v15323_v2 = vld [vmem:[#allocation11 + $0x30] ss:$24 sps:$4 sm:$0xff]   ;;  %v9785_v34 = vld [vmem:[#allocation2 + $0xb0] sm:$0xf] }
 0x6b0   : > { %15901 = vpow2.f32 %v10131_v42  ;;  %v10268_v35 = vsub.f32 %v16842_v57, %v10264_v63  ;;  %v15325_v42 = vld [vmem:[#allocation11 + $0x34] ss:$24 sps:$4 sm:$0xff]   ;;  %v15331_v63 = vld [vmem:[#allocation11 + $0x4] ss:$24 sps:$4 sm:$0xff]  }
 0x6b1   : > { %v16906_v0 = vpop.eup %15895  ;;  %12724 = vmatpush1.bf16.msra.mxu0 %v15317_v18 }
 0x6b2   : > { %v10270_v38 = vmul.f32 1.442695, %v10268_v35  ;;  %v9992_v3 = vsel %vm9264_vm1, %v16906_v0, 0.0  ;;  %12725 = vmatprep.subr.bf16.mxu0 %v15325_v42  ;;  %v15329_v35 = vld [vmem:[#allocation11] ss:$24 sps:$4 sm:$0xff]  }
 0x6b3   : > { %9993 = vadd.xlane.f32.xlu0 %v9992_v3  ;;  %v10267_v12 = vpop.xlane.xlu1 %10266 }
 0x6b4   : > { %15903 = vpow2.f32 %v10270_v38  ;;  %v10269_v37 = vsub.f32 %v16847_v23, %v10267_v12 }
 0x6b5   : > { %v16911_v17 = vpop.eup %15897  ;;  %12726 = vmatpush1.bf16.msra.mxu0 %v15323_v2  ;;  %v9784_v2 = vld [vmem:[#allocation2 + $0x50] sm:$0xf] }
 0x6b6   : > { %v10272_v46 = vmul.f32 1.442695, %v10269_v37  ;;  %v9995_v14 = vsel %vm9264_vm1, %v16911_v17, 0.0  ;;  %12727 = vmatprep.subr.bf16.mxu0 %v15331_v63  ;;  %v14629_v63 = vcombine.low %v9784_v2, %v9785_v34  ;;  %v15352_v34 = vld [vmem:[#allocation11 + $0x334] ss:$24 sps:$4 sm:$0xff]  }
 0x6b7   : > { %9996 = vadd.xlane.f32.xlu1 %v9995_v14  ;;  %v15353_v2 = vld [vmem:[#allocation11 + $0x240] ss:$24 sps:$4 sm:$0xff]  }
 0x6b8   : > { %15905 = vpow2.f32 %v10272_v46 }
 0x6b9   : > { %v16915_v57 = vpop.eup %15899  ;;  %12728 = vmatpush1.bf16.msra.mxu0 %v15329_v35 }
 0x6ba   : > { %v10133_v22 = vsel %vm9264_vm1, %v16915_v57, 0.0 }
 0x6bb   : > { %10134 = vadd.xlane.f32.xlu0 %v10133_v22 }
 0x6bd   : > { %v16919_v55 = vpop.eup %15901 }
 0x6be   : > { %v10136_v23 = vsel %vm9264_vm1, %v16919_v55, 0.0 }
 0x6bf   : > { %10137 = vadd.xlane.f32.xlu1 %v10136_v23 }
 0x6c1   : > { %v16923_v28 = vpop.eup %15903 }
 0x6c2   : > { %v10274_v21 = vsel %vm9264_vm1, %v16923_v28, 0.0 }
 0x6c3   : > { %10275 = vadd.xlane.f32.xlu0 %v10274_v21 }
 0x6c5   : > { %v16927_v16 = vpop.eup %15905 }
 0x6c6   : > { %v10277_v27 = vsel %vm9264_vm1, %v16927_v16, 0.0 }
 0x6c7   : > { %10278 = vadd.xlane.f32.xlu1 %v10277_v27  ;;  %v9362_v27 = vld [vmem:[#allocation2 + $0xa4] sm:$0xf] }
 0x6d8   : > { %9345 = vperm.xlu1 %15289, %v9204_v61  }
 0x6d9   : > { %9340 = vperm.xlu0 %15288, %v9203_v8   ;;  %v14617_v8 = vcombine.low %v9361_v44, %v9362_v27 }
 0x6dc   : > { %10357 = vperm.xlu1 %15289, %v10354_v60  }
 0x714   : > { %v9279_v38 = vpop.xlane.xlu0 %9278 }
 0x715   : > { %15907 = vrcp.f32 %v9279_v38 }
 0x718   : > { %v9282_v3 = vpop.xlane.xlu1 %9281 }
 0x719   : > { %15909 = vrcp.f32 %v9282_v3 }
 0x71c   : > { %v9430_v12 = vpop.xlane.xlu0 %9429 }
 0x71d   : > { %15911 = vrcp.f32 %v9430_v12  ;;  %v9926_v12 = vld [vmem:[#allocation2 + $0xb4] sm:$0xf] }
 0x720   : > { %v9433_v37 = vpop.xlane.xlu1 %9432 }
 0x721   : > { %15913 = vrcp.f32 %v9433_v37 }
 0x722   : > { %v15908_v46 = vpop.eup %15907 }
 0x723   : > { %v9285_v23 = vmul.f32 %v15908_v46, %v16856_v51 }
 0x724   : > { %v9571_v14 = vpop.xlane.xlu0 %9570 }
 0x725   : > { %15915 = vrcp.f32 %v9571_v14  ;;  %v9925_v14 = vld [vmem:[#allocation2 + $0x54] sm:$0xf] }
 0x726   : > { %v15910_v22 = vpop.eup %15909 }
 0x727   : > { %v9286_v21 = vmul.f32 %v15910_v22, %v16861_v11  ;;  %v14633_v22 = vcombine.low %v9925_v14, %v9926_v12  ;;  %v15362_v12 = vld [vmem:[#allocation11 + $0x5d0] ss:$24 sps:$4 sm:$0xff]   ;;  %v15373_v14 = vld [vmem:[#allocation11 + $0x1b4] ss:$24 sps:$4 sm:$0xff]  }
 0x728   : > { %v9574_v56 = vpop.xlane.xlu1 %9573 }
 0x729   : > { %15917 = vrcp.f32 %v9574_v56  ;;  %v9287_v30 = vpack.c.bf16 %v9286_v21, %v9285_v23  ;;  %v10067_v56 = vld [vmem:[#allocation2 + $0xb8] sm:$0xf] }
 0x72a   : > { %v15912_v61 = vpop.eup %15911 }
 0x72b   : > { %15096 = vmatmul.mubr.msk.bf16.vlgmr.msra.gmra.mxu1 %vm9264_vm1, %v9287_v30  ;;  %v9436_v51 = vmul.f32 %v15912_v61, %v16866_v6 }
 0x72c   : > { %15106 = vmatpush3.bf16.msra.mxu1 %v14617_v8  ;;  %v9712_v45 = vpop.xlane.xlu0 %9711  ;;  %15107 = vmatprep.mubr.msk.bf16.mxu1 %vm16228_vm0, %v16227_v53  ;;  %v10066_v8 = vld [vmem:[#allocation2 + $0x58] sm:$0xf] }
 0x72d   : > { %15117 = vmatprep.subr.bf16.mxu1 %v16227_v53  ;;  %15919 = vrcp.f32 %v9712_v45  ;;  %v14637_v61 = vcombine.low %v10066_v8, %v10067_v56  ;;  %v15382_v56 = vld [vmem:[#allocation11 + $0x544] ss:$24 sps:$4 sm:$0xff]   ;;  %v15385_v8 = vld [vmem:[#allocation11 + $0x514] ss:$24 sps:$4 sm:$0xff]  }
 0x72e   : > { %v15914_v31 = vpop.eup %15913 }
 0x72f   : > { %v9437_v11 = vmul.f32 %v15914_v31, %v16871_v32 }
 0x730   : > { %v9715_v1 = vpop.xlane.xlu1 %9714 }
 0x731   : > { %15921 = vrcp.f32 %v9715_v1  ;;  %v9438_v40 = vpack.c.bf16 %v9437_v11, %v9436_v51  ;;  %v10208_v51 = vld [vmem:[#allocation2 + $0xbc] sm:$0xf]  ;;  %v15316_v1 = vld [vmem:[#allocation11 + $0x454] ss:$24 sps:$4 sm:$0xff]  }
 0x732   : > { %v15916_v4 = vpop.eup %15915 }
 0x733   : > { %15108 = vmatmul.mubr.msk.bf16.vlgmr.msra.gmra.mxu1 %vm9264_vm1, %v9438_v40  ;;  %v9577_v6 = vmul.f32 %v15916_v4, %v16876_v48  ;;  %v14641_v40 = vcombine.low %v10207_v36, %v10208_v51  ;;  %v15403_v51 = vld [vmem:[#allocation11 + $0x484] ss:$24 sps:$4 sm:$0xff]   ;;  %v15412_v36 = vld [vmem:[#allocation11 + $0xa54] ss:$24 sps:$4 sm:$0xff]  }
 0x734   : > { %15118 = vmatpush3.bf16.msra.mxu1 %v14621_v41  ;;  %v9853_v29 = vpop.xlane.xlu0 %9852  ;;  %15119 = vmatprep.mubr.msk.bf16.mxu1 %vm16228_vm0, %v16227_v53 }
 0x735   : > { %15129 = vmatprep.subr.bf16.mxu1 %v16227_v53  ;;  %15923 = vrcp.f32 %v9853_v29  ;;  %v15314_v29 = vld [vmem:[#allocation11 + $0x450] ss:$24 sps:$4 sm:$0xff]  }
 0x736   : > { %v15918_v47 = vpop.eup %15917 }
 0x737   : > { %v9578_v32 = vmul.f32 %v15918_v47, %v16881_v26  ;;  %v15322_v47 = vld [vmem:[#allocation11 + $0x424] ss:$24 sps:$4 sm:$0xff]  }
 0x738   : > { %v9856_v13 = vpop.xlane.xlu1 %9855 }
 0x739   : > { %15925 = vrcp.f32 %v9856_v13  ;;  %v9579_v50 = vpack.c.bf16 %v9578_v32, %v9577_v6  ;;  %v15320_v6 = vld [vmem:[#allocation11 + $0x420] ss:$24 sps:$4 sm:$0xff]   ;;  %v15328_v32 = vld [vmem:[#allocation11 + $0x3f4] ss:$24 sps:$4 sm:$0xff]   ;;  %v15334_v13 = vld [vmem:[#allocation11 + $0x3c4] ss:$24 sps:$4 sm:$0xff]  }
 0x73a   : > { %v15920_v25 = vpop.eup %15919 }
 0x73b   : > { %15120 = vmatmul.mubr.msk.bf16.vlgmr.msra.gmra.mxu1 %vm9264_vm1, %v9579_v50  ;;  %v9718_v48 = vmul.f32 %v15920_v25, %v16886_v43  ;;  %v15332_v50 = vld [vmem:[#allocation11 + $0x3c0] ss:$24 sps:$4 sm:$0xff]  }
 0x73c   : > { %15130 = vmatpush3.bf16.msra.mxu1 %v14625_v52  ;;  %v9994_v58 = vpop.xlane.xlu0 %9993  ;;  %15131 = vmatprep.mubr.msk.bf16.mxu1 %vm16228_vm0, %v16227_v53  ;;  %v15338_v52 = vld [vmem:[#allocation11 + $0x390] ss:$24 sps:$4 sm:$0xff]   ;;  %v15341_v25 = vld [vmem:[#allocation11 + $0x2a0] ss:$24 sps:$4 sm:$0xff]  }
 0x73d   : > { %15141 = vmatprep.subr.bf16.mxu1 %v16227_v53  ;;  %15927 = vrcp.f32 %v9994_v58  ;;  %v15346_v58 = vld [vmem:[#allocation11 + $0x364] ss:$24 sps:$4 sm:$0xff]  }
 0x73e   : > { %v15922_v60 = vpop.eup %15921 }
 0x73f   : > { %v9719_v26 = vmul.f32 %v15922_v60, %v16891_v49  ;;  %v15349_v60 = vld [vmem:[#allocation11 + $0x274] ss:$24 sps:$4 sm:$0xff]  }
 0x740   : > { %v9997_v18 = vpop.xlane.xlu1 %9996 }
 0x741   : > { %15929 = vrcp.f32 %v9997_v18  ;;  %v9720_v42 = vpack.c.bf16 %v9719_v26, %v9718_v48  ;;  %v15344_v48 = vld [vmem:[#allocation11 + $0x360] ss:$24 sps:$4 sm:$0xff]   ;;  %v15347_v26 = vld [vmem:[#allocation11 + $0x270] ss:$24 sps:$4 sm:$0xff]   ;;  %v15355_v18 = vld [vmem:[#allocation11 + $0x244] ss:$24 sps:$4 sm:$0xff]  }
 0x742   : > { %v15924_v35 = vpop.eup %15923 }
 0x743   : > { %15132 = vmatmul.mubr.msk.bf16.vlgmr.msra.gmra.mxu1 %vm9264_vm1, %v9720_v42  ;;  %v9859_v43 = vmul.f32 %v15924_v35, %v16896_v54  ;;  %v15350_v42 = vld [vmem:[#allocation11 + $0x330] ss:$24 sps:$4 sm:$0xff]   ;;  %v15361_v35 = vld [vmem:[#allocation11 + $0x214] ss:$24 sps:$4 sm:$0xff]  }
 0x744   : > { %15142 = vmatpush3.bf16.msra.mxu1 %v14629_v63  ;;  %v10135_v38 = vpop.xlane.xlu0 %10134  ;;  %15143 = vmatprep.mubr.msk.bf16.mxu1 %vm16228_vm0, %v16227_v53  ;;  %v15358_v63 = vld [vmem:[#allocation11 + $0x304] ss:$24 sps:$4 sm:$0xff]  }
 0x745   : > { %15153 = vmatprep.subr.bf16.mxu1 %v16227_v53  ;;  %15931 = vrcp.f32 %v10135_v38  ;;  %v15356_v38 = vld [vmem:[#allocation11 + $0x300] ss:$24 sps:$4 sm:$0xff]  }
 0x746   : > { %v15926_v3 = vpop.eup %15925 }
 0x747   : > { %v9860_v49 = vmul.f32 %v15926_v3, %v16901_v20  ;;  %v15359_v3 = vld [vmem:[#allocation11 + $0x210] ss:$24 sps:$4 sm:$0xff]  }
 0x748   : > { %v10138_v37 = vpop.xlane.xlu1 %10137 }
 0x749   : > { %15933 = vrcp.f32 %v10138_v37  ;;  %v9861_v46 = vpack.c.bf16 %v9860_v49, %v9859_v43  ;;  %v15364_v43 = vld [vmem:[#allocation11 + $0x5d4] ss:$24 sps:$4 sm:$0xff]   ;;  %v15367_v49 = vld [vmem:[#allocation11 + $0x1e4] ss:$24 sps:$4 sm:$0xff]   ;;  %v15365_v37 = vld [vmem:[#allocation11 + $0x1e0] ss:$24 sps:$4 sm:$0xff]  }
 0x74a   : > { %v15928_v23 = vpop.eup %15927 }
 0x74b   : > { %15144 = vmatmul.mubr.msk.bf16.vlgmr.msra.gmra.mxu1 %vm9264_vm1, %v9861_v46  ;;  %v10000_v54 = vmul.f32 %v15928_v23, %v16906_v0  ;;  %v15370_v46 = vld [vmem:[#allocation11 + $0x5a4] ss:$24 sps:$4 sm:$0xff]   ;;  %v15371_v23 = vld [vmem:[#allocation11 + $0x1b0] ss:$24 sps:$4 sm:$0xff]  }
 0x74c   : > { %15154 = vmatpush3.bf16.msra.mxu1 %v14633_v22  ;;  %v10276_v21 = vpop.xlane.xlu0 %10275  ;;  %15155 = vmatprep.mubr.msk.bf16.mxu1 %vm16228_vm0, %v16227_v53  ;;  %v15368_v22 = vld [vmem:[#allocation11 + $0x5a0] ss:$24 sps:$4 sm:$0xff]  }
 0x74d   : > { %15165 = vmatprep.subr.bf16.mxu1 %v16227_v53  ;;  %15935 = vrcp.f32 %v10276_v21  ;;  %v15376_v21 = vld [vmem:[#allocation11 + $0x574] ss:$24 sps:$4 sm:$0xff]  }
 0x74e   : > { %v15930_v27 = vpop.eup %15929 }
 0x74f   : > { %v10001_v20 = vmul.f32 %v15930_v27, %v16911_v17  ;;  %v15379_v27 = vld [vmem:[#allocation11 + $0x184] ss:$24 sps:$4 sm:$0xff]  }
 0x750   : > { %v10279_v30 = vpop.xlane.xlu1 %10278 }
 0x751   : > { %15937 = vrcp.f32 %v10279_v30  ;;  %v10002_v44 = vpack.c.bf16 %v10001_v20, %v10000_v54  ;;  %v15374_v54 = vld [vmem:[#allocation11 + $0x570] ss:$24 sps:$4 sm:$0xff]   ;;  %v15377_v20 = vld [vmem:[#allocation11 + $0x180] ss:$24 sps:$4 sm:$0xff]   ;;  %v15388_v30 = vld [vmem:[#allocation11 + $0x754] ss:$24 sps:$4 sm:$0xff]  }
 0x752   : > { %v15932_v45 = vpop.eup %15931 }
 0x753   : > { %15156 = vmatmul.mubr.msk.bf16.vlgmr.msra.gmra.mxu1 %vm9264_vm1, %v10002_v44  ;;  %v10141_v0 = vmul.f32 %v15932_v45, %v16915_v57  ;;  %v15380_v44 = vld [vmem:[#allocation11 + $0x540] ss:$24 sps:$4 sm:$0xff]   ;;  %v15391_v45 = vld [vmem:[#allocation11 + $0x4e4] ss:$24 sps:$4 sm:$0xff]  }
 0x754   : > { %15166 = vmatpush3.bf16.msra.mxu1 %v14637_v61  ;;  %15167 = vmatprep.mubr.msk.bf16.mxu1 %vm16228_vm0, %v16227_v53  ;;  %v15383_v61 = vld [vmem:[#allocation11 + $0x510] ss:$24 sps:$4 sm:$0xff]  }
 0x755   : > { %15177 = vmatprep.subr.bf16.mxu1 %v16227_v53 }
 0x756   : > { %v15934_v31 = vpop.eup %15933 }
 0x757   : > { %v10142_v17 = vmul.f32 %v15934_v31, %v16919_v55  ;;  %v15389_v31 = vld [vmem:[#allocation11 + $0x4e0] ss:$24 sps:$4 sm:$0xff]  }
 0x759   : > { %v10143_v11 = vpack.c.bf16 %v10142_v17, %v10141_v0  ;;  %v15397_v0 = vld [vmem:[#allocation11 + $0x4b4] ss:$24 sps:$4 sm:$0xff]   ;;  %v15395_v17 = vld [vmem:[#allocation11 + $0x4b0] ss:$24 sps:$4 sm:$0xff]  }
 0x75a   : > { %v15936_v39 = vpop.eup %15935 }
 0x75b   : > { %15168 = vmatmul.mubr.msk.bf16.vlgmr.msra.gmra.mxu1 %vm9264_vm1, %v10143_v11  ;;  %v10282_v4 = vmul.f32 %v15936_v39, %v16923_v28  ;;  %v15340_v28 = vld [vmem:[#allocation11 + $0x394] ss:$24 sps:$4 sm:$0xff]   ;;  %v15401_v11 = vld [vmem:[#allocation11 + $0x480] ss:$24 sps:$4 sm:$0xff]  }
 0x75c   : > { %15178 = vmatpush3.bf16.msra.mxu1 %v14641_v40  ;;  %15179 = vmatprep.mubr.msk.bf16.mxu1 %vm16228_vm0, %v16227_v53  ;;  %v15337_v53 = vld [vmem:[#allocation11 + $0x2d4] ss:$24 sps:$4 sm:$0xff]   ;;  %v16980_v40 = vpop.permute.xlu0 %9340 }
 0x75d   : > { %12754 = vmatprep.subr.bf16.mxu1 %v15316_v1  ;;  %12729 = vmatprep.subr.bf16.mxu0 %v15337_v53 }
 0x75e   : > { %v15938_v41 = vpop.eup %15937  ;;  %12730 = vmatpush2.bf16.msra.mxu0 %v15335_v33 }
 0x75f   : > { %v10283_v57 = vmul.f32 %v15938_v41, %v16927_v16  ;;  %v15343_v16 = vld [vmem:[#allocation11 + $0x2a4] ss:$24 sps:$4 sm:$0xff]   ;;  %v16982_v41 = vpop.permute.xlu1 %9345 }
 0x760   : > { %12731 = vmatprep.subr.bf16.mxu0 %v15343_v16 }
 0x761   : > { %v10284_v55 = vpack.c.bf16 %v10283_v57, %v10282_v4 }
 0x762   : > { %12732 = vmatpush2.bf16.msra.mxu0 %v15341_v25 }
 0x763   : > { %15180 = vmatmul.mubr.msk.bf16.vlgmr.msra.gmra.mxu1 %vm9264_vm1, %v10284_v55  ;;  %12733 = vmatprep.subr.bf16.mxu0 %v15349_v60 }
 0x764   : > { %12755 = vmatpush1.bf16.msra.mxu1 %v15314_v29 }
 0x765   : > { %12756 = vmatprep.subr.bf16.mxu1 %v15322_v47 }
 0x766   : > { %12734 = vmatpush2.bf16.msra.mxu0 %v15347_v26 }
 0x767   : > { %12735 = vmatprep.subr.bf16.mxu0 %v15355_v18 }
 0x768   : > { %12757 = vmatpush1.bf16.msra.mxu1 %v15320_v6 }
 0x769   : > { %12758 = vmatprep.subr.bf16.mxu1 %v15328_v32 }
 0x76a   : > { %12736 = vmatpush2.bf16.msra.mxu0 %v15353_v2 }
 0x76b   : > { %12737 = vmatprep.subr.bf16.mxu0 %v15361_v35 }
 0x76c   : > { %12759 = vmatpush1.bf16.msra.mxu1 %v15326_v59  ;;  %v10358_v59 = vpop.permute.xlu1 %10357 }
 0x76d   : > { %12760 = vmatprep.subr.bf16.mxu1 %v15334_v13  ;;  %15939 = vrcp.f32 %v10358_v59 }
 0x76e   : > { %12738 = vmatpush2.bf16.msra.mxu0 %v15359_v3 }
 0x76f   : > { %12739 = vmatprep.subr.bf16.mxu0 %v15367_v49 }
 0x770   : > { %12761 = vmatpush1.bf16.msra.mxu1 %v15332_v50 }
 0x771   : > { %12762 = vmatprep.subr.bf16.mxu1 %v15340_v28 }
 0x772   : > { %12740 = vmatpush2.bf16.msra.mxu0 %v15365_v37 }
 0x773   : > { %12741 = vmatprep.subr.bf16.mxu0 %v15373_v14 }
 0x774   : > { %12763 = vmatpush1.bf16.msra.mxu1 %v15338_v52 }
 0x775   : > { %12764 = vmatprep.subr.bf16.mxu1 %v15346_v58 }
 0x776   : > { %12742 = vmatpush2.bf16.msra.mxu0 %v15371_v23 }
 0x777   : > { %12743 = vmatprep.subr.bf16.mxu0 %v15379_v27 }
 0x778   : > { %12765 = vmatpush1.bf16.msra.mxu1 %v15344_v48 }
 0x779   : > { %12766 = vmatprep.subr.bf16.mxu1 %v15352_v34 }
 0x77a   : > { %12744 = vmatpush2.bf16.msra.mxu0 %v15377_v20  ;;  %v16990_v37 = vpop.eup %15939 }
 0x77b   : > { %12795 = vmatprep.subr.bf16.mxu0 %v15388_v30 }
 0x77c   : > { %12767 = vmatpush1.bf16.msra.mxu1 %v15350_v42 }
 0x77d   : > { %12768 = vmatprep.subr.bf16.mxu1 %v15358_v63 }
 0x780   : > { %12769 = vmatpush1.bf16.msra.mxu1 %v15356_v38 }
 0x781   : > { %12770 = vmatprep.subr.bf16.mxu1 %v15364_v43 }
 0x784   : > { %12771 = vmatpush2.bf16.msra.mxu1 %v15362_v12 }
 0x785   : > { %12772 = vmatprep.subr.bf16.mxu1 %v15370_v46 }
 0x788   : > { %12773 = vmatpush2.bf16.msra.mxu1 %v15368_v22 }
 0x789   : > { %12774 = vmatprep.subr.bf16.mxu1 %v15376_v21 }
 0x78c   : > { %12775 = vmatpush2.bf16.msra.mxu1 %v15374_v54 }
 0x78d   : > { %12776 = vmatprep.subr.bf16.mxu1 %v15382_v56 }
 0x790   : > { %12777 = vmatpush2.bf16.msra.mxu1 %v15380_v44 }
 0x791   : > { %12778 = vmatprep.subr.bf16.mxu1 %v15385_v8 }
 0x794   : > { %12779 = vmatpush2.bf16.msra.mxu1 %v15383_v61 }
 0x795   : > { %12780 = vmatprep.subr.bf16.mxu1 %v15391_v45 }
 0x798   : > { %12781 = vmatpush2.bf16.msra.mxu1 %v15389_v31  ;;  %v15386_v31 = vld [vmem:[#allocation11 + $0x750] ss:$24 sps:$4 sm:$0xff]  }
 0x799   : > { %12782 = vmatprep.subr.bf16.mxu1 %v15397_v0 }
 0x79c   : > { %12783 = vmatpush2.bf16.msra.mxu1 %v15395_v17 }
 0x79d   : > { %12784 = vmatprep.subr.bf16.mxu1 %v15403_v51 }
 0x7a0   : > { %12785 = vmatpush2.bf16.msra.mxu1 %v15401_v11  ;;  %v15394_v11 = vld [vmem:[#allocation11 + $0x724] ss:$24 sps:$4 sm:$0xff]  }
 0x7a1   : > { %12836 = vmatprep.subr.bf16.mxu1 %v15412_v36 }
 0x7eb   : > { %v9331_v1 = vpop.f32.mrf.mxu1 }
 0x7ec   : > { %v9348_v57 = vmul.f32 %v16980_v40, %v9331_v1 }
 0x7ed   : > { %v15097_v39 = vpop.f32.mrf.mxu1 }
 0x7ef   : > { %v9334_v4 = vpop.f32.mrf.mxu1 }
 0x7f0   : > { %v9349_v29 = vmul.f32 %v16982_v41, %v9334_v4  ;;  %v15392_v4 = vld [vmem:[#allocation11 + $0x720] ss:$24 sps:$4 sm:$0xff]  }
 0x7f1   : > { %v15098_v55 = vpop.f32.mrf.mxu1 }
 0x7f2   : > { %v9350_v47 = vadd.f32 %v9349_v29, %v9348_v57  ;;  %v15400_v55 = vld [vmem:[#allocation11 + $0x6f4] ss:$24 sps:$4 sm:$0xff]  }
 0x7f3   : > { %v9482_v6 = vpop.f32.mrf.mxu1 }
 0x7f4   : > { %v9351_v32 = vrot.slane %v9350_v47, 4  ;;  %v9489_v28 = vmul.f32 %v9482_v6, %v16980_v40 }
 0x7f5   : > { %v15109_v13 = vpop.f32.mrf.mxu1 }
 0x7f6   : > { %v9352_v53 = vadd.f32 %v9351_v32, %v9350_v47 }
 0x7f7   : > { %v9485_v50 = vpop.f32.mrf.mxu1 }
 0x7f8   : > { %v9353_v33 = vrot.slane %v9352_v53, 2  ;;  %v9490_v16 = vmul.f32 %v9485_v50, %v16982_v41  ;;  %v15398_v50 = vld [vmem:[#allocation11 + $0x6f0] ss:$24 sps:$4 sm:$0xff]  }
 0x7f9   : > { %v15110_v52 = vpop.f32.mrf.mxu1 }
 0x7fa   : > { %v9491_v25 = vadd.f32 %v9490_v16, %v9489_v28  ;;  %v9354_v58 = vadd.f32 %v9353_v33, %v9352_v53  ;;  %v15406_v16 = vld [vmem:[#allocation11 + $0x6c4] ss:$24 sps:$4 sm:$0xff]  }
 0x7fb   : > { %v9623_v60 = vpop.f32.mrf.mxu1 }
 0x7fc   : > { %v9492_v48 = vrot.slane %v9491_v25, 4  ;;  %v9355_v18 = vrot.slane %v9354_v58, 1  ;;  %v9630_v63 = vmul.f32 %v9623_v60, %v16980_v40 }
 0x7fd   : > { %v15121_v26 = vpop.f32.mrf.mxu1 }
 0x7fe   : > { %v9493_v34 = vadd.f32 %v9492_v48, %v9491_v25  ;;  %v9356_v49 = vadd.f32 %v9355_v18, %v9354_v58  ;;  %v15404_v48 = vld [vmem:[#allocation11 + $0x6c0] ss:$24 sps:$4 sm:$0xff]   ;;  %v15409_v18 = vld [vmem:[#allocation11 + $0x694] ss:$24 sps:$4 sm:$0xff]  }
 0x7ff   : > { %v9626_v42 = vpop.f32.mrf.mxu1 }
 0x800   : > { %v9494_v2 = vrot.slane %v9493_v34, 2  ;;  %v9631_v35 = vmul.f32 %v9626_v42, %v16982_v41  ;;  %v10361_v54 = vmul.f32 %v16990_v37, %v9356_v49 }
 0x801   : > { %v15122_v38 = vpop.f32.mrf.mxu1 }
 0x802   : > { %v9495_v3 = vadd.f32 %v9494_v2, %v9493_v34  ;;  %v9632_v43 = vadd.f32 %v9631_v35, %v9630_v63  ;;  %v16998_v51 = vpack.c.bf16 %v10361_v54, %v10361_v54 }
 0x803   : > { %v9764_v12 = vpop.f32.mrf.mxu1 }
 0x804   : > { %v9633_v46 = vrot.slane %v9632_v43, 4  ;;  %v9496_v14 = vrot.slane %v9495_v3, 1  ;;  %v9771_v56 = vmul.f32 %v9764_v12, %v16980_v40 }
 0x805   : > { %v15133_v22 = vpop.f32.mrf.mxu1 }
 0x806   : > { %v9634_v23 = vadd.f32 %v9633_v46, %v9632_v43  ;;  %v9497_v21 = vadd.f32 %v9496_v14, %v9495_v3  ;;  %v15407_v46 = vld [vmem:[#allocation11 + $0x690] ss:$24 sps:$4 sm:$0xff]  }
 0x807   : > { %v9767_v27 = vpop.f32.mrf.mxu1  ;;  %v15410_v14 = vld [vmem:[#allocation11 + $0xa50] ss:$24 sps:$4 sm:$0xff]  }
 0x808   : > { %v9635_v20 = vrot.slane %v9634_v23, 2  ;;  %v9772_v30 = vmul.f32 %v9767_v27, %v16982_v41  ;;  %v10362_v44 = vmul.f32 %v16990_v37, %v9497_v21  ;;  %v15415_v21 = vld [vmem:[#allocation11 + $0x664] ss:$24 sps:$4 sm:$0xff]  }
 0x809   : > { %v15134_v8 = vpop.f32.mrf.mxu1  ;;  %v15418_v27 = vld [vmem:[#allocation11 + $0xa24] ss:$24 sps:$4 sm:$0xff]  }
 0x80a   : > { %v9773_v61 = vadd.f32 %v9772_v30, %v9771_v56  ;;  %v16996_v45 = vpack.c.bf16 %v10362_v44, %v10362_v44  ;;  %v9636_v0 = vadd.f32 %v9635_v20, %v9634_v23  ;;  %v15413_v8 = vld [vmem:[#allocation11 + $0x660] ss:$24 sps:$4 sm:$0xff]  }
 0x80b   : > { %v9905_v17 = vpop.f32.mrf.mxu1 }
 0x80c   : > { %v9774_v36 = vrot.slane %v9773_v61, 4  ;;  %12745 = vmatprep.mubr.bf16.mxu0 %v16996_v45  ;;  %v9637_v57 = vrot.slane %v9636_v0, 1  ;;  %v9912_v6 = vmul.f32 %v9905_v17, %v16980_v40  ;;  %v15424_v17 = vld [vmem:[#allocation11 + $0x9f4] ss:$24 sps:$4 sm:$0xff]  }
 0x80d   : > { %v15145_v1 = vpop.f32.mrf.mxu1  ;;  %12746 = vmatmul.mubr.bf16.vlgmr.msra.gmra.mxu0 %v16998_v51 }
 0x80e   : > { %v9775_v39 = vadd.f32 %v9774_v36, %v9773_v61  ;;  %12796 = vmatpush1.bf16.msra.mxu0 %v15386_v31  ;;  %v9638_v33 = vadd.f32 %v9637_v57, %v9636_v0  ;;  %v15416_v61 = vld [vmem:[#allocation11 + $0xa20] ss:$24 sps:$4 sm:$0xff]   ;;  %v15421_v0 = vld [vmem:[#allocation11 + $0x634] ss:$24 sps:$4 sm:$0xff]  }
 0x80f   : > { %v9908_v29 = vpop.f32.mrf.mxu1  ;;  %12797 = vmatprep.subr.bf16.mxu0 %v15394_v11 }
 0x810   : > { %v9776_v47 = vrot.slane %v9775_v39, 2  ;;  %v9913_v32 = vmul.f32 %v9908_v29, %v16982_v41  ;;  %v10363_v42 = vmul.f32 %v16990_v37, %v9638_v33 }
 0x811   : > { %v15146_v59 = vpop.f32.mrf.mxu1 }
 0x812   : > { %v9777_v13 = vadd.f32 %v9776_v47, %v9775_v39  ;;  %v9914_v53 = vadd.f32 %v9913_v32, %v9912_v6  ;;  %12798 = vmatpush1.bf16.msra.mxu0 %v15392_v4  ;;  %v17010_v23 = vpack.c.bf16 %v10363_v42, %v10363_v42  ;;  %v15422_v47 = vld [vmem:[#allocation11 + $0x9f0] ss:$24 sps:$4 sm:$0xff]   ;;  %v15427_v32 = vld [vmem:[#allocation11 + $0x604] ss:$24 sps:$4 sm:$0xff]  }
 0x813   : > { %v10046_v28 = vpop.f32.mrf.mxu1  ;;  %12799 = vmatprep.subr.bf16.mxu0 %v15400_v55  ;;  %v15419_v55 = vld [vmem:[#allocation11 + $0x630] ss:$24 sps:$4 sm:$0xff]   ;;  %v15430_v59 = vld [vmem:[#allocation11 + $0x9c4] ss:$24 sps:$4 sm:$0xff]  }
 0x814   : > { %v9915_v52 = vrot.slane %v9914_v53, 4  ;;  %v9778_v25 = vrot.slane %v9777_v13, 1  ;;  %v10053_v63 = vmul.f32 %v10046_v28, %v16980_v40  ;;  %v15425_v28 = vld [vmem:[#allocation11 + $0x600] ss:$24 sps:$4 sm:$0xff]  }
 0x815   : > { %v15157_v58 = vpop.f32.mrf.mxu1 }
 0x816   : > { %v9916_v60 = vadd.f32 %v9915_v52, %v9914_v53  ;;  %12800 = vmatpush1.bf16.msra.mxu0 %v15398_v50  ;;  %v9779_v26 = vadd.f32 %v9778_v25, %v9777_v13  ;;  %v15433_v58 = vld [vmem:[#allocation11 + $0x8d4] ss:$24 sps:$4 sm:$0xff]  }
 0x817   : > { %v10049_v34 = vpop.f32.mrf.mxu1  ;;  %12801 = vmatprep.subr.bf16.mxu0 %v15406_v16  ;;  %v15428_v16 = vld [vmem:[#allocation11 + $0x9c0] ss:$24 sps:$4 sm:$0xff]  }
 0x818   : > { %v9917_v2 = vrot.slane %v9916_v60, 2  ;;  %v10054_v35 = vmul.f32 %v10049_v34, %v16982_v41  ;;  %v10364_v38 = vmul.f32 %v16990_v37, %v9779_v26 }
 0x819   : > { %v15158_v3 = vpop.f32.mrf.mxu1 }
 0x81a   : > { %v9918_v43 = vadd.f32 %v9917_v2, %v9916_v60  ;;  %v10055_v49 = vadd.f32 %v10054_v35, %v10053_v63  ;;  %12802 = vmatpush1.bf16.msra.mxu0 %v15404_v48  ;;  %v17008_v12 = vpack.c.bf16 %v10364_v38, %v10364_v38  ;;  %v15436_v60 = vld [vmem:[#allocation11 + $0x994] ss:$24 sps:$4 sm:$0xff]   ;;  %v15431_v35 = vld [vmem:[#allocation11 + $0x8d0] ss:$24 sps:$4 sm:$0xff]  }
 0x81b   : > { %v10187_v22 = vpop.f32.mrf.mxu1  ;;  %12803 = vmatprep.subr.bf16.mxu0 %v15409_v18  ;;  %v15434_v3 = vld [vmem:[#allocation11 + $0x990] ss:$24 sps:$4 sm:$0xff]  }
 0x81c   : > { %v9919_v54 = vrot.slane %v9918_v43, 1  ;;  %v10056_v20 = vrot.slane %v10055_v49, 4  ;;  %12786 = vmatprep.mubr.bf16.mxu1 %v17008_v12  ;;  %v10194_v36 = vmul.f32 %v10187_v22, %v16980_v40  ;;  %v15437_v22 = vld [vmem:[#allocation11 + $0x8a0] ss:$24 sps:$4 sm:$0xff]  }
 0x81d   : > { %v15169_v56 = vpop.f32.mrf.mxu1  ;;  %12787 = vmatmul.mubr.bf16.vlgmr.msra.gmra.mxu1 %v17010_v23 }
 0x81e   : > { %v9920_v30 = vadd.f32 %v9919_v54, %v9918_v43  ;;  %v10057_v44 = vadd.f32 %v10056_v20, %v10055_v49  ;;  %12804 = vmatpush1.bf16.msra.mxu0 %v15407_v46  ;;  %12837 = vmatpush1.bf16.msra.mxu1 %v15410_v14  ;;  %v15439_v43 = vld [vmem:[#allocation11 + $0x8a4] ss:$24 sps:$4 sm:$0xff]   ;;  %v15448_v54 = vld [vmem:[#allocation11 + $0x934] ss:$24 sps:$4 sm:$0xff]  }
 0x81f   : > { %v10190_v31 = vpop.f32.mrf.mxu1  ;;  %12805 = vmatprep.subr.bf16.mxu0 %v15415_v21  ;;  %12838 = vmatprep.subr.bf16.mxu1 %v15418_v27  ;;  %v15442_v49 = vld [vmem:[#allocation11 + $0x964] ss:$24 sps:$4 sm:$0xff]   ;;  %v15440_v21 = vld [vmem:[#allocation11 + $0x960] ss:$24 sps:$4 sm:$0xff]   ;;  %v15445_v27 = vld [vmem:[#allocation11 + $0x874] ss:$24 sps:$4 sm:$0xff]  }
 0x820   : > { %v10058_v11 = vrot.slane %v10057_v44, 2  ;;  %v10195_v1 = vmul.f32 %v10190_v31, %v16982_v41  ;;  %v17017_v39 = vmul.f32 %v16990_v37, %v9920_v30  ;;  %v15454_v31 = vld [vmem:[#allocation11 + $0x904] ss:$24 sps:$4 sm:$0xff]  }
 0x821   : > { %v15170_v4 = vpop.f32.mrf.mxu1 }
 0x822   : > { %v10059_v57 = vadd.f32 %v10058_v11, %v10057_v44  ;;  %v10196_v29 = vadd.f32 %v10195_v1, %v10194_v36  ;;  %12806 = vmatpush1.bf16.msra.mxu0 %v15413_v8  ;;  %12839 = vmatpush1.bf16.msra.mxu1 %v15416_v61  ;;  %v15443_v44 = vld [vmem:[#allocation11 + $0x870] ss:$24 sps:$4 sm:$0xff]   ;;  %v15451_v61 = vld [vmem:[#allocation11 + $0x844] ss:$24 sps:$4 sm:$0xff]   ;;  %v15452_v11 = vld [vmem:[#allocation11 + $0x900] ss:$24 sps:$4 sm:$0xff]  }
 0x823   : > { %v10328_v6 = vpop.f32.mrf.mxu1  ;;  %12807 = vmatprep.subr.bf16.mxu0 %v15421_v0  ;;  %12840 = vmatprep.subr.bf16.mxu1 %v15424_v17  ;;  %v15446_v8 = vld [vmem:[#allocation11 + $0x930] ss:$24 sps:$4 sm:$0xff]   ;;  %v15449_v17 = vld [vmem:[#allocation11 + $0x840] ss:$24 sps:$4 sm:$0xff]   ;;  %v15457_v1 = vld [vmem:[#allocation11 + $0x814] ss:$24 sps:$4 sm:$0xff]  }
 0x824   : > { %v10197_v13 = vrot.slane %v10196_v29, 4  ;;  %v10060_v53 = vrot.slane %v10059_v57, 1  ;;  %v10335_v26 = vmul.f32 %v10328_v6, %v16980_v40  ;;  %v15460_v4 = vld [vmem:[#allocation11 + $0xbd4] ss:$24 sps:$4 sm:$0xff]   ;;  %v15463_v6 = vld [vmem:[#allocation11 + $0x7e4] ss:$24 sps:$4 sm:$0xff]  }
 0x825   : > { %v15181_v50 = vpop.f32.mrf.mxu1 }
 0x826   : > { %v10198_v33 = vadd.f32 %v10197_v13, %v10196_v29  ;;  %12808 = vmatpush1.bf16.msra.mxu0 %v15419_v55  ;;  %12841 = vmatpush1.bf16.msra.mxu1 %v15422_v47  ;;  %v10061_v52 = vadd.f32 %v10060_v53, %v10059_v57  ;;  %v15455_v29 = vld [vmem:[#allocation11 + $0x810] ss:$24 sps:$4 sm:$0xff]   ;;  %v15464_v13 = vld [vmem:[#allocation11 + $0xba0] ss:$24 sps:$4 sm:$0xff]   ;;  %v15469_v53 = vld [vmem:[#allocation11 + $0x7b4] ss:$24 sps:$4 sm:$0xff]  }
 0x827   : > { %v10331_v25 = vpop.f32.mrf.mxu1  ;;  %12809 = vmatprep.subr.bf16.mxu0 %v15427_v32  ;;  %12842 = vmatprep.subr.bf16.mxu1 %v15430_v59  ;;  %v15458_v55 = vld [vmem:[#allocation11 + $0xbd0] ss:$24 sps:$4 sm:$0xff]   ;;  %v15466_v32 = vld [vmem:[#allocation11 + $0xba4] ss:$24 sps:$4 sm:$0xff]   ;;  %v15461_v59 = vld [vmem:[#allocation11 + $0x7e0] ss:$24 sps:$4 sm:$0xff]  }
 0x828   : > { %v10199_v48 = vrot.slane %v10198_v33, 2  ;;  %v10336_v34 = vmul.f32 %v10331_v25, %v16982_v41  ;;  %v10366_v18 = vmul.f32 %v16990_v37, %v10061_v52  ;;  %v15467_v50 = vld [vmem:[#allocation11 + $0x7b0] ss:$24 sps:$4 sm:$0xff]   ;;  %v15473_v52 = vld [vmem:[#allocation11 + $0x780] ss:$24 sps:$4 sm:$0xff]  }
 0x829   : > { %v15182_v42 = vpop.f32.mrf.mxu1  ;;  %v15476_v25 = vld [vmem:[#allocation11 + $0xb40] ss:$24 sps:$4 sm:$0xff]  }
 0x82a   : > { %v10200_v2 = vadd.f32 %v10199_v48, %v10198_v33  ;;  %v10337_v63 = vadd.f32 %v10336_v34, %v10335_v26  ;;  %12810 = vmatpush1.bf16.msra.mxu0 %v15425_v28  ;;  %12843 = vmatpush1.bf16.msra.mxu1 %v15428_v16  ;;  %v17022_v38 = vpack.c.bf16 %v10366_v18, %v10366_v18  ;;  %v15470_v33 = vld [vmem:[#allocation11 + $0xb70] ss:$24 sps:$4 sm:$0xff]   ;;  %v15475_v28 = vld [vmem:[#allocation11 + $0x784] ss:$24 sps:$4 sm:$0xff]  }
 0x82b   : > { %12811 = vmatprep.subr.bf16.mxu0 %v15433_v58  ;;  %12844 = vmatprep.subr.bf16.mxu1 %v15436_v60  ;;  %v15478_v16 = vld [vmem:[#allocation11 + $0xb44] ss:$24 sps:$4 sm:$0xff]   ;;  %v15481_v58 = vld [vmem:[#allocation11 + $0xb14] ss:$24 sps:$4 sm:$0xff]   ;;  %v15479_v48 = vld [vmem:[#allocation11 + $0xb10] ss:$24 sps:$4 sm:$0xff]   ;;  %v17034_v34 = vpack.c.bf16 %v17017_v39, %v17017_v39 }
 0x82c   : > { %v10201_v46 = vrot.slane %v10200_v2, 1  ;;  %v10338_v14 = vrot.slane %v10337_v63, 4  ;;  %12827 = vmatprep.mubr.bf16.mxu0 %v17022_v38  ;;  %v15484_v60 = vld [vmem:[#allocation11 + $0x15c] ss:$24 sps:$4 sm:$0xff]   ;;  %v15482_v26 = vld [vmem:[#allocation11 + $0x158] ss:$24 sps:$4 sm:$0xff]  }
 0x82d   : > { %v15487_v18 = vld [vmem:[#allocation11 + $0xae4] ss:$24 sps:$4 sm:$0xff]   ;;  %v15491_v39 = vld [vmem:[#allocation11 + $0xab0] ss:$24 sps:$4 sm:$0xff]  }
 0x82e   : > { %v10202_v40 = vadd.f32 %v10201_v46, %v10200_v2  ;;  %v10339_v41 = vadd.f32 %v10338_v14, %v10337_v63  ;;  %12812 = vmatpush2.bf16.msra.mxu0 %v15431_v35  ;;  %12845 = vmatpush1.bf16.msra.mxu1 %v15434_v3  ;;  %v15490_v42 = vld [vmem:[#allocation11 + $0x12c] ss:$24 sps:$4 sm:$0xff]   ;;  %v15485_v2 = vld [vmem:[#allocation11 + $0xae0] ss:$24 sps:$4 sm:$0xff]   ;;  %v15496_v3 = vld [vmem:[#allocation11 + $0xfc] ss:$24 sps:$4 sm:$0xff]  }
 0x82f   : > { %12813 = vmatprep.subr.bf16.mxu0 %v15439_v43  ;;  %12846 = vmatprep.subr.bf16.mxu1 %v15442_v49  ;;  %v15488_v63 = vld [vmem:[#allocation11 + $0x128] ss:$24 sps:$4 sm:$0xff]   ;;  %v15493_v35 = vld [vmem:[#allocation11 + $0xab4] ss:$24 sps:$4 sm:$0xff]   ;;  %v15494_v43 = vld [vmem:[#allocation11 + $0xf8] ss:$24 sps:$4 sm:$0xff]  }
 0x830   : > { %v10340_v20 = vrot.slane %v10339_v41, 2  ;;  %v17026_v56 = vmul.f32 %v16990_v37, %v10202_v40  ;;  %v15499_v49 = vld [vmem:[#allocation11 + $0xa84] ss:$24 sps:$4 sm:$0xff]   ;;  %v15497_v14 = vld [vmem:[#allocation11 + $0xa80] ss:$24 sps:$4 sm:$0xff]  }
 0x831   : > { %v15502_v46 = vld [vmem:[#allocation11 + $0xcc] ss:$24 sps:$4 sm:$0xff]   ;;  %v15500_v40 = vld [vmem:[#allocation11 + $0xc8] ss:$24 sps:$4 sm:$0xff]  }
 0x832   : > { %v10341_v30 = vadd.f32 %v10340_v20, %v10339_v41  ;;  %12814 = vmatpush2.bf16.msra.mxu0 %v15437_v22  ;;  %12847 = vmatpush1.bf16.msra.mxu1 %v15440_v21  ;;  %v15505_v41 = vld [vmem:[#allocation11 + $0x9c] ss:$24 sps:$4 sm:$0xff]   ;;  %v15503_v21 = vld [vmem:[#allocation11 + $0x98] ss:$24 sps:$4 sm:$0xff]   ;;  %v15511_v20 = vld [vmem:[#allocation11 + $0x6c] ss:$24 sps:$4 sm:$0xff]  }
 0x833   : > { %12815 = vmatprep.subr.bf16.mxu0 %v15445_v27  ;;  %12848 = vmatprep.subr.bf16.mxu1 %v15448_v54  ;;  %v15508_v22 = vld [vmem:[#allocation11 + $0x45c] ss:$24 sps:$4 sm:$0xff]   ;;  %v15506_v27 = vld [vmem:[#allocation11 + $0x458] ss:$24 sps:$4 sm:$0xff]   ;;  %v17040_v54 = vpack.c.bf16 %v17026_v56, %v17026_v56 }
 0x834   : > { %v10342_v0 = vrot.slane %v10341_v30, 1  ;;  %v15515_v56 = vld [vmem:[#allocation11 + $0x38] ss:$24 sps:$4 sm:$0xff]  }
 0x836   : > { %12816 = vmatpush2.bf16.msra.mxu0 %v15443_v44  ;;  %12849 = vmatpush1.bf16.msra.mxu1 %v15446_v8  ;;  %v10343_v36 = vadd.f32 %v10342_v0, %v10341_v30  ;;  %v15514_v30 = vld [vmem:[#allocation11 + $0x42c] ss:$24 sps:$4 sm:$0xff]   ;;  %v15509_v44 = vld [vmem:[#allocation11 + $0x68] ss:$24 sps:$4 sm:$0xff]   ;;  %v15518_v0 = vld [vmem:[#allocation11 + $0x3f8] ss:$24 sps:$4 sm:$0xff]  }
 0x837   : > { %12817 = vmatprep.subr.bf16.mxu0 %v15451_v61  ;;  %12850 = vmatprep.subr.bf16.mxu1 %v15454_v31  ;;  %v15512_v8 = vld [vmem:[#allocation11 + $0x428] ss:$24 sps:$4 sm:$0xff]   ;;  %v15517_v61 = vld [vmem:[#allocation11 + $0x3c] ss:$24 sps:$4 sm:$0xff]  }
 0x838   : > { %v10368_v57 = vmul.f32 %v16990_v37, %v10343_v36  ;;  %v15472_v37 = vld [vmem:[#allocation11 + $0xb74] ss:$24 sps:$4 sm:$0xff]   ;;  %v15521_v36 = vld [vmem:[#allocation11 + $0x8] ss:$24 sps:$4 sm:$0xff]  }
 0x839   : > { %v15520_v31 = vld [vmem:[#allocation11 + $0x3fc] ss:$24 sps:$4 sm:$0xff]  }
 0x83a   : > { %12818 = vmatpush2.bf16.msra.mxu0 %v15449_v17  ;;  %12851 = vmatpush1.bf16.msra.mxu1 %v15452_v11  ;;  %v17029_v47 = vpack.c.bf16 %v10368_v57, %v10368_v57  ;;  %v15523_v17 = vld [vmem:[#allocation11 + $0xc] ss:$24 sps:$4 sm:$0xff]   ;;  %v15532_v57 = vld [vmem:[#allocation11 + $0x39c] ss:$24 sps:$4 sm:$0xff]  }
 0x83b   : > { %12819 = vmatprep.subr.bf16.mxu0 %v15457_v1  ;;  %12852 = vmatprep.subr.bf16.mxu1 %v15460_v4  ;;  %v15526_v11 = vld [vmem:[#allocation11 + $0x3cc] ss:$24 sps:$4 sm:$0xff]   ;;  %v15524_v1 = vld [vmem:[#allocation11 + $0x3c8] ss:$24 sps:$4 sm:$0xff]   ;;  %v15529_v4 = vld [vmem:[#allocation11 + $0x2dc] ss:$24 sps:$4 sm:$0xff]  }
 0x83c   : > { %12868 = vmatprep.mubr.bf16.mxu1 %v17029_v47 }
 0x83e   : > { %12820 = vmatpush2.bf16.msra.mxu0 %v15455_v29  ;;  %12853 = vmatpush2.bf16.msra.mxu1 %v15458_v55  ;;  %v15527_v29 = vld [vmem:[#allocation11 + $0x2d8] ss:$24 sps:$4 sm:$0xff]  }
 0x83f   : > { %12821 = vmatprep.subr.bf16.mxu0 %v15463_v6  ;;  %12854 = vmatprep.subr.bf16.mxu1 %v15466_v32  ;;  %v15530_v55 = vld [vmem:[#allocation11 + $0x398] ss:$24 sps:$4 sm:$0xff]   ;;  %v15535_v6 = vld [vmem:[#allocation11 + $0x2ac] ss:$24 sps:$4 sm:$0xff]  }
 0x840   : > { %v15538_v32 = vld [vmem:[#allocation11 + $0x36c] ss:$24 sps:$4 sm:$0xff]  }
 0x842   : > { %12822 = vmatpush2.bf16.msra.mxu0 %v15461_v59  ;;  %12855 = vmatpush2.bf16.msra.mxu1 %v15464_v13  ;;  %v15533_v59 = vld [vmem:[#allocation11 + $0x2a8] ss:$24 sps:$4 sm:$0xff]  }
 0x843   : > { %12823 = vmatprep.subr.bf16.mxu0 %v15469_v53  ;;  %12856 = vmatprep.subr.bf16.mxu1 %v15472_v37  ;;  %v15536_v13 = vld [vmem:[#allocation11 + $0x368] ss:$24 sps:$4 sm:$0xff]   ;;  %v15541_v53 = vld [vmem:[#allocation11 + $0x27c] ss:$24 sps:$4 sm:$0xff]  }
 0x844   : > { %v15544_v37 = vld [vmem:[#allocation11 + $0x33c] ss:$24 sps:$4 sm:$0xff]  }
 0x846   : > { %12824 = vmatpush2.bf16.msra.mxu0 %v15467_v50  ;;  %12857 = vmatpush2.bf16.msra.mxu1 %v15470_v33  ;;  %v15539_v50 = vld [vmem:[#allocation11 + $0x278] ss:$24 sps:$4 sm:$0xff]  }
 0x847   : > { %12825 = vmatprep.subr.bf16.mxu0 %v15475_v28  ;;  %12858 = vmatprep.subr.bf16.mxu1 %v15478_v16  ;;  %v15542_v33 = vld [vmem:[#allocation11 + $0x338] ss:$24 sps:$4 sm:$0xff]   ;;  %v15547_v28 = vld [vmem:[#allocation11 + $0x24c] ss:$24 sps:$4 sm:$0xff]  }
 0x848   : > { %v15550_v16 = vld [vmem:[#allocation11 + $0x30c] ss:$24 sps:$4 sm:$0xff]  }
 0x84a   : > { %12826 = vmatpush2.bf16.msra.mxu0 %v15473_v52  ;;  %12859 = vmatpush2.bf16.msra.mxu1 %v15476_v25  ;;  %v15545_v52 = vld [vmem:[#allocation11 + $0x248] ss:$24 sps:$4 sm:$0xff]  }
 0x84b   : > { %12860 = vmatprep.subr.bf16.mxu1 %v15481_v58  ;;  %12877 = vmatprep.subr.bf16.mxu0 %v15484_v60  ;;  %v15548_v25 = vld [vmem:[#allocation11 + $0x308] ss:$24 sps:$4 sm:$0xff]   ;;  %v15553_v58 = vld [vmem:[#allocation11 + $0x21c] ss:$24 sps:$4 sm:$0xff]  }
 0x84c   : > { %v15556_v60 = vld [vmem:[#allocation11 + $0x5dc] ss:$24 sps:$4 sm:$0xff]  }
 0x84d   : > { %12828 = vmatmul.mubr.bf16.vlgmr.msra.gmra.mxu0 %v17034_v34 }
 0x84e   : > { %12861 = vmatpush2.bf16.msra.mxu1 %v15479_v48  ;;  %12878 = vmatpush1.bf16.msra.mxu0 %v15482_v26  ;;  %v15551_v48 = vld [vmem:[#allocation11 + $0x218] ss:$24 sps:$4 sm:$0xff]  }
 0x84f   : > { %12909 = vmatprep.mubr.bf16.mxu0 %v16996_v45  ;;  %12862 = vmatprep.subr.bf16.mxu1 %v15487_v18  ;;  %v15554_v26 = vld [vmem:[#allocation11 + $0x5d8] ss:$24 sps:$4 sm:$0xff]   ;;  %v15559_v18 = vld [vmem:[#allocation11 + $0x1ec] ss:$24 sps:$4 sm:$0xff]  }
 0x850   : > { %12879 = vmatprep.subr.bf16.mxu0 %v15490_v42  ;;  %v15562_v42 = vld [vmem:[#allocation11 + $0x5ac] ss:$24 sps:$4 sm:$0xff]  }
 0x852   : > { %12863 = vmatpush2.bf16.msra.mxu1 %v15485_v2  ;;  %12880 = vmatpush1.bf16.msra.mxu0 %v15488_v63  ;;  %v15557_v2 = vld [vmem:[#allocation11 + $0x1e8] ss:$24 sps:$4 sm:$0xff]  }
 0x853   : > { %12864 = vmatprep.subr.bf16.mxu1 %v15493_v35  ;;  %12881 = vmatprep.subr.bf16.mxu0 %v15496_v3  ;;  %v15560_v63 = vld [vmem:[#allocation11 + $0x5a8] ss:$24 sps:$4 sm:$0xff]   ;;  %v15565_v35 = vld [vmem:[#allocation11 + $0x1bc] ss:$24 sps:$4 sm:$0xff]  }
 0x854   : > { %v15568_v3 = vld [vmem:[#allocation11 + $0x57c] ss:$24 sps:$4 sm:$0xff]  }
 0x856   : > { %12865 = vmatpush2.bf16.msra.mxu1 %v15491_v39  ;;  %12882 = vmatpush1.bf16.msra.mxu0 %v15494_v43  ;;  %v15563_v39 = vld [vmem:[#allocation11 + $0x1b8] ss:$24 sps:$4 sm:$0xff]  }
 0x857   : > { %12866 = vmatprep.subr.bf16.mxu1 %v15499_v49  ;;  %12883 = vmatprep.subr.bf16.mxu0 %v15502_v46  ;;  %v15566_v43 = vld [vmem:[#allocation11 + $0x578] ss:$24 sps:$4 sm:$0xff]   ;;  %v15571_v49 = vld [vmem:[#allocation11 + $0x18c] ss:$24 sps:$4 sm:$0xff]  }
 0x858   : > { %v15574_v46 = vld [vmem:[#allocation11 + $0x54c] ss:$24 sps:$4 sm:$0xff]  }
 0x85a   : > { %12867 = vmatpush2.bf16.msra.mxu1 %v15497_v14  ;;  %12884 = vmatpush1.bf16.msra.mxu0 %v15500_v40  ;;  %v15569_v14 = vld [vmem:[#allocation11 + $0x188] ss:$24 sps:$4 sm:$0xff]  }
 0x85b   : > { %12885 = vmatprep.subr.bf16.mxu0 %v15505_v41  ;;  %12918 = vmatprep.subr.bf16.mxu1 %v15508_v22  ;;  %v15572_v40 = vld [vmem:[#allocation11 + $0x548] ss:$24 sps:$4 sm:$0xff]   ;;  %v15577_v41 = vld [vmem:[#allocation11 + $0x51c] ss:$24 sps:$4 sm:$0xff]  }
 0x85c   : > { %v15580_v22 = vld [vmem:[#allocation11 + $0x75c] ss:$24 sps:$4 sm:$0xff]  }
 0x85d   : > { %12869 = vmatmul.mubr.bf16.vlgmr.msra.gmra.mxu1 %v17040_v54 }
 0x85e   : > { %12886 = vmatpush1.bf16.msra.mxu0 %v15503_v21  ;;  %12919 = vmatpush1.bf16.msra.mxu1 %v15506_v27  ;;  %v15575_v21 = vld [vmem:[#allocation11 + $0x518] ss:$24 sps:$4 sm:$0xff]  }
 0x85f   : > { %12950 = vmatprep.mubr.bf16.mxu1 %v17008_v12  ;;  %12887 = vmatprep.subr.bf16.mxu0 %v15511_v20  ;;  %v15578_v27 = vld [vmem:[#allocation11 + $0x758] ss:$24 sps:$4 sm:$0xff]   ;;  %v15583_v20 = vld [vmem:[#allocation11 + $0x4ec] ss:$24 sps:$4 sm:$0xff]  }
 0x860   : > { %12920 = vmatprep.subr.bf16.mxu1 %v15514_v30  ;;  %v15586_v30 = vld [vmem:[#allocation11 + $0x72c] ss:$24 sps:$4 sm:$0xff]  }
 0x862   : > { %12888 = vmatpush1.bf16.msra.mxu0 %v15509_v44  ;;  %12921 = vmatpush1.bf16.msra.mxu1 %v15512_v8  ;;  %v15581_v44 = vld [vmem:[#allocation11 + $0x4e8] ss:$24 sps:$4 sm:$0xff]  }
 0x863   : > { %12889 = vmatprep.subr.bf16.mxu0 %v15517_v61  ;;  %12922 = vmatprep.subr.bf16.mxu1 %v15520_v31  ;;  %v15584_v8 = vld [vmem:[#allocation11 + $0x728] ss:$24 sps:$4 sm:$0xff]   ;;  %v15589_v61 = vld [vmem:[#allocation11 + $0x4bc] ss:$24 sps:$4 sm:$0xff]  }
 0x864   : > { %v15592_v31 = vld [vmem:[#allocation11 + $0x6fc] ss:$24 sps:$4 sm:$0xff]  }
 0x866   : > { %12890 = vmatpush1.bf16.msra.mxu0 %v15515_v56  ;;  %12923 = vmatpush1.bf16.msra.mxu1 %v15518_v0  ;;  %v15587_v56 = vld [vmem:[#allocation11 + $0x4b8] ss:$24 sps:$4 sm:$0xff]  }
 0x867   : > { %12891 = vmatprep.subr.bf16.mxu0 %v15523_v17  ;;  %12924 = vmatprep.subr.bf16.mxu1 %v15526_v11  ;;  %v15590_v0 = vld [vmem:[#allocation11 + $0x6f8] ss:$24 sps:$4 sm:$0xff]   ;;  %v15595_v17 = vld [vmem:[#allocation11 + $0x48c] ss:$24 sps:$4 sm:$0xff]  }
 0x868   : > { %v15598_v11 = vld [vmem:[#allocation11 + $0x6cc] ss:$24 sps:$4 sm:$0xff]  }
 0x86a   : > { %12892 = vmatpush1.bf16.msra.mxu0 %v15521_v36  ;;  %12925 = vmatpush1.bf16.msra.mxu1 %v15524_v1  ;;  %v15593_v36 = vld [vmem:[#allocation11 + $0x488] ss:$24 sps:$4 sm:$0xff]  }
 0x86b   : > { %12893 = vmatprep.subr.bf16.mxu0 %v15529_v4  ;;  %12926 = vmatprep.subr.bf16.mxu1 %v15532_v57  ;;  %v15596_v1 = vld [vmem:[#allocation11 + $0x6c8] ss:$24 sps:$4 sm:$0xff]   ;;  %v15601_v4 = vld [vmem:[#allocation11 + $0x69c] ss:$24 sps:$4 sm:$0xff]  }
 0x86c   : > { %v15604_v57 = vld [vmem:[#allocation11 + $0xa5c] ss:$24 sps:$4 sm:$0xff]  }
 0x86e   : > { %12894 = vmatpush2.bf16.msra.mxu0 %v15527_v29  ;;  %12927 = vmatpush1.bf16.msra.mxu1 %v15530_v55  ;;  %v15599_v29 = vld [vmem:[#allocation11 + $0x698] ss:$24 sps:$4 sm:$0xff]  }
 0x86f   : > { %12895 = vmatprep.subr.bf16.mxu0 %v15535_v6  ;;  %12928 = vmatprep.subr.bf16.mxu1 %v15538_v32  ;;  %v15602_v55 = vld [vmem:[#allocation11 + $0xa58] ss:$24 sps:$4 sm:$0xff]   ;;  %v15607_v6 = vld [vmem:[#allocation11 + $0x66c] ss:$24 sps:$4 sm:$0xff]  }
 0x870   : > { %v15610_v32 = vld [vmem:[#allocation11 + $0xa2c] ss:$24 sps:$4 sm:$0xff]  }
 0x872   : > { %12896 = vmatpush2.bf16.msra.mxu0 %v15533_v59  ;;  %12929 = vmatpush1.bf16.msra.mxu1 %v15536_v13  ;;  %v15605_v59 = vld [vmem:[#allocation11 + $0x668] ss:$24 sps:$4 sm:$0xff]  }
 0x873   : > { %12897 = vmatprep.subr.bf16.mxu0 %v15541_v53  ;;  %12930 = vmatprep.subr.bf16.mxu1 %v15544_v37  ;;  %v15608_v13 = vld [vmem:[#allocation11 + $0xa28] ss:$24 sps:$4 sm:$0xff]   ;;  %v15613_v53 = vld [vmem:[#allocation11 + $0x63c] ss:$24 sps:$4 sm:$0xff]  }
 0x874   : > { %v15616_v37 = vld [vmem:[#allocation11 + $0x9fc] ss:$24 sps:$4 sm:$0xff]  }
 0x876   : > { %12898 = vmatpush2.bf16.msra.mxu0 %v15539_v50  ;;  %12931 = vmatpush1.bf16.msra.mxu1 %v15542_v33  ;;  %v15611_v50 = vld [vmem:[#allocation11 + $0x638] ss:$24 sps:$4 sm:$0xff]  }
 0x877   : > { %12899 = vmatprep.subr.bf16.mxu0 %v15547_v28  ;;  %12932 = vmatprep.subr.bf16.mxu1 %v15550_v16  ;;  %v15614_v33 = vld [vmem:[#allocation11 + $0x9f8] ss:$24 sps:$4 sm:$0xff]   ;;  %v15619_v28 = vld [vmem:[#allocation11 + $0x60c] ss:$24 sps:$4 sm:$0xff]  }
 0x878   : > { %v15622_v16 = vld [vmem:[#allocation11 + $0x9cc] ss:$24 sps:$4 sm:$0xff]  }
 0x87a   : > { %12900 = vmatpush2.bf16.msra.mxu0 %v15545_v52  ;;  %12933 = vmatpush1.bf16.msra.mxu1 %v15548_v25  ;;  %v15617_v52 = vld [vmem:[#allocation11 + $0x608] ss:$24 sps:$4 sm:$0xff]  }
 0x87b   : > { %12901 = vmatprep.subr.bf16.mxu0 %v15553_v58  ;;  %12934 = vmatprep.subr.bf16.mxu1 %v15556_v60  ;;  %v15620_v25 = vld [vmem:[#allocation11 + $0x9c8] ss:$24 sps:$4 sm:$0xff]   ;;  %v15625_v58 = vld [vmem:[#allocation11 + $0x8dc] ss:$24 sps:$4 sm:$0xff]  }
 0x87c   : > { %v15628_v60 = vld [vmem:[#allocation11 + $0x99c] ss:$24 sps:$4 sm:$0xff]  }
 0x87e   : > { %12902 = vmatpush2.bf16.msra.mxu0 %v15551_v48  ;;  %12935 = vmatpush2.bf16.msra.mxu1 %v15554_v26  ;;  %v15623_v48 = vld [vmem:[#allocation11 + $0x8d8] ss:$24 sps:$4 sm:$0xff]  }
 0x87f   : > { %12903 = vmatprep.subr.bf16.mxu0 %v15559_v18  ;;  %12936 = vmatprep.subr.bf16.mxu1 %v15562_v42  ;;  %v15626_v26 = vld [vmem:[#allocation11 + $0x998] ss:$24 sps:$4 sm:$0xff]   ;;  %v15631_v18 = vld [vmem:[#allocation11 + $0x8ac] ss:$24 sps:$4 sm:$0xff]  }
 0x880   : > { %v15634_v42 = vld [vmem:[#allocation11 + $0x96c] ss:$24 sps:$4 sm:$0xff]  }
 0x882   : > { %12904 = vmatpush2.bf16.msra.mxu0 %v15557_v2  ;;  %12937 = vmatpush2.bf16.msra.mxu1 %v15560_v63  ;;  %v15629_v2 = vld [vmem:[#allocation11 + $0x8a8] ss:$24 sps:$4 sm:$0xff]  }
 0x883   : > { %12905 = vmatprep.subr.bf16.mxu0 %v15565_v35  ;;  %12938 = vmatprep.subr.bf16.mxu1 %v15568_v3  ;;  %v15632_v63 = vld [vmem:[#allocation11 + $0x968] ss:$24 sps:$4 sm:$0xff]   ;;  %v15637_v35 = vld [vmem:[#allocation11 + $0x87c] ss:$24 sps:$4 sm:$0xff]  }
 0x884   : > { %v15640_v3 = vld [vmem:[#allocation11 + $0x93c] ss:$24 sps:$4 sm:$0xff]  }
 0x886   : > { %12906 = vmatpush2.bf16.msra.mxu0 %v15563_v39  ;;  %12939 = vmatpush2.bf16.msra.mxu1 %v15566_v43  ;;  %v15635_v39 = vld [vmem:[#allocation11 + $0x878] ss:$24 sps:$4 sm:$0xff]  }
 0x887   : > { %12907 = vmatprep.subr.bf16.mxu0 %v15571_v49  ;;  %12940 = vmatprep.subr.bf16.mxu1 %v15574_v46  ;;  %v15638_v43 = vld [vmem:[#allocation11 + $0x938] ss:$24 sps:$4 sm:$0xff]   ;;  %v15643_v49 = vld [vmem:[#allocation11 + $0x84c] ss:$24 sps:$4 sm:$0xff]  }
 0x888   : > { %v15646_v46 = vld [vmem:[#allocation11 + $0x90c] ss:$24 sps:$4 sm:$0xff]  }
 0x88a   : > { %12908 = vmatpush2.bf16.msra.mxu0 %v15569_v14  ;;  %12941 = vmatpush2.bf16.msra.mxu1 %v15572_v40  ;;  %v15641_v14 = vld [vmem:[#allocation11 + $0x848] ss:$24 sps:$4 sm:$0xff]  }
 0x88b   : > { %12942 = vmatprep.subr.bf16.mxu1 %v15577_v41  ;;  %12959 = vmatprep.subr.bf16.mxu0 %v15580_v22  ;;  %v15644_v40 = vld [vmem:[#allocation11 + $0x908] ss:$24 sps:$4 sm:$0xff]   ;;  %v15649_v41 = vld [vmem:[#allocation11 + $0x81c] ss:$24 sps:$4 sm:$0xff]  }
 0x88c   : > { %v15652_v22 = vld [vmem:[#allocation11 + $0xbdc] ss:$24 sps:$4 sm:$0xff]  }
 0x88d   : > { %12910 = vmatmul.mubr.bf16.vlgmr.msra.gmra.mxu0 %v16998_v51 }
 0x88e   : > { %12943 = vmatpush2.bf16.msra.mxu1 %v15575_v21  ;;  %12960 = vmatpush1.bf16.msra.mxu0 %v15578_v27  ;;  %v15647_v21 = vld [vmem:[#allocation11 + $0x818] ss:$24 sps:$4 sm:$0xff]  }
 0x88f   : > { %12991 = vmatprep.mubr.bf16.mxu0 %v17022_v38  ;;  %12944 = vmatprep.subr.bf16.mxu1 %v15583_v20  ;;  %v15650_v27 = vld [vmem:[#allocation11 + $0xbd8] ss:$24 sps:$4 sm:$0xff]   ;;  %v15655_v20 = vld [vmem:[#allocation11 + $0x7ec] ss:$24 sps:$4 sm:$0xff]  }
 0x890   : > { %12961 = vmatprep.subr.bf16.mxu0 %v15586_v30  ;;  %v15658_v30 = vld [vmem:[#allocation11 + $0xbac] ss:$24 sps:$4 sm:$0xff]  }
 0x892   : > { %12945 = vmatpush2.bf16.msra.mxu1 %v15581_v44  ;;  %12962 = vmatpush1.bf16.msra.mxu0 %v15584_v8  ;;  %v15653_v44 = vld [vmem:[#allocation11 + $0x7e8] ss:$24 sps:$4 sm:$0xff]  }
 0x893   : > { %12946 = vmatprep.subr.bf16.mxu1 %v15589_v61  ;;  %12963 = vmatprep.subr.bf16.mxu0 %v15592_v31  ;;  %v15656_v8 = vld [vmem:[#allocation11 + $0xba8] ss:$24 sps:$4 sm:$0xff]   ;;  %v15661_v61 = vld [vmem:[#allocation11 + $0x7bc] ss:$24 sps:$4 sm:$0xff]  }
 0x894   : > { %v15664_v31 = vld [vmem:[#allocation11 + $0xb7c] ss:$24 sps:$4 sm:$0xff]  }
 0x896   : > { %12947 = vmatpush2.bf16.msra.mxu1 %v15587_v56  ;;  %12964 = vmatpush1.bf16.msra.mxu0 %v15590_v0  ;;  %v15659_v56 = vld [vmem:[#allocation11 + $0x7b8] ss:$24 sps:$4 sm:$0xff]  }
 0x897   : > { %12948 = vmatprep.subr.bf16.mxu1 %v15595_v17  ;;  %12965 = vmatprep.subr.bf16.mxu0 %v15598_v11  ;;  %v15662_v0 = vld [vmem:[#allocation11 + $0xb78] ss:$24 sps:$4 sm:$0xff]   ;;  %v15667_v17 = vld [vmem:[#allocation11 + $0x78c] ss:$24 sps:$4 sm:$0xff]  }
 0x898   : > { %v15670_v11 = vld [vmem:[#allocation11 + $0xb4c] ss:$24 sps:$4 sm:$0xff]  }
 0x89a   : > { %12949 = vmatpush2.bf16.msra.mxu1 %v15593_v36  ;;  %12966 = vmatpush1.bf16.msra.mxu0 %v15596_v1  ;;  %v15665_v36 = vld [vmem:[#allocation11 + $0x788] ss:$24 sps:$4 sm:$0xff]  }
 0x89b   : > { %12967 = vmatprep.subr.bf16.mxu0 %v15601_v4  ;;  %13000 = vmatprep.subr.bf16.mxu1 %v15604_v57  ;;  %v15668_v1 = vld [vmem:[#allocation11 + $0xb48] ss:$24 sps:$4 sm:$0xff]   ;;  %v15673_v4 = vld [vmem:[#allocation11 + $0xb1c] ss:$24 sps:$4 sm:$0xff]  }
 0x89c   : > { %v15676_v57 = vld [vmem:[#allocation11 + $0x164] ss:$24 sps:$4 sm:$0xff]  }
 0x89d   : > { %12951 = vmatmul.mubr.bf16.vlgmr.msra.gmra.mxu1 %v17010_v23 }
 0x89e   : > { %12968 = vmatpush1.bf16.msra.mxu0 %v15599_v29  ;;  %13001 = vmatpush1.bf16.msra.mxu1 %v15602_v55  ;;  %v15671_v29 = vld [vmem:[#allocation11 + $0xb18] ss:$24 sps:$4 sm:$0xff]  }
 0x89f   : > { %13032 = vmatprep.mubr.bf16.mxu1 %v17029_v47  ;;  %12969 = vmatprep.subr.bf16.mxu0 %v15607_v6  ;;  %v15674_v55 = vld [vmem:[#allocation11 + $0x160] ss:$24 sps:$4 sm:$0xff]   ;;  %v15679_v6 = vld [vmem:[#allocation11 + $0xaec] ss:$24 sps:$4 sm:$0xff]  }
 0x8a0   : > { %13002 = vmatprep.subr.bf16.mxu1 %v15610_v32  ;;  %v15682_v32 = vld [vmem:[#allocation11 + $0x134] ss:$24 sps:$4 sm:$0xff]  }
 0x8a2   : > { %12970 = vmatpush1.bf16.msra.mxu0 %v15605_v59  ;;  %13003 = vmatpush1.bf16.msra.mxu1 %v15608_v13  ;;  %v15677_v13 = vld [vmem:[#allocation11 + $0xae8] ss:$24 sps:$4 sm:$0xff]  }
 0x8a3   : > { %12971 = vmatprep.subr.bf16.mxu0 %v15613_v53  ;;  %13004 = vmatprep.subr.bf16.mxu1 %v15616_v37  ;;  %v15680_v53 = vld [vmem:[#allocation11 + $0x130] ss:$24 sps:$4 sm:$0xff]  }
 0x8a6   : > { %12972 = vmatpush1.bf16.msra.mxu0 %v15611_v50  ;;  %13005 = vmatpush1.bf16.msra.mxu1 %v15614_v33  ;;  %v15685_v50 = vld [vmem:[#allocation11 + $0xabc] ss:$24 sps:$4 sm:$0xff]  }
 0x8a7   : > { %12973 = vmatprep.subr.bf16.mxu0 %v15619_v28  ;;  %13006 = vmatprep.subr.bf16.mxu1 %v15622_v16  ;;  %v15688_v33 = vld [vmem:[#allocation11 + $0x104] ss:$24 sps:$4 sm:$0xff]   ;;  %v15683_v16 = vld [vmem:[#allocation11 + $0xab8] ss:$24 sps:$4 sm:$0xff]  }
 0x8aa   : > { %12974 = vmatpush1.bf16.msra.mxu0 %v15617_v52  ;;  %13007 = vmatpush1.bf16.msra.mxu1 %v15620_v25  ;;  %v15686_v52 = vld [vmem:[#allocation11 + $0x100] ss:$24 sps:$4 sm:$0xff]  }
 0x8ab   : > { %12975 = vmatprep.subr.bf16.mxu0 %v15625_v58  ;;  %13008 = vmatprep.subr.bf16.mxu1 %v15628_v60  ;;  %v15691_v58 = vld [vmem:[#allocation11 + $0xa8c] ss:$24 sps:$4 sm:$0xff]  }
 0x8ac   : > { %v15694_v60 = vld [vmem:[#allocation11 + $0xd4] ss:$24 sps:$4 sm:$0xff]  }
 0x8ae   : > { %12976 = vmatpush2.bf16.msra.mxu0 %v15623_v48  ;;  %13009 = vmatpush1.bf16.msra.mxu1 %v15626_v26  ;;  %v17050_v48 = vld [vmem:[#allocation12] sm:$0x3f]  ;;  %v15692_v26 = vld [vmem:[#allocation11 + $0xd0] ss:$24 sps:$4 sm:$0xff]  }
 0x8af   : > { %12977 = vmatprep.subr.bf16.mxu0 %v15631_v18  ;;  %13010 = vmatprep.subr.bf16.mxu1 %v15634_v42  ;;  %v15697_v18 = vld [vmem:[#allocation11 + $0xa4] ss:$24 sps:$4 sm:$0xff]  }
 0x8b0   : > { %v15700_v42 = vld [vmem:[#allocation11 + $0x464] ss:$24 sps:$4 sm:$0xff]  }
 0x8b2   : > { %12978 = vmatpush2.bf16.msra.mxu0 %v15629_v2  ;;  %13011 = vmatpush1.bf16.msra.mxu1 %v15632_v63  ;;  %v12686_v2 = vrot.slane %v17050_v48, %v16529_v19  ;;  %v12690_v63 = vrot.slane %v17050_v48, %v16534_v24  ;;  %v15701_v19 = vld [vmem:[#allocation11 + $0x70] ss:$24 sps:$4 sm:$0xff]  }
 0x8b3   : > { %12979 = vmatprep.subr.bf16.mxu0 %v15637_v35  ;;  %13012 = vmatprep.subr.bf16.mxu1 %v15640_v3  ;;  %v15695_v35 = vld [vmem:[#allocation11 + $0xa0] ss:$24 sps:$4 sm:$0xff]  }
 0x8b4   : > { %v15698_v3 = vld [vmem:[#allocation11 + $0x460] ss:$24 sps:$4 sm:$0xff]  }
 0x8b6   : > { %12980 = vmatpush2.bf16.msra.mxu0 %v15635_v39  ;;  %13013 = vmatpush1.bf16.msra.mxu1 %v15638_v43  ;;  %v15703_v39 = vld [vmem:[#allocation11 + $0x74] ss:$24 sps:$4 sm:$0xff]  }
 0x8b7   : > { %12981 = vmatprep.subr.bf16.mxu0 %v15643_v49  ;;  %13014 = vmatprep.subr.bf16.mxu1 %v15646_v46  ;;  %v15706_v49 = vld [vmem:[#allocation11 + $0x434] ss:$24 sps:$4 sm:$0xff]  }
 0x8ba   : > { %12982 = vmatpush2.bf16.msra.mxu0 %v15641_v14  ;;  %13015 = vmatpush1.bf16.msra.mxu1 %v15644_v40 }
 0x8bb   : > { %12983 = vmatprep.subr.bf16.mxu0 %v15649_v41  ;;  %13016 = vmatprep.subr.bf16.mxu1 %v15652_v22  ;;  %v15704_v41 = vld [vmem:[#allocation11 + $0x430] ss:$24 sps:$4 sm:$0xff]   ;;  %v15709_v22 = vld [vmem:[#allocation11 + $0x44] ss:$24 sps:$4 sm:$0xff]  }
 0x8be   : > { %12984 = vmatpush2.bf16.msra.mxu0 %v15647_v21  ;;  %13017 = vmatpush2.bf16.msra.mxu1 %v15650_v27  ;;  %v15712_v21 = vld [vmem:[#allocation11 + $0x404] ss:$24 sps:$4 sm:$0xff]  }
 0x8bf   : > { %12985 = vmatprep.subr.bf16.mxu0 %v15655_v20  ;;  %13018 = vmatprep.subr.bf16.mxu1 %v15658_v30  ;;  %v15707_v30 = vld [vmem:[#allocation11 + $0x40] ss:$24 sps:$4 sm:$0xff]  }
 0x8c2   : > { %12986 = vmatpush2.bf16.msra.mxu0 %v15653_v44  ;;  %13019 = vmatpush2.bf16.msra.mxu1 %v15656_v8  ;;  %v15710_v44 = vld [vmem:[#allocation11 + $0x400] ss:$24 sps:$4 sm:$0xff]  }
 0x8c3   : > { %12987 = vmatprep.subr.bf16.mxu0 %v15661_v61  ;;  %13020 = vmatprep.subr.bf16.mxu1 %v15664_v31  ;;  %v15715_v61 = vld [vmem:[#allocation11 + $0x14] ss:$24 sps:$4 sm:$0xff]  }
 0x8c4   : > { %v15718_v31 = vld [vmem:[#allocation11 + $0x3d4] ss:$24 sps:$4 sm:$0xff]  }
 0x8c6   : > { %12988 = vmatpush2.bf16.msra.mxu0 %v15659_v56  ;;  %13021 = vmatpush2.bf16.msra.mxu1 %v15662_v0  ;;  %v15716_v56 = vld [vmem:[#allocation11 + $0x3d0] ss:$24 sps:$4 sm:$0xff]   ;;  %v15721_v0 = vld [vmem:[#allocation11 + $0x2e4] ss:$24 sps:$4 sm:$0xff]  }
 0x8c7   : > { %12989 = vmatprep.subr.bf16.mxu0 %v15667_v17  ;;  %13022 = vmatprep.subr.bf16.mxu1 %v15670_v11  ;;  %v15724_v17 = vld [vmem:[#allocation11 + $0x3a4] ss:$24 sps:$4 sm:$0xff]   ;;  %v15719_v11 = vld [vmem:[#allocation11 + $0x2e0] ss:$24 sps:$4 sm:$0xff]  }
 0x8ca   : > { %12990 = vmatpush2.bf16.msra.mxu0 %v15665_v36  ;;  %13023 = vmatpush2.bf16.msra.mxu1 %v15668_v1  ;;  %v15722_v36 = vld [vmem:[#allocation11 + $0x3a0] ss:$24 sps:$4 sm:$0xff]   ;;  %v15727_v1 = vld [vmem:[#allocation11 + $0x2b4] ss:$24 sps:$4 sm:$0xff]  }
 0x8cb   : > { %13024 = vmatprep.subr.bf16.mxu1 %v15673_v4  ;;  %13041 = vmatprep.subr.bf16.mxu0 %v15676_v57  ;;  %v15730_v4 = vld [vmem:[#allocation11 + $0x374] ss:$24 sps:$4 sm:$0xff]   ;;  %v15725_v57 = vld [vmem:[#allocation11 + $0x2b0] ss:$24 sps:$4 sm:$0xff]  }
 0x8cd   : > { %12992 = vmatmul.mubr.bf16.vlgmr.msra.gmra.mxu0 %v17034_v34  ;;  %v12747_v59 = vpop.f32.mrf.mxu0 }
 0x8ce   : > { %13025 = vmatpush2.bf16.msra.mxu1 %v15671_v29  ;;  %13042 = vmatpush1.bf16.msra.mxu0 %v15674_v55  ;;  %v12748_v43 = vadd.f32 %v12747_v59, %v12686_v2  ;;  %v15728_v29 = vld [vmem:[#allocation11 + $0x370] ss:$24 sps:$4 sm:$0xff]   ;;  %v15733_v55 = vld [vmem:[#allocation11 + $0x284] ss:$24 sps:$4 sm:$0xff]   ;;  %v15734_v59 = vld [vmem:[#allocation11 + $0x340] ss:$24 sps:$4 sm:$0xff]  }
 0x8cf   : > { %13073 = vmatprep.mubr.bf16.mxu0 %v16996_v45  ;;  %v12749_v37 = vpop.f32.mrf.mxu0  ;;  %13026 = vmatprep.subr.bf16.mxu1 %v15679_v6  ;;  %v15689_v45 = vld [vmem:[#allocation11 + $0xa88] ss:$24 sps:$4 sm:$0xff]   ;;  %v15736_v6 = vld [vmem:[#allocation11 + $0x344] ss:$24 sps:$4 sm:$0xff]  }
 0x8d0   : > { %13043 = vmatprep.subr.bf16.mxu0 %v15682_v32  ;;  %v12750_v14 = vadd.f32 %v12749_v37, %v12690_v63  ;;  %v15731_v32 = vld [vmem:[#allocation11 + $0x280] ss:$24 sps:$4 sm:$0xff]   ;;  %v15737_v37 = vld [vmem:[#allocation11 + $0x250] ss:$24 sps:$4 sm:$0xff]   ;;  %v15763_v63 = vld [vmem:[#allocation11 + $0x194] ss:$24 sps:$4 sm:$0xff]  }
 0x8d1   : > { %v12751_v28 = vpop.f32.mrf.mxu0  ;;  %v15758_v2 = vld [vmem:[#allocation11 + $0x580] ss:$24 sps:$4 sm:$0xff]  }
 0x8d2   : > { %13027 = vmatpush2.bf16.msra.mxu1 %v15677_v13  ;;  %13044 = vmatpush1.bf16.msra.mxu0 %v15680_v53  ;;  %v15739_v13 = vld [vmem:[#allocation11 + $0x254] ss:$24 sps:$4 sm:$0xff]   ;;  %v15748_v28 = vld [vmem:[#allocation11 + $0x5e4] ss:$24 sps:$4 sm:$0xff]  }
 0x8d3   : > { %v12752_v25 = vpop.f32.mrf.mxu0  ;;  %13028 = vmatprep.subr.bf16.mxu1 %v15685_v50  ;;  %13045 = vmatprep.subr.bf16.mxu0 %v15688_v33  ;;  %v15742_v53 = vld [vmem:[#allocation11 + $0x314] ss:$24 sps:$4 sm:$0xff]   ;;  %v15740_v50 = vld [vmem:[#allocation11 + $0x310] ss:$24 sps:$4 sm:$0xff]   ;;  %v15745_v33 = vld [vmem:[#allocation11 + $0x224] ss:$24 sps:$4 sm:$0xff]  }
 0x8d4   : > { %v15751_v25 = vld [vmem:[#allocation11 + $0x1f4] ss:$24 sps:$4 sm:$0xff]  }
 0x8d6   : > { %13029 = vmatpush2.bf16.msra.mxu1 %v15683_v16  ;;  %13046 = vmatpush1.bf16.msra.mxu0 %v15686_v52  ;;  %v15743_v16 = vld [vmem:[#allocation11 + $0x220] ss:$24 sps:$4 sm:$0xff]  }
 0x8d7   : > { %13030 = vmatprep.subr.bf16.mxu1 %v15691_v58  ;;  %13047 = vmatprep.subr.bf16.mxu0 %v15694_v60  ;;  %v15746_v52 = vld [vmem:[#allocation11 + $0x5e0] ss:$24 sps:$4 sm:$0xff]   ;;  %v15754_v58 = vld [vmem:[#allocation11 + $0x5b4] ss:$24 sps:$4 sm:$0xff]   ;;  %v15749_v60 = vld [vmem:[#allocation11 + $0x1f0] ss:$24 sps:$4 sm:$0xff]  }
 0x8da   : > { %13031 = vmatpush2.bf16.msra.mxu1 %v15689_v45  ;;  %13048 = vmatpush1.bf16.msra.mxu0 %v15692_v26  ;;  %v15752_v45 = vld [vmem:[#allocation11 + $0x5b0] ss:$24 sps:$4 sm:$0xff]   ;;  %v15757_v26 = vld [vmem:[#allocation11 + $0x1c4] ss:$24 sps:$4 sm:$0xff]  }
 0x8db   : > { %13049 = vmatprep.subr.bf16.mxu0 %v15697_v18  ;;  %13082 = vmatprep.subr.bf16.mxu1 %v15700_v42  ;;  %v15760_v18 = vld [vmem:[#allocation11 + $0x584] ss:$24 sps:$4 sm:$0xff]   ;;  %v15755_v42 = vld [vmem:[#allocation11 + $0x1c0] ss:$24 sps:$4 sm:$0xff]  }
 0x8dd   : > { %13033 = vmatmul.mubr.bf16.vlgmr.msra.gmra.mxu1 %v17040_v54  ;;  %v12788_v46 = vpop.f32.mrf.mxu1 }
 0x8de   : > { %v17057_v40 = vadd.f32 %v12788_v46, %v12748_v43  ;;  %13050 = vmatpush1.bf16.msra.mxu0 %v15695_v35  ;;  %13083 = vmatpush1.bf16.msra.mxu1 %v15698_v3  ;;  %v15766_v35 = vld [vmem:[#allocation11 + $0x554] ss:$24 sps:$4 sm:$0xff]   ;;  %v15761_v3 = vld [vmem:[#allocation11 + $0x190] ss:$24 sps:$4 sm:$0xff]   ;;  %v15769_v43 = vld [vmem:[#allocation11 + $0x524] ss:$24 sps:$4 sm:$0xff]  }
 0x8df   : > { %13114 = vmatprep.mubr.bf16.mxu1 %v17008_v12  ;;  %v12790_v24 = vpop.f32.mrf.mxu1  ;;  %13051 = vmatprep.subr.bf16.mxu0 %v15703_v39  ;;  %v15713_v12 = vld [vmem:[#allocation11 + $0x10] ss:$24 sps:$4 sm:$0xff]   ;;  %v15767_v46 = vld [vmem:[#allocation11 + $0x520] ss:$24 sps:$4 sm:$0xff]  }
 0x8e0   : > { %v17060_v27 = vadd.f32 %v12790_v24, %v12750_v14  ;;  %13084 = vmatprep.subr.bf16.mxu1 %v15706_v49  ;;  %v15764_v39 = vld [vmem:[#allocation11 + $0x550] ss:$24 sps:$4 sm:$0xff]   ;;  %v15772_v49 = vld [vmem:[#allocation11 + $0x764] ss:$24 sps:$4 sm:$0xff]   ;;  %v15770_v14 = vld [vmem:[#allocation11 + $0x760] ss:$24 sps:$4 sm:$0xff]  }
 0x8e1   : > { %v12792_v20 = vpop.f32.mrf.mxu1 }
 0x8e2   : > { %13052 = vmatpush1.bf16.msra.mxu0 %v15701_v19  ;;  %13085 = vmatpush1.bf16.msra.mxu1 %v15704_v41  ;;  %v15775_v19 = vld [vmem:[#allocation11 + $0x4f4] ss:$24 sps:$4 sm:$0xff]   ;;  %v15776_v20 = vld [vmem:[#allocation11 + $0x730] ss:$24 sps:$4 sm:$0xff]  }
 0x8e3   : > { %v12793_v8 = vpop.f32.mrf.mxu1  ;;  %13053 = vmatprep.subr.bf16.mxu0 %v15709_v22  ;;  %13086 = vmatprep.subr.bf16.mxu1 %v15712_v21  ;;  %v15778_v41 = vld [vmem:[#allocation11 + $0x734] ss:$24 sps:$4 sm:$0xff]   ;;  %v15773_v21 = vld [vmem:[#allocation11 + $0x4f0] ss:$24 sps:$4 sm:$0xff]  }
 0x8e4   : > { %v15784_v8 = vld [vmem:[#allocation11 + $0x704] ss:$24 sps:$4 sm:$0xff]  }
 0x8e6   : > { %13054 = vmatpush1.bf16.msra.mxu0 %v15707_v30  ;;  %13087 = vmatpush1.bf16.msra.mxu1 %v15710_v44  ;;  %v15781_v44 = vld [vmem:[#allocation11 + $0x4c4] ss:$24 sps:$4 sm:$0xff]  }
 0x8e7   : > { %13055 = vmatprep.subr.bf16.mxu0 %v15715_v61  ;;  %13088 = vmatprep.subr.bf16.mxu1 %v15718_v31 }
 0x8ea   : > { %13056 = vmatpush1.bf16.msra.mxu0 %v15713_v12  ;;  %13089 = vmatpush1.bf16.msra.mxu1 %v15716_v56  ;;  %v15779_v12 = vld [vmem:[#allocation11 + $0x4c0] ss:$24 sps:$4 sm:$0xff]  }
 0x8eb   : > { %13057 = vmatprep.subr.bf16.mxu0 %v15721_v0  ;;  %13090 = vmatprep.subr.bf16.mxu1 %v15724_v17  ;;  %v15790_v0 = vld [vmem:[#allocation11 + $0x6d4] ss:$24 sps:$4 sm:$0xff]   ;;  %v15788_v17 = vld [vmem:[#allocation11 + $0x6d0] ss:$24 sps:$4 sm:$0xff]  }
 0x8ee   : > { %13058 = vmatpush2.bf16.msra.mxu0 %v15719_v11  ;;  %13091 = vmatpush1.bf16.msra.mxu1 %v15722_v36  ;;  %v15793_v11 = vld [vmem:[#allocation11 + $0x6a4] ss:$24 sps:$4 sm:$0xff]  }
 0x8ef   : > { %13059 = vmatprep.subr.bf16.mxu0 %v15727_v1  ;;  %13092 = vmatprep.subr.bf16.mxu1 %v15730_v4  ;;  %v15796_v36 = vld [vmem:[#allocation11 + $0xa64] ss:$24 sps:$4 sm:$0xff]   ;;  %v15794_v1 = vld [vmem:[#allocation11 + $0xa60] ss:$24 sps:$4 sm:$0xff]   ;;  %v15799_v4 = vld [vmem:[#allocation11 + $0x674] ss:$24 sps:$4 sm:$0xff]  }
 0x8f2   : > { %13060 = vmatpush2.bf16.msra.mxu0 %v15725_v57  ;;  %13093 = vmatpush1.bf16.msra.mxu1 %v15728_v29  ;;  %v15802_v57 = vld [vmem:[#allocation11 + $0xa34] ss:$24 sps:$4 sm:$0xff]  }
 0x8f3   : > { %13061 = vmatprep.subr.bf16.mxu0 %v15733_v55  ;;  %13094 = vmatprep.subr.bf16.mxu1 %v15736_v6  ;;  %v15797_v6 = vld [vmem:[#allocation11 + $0x670] ss:$24 sps:$4 sm:$0xff]  }
 0x8f6   : > { %13062 = vmatpush2.bf16.msra.mxu0 %v15731_v32  ;;  %13095 = vmatpush1.bf16.msra.mxu1 %v15734_v59  ;;  %v15800_v32 = vld [vmem:[#allocation11 + $0xa30] ss:$24 sps:$4 sm:$0xff]  }
 0x8f7   : > { %13063 = vmatprep.subr.bf16.mxu0 %v15739_v13  ;;  %13096 = vmatprep.subr.bf16.mxu1 %v15742_v53  ;;  %v15805_v13 = vld [vmem:[#allocation11 + $0x644] ss:$24 sps:$4 sm:$0xff]  }
 0x8f8   : > { %v15808_v53 = vld [vmem:[#allocation11 + $0xa04] ss:$24 sps:$4 sm:$0xff]  }
 0x8fa   : > { %13064 = vmatpush2.bf16.msra.mxu0 %v15737_v37  ;;  %13097 = vmatpush1.bf16.msra.mxu1 %v15740_v50 }
 0x8fb   : > { %13065 = vmatprep.subr.bf16.mxu0 %v15745_v33  ;;  %13098 = vmatprep.subr.bf16.mxu1 %v15748_v28  ;;  %v15806_v28 = vld [vmem:[#allocation11 + $0xa00] ss:$24 sps:$4 sm:$0xff]  }
 0x8fe   : > { %13066 = vmatpush2.bf16.msra.mxu0 %v15743_v16  ;;  %13099 = vmatpush2.bf16.msra.mxu1 %v15746_v52  ;;  %v15811_v52 = vld [vmem:[#allocation11 + $0x614] ss:$24 sps:$4 sm:$0xff]  }
 0x8ff   : > { %13067 = vmatprep.subr.bf16.mxu0 %v15751_v25  ;;  %13100 = vmatprep.subr.bf16.mxu1 %v15754_v58  ;;  %v15809_v25 = vld [vmem:[#allocation11 + $0x610] ss:$24 sps:$4 sm:$0xff]  }
 0x900   : > { %v15812_v58 = vld [vmem:[#allocation11 + $0x9d0] ss:$24 sps:$4 sm:$0xff]  }
 0x902   : > { %13068 = vmatpush2.bf16.msra.mxu0 %v15749_v60  ;;  %13101 = vmatpush2.bf16.msra.mxu1 %v15752_v45  ;;  %v15817_v60 = vld [vmem:[#allocation11 + $0x8e4] ss:$24 sps:$4 sm:$0xff]  }
 0x903   : > { %13069 = vmatprep.subr.bf16.mxu0 %v15757_v26  ;;  %13102 = vmatprep.subr.bf16.mxu1 %v15760_v18  ;;  %v15820_v45 = vld [vmem:[#allocation11 + $0x9a4] ss:$24 sps:$4 sm:$0xff]   ;;  %v15815_v26 = vld [vmem:[#allocation11 + $0x8e0] ss:$24 sps:$4 sm:$0xff]  }
 0x904   : > { %v15818_v18 = vld [vmem:[#allocation11 + $0x9a0] ss:$24 sps:$4 sm:$0xff]  }
 0x906   : > { %13070 = vmatpush2.bf16.msra.mxu0 %v15755_v42  ;;  %13103 = vmatpush2.bf16.msra.mxu1 %v15758_v2  ;;  %v15823_v42 = vld [vmem:[#allocation11 + $0x8b4] ss:$24 sps:$4 sm:$0xff]  }
 0x907   : > { %13071 = vmatprep.subr.bf16.mxu0 %v15763_v63  ;;  %13104 = vmatprep.subr.bf16.mxu1 %v15766_v35  ;;  %v15826_v2 = vld [vmem:[#allocation11 + $0x974] ss:$24 sps:$4 sm:$0xff]   ;;  %v15821_v63 = vld [vmem:[#allocation11 + $0x8b0] ss:$24 sps:$4 sm:$0xff]  }
 0x908   : > { %v15824_v35 = vld [vmem:[#allocation11 + $0x970] ss:$24 sps:$4 sm:$0xff]  }
 0x90a   : > { %13072 = vmatpush2.bf16.msra.mxu0 %v15761_v3  ;;  %13105 = vmatpush2.bf16.msra.mxu1 %v15764_v39  ;;  %v15829_v3 = vld [vmem:[#allocation11 + $0x884] ss:$24 sps:$4 sm:$0xff]  }
 0x90b   : > { %13106 = vmatprep.subr.bf16.mxu1 %v15769_v43  ;;  %13123 = vmatprep.subr.bf16.mxu0 %v15772_v49  ;;  %v15832_v39 = vld [vmem:[#allocation11 + $0x944] ss:$24 sps:$4 sm:$0xff]   ;;  %v15827_v43 = vld [vmem:[#allocation11 + $0x880] ss:$24 sps:$4 sm:$0xff]  }
 0x90c   : > { %v15830_v49 = vld [vmem:[#allocation11 + $0x940] ss:$24 sps:$4 sm:$0xff]  }
 0x90d   : > { %v12829_v24 = vpop.f32.mrf.mxu0  ;;  %13074 = vmatmul.mubr.bf16.vlgmr.msra.gmra.mxu0 %v16998_v51  ;;  %v15782_v51 = vld [vmem:[#allocation11 + $0x700] ss:$24 sps:$4 sm:$0xff]  }
 0x90e   : > { %v12830_v22 = vadd.f32 %v12829_v24, %v17057_v40  ;;  %13107 = vmatpush2.bf16.msra.mxu1 %v15767_v46  ;;  %13124 = vmatpush1.bf16.msra.mxu0 %v15770_v14  ;;  %v15787_v40 = vld [vmem:[#allocation11 + $0x494] ss:$24 sps:$4 sm:$0xff]   ;;  %v15841_v24 = vld [vmem:[#allocation11 + $0x824] ss:$24 sps:$4 sm:$0xff]  }
 0x90f   : > { %13155 = vmatprep.mubr.bf16.mxu0 %v17022_v38  ;;  %v12831_v30 = vpop.f32.mrf.mxu0  ;;  %13108 = vmatprep.subr.bf16.mxu1 %v15775_v19  ;;  %v15785_v38 = vld [vmem:[#allocation11 + $0x490] ss:$24 sps:$4 sm:$0xff]   ;;  %v15835_v46 = vld [vmem:[#allocation11 + $0x854] ss:$24 sps:$4 sm:$0xff]  }
 0x910   : > { %v12832_v61 = vadd.f32 %v12831_v30, %v17060_v27  ;;  %13125 = vmatprep.subr.bf16.mxu0 %v15778_v41  ;;  %v15791_v27 = vld [vmem:[#allocation11 + $0x6a0] ss:$24 sps:$4 sm:$0xff]   ;;  %v15838_v14 = vld [vmem:[#allocation11 + $0x914] ss:$24 sps:$4 sm:$0xff]   ;;  %v15833_v19 = vld [vmem:[#allocation11 + $0x850] ss:$24 sps:$4 sm:$0xff]  }
 0x911   : > { %v12833_v31 = vpop.f32.mrf.mxu0  ;;  %v15836_v41 = vld [vmem:[#allocation11 + $0x910] ss:$24 sps:$4 sm:$0xff]   ;;  %v15847_v30 = vld [vmem:[#allocation11 + $0x7f4] ss:$24 sps:$4 sm:$0xff]  }
 0x912   : > { %13109 = vmatpush2.bf16.msra.mxu1 %v15773_v21  ;;  %13126 = vmatpush1.bf16.msra.mxu0 %v15776_v20  ;;  %v15839_v21 = vld [vmem:[#allocation11 + $0x820] ss:$24 sps:$4 sm:$0xff]   ;;  %v15853_v31 = vld [vmem:[#allocation11 + $0x7c4] ss:$24 sps:$4 sm:$0xff]  }
 0x913   : > { %v12834_v56 = vpop.f32.mrf.mxu0  ;;  %13110 = vmatprep.subr.bf16.mxu1 %v15781_v44  ;;  %13127 = vmatprep.subr.bf16.mxu0 %v15784_v8  ;;  %v15842_v20 = vld [vmem:[#allocation11 + $0xbe0] ss:$24 sps:$4 sm:$0xff]   ;;  %v15850_v44 = vld [vmem:[#allocation11 + $0xbb4] ss:$24 sps:$4 sm:$0xff]   ;;  %v15845_v8 = vld [vmem:[#allocation11 + $0x7f0] ss:$24 sps:$4 sm:$0xff]  }
 0x914   : > { %v15854_v56 = vld [vmem:[#allocation11 + $0xb80] ss:$24 sps:$4 sm:$0xff]  }
 0x916   : > { %13111 = vmatpush2.bf16.msra.mxu1 %v15779_v12  ;;  %13128 = vmatpush1.bf16.msra.mxu0 %v15782_v51  ;;  %v15856_v12 = vld [vmem:[#allocation11 + $0xb84] ss:$24 sps:$4 sm:$0xff]   ;;  %v15851_v51 = vld [vmem:[#allocation11 + $0x7c0] ss:$24 sps:$4 sm:$0xff]  }
 0x917   : > { %13112 = vmatprep.subr.bf16.mxu1 %v15787_v40  ;;  %13129 = vmatprep.subr.bf16.mxu0 %v15790_v0  ;;  %v15859_v40 = vld [vmem:[#allocation11 + $0x794] ss:$24 sps:$4 sm:$0xff]  }
 0x918   : > { %v15862_v0 = vld [vmem:[#allocation11 + $0xb54] ss:$24 sps:$4 sm:$0xff]  }
 0x91a   : > { %13113 = vmatpush2.bf16.msra.mxu1 %v15785_v38  ;;  %13130 = vmatpush1.bf16.msra.mxu0 %v15788_v17  ;;  %v15857_v38 = vld [vmem:[#allocation11 + $0x790] ss:$24 sps:$4 sm:$0xff]  }
 0x91b   : > { %13131 = vmatprep.subr.bf16.mxu0 %v15793_v11  ;;  %13164 = vmatprep.subr.bf16.mxu1 %v15796_v36  ;;  %v15860_v17 = vld [vmem:[#allocation11 + $0xb50] ss:$24 sps:$4 sm:$0xff]   ;;  %v15865_v11 = vld [vmem:[#allocation11 + $0xb24] ss:$24 sps:$4 sm:$0xff]   ;;  %v15863_v36 = vld [vmem:[#allocation11 + $0xb20] ss:$24 sps:$4 sm:$0xff]  }
 0x91d   : > { %v12870_v29 = vpop.f32.mrf.mxu1  ;;  %13115 = vmatmul.mubr.bf16.vlgmr.msra.gmra.mxu1 %v17010_v23  ;;  %v15803_v23 = vld [vmem:[#allocation11 + $0x640] ss:$24 sps:$4 sm:$0xff]  }
 0x91e   : > { %v17067_v55 = vadd.f32 %v12870_v29, %v12830_v22  ;;  %13132 = vmatpush1.bf16.msra.mxu0 %v15791_v27  ;;  %13165 = vmatpush1.bf16.msra.mxu1 %v15794_v1  ;;  %v15844_v22 = vld [vmem:[#allocation11 + $0xbe4] ss:$24 sps:$4 sm:$0xff]   ;;  %v15868_v27 = vld [vmem:[#allocation11 + $0xaf4] ss:$24 sps:$4 sm:$0xff]  }
 0x91f   : > { %13196 = vmatprep.mubr.bf16.mxu1 %v17029_v47  ;;  %v12872_v59 = vpop.f32.mrf.mxu1  ;;  %13133 = vmatprep.subr.bf16.mxu0 %v15799_v4  ;;  %v15814_v47 = vld [vmem:[#allocation11 + $0x9d4] ss:$24 sps:$4 sm:$0xff]   ;;  %v15866_v4 = vld [vmem:[#allocation11 + $0xaf0] ss:$24 sps:$4 sm:$0xff]   ;;  %v15871_v29 = vld [vmem:[#allocation11 + $0xac4] ss:$24 sps:$4 sm:$0xff]  }
 0x920   : > { %v17070_v37 = vadd.f32 %v12872_v59, %v12832_v61  ;;  %13166 = vmatprep.subr.bf16.mxu1 %v15802_v57  ;;  %v15848_v61 = vld [vmem:[#allocation11 + $0xbb0] ss:$24 sps:$4 sm:$0xff]  }
 0x921   : > { %v12874_v50 = vpop.f32.mrf.mxu1 }
 0x922   : > { %v13211_v33 = vcombine.low %v17067_v55, %v17070_v37  ;;  %13134 = vmatpush1.bf16.msra.mxu0 %v15797_v6  ;;  %13167 = vmatpush1.bf16.msra.mxu1 %v15800_v32  ;;  %v15869_v32 = vld [vmem:[#allocation11 + $0xac0] ss:$24 sps:$4 sm:$0xff]   ;;  %v12694_v50 = vrot.slane %v17050_v48, %v16551_v5  ;;  %v12706_v55 = vrot.slane %v17050_v48, %v16584_v15 }
 0x923   : > { %v12875_v16 = vpop.f32.mrf.mxu1  ;;  %13135 = vmatprep.subr.bf16.mxu0 %v15805_v13  ;;  %13168 = vmatprep.subr.bf16.mxu1 %v15808_v53  ;;  %v15874_v13 = vld [vmem:[#allocation11 + $0xa94] ss:$24 sps:$4 sm:$0xff]   ;;  %v15872_v53 = vld [vmem:[#allocation11 + $0xa90] ss:$24 sps:$4 sm:$0xff]  }
 0x926   : > { %13136 = vmatpush1.bf16.msra.mxu0 %v15803_v23  ;;  %13169 = vmatpush1.bf16.msra.mxu1 %v15806_v28 }
 0x927   : > { %13137 = vmatprep.subr.bf16.mxu0 %v15811_v52  ;;  %13170 = vmatprep.subr.bf16.mxu1 %v15814_v47 }
 0x92a   : > { %13138 = vmatpush1.bf16.msra.mxu0 %v15809_v25  ;;  %13171 = vmatpush1.bf16.msra.mxu1 %v15812_v58 }
 0x92b   : > { %13139 = vmatprep.subr.bf16.mxu0 %v15817_v60  ;;  %13172 = vmatprep.subr.bf16.mxu1 %v15820_v45 }
 0x92e   : > { %13140 = vmatpush2.bf16.msra.mxu0 %v15815_v26  ;;  %13173 = vmatpush1.bf16.msra.mxu1 %v15818_v18 }
 0x92f   : > { %13141 = vmatprep.subr.bf16.mxu0 %v15823_v42  ;;  %13174 = vmatprep.subr.bf16.mxu1 %v15826_v2 }
 0x932   : > { %13142 = vmatpush2.bf16.msra.mxu0 %v15821_v63  ;;  %13175 = vmatpush1.bf16.msra.mxu1 %v15824_v35  ;;  %v16230_v63 = vmov 1966171168  }
 0x933   : > { %13143 = vmatprep.subr.bf16.mxu0 %v15829_v3  ;;  %13176 = vmatprep.subr.bf16.mxu1 %v15832_v39  ;;  %v13215_v35 = vunpack.c.l.s4 %v16230_v63 }
 0x936   : > { %13144 = vmatpush2.bf16.msra.mxu0 %v15827_v43  ;;  %13177 = vmatpush1.bf16.msra.mxu1 %v15830_v49 }
 0x937   : > { %13145 = vmatprep.subr.bf16.mxu0 %v15835_v46  ;;  %13178 = vmatprep.subr.bf16.mxu1 %v15838_v14 }
 0x93a   : > { %13146 = vmatpush2.bf16.msra.mxu0 %v15833_v19  ;;  %13179 = vmatpush1.bf16.msra.mxu1 %v15836_v41 }
 0x93b   : > { %13147 = vmatprep.subr.bf16.mxu0 %v15841_v24  ;;  %13180 = vmatprep.subr.bf16.mxu1 %v15844_v22 }
 0x93e   : > { %13148 = vmatpush2.bf16.msra.mxu0 %v15839_v21  ;;  %13181 = vmatpush2.bf16.msra.mxu1 %v15842_v20 }
 0x93f   : > { %13149 = vmatprep.subr.bf16.mxu0 %v15847_v30  ;;  %13182 = vmatprep.subr.bf16.mxu1 %v15850_v44 }
 0x942   : > { %13150 = vmatpush2.bf16.msra.mxu0 %v15845_v8  ;;  %13183 = vmatpush2.bf16.msra.mxu1 %v15848_v61 }
 0x943   : > { %13151 = vmatprep.subr.bf16.mxu0 %v15853_v31  ;;  %13184 = vmatprep.subr.bf16.mxu1 %v15856_v12 }
 0x946   : > { %13152 = vmatpush2.bf16.msra.mxu0 %v15851_v51  ;;  %13185 = vmatpush2.bf16.msra.mxu1 %v15854_v56 }
 0x947   : > { %13153 = vmatprep.subr.bf16.mxu0 %v15859_v40  ;;  %13186 = vmatprep.subr.bf16.mxu1 %v15862_v0  ;;  %v12702_v0 = vrot.slane %v17050_v48, %v16581_v9 }
 0x94a   : > { %13154 = vmatpush2.bf16.msra.mxu0 %v15857_v38  ;;  %13187 = vmatpush2.bf16.msra.mxu1 %v15860_v17 }
 0x94b   : > { %13188 = vmatprep.subr.bf16.mxu1 %v15865_v11 }
 0x94d   : > { %v12911_v1 = vpop.f32.mrf.mxu0  ;;  %13156 = vmatmul.mubr.bf16.vlgmr.msra.gmra.mxu0 %v17034_v34  ;;  %v12698_v34 = vrot.slane %v17050_v48, %v16554_v10  ;;  %v13216_v10 = vunpack.c.0.s8 %v13215_v35 }
 0x94e   : > { %13189 = vmatpush2.bf16.msra.mxu1 %v15863_v36  ;;  %v12912_v23 = vadd.f32 %v12911_v1, %v12694_v50 }
 0x94f   : > { %v12913_v57 = vpop.f32.mrf.mxu0  ;;  %13190 = vmatprep.subr.bf16.mxu1 %v15868_v27 }
 0x950   : > { %v12914_v16 = vadd.f32 %v12913_v57, %v12698_v34 }
 0x951   : > { %v12915_v6 = vpop.f32.mrf.mxu0 }
 0x952   : > { %13191 = vmatpush2.bf16.msra.mxu1 %v15866_v4 }
 0x953   : > { %v12916_v59 = vpop.f32.mrf.mxu0  ;;  %13192 = vmatprep.subr.bf16.mxu1 %v15871_v29 }
 0x956   : > { %13193 = vmatpush2.bf16.msra.mxu1 %v15869_v32 }
 0x957   : > { %13194 = vmatprep.subr.bf16.mxu1 %v15874_v13 }
 0x95a   : > { %13195 = vmatpush2.bf16.msra.mxu1 %v15872_v53 }
 0x95d   : > { %v12952_v28 = vpop.f32.mrf.mxu1  ;;  %13197 = vmatmul.mubr.bf16.vlgmr.msra.gmra.mxu1 %v17040_v54  ;;  %v13219_v54 = vsub.s32 %v13216_v10, %v16526_v7 }
 0x95e   : > { %v12953_v52 = vadd.f32 %v12952_v28, %v12912_v23 }
 0x95f   : > { %v12954_v47 = vpop.f32.mrf.mxu1  ;;  %v13220_v41 = vrot.slane %v13211_v33, %v13219_v54 }
 0x960   : > { %v12955_v25 = vadd.f32 %v12954_v47, %v12914_v16 }
 0x961   : > { %v12956_v58 = vpop.f32.mrf.mxu1 }
 0x963   : > { %v12957_v60 = vpop.f32.mrf.mxu1 }
 0x98d   : > { %v12993_v45 = vpop.f32.mrf.mxu0 }
 0x98e   : > { %v12994_v26 = vadd.f32 %v12993_v45, %v12953_v52 }
 0x98f   : > { %v12995_v18 = vpop.f32.mrf.mxu0 }
 0x990   : > { %v12996_v42 = vadd.f32 %v12995_v18, %v12955_v25 }
 0x991   : > { %v12997_v2 = vpop.f32.mrf.mxu0 }
 0x993   : > { %v12998_v5 = vpop.f32.mrf.mxu0 }
 0x99d   : > { %v13034_v3 = vpop.f32.mrf.mxu1 }
 0x99e   : > { %v13035_v39 = vadd.f32 %v13034_v3, %v12994_v26 }
 0x99f   : > { %v13036_v43 = vpop.f32.mrf.mxu1 }
 0x9a0   : > { %v13037_v49 = vadd.f32 %v13036_v43, %v12996_v42 }
 0x9a1   : > { %v13038_v46 = vpop.f32.mrf.mxu1 }
 0x9a2   : > { %v13212_v14 = vcombine.low %v13035_v39, %v13037_v49 }
 0x9a3   : > { %v13039_v19 = vpop.f32.mrf.mxu1 }
 0x9a4   : > { %v13227_v24 = vrot.slane %v13212_v14, %v13219_v54 }
 0x9a6   : > { %v13235_v22 = vcombine.low %v13220_v41, %v13227_v24 }
 0x9a8   : > { %v13242_v15 = vrot.slane %v13235_v22, %v13219_v54 }
 0x9cd   : > { %v13075_v21 = vpop.f32.mrf.mxu0 }
 0x9ce   : > { %v13076_v37 = vadd.f32 %v13075_v21, %v12702_v0 }
 0x9cf   : > { %v13077_v20 = vpop.f32.mrf.mxu0 }
 0x9d0   : > { %v13078_v33 = vadd.f32 %v13077_v20, %v12706_v55 }
 0x9d1   : > { %v13079_v30 = vpop.f32.mrf.mxu0 }
 0x9d3   : > { %v13080_v44 = vpop.f32.mrf.mxu0 }
 0x9dd   : > { %v13116_v8 = vpop.f32.mrf.mxu1 }
 0x9de   : > { %v13117_v38 = vadd.f32 %v13116_v8, %v13076_v37 }
 0x9df   : > { %v13118_v61 = vpop.f32.mrf.mxu1 }
 0x9e0   : > { %v13119_v17 = vadd.f32 %v13118_v61, %v13078_v33 }
 0x9e1   : > { %v13120_v31 = vpop.f32.mrf.mxu1 }
 0x9e3   : > { %v13121_v12 = vpop.f32.mrf.mxu1 }
 0xa0d   : > { %v13157_v7 = vpop.f32.mrf.mxu0 }
 0xa0e   : > { %v13158_v36 = vadd.f32 %v13157_v7, %v13117_v38 }
 0xa0f   : > { %v13159_v51 = vpop.f32.mrf.mxu0 }
 0xa10   : > { %v13160_v27 = vadd.f32 %v13159_v51, %v13119_v17 }
 0xa11   : > { %v13161_v56 = vpop.f32.mrf.mxu0 }
 0xa13   : > { %v13162_v40 = vpop.f32.mrf.mxu0 }
 0xa1d   : > { %v13198_v11 = vpop.f32.mrf.mxu1 }
 0xa1e   : > { %v13199_v4 = vadd.f32 %v13198_v11, %v13158_v36 }
 0xa1f   : > { %v13200_v1 = vpop.f32.mrf.mxu1 }
 0xa20   : > { %v13201_v57 = vadd.f32 %v13200_v1, %v13160_v27 }
 0xa21   : > { %v13202_v29 = vpop.f32.mrf.mxu1 }
 0xa22   : > { %v13213_v6 = vcombine.low %v13199_v4, %v13201_v57 }
 0xa23   : > { %v13203_v9 = vpop.f32.mrf.mxu1 }
 0xa24   : > { %v13234_v32 = vrot.slane %v13213_v6, %v13219_v54 }
 0xa26   : > { %v13249_v48 = vrot.slane %v13234_v32, %v13219_v54 }
 0xa28   : > { %v13250_v59 = vcombine.low %v13242_v15, %v13249_v48 }
 0xa2a   : > { %13256 = vst.msk [vmem:[%s399_s21] sm:$0x3f] %vm13254_vm3, %v13250_v59 }
 0xa2b   : > { %16148 = shalt.err (!%p16145_p8)
}
 0xa2c   : > { %s16149_s4 = scalar_lea.hbm %s13270_s3, 96  ;;  %s16153_s17 = scalar_lea.hbm %s17132_s7, 192 }
 0xa2d   : > { %p16150_p11 = scmp.ne.s32.totalorder %s13270_s3, %s16149_s4  ;;  %p16154_p13 = scmp.lt.s32.totalorder %s13270_s3, %s17132_s7 }
 0xa2e   : > { %p16155_p6 = scmp.lt.s32.totalorder %s16153_s17, %s16149_s4 }
 0xa2f   : > { %p16151_p1 = pnand %p16150_p11, %p17168_p3 }
 0xa30   : > { %p16156_p4 = por %p16155_p6, %p16154_p13 }
 0xa31   : > { %p16152_p9 = pneg %p16151_p1 }
 0xa33   : > { %p16157_p0 = pnand %p16156_p4, %p16152_p9 }
 0xa35   : > { %16160 = shalt.err (!%p16157_p0)
}
 0xa36   : > { %15208 = dma.vmem_to_hbm [thread:$0]  (%p17168_p3), %s13273_s10, 96, %s13270_s3, %s13258_s6  }
 0xa37 PF: > { %s13284_s14 = sand.u32 1, %s16203_s24   ;;  %p17169_p7 = scmp.ne.s32.totalorder %s17145_s8, 0 }
 0xa38   : > { %p17170_p2 = scmp.ge.s32.totalorder %s16215_s27, 2  ;;  %s13285_s18 = scalar_lea.sflag [#allocation5], %s13284_s14 }
 0xa3a   : > { %p15231_p10 = pnand %p17170_p2, %p17169_p7 }
 0xa3c   : > { %p15232_p12 = pneg %p15231_p10 }
 0xa3e   : > { %16198 = dma.done.wait (%p15232_p12), %s13285_s18, 96  }
 0xa3f   : > { %16200 = vsyncadd (%p15232_p12), %s13285_s18, 4294967200  ;;  %s17171_s12 = sld [smem:[#allocation21_spill]]  ;;  %p25_p5 = scmp.ge.s32.totalorder %s16363_s16, 4  }
 0xa40   : > { %s17172_s24 = smov %s16207_s25  ;;  %s17173_s25 = smov %s16211_s26 }
 0xa41   : > { %s17175_s27 = smov %s16363_s16  ;;  %27 = sbr.rel (!%p25_p5) target bundleno = 15 (0xf), region = 125 }
 0xa45   : > { %s17174_s26 = smov %s17171_s12 }
 0xa46   :  { %13290 = vsyncpa [#allocation4], 1 }
 0xa47   :  { %13292 = vsyncpa [#allocation4 + $0x1], 1 }
 0xa48   :  { %13293 = vsyncpa [#allocation7], 1 }
 0xa49   :  { %13295 = vsyncpa [#allocation7 + $0x1], 1 }
 0xa4a   :  { %13296 = vsyncpa [#allocation10], 1 }
 0xa4b   :  { %13297 = vsyncpa [#allocation13], 1 }
 0xa4c   :  { %13298 = vsyncpa [#allocation5], 1 }
 0xa4d   :  { %13300 = vsyncpa [#allocation5 + $0x1], 1 }

</bundles_post_ra>
